<compile_context>
chip_gen: v7x
topology: tpu7x:2x2x1
jax: 0.10.0
libtpu: 0.0.40
codegen_flags: <defaults>
</compile_context>

<pallas_src>
import functools
import math

import jax
import jax.numpy as jnp
from jax.experimental import pallas as pl
from jax.experimental.pallas import tpu as pltpu

_VMEM_LIMIT_BYTES = 64 * 1024 * 1024


def _round_up(v, m):
    return ((v + m - 1) // m) * m


# ---------------------------------------------------------------------------
# conv1: tiled pointwise matmul + bias + ReLU
# ---------------------------------------------------------------------------
def _mm_bias_relu_kernel(x_ref, w_ref, b_ref, o_ref):
    acc = jnp.dot(x_ref[...], w_ref[...], preferred_element_type=jnp.float32)
    o_ref[...] = jnp.maximum(acc + b_ref[...], 0.0).astype(o_ref.dtype)


def _pick_row_tile(m, target=256):
    if m <= target:
        return m
    for t in range(target, 7, -8):
        if m % t == 0:
            return t
    return m


def matmul_bias_relu(x, w, b):
    """ReLU(x @ w + b); M-tiled & pipelined, weights stay VMEM resident."""
    M, K = x.shape
    N = w.shape[1]
    tm = _pick_row_tile(M)
    cost = pl.CostEstimate(
        flops=2 * M * K * N,
        transcendentals=0,
        bytes_accessed=int(M * K * 2 + K * N * 2 + N * 4 + M * N * 2))
    return pl.pallas_call(
        _mm_bias_relu_kernel,
        out_shape=jax.ShapeDtypeStruct((M, N), jnp.bfloat16),
        grid=(M // tm,),
        in_specs=[
            pl.BlockSpec((tm, K), lambda i: (i, 0)),
            pl.BlockSpec((K, N), lambda i: (0, 0)),
            pl.BlockSpec((1, N), lambda i: (0, 0)),
        ],
        out_specs=pl.BlockSpec((tm, N), lambda i: (i, 0)),
        compiler_params=pltpu.CompilerParams(
            dimension_semantics=("parallel",),
            vmem_limit_bytes=_VMEM_LIMIT_BYTES),
        cost_estimate=cost,
    )(x, w, b.astype(jnp.float32).reshape(1, N))


# ---------------------------------------------------------------------------
# conv2/3/4: 3x3 stride-2 pad-1 conv + ReLU with in-kernel 9-tap gather
# ---------------------------------------------------------------------------
def _conv3x3s2_kernel(v0_ref, v1_ref, v2_ref, w_ref, b_ref, o_ref,
                      lhs_sc, acc_sc, *, Ho, Wo, WoP, C):
    """One image per grid step.  v{kw}_ref: (1, H+2, Wo, C) bf16 stride-2 column
    variant for tap column kw.  For each of the 9 taps the (Ho*WoP, C) patch is
    staged into VMEM (aligned row bands) and accumulated with a bf16 MXU matmul
    into an f32 accumulator."""
    v_refs = (v0_ref, v1_ref, v2_ref)
    lhs_sc[...] = jnp.zeros_like(lhs_sc)    # pad rows stay zero
    acc_sc[...] = jnp.zeros_like(acc_sc)
    for kh in range(3):
        for kw in range(3):
            vref = v_refs[kw]
            for i in range(Ho):
                lhs_sc[i * WoP:i * WoP + Wo, :] = (
                    vref[0, 2 * i + kh, :, :].astype(jnp.float32))
            tap = kh * 3 + kw
            acc_sc[...] += jnp.dot(
                lhs_sc[...].astype(jnp.bfloat16),
                w_ref[tap * C:(tap + 1) * C, :],
                preferred_element_type=jnp.float32)
    o_ref[0, :, :] = jnp.maximum(acc_sc[...] + b_ref[...], 0.0).astype(o_ref.dtype)


def conv3x3_s2_relu(h, H, W, w_hwio, b):
    """Conv2d(C, Cout, 3, stride=2, padding=1) + ReLU.

    h: (N, H*W, C) bf16 (NHWC-flattened).  Returns ((N, Ho*Wo, Cout) bf16, Ho, Wo).
    """
    N, _, C = h.shape
    Cout = w_hwio.shape[-1]
    Ho, Wo = H // 2, W // 2
    WoP = _round_up(Wo, 8)           # sublane-aligned row bands in the staging scratch
    Mp = Ho * WoP

    x = h.reshape(N, H, W, C)
    xp = jnp.pad(x, ((0, 0), (1, 1), (1, 1), (0, 0)))
    # One stride-2 "column variant" per kw tap (~1.5x activation bytes total)
    # instead of an HBM-materialised 9x im2col.
    variants = [xp[:, :, kw:kw + 2 * Wo - 1:2, :] for kw in range(3)]
    w2d = w_hwio.reshape(9 * C, Cout).astype(jnp.bfloat16)
    b2d = b.astype(jnp.float32).reshape(1, Cout)

    cost = pl.CostEstimate(
        flops=2 * N * Mp * 9 * C * Cout,
        transcendentals=0,
        bytes_accessed=int((3 * N * (H + 2) * Wo * C + 9 * C * Cout
                            + N * Mp * Cout) * 2 + Cout * 4))
    kern = functools.partial(_conv3x3s2_kernel, Ho=Ho, Wo=Wo, WoP=WoP, C=C)
    out = pl.pallas_call(
        kern,
        out_shape=jax.ShapeDtypeStruct((N, Mp, Cout), jnp.bfloat16),
        grid=(N,),
        in_specs=[
            pl.BlockSpec((1, H + 2, Wo, C), lambda n: (n, 0, 0, 0)),
            pl.BlockSpec((1, H + 2, Wo, C), lambda n: (n, 0, 0, 0)),
            pl.BlockSpec((1, H + 2, Wo, C), lambda n: (n, 0, 0, 0)),
            pl.BlockSpec((9 * C, Cout), lambda n: (0, 0)),
            pl.BlockSpec((1, Cout), lambda n: (0, 0)),
        ],
        out_specs=pl.BlockSpec((1, Mp, Cout), lambda n: (n, 0, 0)),
        scratch_shapes=[
            pltpu.VMEM((Mp, C), jnp.float32),     # staged tap patch
            pltpu.VMEM((Mp, Cout), jnp.float32),  # f32 accumulator
        ],
        compiler_params=pltpu.CompilerParams(
            dimension_semantics=("parallel",),
            vmem_limit_bytes=_VMEM_LIMIT_BYTES),
        cost_estimate=cost,
    )(variants[0].astype(jnp.bfloat16),
      variants[1].astype(jnp.bfloat16),
      variants[2].astype(jnp.bfloat16),
      w2d, b2d)
    if WoP != Wo:
        out = out.reshape(N, Ho, WoP, Cout)[:, :, :Wo, :].reshape(N, Ho * Wo, Cout)
    return out, Ho, Wo


# ---------------------------------------------------------------------------
# Fused mu/logsd Linear heads + reparameterisation
# ---------------------------------------------------------------------------
def _vae_head_kernel(x_ref, w_ref, b_ref, eps_ref, z_ref, ls_ref, mu_ref, *, zdim):
    y = jnp.dot(x_ref[...], w_ref[...], preferred_element_type=jnp.float32)
    y = y + b_ref[...]
    mu = y[:, :zdim]
    ls = y[:, zdim:]
    z = eps_ref[...] * jnp.exp(ls) + mu          # f32 reparameterisation
    z_ref[...] = z.astype(z_ref.dtype)
    ls_ref[...] = ls.astype(ls_ref.dtype)
    mu_ref[...] = mu.astype(mu_ref.dtype)


def vae_head(feat, w_cat, b_cat, eps, zdim):
    B, F = feat.shape
    full2 = lambda s: pl.BlockSpec(s, lambda i: (0, 0))
    cost = pl.CostEstimate(
        flops=2 * B * F * 2 * zdim,
        transcendentals=B * zdim,
        bytes_accessed=int(B * F * 2 + F * 2 * zdim * 2 + 4 * B * zdim * 4))
    return pl.pallas_call(
        functools.partial(_vae_head_kernel, zdim=zdim),
        out_shape=(jax.ShapeDtypeStruct((B, zdim), jnp.float32),
                   jax.ShapeDtypeStruct((B, zdim), jnp.float32),
                   jax.ShapeDtypeStruct((B, zdim), jnp.float32)),
        grid=(1,),
        in_specs=[full2((B, F)), full2((F, 2 * zdim)), full2((1, 2 * zdim)),
                  full2((B, zdim))],
        out_specs=(full2((B, zdim)), full2((B, zdim)), full2((B, zdim))),
        compiler_params=pltpu.CompilerParams(
            dimension_semantics=("arbitrary",),
            vmem_limit_bytes=_VMEM_LIMIT_BYTES),
        cost_estimate=cost,
    )(feat, w_cat, b_cat, eps)


# ---------------------------------------------------------------------------
# Parameters (PyTorch-default-like uniform(-1/sqrt(fan_in), +1/sqrt(fan_in)))
# ---------------------------------------------------------------------------
def _uniform(key, shape, bound):
    return jax.random.uniform(key, shape, jnp.float32, -bound, bound)


def init_params(key, zdim, channel_in, img_height):
    final_dim = (img_height // 8) ** 2
    feat = final_dim * 256
    ks = jax.random.split(key, 12)

    def conv_p(kw_key, kb_key, ksize, cin, cout):
        bound = 1.0 / math.sqrt(cin * ksize * ksize)
        w = _uniform(kw_key, (ksize, ksize, cin, cout), bound)   # HWIO
        b = _uniform(kb_key, (cout,), bound)
        return w, b

    def lin_p(kw_key, kb_key, fin, fout):
        bound = 1.0 / math.sqrt(fin)
        w = _uniform(kw_key, (fin, fout), bound)   # (in, out): y = x @ w + b
        b = _uniform(kb_key, (fout,), bound)
        return w, b

    return {
        "conv1": conv_p(ks[0], ks[1], 1, channel_in, 32),
        "conv2": conv_p(ks[2], ks[3], 3, 32, 64),
        "conv3": conv_p(ks[4], ks[5], 3, 64, 128),
        "conv4": conv_p(ks[6], ks[7], 3, 128, 256),
        "mu": lin_p(ks[8], ks[9], feat, zdim),
        "logsd": lin_p(ks[10], ks[11], feat, zdim),
    }


# ---------------------------------------------------------------------------
# Forward pass (mirrors Encoder.forward)
# ---------------------------------------------------------------------------
def encoder_forward(params, x_nchw, eps):
    N, C_in, H, W = x_nchw.shape
    x = jnp.transpose(x_nchw, (0, 2, 3, 1)).astype(jnp.bfloat16)   # NHWC, bf16

    # Conv2d(channel_in, 32, 1) + ReLU  ==  M-tiled pointwise matmul.
    # TODO(synk): conv1 could be folded into the conv2 kernel (border-masked)
    # to remove one HBM round trip of the largest activation.
    w1, b1 = params["conv1"]
    h = matmul_bias_relu(x.reshape(N * H * W, C_in),
                         w1.reshape(C_in, 32).astype(jnp.bfloat16), b1)
    h = h.reshape(N, H * W, 32)

    # Three Conv2d(., ., 3, stride=2, pad=1) + ReLU layers (fused im2col).
    Hc, Wc = H, W
    for name in ("conv2", "conv3", "conv4"):
        w, b = params[name]
        h, Hc, Wc = conv3x3_s2_relu(h, Hc, Wc, w, b)

    # Flatten: keep the NHWC order and absorb the NCHW flatten into the head
    # weights by a one-time row permutation (no runtime feature-map transpose).
    S, Cf = h.shape[1], h.shape[2]
    feat = h.reshape(N, S * Cf)

    w_mu, b_mu = params["mu"]
    w_ls, b_ls = params["logsd"]
    # NHWC-flat index s*Cf + c  <-  NCHW-flat index c*S + s
    perm = (jnp.arange(Cf)[None, :] * S + jnp.arange(S)[:, None]).reshape(-1)
    w_cat = jnp.concatenate([w_mu[perm, :], w_ls[perm, :]], axis=1).astype(jnp.bfloat16)
    b_cat = jnp.concatenate([b_mu, b_ls]).astype(jnp.float32).reshape(1, -1)
    # (in deployment the permutation/concat would be folded into parameter init)

    zdim = w_mu.shape[1]
    z, logsd, mu = vae_head(feat, w_cat, b_cat, eps.astype(jnp.float32), zdim)
    return z, logsd, mu


# ---------------------------------------------------------------------------
if __name__ == "__main__":
    zdim, channel_in, img_height, batch = 32, 4, 16, 2

    key = jax.random.PRNGKey(0)
    pkey, xkey, ekey = jax.random.split(key, 3)

    params = init_params(pkey, zdim, channel_in, img_height)
    x = jax.random.normal(xkey, (batch, channel_in, img_height, img_height), jnp.float32)
    # TODO(synk): torch.randn eps is an in-graph RNG draw; here it is an explicit input.
    eps = jax.random.normal(ekey, (batch, zdim), jnp.float32)

    fwd = jax.jit(encoder_forward)
    z, logsd, mu = fwd(params, x, eps)
    jax.block_until_ready((z, logsd, mu))

    assert z.shape == (batch, zdim)
    assert logsd.shape == (batch, zdim)
    assert mu.shape == (batch, zdim)
    assert jnp.all(jnp.isfinite(z)) and jnp.all(jnp.isfinite(logsd)) and jnp.all(jnp.isfinite(mu))
    print("KERNEL_OK")
</pallas_src>

<mosaic_0001>
module attributes {stable_mosaic.version = 11 : i64} {
  func.func @_mm_bias_relu_kernel(%arg0: i32, %arg1: memref<256x4xbf16, #tpu.memory_space<vmem>>, %arg2: memref<4x32xbf16, #tpu.memory_space<vmem>>, %arg3: memref<1x32xf32, #tpu.memory_space<vmem>>, %arg4: memref<256x32xbf16, #tpu.memory_space<vmem>>) attributes {dimension_semantics = [#tpu.dimension_semantics<parallel>], iteration_bounds = array<i64: 2>, scalar_prefetch = 0 : i64, scratch_operands = 0 : i64, tpu.core_type = #tpu.core_type<tc>, window_params = [{transform_indices = @transform_0, window_bounds = array<i64: 256, 4>}, {pipeline_mode = #tpu.pipeline_mode<synchronous>, transform_indices = @transform_1, window_bounds = array<i64: 4, 32>}, {pipeline_mode = #tpu.pipeline_mode<synchronous>, transform_indices = @transform_2, window_bounds = array<i64: 1, 32>}, {transform_indices = @transform_3, window_bounds = array<i64: 256, 32>}]} {
    %c0 = arith.constant 0 : index
    %c0_0 = arith.constant 0 : index
    %0 = vector.load %arg1[%c0, %c0_0] : memref<256x4xbf16, #tpu.memory_space<vmem>>, vector<256x4xbf16>
    %c0_1 = arith.constant 0 : index
    %c0_2 = arith.constant 0 : index
    %1 = vector.load %arg2[%c0_1, %c0_2] : memref<4x32xbf16, #tpu.memory_space<vmem>>, vector<4x32xbf16>
    %cst = arith.constant dense<0.000000e+00> : vector<256x32xf32>
    %2 = tpu.matmul %0, %1, %cst {dimension_numbers = #tpu.dot_dimension_numbers<[1], [0], [0], [1], [0, 0, 1, 1], [], []>} : vector<256x4xbf16>, vector<4x32xbf16>, vector<256x32xf32> -> vector<256x32xf32>
    %c0_3 = arith.constant 0 : index
    %c0_4 = arith.constant 0 : index
    %3 = vector.load %arg3[%c0_3, %c0_4] : memref<1x32xf32, #tpu.memory_space<vmem>>, vector<1x32xf32>
    %4 = vector.broadcast %3 : vector<1x32xf32> to vector<256x32xf32>
    %5 = arith.addf %2, %4 : vector<256x32xf32>
    %cst_5 = arith.constant 0.000000e+00 : f32
    %6 = vector.broadcast %cst_5 : f32 to vector<256x32xf32>
    %7 = arith.maximumf %5, %6 : vector<256x32xf32>
    %8 = arith.truncf %7 : vector<256x32xf32> to vector<256x32xbf16>
    %c0_6 = arith.constant 0 : index
    %c0_7 = arith.constant 0 : index
    %9 = vector.load %arg4[%c0_6, %c0_7] : memref<256x32xbf16, #tpu.memory_space<vmem>>, vector<256x32xbf16>
    tpu.vector_store %arg4[%c0_6, %c0_7], %8 {strides = array<i32>} : memref<256x32xbf16, #tpu.memory_space<vmem>>, vector<256x32xbf16>,
    return
  }
  func.func @transform_0(%arg0: i32) -> (i32, i32) {
    %c0_i32 = arith.constant 0 : i32
    %c0_i32_0 = arith.constant 0 : i32
    return %arg0, %c0_i32 : i32, i32
  }
  func.func @transform_1(%arg0: i32) -> (i32, i32) {
    %c0_i32 = arith.constant 0 : i32
    %c0_i32_0 = arith.constant 0 : i32
    %c0_i32_1 = arith.constant 0 : i32
    return %c0_i32, %c0_i32_0 : i32, i32
  }
  func.func @transform_2(%arg0: i32) -> (i32, i32) {
    %c0_i32 = arith.constant 0 : i32
    %c0_i32_0 = arith.constant 0 : i32
    %c0_i32_1 = arith.constant 0 : i32
    return %c0_i32, %c0_i32_0 : i32, i32
  }
  func.func @transform_3(%arg0: i32) -> (i32, i32) {
    %c0_i32 = arith.constant 0 : i32
    %c0_i32_0 = arith.constant 0 : i32
    return %arg0, %c0_i32 : i32, i32
  }
}

module attributes {stable_mosaic.version = 11 : i64} {
  func.func @_conv3x3s2_kernel(%arg0: i32, %arg1: memref<1x18x8x32xbf16, #tpu.memory_space<vmem>>, %arg2: memref<1x18x8x32xbf16, #tpu.memory_space<vmem>>, %arg3: memref<1x18x8x32xbf16, #tpu.memory_space<vmem>>, %arg4: memref<288x64xbf16, #tpu.memory_space<vmem>>, %arg5: memref<1x64xf32, #tpu.memory_space<vmem>>, %arg6: memref<1x64x64xbf16, #tpu.memory_space<vmem>>, %arg7: memref<64x32xf32, #tpu.memory_space<vmem>>, %arg8: memref<64x64xf32, #tpu.memory_space<vmem>>) attributes {dimension_semantics = [#tpu.dimension_semantics<parallel>], iteration_bounds = array<i64: 2>, scalar_prefetch = 0 : i64, scratch_operands = 2 : i64, tpu.core_type = #tpu.core_type<tc>, window_params = [{transform_indices = @transform_0, window_bounds = array<i64: 1, 18, 8, 32>}, {transform_indices = @transform_1, window_bounds = array<i64: 1, 18, 8, 32>}, {transform_indices = @transform_2, window_bounds = array<i64: 1, 18, 8, 32>}, {pipeline_mode = #tpu.pipeline_mode<synchronous>, transform_indices = @transform_3, window_bounds = array<i64: 288, 64>}, {pipeline_mode = #tpu.pipeline_mode<synchronous>, transform_indices = @transform_4, window_bounds = array<i64: 1, 64>}, {transform_indices = @transform_5, window_bounds = array<i64: 1, 64, 64>}]} {
    %cst = arith.constant 0.000000e+00 : f32
    %0 = vector.broadcast %cst : f32 to vector<64x32xf32>
    %c0 = arith.constant 0 : index
    %c0_0 = arith.constant 0 : index
    %1 = vector.load %arg7[%c0, %c0_0] : memref<64x32xf32, #tpu.memory_space<vmem>>, vector<64x32xf32>
    tpu.vector_store %arg7[%c0, %c0_0], %0 {strides = array<i32>} : memref<64x32xf32, #tpu.memory_space<vmem>>, vector<64x32xf32>,
    %cst_1 = arith.constant 0.000000e+00 : f32
    %2 = vector.broadcast %cst_1 : f32 to vector<64x64xf32>
    %c0_2 = arith.constant 0 : index
    %c0_3 = arith.constant 0 : index
    %3 = vector.load %arg8[%c0_2, %c0_3] : memref<64x64xf32, #tpu.memory_space<vmem>>, vector<64x64xf32>
    tpu.vector_store %arg8[%c0_2, %c0_3], %2 {strides = array<i32>} : memref<64x64xf32, #tpu.memory_space<vmem>>, vector<64x64xf32>,
    %c0_4 = arith.constant 0 : index
    %c0_5 = arith.constant 0 : index
    %c0_6 = arith.constant 0 : index
    %c0_7 = arith.constant 0 : index
    %4 = vector.load %arg1[%c0_4, %c0_5, %c0_6, %c0_7] : memref<1x18x8x32xbf16, #tpu.memory_space<vmem>>, vector<1x1x8x32xbf16>
    %5 = vector.shape_cast %4 : vector<1x1x8x32xbf16> to vector<8x32xbf16>
    %6 = arith.extf %5 : vector<8x32xbf16> to vector<8x32xf32>
    %c0_8 = arith.constant 0 : index
    %c0_9 = arith.constant 0 : index
    %7 = vector.load %arg7[%c0_8, %c0_9] : memref<64x32xf32, #tpu.memory_space<vmem>>, vector<8x32xf32>
    tpu.vector_store %arg7[%c0_8, %c0_9], %6 {strides = array<i32>} : memref<64x32xf32, #tpu.memory_space<vmem>>, vector<8x32xf32>,
    %c0_10 = arith.constant 0 : index
    %c2 = arith.constant 2 : index
    %c0_11 = arith.constant 0 : index
    %c0_12 = arith.constant 0 : index
    %8 = vector.load %arg1[%c0_10, %c2, %c0_11, %c0_12] : memref<1x18x8x32xbf16, #tpu.memory_space<vmem>>, vector<1x1x8x32xbf16>
    %9 = vector.shape_cast %8 : vector<1x1x8x32xbf16> to vector<8x32xbf16>
    %10 = arith.extf %9 : vector<8x32xbf16> to vector<8x32xf32>
    %c8 = arith.constant 8 : index
    %c0_13 = arith.constant 0 : index
    %11 = vector.load %arg7[%c8, %c0_13] : memref<64x32xf32, #tpu.memory_space<vmem>>, vector<8x32xf32>
    tpu.vector_store %arg7[%c8, %c0_13], %10 {strides = array<i32>} : memref<64x32xf32, #tpu.memory_space<vmem>>, vector<8x32xf32>,
    %c0_14 = arith.constant 0 : index
    %c4 = arith.constant 4 : index
    %c0_15 = arith.constant 0 : index
    %c0_16 = arith.constant 0 : index
    %12 = vector.load %arg1[%c0_14, %c4, %c0_15, %c0_16] : memref<1x18x8x32xbf16, #tpu.memory_space<vmem>>, vector<1x1x8x32xbf16>
    %13 = vector.shape_cast %12 : vector<1x1x8x32xbf16> to vector<8x32xbf16>
    %14 = arith.extf %13 : vector<8x32xbf16> to vector<8x32xf32>
    %c16 = arith.constant 16 : index
    %c0_17 = arith.constant 0 : index
    %15 = vector.load %arg7[%c16, %c0_17] : memref<64x32xf32, #tpu.memory_space<vmem>>, vector<8x32xf32>
    tpu.vector_store %arg7[%c16, %c0_17], %14 {strides = array<i32>} : memref<64x32xf32, #tpu.memory_space<vmem>>, vector<8x32xf32>,
    %c0_18 = arith.constant 0 : index
    %c6 = arith.constant 6 : index
    %c0_19 = arith.constant 0 : index
    %c0_20 = arith.constant 0 : index
    %16 = vector.load %arg1[%c0_18, %c6, %c0_19, %c0_20] : memref<1x18x8x32xbf16, #tpu.memory_space<vmem>>, vector<1x1x8x32xbf16>
    %17 = vector.shape_cast %16 : vector<1x1x8x32xbf16> to vector<8x32xbf16>
    %18 = arith.extf %17 : vector<8x32xbf16> to vector<8x32xf32>
    %c24 = arith.constant 24 : index
    %c0_21 = arith.constant 0 : index
    %19 = vector.load %arg7[%c24, %c0_21] : memref<64x32xf32, #tpu.memory_space<vmem>>, vector<8x32xf32>
    tpu.vector_store %arg7[%c24, %c0_21], %18 {strides = array<i32>} : memref<64x32xf32, #tpu.memory_space<vmem>>, vector<8x32xf32>,
    %c0_22 = arith.constant 0 : index
    %c8_23 = arith.constant 8 : index
    %c0_24 = arith.constant 0 : index
    %c0_25 = arith.constant 0 : index
    %20 = vector.load %arg1[%c0_22, %c8_23, %c0_24, %c0_25] : memref<1x18x8x32xbf16, #tpu.memory_space<vmem>>, vector<1x1x8x32xbf16>
    %21 = vector.shape_cast %20 : vector<1x1x8x32xbf16> to vector<8x32xbf16>
    %22 = arith.extf %21 : vector<8x32xbf16> to vector<8x32xf32>
    %c32 = arith.constant 32 : index
    %c0_26 = arith.constant 0 : index
    %23 = vector.load %arg7[%c32, %c0_26] : memref<64x32xf32, #tpu.memory_space<vmem>>, vector<8x32xf32>
    tpu.vector_store %arg7[%c32, %c0_26], %22 {strides = array<i32>} : memref<64x32xf32, #tpu.memory_space<vmem>>, vector<8x32xf32>,
    %c0_27 = arith.constant 0 : index
    %c10 = arith.constant 10 : index
    %c0_28 = arith.constant 0 : index
    %c0_29 = arith.constant 0 : index
    %24 = vector.load %arg1[%c0_27, %c10, %c0_28, %c0_29] : memref<1x18x8x32xbf16, #tpu.memory_space<vmem>>, vector<1x1x8x32xbf16>
    %25 = vector.shape_cast %24 : vector<1x1x8x32xbf16> to vector<8x32xbf16>
    %26 = arith.extf %25 : vector<8x32xbf16> to vector<8x32xf32>
    %c40 = arith.constant 40 : index
    %c0_30 = arith.constant 0 : index
    %27 = vector.load %arg7[%c40, %c0_30] : memref<64x32xf32, #tpu.memory_space<vmem>>, vector<8x32xf32>
    tpu.vector_store %arg7[%c40, %c0_30], %26 {strides = array<i32>} : memref<64x32xf32, #tpu.memory_space<vmem>>, vector<8x32xf32>,
    %c0_31 = arith.constant 0 : index
    %c12 = arith.constant 12 : index
    %c0_32 = arith.constant 0 : index
    %c0_33 = arith.constant 0 : index
    %28 = vector.load %arg1[%c0_31, %c12, %c0_32, %c0_33] : memref<1x18x8x32xbf16, #tpu.memory_space<vmem>>, vector<1x1x8x32xbf16>
    %29 = vector.shape_cast %28 : vector<1x1x8x32xbf16> to vector<8x32xbf16>
    %30 = arith.extf %29 : vector<8x32xbf16> to vector<8x32xf32>
    %c48 = arith.constant 48 : index
    %c0_34 = arith.constant 0 : index
    %31 = vector.load %arg7[%c48, %c0_34] : memref<64x32xf32, #tpu.memory_space<vmem>>, vector<8x32xf32>
    tpu.vector_store %arg7[%c48, %c0_34], %30 {strides = array<i32>} : memref<64x32xf32, #tpu.memory_space<vmem>>, vector<8x32xf32>,
    %c0_35 = arith.constant 0 : index
    %c14 = arith.constant 14 : index
    %c0_36 = arith.constant 0 : index
    %c0_37 = arith.constant 0 : index
    %32 = vector.load %arg1[%c0_35, %c14, %c0_36, %c0_37] : memref<1x18x8x32xbf16, #tpu.memory_space<vmem>>, vector<1x1x8x32xbf16>
    %33 = vector.shape_cast %32 : vector<1x1x8x32xbf16> to vector<8x32xbf16>
    %34 = arith.extf %33 : vector<8x32xbf16> to vector<8x32xf32>
    %c56 = arith.constant 56 : index
    %c0_38 = arith.constant 0 : index
    %35 = vector.load %arg7[%c56, %c0_38] : memref<64x32xf32, #tpu.memory_space<vmem>>, vector<8x32xf32>
    tpu.vector_store %arg7[%c56, %c0_38], %34 {strides = array<i32>} : memref<64x32xf32, #tpu.memory_space<vmem>>, vector<8x32xf32>,
    %c0_39 = arith.constant 0 : index
    %c0_40 = arith.constant 0 : index
    %36 = vector.load %arg8[%c0_39, %c0_40] : memref<64x64xf32, #tpu.memory_space<vmem>>, vector<64x64xf32>
    %c0_41 = arith.constant 0 : index
    %c0_42 = arith.constant 0 : index
    %37 = vector.load %arg7[%c0_41, %c0_42] : memref<64x32xf32, #tpu.memory_space<vmem>>, vector<64x32xf32>
    %38 = arith.truncf %37 : vector<64x32xf32> to vector<64x32xbf16>
    %c0_43 = arith.constant 0 : index
    %c0_44 = arith.constant 0 : index
    %39 = vector.load %arg4[%c0_43, %c0_44] : memref<288x64xbf16, #tpu.memory_space<vmem>>, vector<32x64xbf16>
    %cst_45 = arith.constant dense<0.000000e+00> : vector<64x64xf32>
    %40 = tpu.matmul %38, %39, %cst_45 {dimension_numbers = #tpu.dot_dimension_numbers<[1], [0], [0], [1], [0, 0, 1, 1], [], []>} : vector<64x32xbf16>, vector<32x64xbf16>, vector<64x64xf32> -> vector<64x64xf32>
    %41 = arith.addf %36, %40 : vector<64x64xf32>
    %c0_46 = arith.constant 0 : index
    %c0_47 = arith.constant 0 : index
    %42 = vector.load %arg8[%c0_46, %c0_47] : memref<64x64xf32, #tpu.memory_space<vmem>>, vector<64x64xf32>
    tpu.vector_store %arg8[%c0_46, %c0_47], %41 {strides = array<i32>} : memref<64x64xf32, #tpu.memory_space<vmem>>, vector<64x64xf32>,
    %c0_48 = arith.constant 0 : index
    %c0_49 = arith.constant 0 : index
    %c0_50 = arith.constant 0 : index
    %c0_51 = arith.constant 0 : index
    %43 = vector.load %arg2[%c0_48, %c0_49, %c0_50, %c0_51] : memref<1x18x8x32xbf16, #tpu.memory_space<vmem>>, vector<1x1x8x32xbf16>
    %44 = vector.shape_cast %43 : vector<1x1x8x32xbf16> to vector<8x32xbf16>
    %45 = arith.extf %44 : vector<8x32xbf16> to vector<8x32xf32>
    %c0_52 = arith.constant 0 : index
    %c0_53 = arith.constant 0 : index
    %46 = vector.load %arg7[%c0_52, %c0_53] : memref<64x32xf32, #tpu.memory_space<vmem>>, vector<8x32xf32>
    tpu.vector_store %arg7[%c0_52, %c0_53], %45 {strides = array<i32>} : memref<64x32xf32, #tpu.memory_space<vmem>>, vector<8x32xf32>,
    %c0_54 = arith.constant 0 : index
    %c2_55 = arith.constant 2 : index
    %c0_56 = arith.constant 0 : index
    %c0_57 = arith.constant 0 : index
    %47 = vector.load %arg2[%c0_54, %c2_55, %c0_56, %c0_57] : memref<1x18x8x32xbf16, #tpu.memory_space<vmem>>, vector<1x1x8x32xbf16>
    %48 = vector.shape_cast %47 : vector<1x1x8x32xbf16> to vector<8x32xbf16>
    %49 = arith.extf %48 : vector<8x32xbf16> to vector<8x32xf32>
    %c8_58 = arith.constant 8 : index
    %c0_59 = arith.constant 0 : index
    %50 = vector.load %arg7[%c8_58, %c0_59] : memref<64x32xf32, #tpu.memory_space<vmem>>, vector<8x32xf32>
    tpu.vector_store %arg7[%c8_58, %c0_59], %49 {strides = array<i32>} : memref<64x32xf32, #tpu.memory_space<vmem>>, vector<8x32xf32>,
    %c0_60 = arith.constant 0 : index
    %c4_61 = arith.constant 4 : index
    %c0_62 = arith.constant 0 : index
    %c0_63 = arith.constant 0 : index
    %51 = vector.load %arg2[%c0_60, %c4_61, %c0_62, %c0_63] : memref<1x18x8x32xbf16, #tpu.memory_space<vmem>>, vector<1x1x8x32xbf16>
    %52 = vector.shape_cast %51 : vector<1x1x8x32xbf16> to vector<8x32xbf16>
    %53 = arith.extf %52 : vector<8x32xbf16> to vector<8x32xf32>
    %c16_64 = arith.constant 16 : index
    %c0_65 = arith.constant 0 : index
    %54 = vector.load %arg7[%c16_64, %c0_65] : memref<64x32xf32, #tpu.memory_space<vmem>>, vector<8x32xf32>
    tpu.vector_store %arg7[%c16_64, %c0_65], %53 {strides = array<i32>} : memref<64x32xf32, #tpu.memory_space<vmem>>, vector<8x32xf32>,
    %c0_66 = arith.constant 0 : index
    %c6_67 = arith.constant 6 : index
    %c0_68 = arith.constant 0 : index
    %c0_69 = arith.constant 0 : index
    %55 = vector.load %arg2[%c0_66, %c6_67, %c0_68, %c0_69] : memref<1x18x8x32xbf16, #tpu.memory_space<vmem>>, vector<1x1x8x32xbf16>
    %56 = vector.shape_cast %55 : vector<1x1x8x32xbf16> to vector<8x32xbf16>
    %57 = arith.extf %56 : vector<8x32xbf16> to vector<8x32xf32>
    %c24_70 = arith.constant 24 : index
    %c0_71 = arith.constant 0 : index
    %58 = vector.load %arg7[%c24_70, %c0_71] : memref<64x32xf32, #tpu.memory_space<vmem>>, vector<8x32xf32>
    tpu.vector_store %arg7[%c24_70, %c0_71], %57 {strides = array<i32>} : memref<64x32xf32, #tpu.memory_space<vmem>>, vector<8x32xf32>,
    %c0_72 = arith.constant 0 : index
    %c8_73 = arith.constant 8 : index
    %c0_74 = arith.constant 0 : index
    %c0_75 = arith.constant 0 : index
    %59 = vector.load %arg2[%c0_72, %c8_73, %c0_74, %c0_75] : memref<1x18x8x32xbf16, #tpu.memory_space<vmem>>, vector<1x1x8x32xbf16>
    %60 = vector.shape_cast %59 : vector<1x1x8x32xbf16> to vector<8x32xbf16>
    %61 = arith.extf %60 : vector<8x32xbf16> to vector<8x32xf32>
    %c32_76 = arith.constant 32 : index
    %c0_77 = arith.constant 0 : index
    %62 = vector.load %arg7[%c32_76, %c0_77] : memref<64x32xf32, #tpu.memory_space<vmem>>, vector<8x32xf32>
    tpu.vector_store %arg7[%c32_76, %c0_77], %61 {strides = array<i32>} : memref<64x32xf32, #tpu.memory_space<vmem>>, vector<8x32xf32>,
    %c0_78 = arith.constant 0 : index
    %c10_79 = arith.constant 10 : index
    %c0_80 = arith.constant 0 : index
    %c0_81 = arith.constant 0 : index
    %63 = vector.load %arg2[%c0_78, %c10_79, %c0_80, %c0_81] : memref<1x18x8x32xbf16, #tpu.memory_space<vmem>>, vector<1x1x8x32xbf16>
    %64 = vector.shape_cast %63 : vector<1x1x8x32xbf16> to vector<8x32xbf16>
    %65 = arith.extf %64 : vector<8x32xbf16> to vector<8x32xf32>
    %c40_82 = arith.constant 40 : index
    %c0_83 = arith.constant 0 : index
    %66 = vector.load %arg7[%c40_82, %c0_83] : memref<64x32xf32, #tpu.memory_space<vmem>>, vector<8x32xf32>
    tpu.vector_store %arg7[%c40_82, %c0_83], %65 {strides = array<i32>} : memref<64x32xf32, #tpu.memory_space<vmem>>, vector<8x32xf32>,
    %c0_84 = arith.constant 0 : index
    %c12_85 = arith.constant 12 : index
    %c0_86 = arith.constant 0 : index
    %c0_87 = arith.constant 0 : index
    %67 = vector.load %arg2[%c0_84, %c12_85, %c0_86, %c0_87] : memref<1x18x8x32xbf16, #tpu.memory_space<vmem>>, vector<1x1x8x32xbf16>
    %68 = vector.shape_cast %67 : vector<1x1x8x32xbf16> to vector<8x32xbf16>
    %69 = arith.extf %68 : vector<8x32xbf16> to vector<8x32xf32>
    %c48_88 = arith.constant 48 : index
    %c0_89 = arith.constant 0 : index
    %70 = vector.load %arg7[%c48_88, %c0_89] : memref<64x32xf32, #tpu.memory_space<vmem>>, vector<8x32xf32>
    tpu.vector_store %arg7[%c48_88, %c0_89], %69 {strides = array<i32>} : memref<64x32xf32, #tpu.memory_space<vmem>>, vector<8x32xf32>,
    %c0_90 = arith.constant 0 : index
    %c14_91 = arith.constant 14 : index
    %c0_92 = arith.constant 0 : index
    %c0_93 = arith.constant 0 : index
    %71 = vector.load %arg2[%c0_90, %c14_91, %c0_92, %c0_93] : memref<1x18x8x32xbf16, #tpu.memory_space<vmem>>, vector<1x1x8x32xbf16>
    %72 = vector.shape_cast %71 : vector<1x1x8x32xbf16> to vector<8x32xbf16>
    %73 = arith.extf %72 : vector<8x32xbf16> to vector<8x32xf32>
    %c56_94 = arith.constant 56 : index
    %c0_95 = arith.constant 0 : index
    %74 = vector.load %arg7[%c56_94, %c0_95] : memref<64x32xf32, #tpu.memory_space<vmem>>, vector<8x32xf32>
    tpu.vector_store %arg7[%c56_94, %c0_95], %73 {strides = array<i32>} : memref<64x32xf32, #tpu.memory_space<vmem>>, vector<8x32xf32>,
    %c0_96 = arith.constant 0 : index
    %c0_97 = arith.constant 0 : index
    %75 = vector.load %arg8[%c0_96, %c0_97] : memref<64x64xf32, #tpu.memory_space<vmem>>, vector<64x64xf32>
    %c0_98 = arith.constant 0 : index
    %c0_99 = arith.constant 0 : index
    %76 = vector.load %arg7[%c0_98, %c0_99] : memref<64x32xf32, #tpu.memory_space<vmem>>, vector<64x32xf32>
    %77 = arith.truncf %76 : vector<64x32xf32> to vector<64x32xbf16>
    %c32_100 = arith.constant 32 : index
    %c0_101 = arith.constant 0 : index
    %78 = vector.load %arg4[%c32_100, %c0_101] : memref<288x64xbf16, #tpu.memory_space<vmem>>, vector<32x64xbf16>
    %cst_102 = arith.constant dense<0.000000e+00> : vector<64x64xf32>
    %79 = tpu.matmul %77, %78, %cst_102 {dimension_numbers = #tpu.dot_dimension_numbers<[1], [0], [0], [1], [0, 0, 1, 1], [], []>} : vector<64x32xbf16>, vector<32x64xbf16>, vector<64x64xf32> -> vector<64x64xf32>
    %80 = arith.addf %75, %79 : vector<64x64xf32>
    %c0_103 = arith.constant 0 : index
    %c0_104 = arith.constant 0 : index
    %81 = vector.load %arg8[%c0_103, %c0_104] : memref<64x64xf32, #tpu.memory_space<vmem>>, vector<64x64xf32>
    tpu.vector_store %arg8[%c0_103, %c0_104], %80 {strides = array<i32>} : memref<64x64xf32, #tpu.memory_space<vmem>>, vector<64x64xf32>,
    %c0_105 = arith.constant 0 : index
    %c0_106 = arith.constant 0 : index
    %c0_107 = arith.constant 0 : index
    %c0_108 = arith.constant 0 : index
    %82 = vector.load %arg3[%c0_105, %c0_106, %c0_107, %c0_108] : memref<1x18x8x32xbf16, #tpu.memory_space<vmem>>, vector<1x1x8x32xbf16>
    %83 = vector.shape_cast %82 : vector<1x1x8x32xbf16> to vector<8x32xbf16>
    %84 = arith.extf %83 : vector<8x32xbf16> to vector<8x32xf32>
    %c0_109 = arith.constant 0 : index
    %c0_110 = arith.constant 0 : index
    %85 = vector.load %arg7[%c0_109, %c0_110] : memref<64x32xf32, #tpu.memory_space<vmem>>, vector<8x32xf32>
    tpu.vector_store %arg7[%c0_109, %c0_110], %84 {strides = array<i32>} : memref<64x32xf32, #tpu.memory_space<vmem>>, vector<8x32xf32>,
    %c0_111 = arith.constant 0 : index
    %c2_112 = arith.constant 2 : index
    %c0_113 = arith.constant 0 : index
    %c0_114 = arith.constant 0 : index
    %86 = vector.load %arg3[%c0_111, %c2_112, %c0_113, %c0_114] : memref<1x18x8x32xbf16, #tpu.memory_space<vmem>>, vector<1x1x8x32xbf16>
    %87 = vector.shape_cast %86 : vector<1x1x8x32xbf16> to vector<8x32xbf16>
    %88 = arith.extf %87 : vector<8x32xbf16> to vector<8x32xf32>
    %c8_115 = arith.constant 8 : index
    %c0_116 = arith.constant 0 : index
    %89 = vector.load %arg7[%c8_115, %c0_116] : memref<64x32xf32, #tpu.memory_space<vmem>>, vector<8x32xf32>
    tpu.vector_store %arg7[%c8_115, %c0_116], %88 {strides = array<i32>} : memref<64x32xf32, #tpu.memory_space<vmem>>, vector<8x32xf32>,
    %c0_117 = arith.constant 0 : index
    %c4_118 = arith.constant 4 : index
    %c0_119 = arith.constant 0 : index
    %c0_120 = arith.constant 0 : index
    %90 = vector.load %arg3[%c0_117, %c4_118, %c0_119, %c0_120] : memref<1x18x8x32xbf16, #tpu.memory_space<vmem>>, vector<1x1x8x32xbf16>
    %91 = vector.shape_cast %90 : vector<1x1x8x32xbf16> to vector<8x32xbf16>
    %92 = arith.extf %91 : vector<8x32xbf16> to vector<8x32xf32>
    %c16_121 = arith.constant 16 : index
    %c0_122 = arith.constant 0 : index
    %93 = vector.load %arg7[%c16_121, %c0_122] : memref<64x32xf32, #tpu.memory_space<vmem>>, vector<8x32xf32>
    tpu.vector_store %arg7[%c16_121, %c0_122], %92 {strides = array<i32>} : memref<64x32xf32, #tpu.memory_space<vmem>>, vector<8x32xf32>,
    %c0_123 = arith.constant 0 : index
    %c6_124 = arith.constant 6 : index
    %c0_125 = arith.constant 0 : index
    %c0_126 = arith.constant 0 : index
    %94 = vector.load %arg3[%c0_123, %c6_124, %c0_125, %c0_126] : memref<1x18x8x32xbf16, #tpu.memory_space<vmem>>, vector<1x1x8x32xbf16>
    %95 = vector.shape_cast %94 : vector<1x1x8x32xbf16> to vector<8x32xbf16>
    %96 = arith.extf %95 : vector<8x32xbf16> to vector<8x32xf32>
    %c24_127 = arith.constant 24 : index
    %c0_128 = arith.constant 0 : index
    %97 = vector.load %arg7[%c24_127, %c0_128] : memref<64x32xf32, #tpu.memory_space<vmem>>, vector<8x32xf32>
    tpu.vector_store %arg7[%c24_127, %c0_128], %96 {strides = array<i32>} : memref<64x32xf32, #tpu.memory_space<vmem>>, vector<8x32xf32>,
    %c0_129 = arith.constant 0 : index
    %c8_130 = arith.constant 8 : index
    %c0_131 = arith.constant 0 : index
    %c0_132 = arith.constant 0 : index
    %98 = vector.load %arg3[%c0_129, %c8_130, %c0_131, %c0_132] : memref<1x18x8x32xbf16, #tpu.memory_space<vmem>>, vector<1x1x8x32xbf16>
    %99 = vector.shape_cast %98 : vector<1x1x8x32xbf16> to vector<8x32xbf16>
    %100 = arith.extf %99 : vector<8x32xbf16> to vector<8x32xf32>
    %c32_133 = arith.constant 32 : index
    %c0_134 = arith.constant 0 : index
    %101 = vector.load %arg7[%c32_133, %c0_134] : memref<64x32xf32, #tpu.memory_space<vmem>>, vector<8x32xf32>
    tpu.vector_store %arg7[%c32_133, %c0_134], %100 {strides = array<i32>} : memref<64x32xf32, #tpu.memory_space<vmem>>, vector<8x32xf32>,
    %c0_135 = arith.constant 0 : index
    %c10_136 = arith.constant 10 : index
    %c0_137 = arith.constant 0 : index
    %c0_138 = arith.constant 0 : index
    %102 = vector.load %arg3[%c0_135, %c10_136, %c0_137, %c0_138] : memref<1x18x8x32xbf16, #tpu.memory_space<vmem>>, vector<1x1x8x32xbf16>
    %103 = vector.shape_cast %102 : vector<1x1x8x32xbf16> to vector<8x32xbf16>
    %104 = arith.extf %103 : vector<8x32xbf16> to vector<8x32xf32>
    %c40_139 = arith.constant 40 : index
    %c0_140 = arith.constant 0 : index
    %105 = vector.load %arg7[%c40_139, %c0_140] : memref<64x32xf32, #tpu.memory_space<vmem>>, vector<8x32xf32>
    tpu.vector_store %arg7[%c40_139, %c0_140], %104 {strides = array<i32>} : memref<64x32xf32, #tpu.memory_space<vmem>>, vector<8x32xf32>,
    %c0_141 = arith.constant 0 : index
    %c12_142 = arith.constant 12 : index
    %c0_143 = arith.constant 0 : index
    %c0_144 = arith.constant 0 : index
    %106 = vector.load %arg3[%c0_141, %c12_142, %c0_143, %c0_144] : memref<1x18x8x32xbf16, #tpu.memory_space<vmem>>, vector<1x1x8x32xbf16>
    %107 = vector.shape_cast %106 : vector<1x1x8x32xbf16> to vector<8x32xbf16>
    %108 = arith.extf %107 : vector<8x32xbf16> to vector<8x32xf32>
    %c48_145 = arith.constant 48 : index
    %c0_146 = arith.constant 0 : index
    %109 = vector.load %arg7[%c48_145, %c0_146] : memref<64x32xf32, #tpu.memory_space<vmem>>, vector<8x32xf32>
    tpu.vector_store %arg7[%c48_145, %c0_146], %108 {strides = array<i32>} : memref<64x32xf32, #tpu.memory_space<vmem>>, vector<8x32xf32>,
    %c0_147 = arith.constant 0 : index
    %c14_148 = arith.constant 14 : index
    %c0_149 = arith.constant 0 : index
    %c0_150 = arith.constant 0 : index
    %110 = vector.load %arg3[%c0_147, %c14_148, %c0_149, %c0_150] : memref<1x18x8x32xbf16, #tpu.memory_space<vmem>>, vector<1x1x8x32xbf16>
    %111 = vector.shape_cast %110 : vector<1x1x8x32xbf16> to vector<8x32xbf16>
    %112 = arith.extf %111 : vector<8x32xbf16> to vector<8x32xf32>
    %c56_151 = arith.constant 56 : index
    %c0_152 = arith.constant 0 : index
    %113 = vector.load %arg7[%c56_151, %c0_152] : memref<64x32xf32, #tpu.memory_space<vmem>>, vector<8x32xf32>
    tpu.vector_store %arg7[%c56_151, %c0_152], %112 {strides = array<i32>} : memref<64x32xf32, #tpu.memory_space<vmem>>, vector<8x32xf32>,
    %c0_153 = arith.constant 0 : index
    %c0_154 = arith.constant 0 : index
    %114 = vector.load %arg8[%c0_153, %c0_154] : memref<64x64xf32, #tpu.memory_space<vmem>>, vector<64x64xf32>
    %c0_155 = arith.constant 0 : index
    %c0_156 = arith.constant 0 : index
    %115 = vector.load %arg7[%c0_155, %c0_156] : memref<64x32xf32, #tpu.memory_space<vmem>>, vector<64x32xf32>
    %116 = arith.truncf %115 : vector<64x32xf32> to vector<64x32xbf16>
    %c64 = arith.constant 64 : index
    %c0_157 = arith.constant 0 : index
    %117 = vector.load %arg4[%c64, %c0_157] : memref<288x64xbf16, #tpu.memory_space<vmem>>, vector<32x64xbf16>
    %cst_158 = arith.constant dense<0.000000e+00> : vector<64x64xf32>
    %118 = tpu.matmul %116, %117, %cst_158 {dimension_numbers = #tpu.dot_dimension_numbers<[1], [0], [0], [1], [0, 0, 1, 1], [], []>} : vector<64x32xbf16>, vector<32x64xbf16>, vector<64x64xf32> -> vector<64x64xf32>
    %119 = arith.addf %114, %118 : vector<64x64xf32>
    %c0_159 = arith.constant 0 : index
    %c0_160 = arith.constant 0 : index
    %120 = vector.load %arg8[%c0_159, %c0_160] : memref<64x64xf32, #tpu.memory_space<vmem>>, vector<64x64xf32>
    tpu.vector_store %arg8[%c0_159, %c0_160], %119 {strides = array<i32>} : memref<64x64xf32, #tpu.memory_space<vmem>>, vector<64x64xf32>,
    %c0_161 = arith.constant 0 : index
    %c1 = arith.constant 1 : index
    %c0_162 = arith.constant 0 : index
    %c0_163 = arith.constant 0 : index
    %121 = vector.load %arg1[%c0_161, %c1, %c0_162, %c0_163] : memref<1x18x8x32xbf16, #tpu.memory_space<vmem>>, vector<1x1x8x32xbf16>
    %122 = vector.shape_cast %121 : vector<1x1x8x32xbf16> to vector<8x32xbf16>
    %123 = arith.extf %122 : vector<8x32xbf16> to vector<8x32xf32>
    %c0_164 = arith.constant 0 : index
    %c0_165 = arith.constant 0 : index
    %124 = vector.load %arg7[%c0_164, %c0_165] : memref<64x32xf32, #tpu.memory_space<vmem>>, vector<8x32xf32>
    tpu.vector_store %arg7[%c0_164, %c0_165], %123 {strides = array<i32>} : memref<64x32xf32, #tpu.memory_space<vmem>>, vector<8x32xf32>,
    %c0_166 = arith.constant 0 : index
    %c3 = arith.constant 3 : index
    %c0_167 = arith.constant 0 : index
    %c0_168 = arith.constant 0 : index
    %125 = vector.load %arg1[%c0_166, %c3, %c0_167, %c0_168] : memref<1x18x8x32xbf16, #tpu.memory_space<vmem>>, vector<1x1x8x32xbf16>
    %126 = vector.shape_cast %125 : vector<1x1x8x32xbf16> to vector<8x32xbf16>
    %127 = arith.extf %126 : vector<8x32xbf16> to vector<8x32xf32>
    %c8_169 = arith.constant 8 : index
    %c0_170 = arith.constant 0 : index
    %128 = vector.load %arg7[%c8_169, %c0_170] : memref<64x32xf32, #tpu.memory_space<vmem>>, vector<8x32xf32>
    tpu.vector_store %arg7[%c8_169, %c0_170], %127 {strides = array<i32>} : memref<64x32xf32, #tpu.memory_space<vmem>>, vector<8x32xf32>,
    %c0_171 = arith.constant 0 : index
    %c5 = arith.constant 5 : index
    %c0_172 = arith.constant 0 : index
    %c0_173 = arith.constant 0 : index
    %129 = vector.load %arg1[%c0_171, %c5, %c0_172, %c0_173] : memref<1x18x8x32xbf16, #tpu.memory_space<vmem>>, vector<1x1x8x32xbf16>
    %130 = vector.shape_cast %129 : vector<1x1x8x32xbf16> to vector<8x32xbf16>
    %131 = arith.extf %130 : vector<8x32xbf16> to vector<8x32xf32>
    %c16_174 = arith.constant 16 : index
    %c0_175 = arith.constant 0 : index
    %132 = vector.load %arg7[%c16_174, %c0_175] : memref<64x32xf32, #tpu.memory_space<vmem>>, vector<8x32xf32>
    tpu.vector_store %arg7[%c16_174, %c0_175], %131 {strides = array<i32>} : memref<64x32xf32, #tpu.memory_space<vmem>>, vector<8x32xf32>,
    %c0_176 = arith.constant 0 : index
    %c7 = arith.constant 7 : index
    %c0_177 = arith.constant 0 : index
    %c0_178 = arith.constant 0 : index
    %133 = vector.load %arg1[%c0_176, %c7, %c0_177, %c0_178] : memref<1x18x8x32xbf16, #tpu.memory_space<vmem>>, vector<1x1x8x32xbf16>
    %134 = vector.shape_cast %133 : vector<1x1x8x32xbf16> to vector<8x32xbf16>
    %135 = arith.extf %134 : vector<8x32xbf16> to vector<8x32xf32>
    %c24_179 = arith.constant 24 : index
    %c0_180 = arith.constant 0 : index
    %136 = vector.load %arg7[%c24_179, %c0_180] : memref<64x32xf32, #tpu.memory_space<vmem>>, vector<8x32xf32>
    tpu.vector_store %arg7[%c24_179, %c0_180], %135 {strides = array<i32>} : memref<64x32xf32, #tpu.memory_space<vmem>>, vector<8x32xf32>,
    %c0_181 = arith.constant 0 : index
    %c9 = arith.constant 9 : index
    %c0_182 = arith.constant 0 : index
    %c0_183 = arith.constant 0 : index
    %137 = vector.load %arg1[%c0_181, %c9, %c0_182, %c0_183] : memref<1x18x8x32xbf16, #tpu.memory_space<vmem>>, vector<1x1x8x32xbf16>
    %138 = vector.shape_cast %137 : vector<1x1x8x32xbf16> to vector<8x32xbf16>
    %139 = arith.extf %138 : vector<8x32xbf16> to vector<8x32xf32>
    %c32_184 = arith.constant 32 : index
    %c0_185 = arith.constant 0 : index
    %140 = vector.load %arg7[%c32_184, %c0_185] : memref<64x32xf32, #tpu.memory_space<vmem>>, vector<8x32xf32>
    tpu.vector_store %arg7[%c32_184, %c0_185], %139 {strides = array<i32>} : memref<64x32xf32, #tpu.memory_space<vmem>>, vector<8x32xf32>,
    %c0_186 = arith.constant 0 : index
    %c11 = arith.constant 11 : index
    %c0_187 = arith.constant 0 : index
    %c0_188 = arith.constant 0 : index
    %141 = vector.load %arg1[%c0_186, %c11, %c0_187, %c0_188] : memref<1x18x8x32xbf16, #tpu.memory_space<vmem>>, vector<1x1x8x32xbf16>
    %142 = vector.shape_cast %141 : vector<1x1x8x32xbf16> to vector<8x32xbf16>
    %143 = arith.extf %142 : vector<8x32xbf16> to vector<8x32xf32>
    %c40_189 = arith.constant 40 : index
    %c0_190 = arith.constant 0 : index
    %144 = vector.load %arg7[%c40_189, %c0_190] : memref<64x32xf32, #tpu.memory_space<vmem>>, vector<8x32xf32>
    tpu.vector_store %arg7[%c40_189, %c0_190], %143 {strides = array<i32>} : memref<64x32xf32, #tpu.memory_space<vmem>>, vector<8x32xf32>,
    %c0_191 = arith.constant 0 : index
    %c13 = arith.constant 13 : index
    %c0_192 = arith.constant 0 : index
    %c0_193 = arith.constant 0 : index
    %145 = vector.load %arg1[%c0_191, %c13, %c0_192, %c0_193] : memref<1x18x8x32xbf16, #tpu.memory_space<vmem>>, vector<1x1x8x32xbf16>
    %146 = vector.shape_cast %145 : vector<1x1x8x32xbf16> to vector<8x32xbf16>
    %147 = arith.extf %146 : vector<8x32xbf16> to vector<8x32xf32>
    %c48_194 = arith.constant 48 : index
    %c0_195 = arith.constant 0 : index
    %148 = vector.load %arg7[%c48_194, %c0_195] : memref<64x32xf32, #tpu.memory_space<vmem>>, vector<8x32xf32>
    tpu.vector_store %arg7[%c48_194, %c0_195], %147 {strides = array<i32>} : memref<64x32xf32, #tpu.memory_space<vmem>>, vector<8x32xf32>,
    %c0_196 = arith.constant 0 : index
    %c15 = arith.constant 15 : index
    %c0_197 = arith.constant 0 : index
    %c0_198 = arith.constant 0 : index
    %149 = vector.load %arg1[%c0_196, %c15, %c0_197, %c0_198] : memref<1x18x8x32xbf16, #tpu.memory_space<vmem>>, vector<1x1x8x32xbf16>
    %150 = vector.shape_cast %149 : vector<1x1x8x32xbf16> to vector<8x32xbf16>
    %151 = arith.extf %150 : vector<8x32xbf16> to vector<8x32xf32>
    %c56_199 = arith.constant 56 : index
    %c0_200 = arith.constant 0 : index
    %152 = vector.load %arg7[%c56_199, %c0_200] : memref<64x32xf32, #tpu.memory_space<vmem>>, vector<8x32xf32>
    tpu.vector_store %arg7[%c56_199, %c0_200], %151 {strides = array<i32>} : memref<64x32xf32, #tpu.memory_space<vmem>>, vector<8x32xf32>,
    %c0_201 = arith.constant 0 : index
    %c0_202 = arith.constant 0 : index
    %153 = vector.load %arg8[%c0_201, %c0_202] : memref<64x64xf32, #tpu.memory_space<vmem>>, vector<64x64xf32>
    %c0_203 = arith.constant 0 : index
    %c0_204 = arith.constant 0 : index
    %154 = vector.load %arg7[%c0_203, %c0_204] : memref<64x32xf32, #tpu.memory_space<vmem>>, vector<64x32xf32>
    %155 = arith.truncf %154 : vector<64x32xf32> to vector<64x32xbf16>
    %c96 = arith.constant 96 : index
    %c0_205 = arith.constant 0 : index
    %156 = vector.load %arg4[%c96, %c0_205] : memref<288x64xbf16, #tpu.memory_space<vmem>>, vector<32x64xbf16>
    %cst_206 = arith.constant dense<0.000000e+00> : vector<64x64xf32>
    %157 = tpu.matmul %155, %156, %cst_206 {dimension_numbers = #tpu.dot_dimension_numbers<[1], [0], [0], [1], [0, 0, 1, 1], [], []>} : vector<64x32xbf16>, vector<32x64xbf16>, vector<64x64xf32> -> vector<64x64xf32>
    %158 = arith.addf %153, %157 : vector<64x64xf32>
    %c0_207 = arith.constant 0 : index
    %c0_208 = arith.constant 0 : index
    %159 = vector.load %arg8[%c0_207, %c0_208] : memref<64x64xf32, #tpu.memory_space<vmem>>, vector<64x64xf32>
    tpu.vector_store %arg8[%c0_207, %c0_208], %158 {strides = array<i32>} : memref<64x64xf32, #tpu.memory_space<vmem>>, vector<64x64xf32>,
    %c0_209 = arith.constant 0 : index
    %c1_210 = arith.constant 1 : index
    %c0_211 = arith.constant 0 : index
    %c0_212 = arith.constant 0 : index
    %160 = vector.load %arg2[%c0_209, %c1_210, %c0_211, %c0_212] : memref<1x18x8x32xbf16, #tpu.memory_space<vmem>>, vector<1x1x8x32xbf16>
    %161 = vector.shape_cast %160 : vector<1x1x8x32xbf16> to vector<8x32xbf16>
    %162 = arith.extf %161 : vector<8x32xbf16> to vector<8x32xf32>
    %c0_213 = arith.constant 0 : index
    %c0_214 = arith.constant 0 : index
    %163 = vector.load %arg7[%c0_213, %c0_214] : memref<64x32xf32, #tpu.memory_space<vmem>>, vector<8x32xf32>
    tpu.vector_store %arg7[%c0_213, %c0_214], %162 {strides = array<i32>} : memref<64x32xf32, #tpu.memory_space<vmem>>, vector<8x32xf32>,
    %c0_215 = arith.constant 0 : index
    %c3_216 = arith.constant 3 : index
    %c0_217 = arith.constant 0 : index
    %c0_218 = arith.constant 0 : index
    %164 = vector.load %arg2[%c0_215, %c3_216, %c0_217, %c0_218] : memref<1x18x8x32xbf16, #tpu.memory_space<vmem>>, vector<1x1x8x32xbf16>
    %165 = vector.shape_cast %164 : vector<1x1x8x32xbf16> to vector<8x32xbf16>
    %166 = arith.extf %165 : vector<8x32xbf16> to vector<8x32xf32>
    %c8_219 = arith.constant 8 : index
    %c0_220 = arith.constant 0 : index
    %167 = vector.load %arg7[%c8_219, %c0_220] : memref<64x32xf32, #tpu.memory_space<vmem>>, vector<8x32xf32>
    tpu.vector_store %arg7[%c8_219, %c0_220], %166 {strides = array<i32>} : memref<64x32xf32, #tpu.memory_space<vmem>>, vector<8x32xf32>,
    %c0_221 = arith.constant 0 : index
    %c5_222 = arith.constant 5 : index
    %c0_223 = arith.constant 0 : index
    %c0_224 = arith.constant 0 : index
    %168 = vector.load %arg2[%c0_221, %c5_222, %c0_223, %c0_224] : memref<1x18x8x32xbf16, #tpu.memory_space<vmem>>, vector<1x1x8x32xbf16>
    %169 = vector.shape_cast %168 : vector<1x1x8x32xbf16> to vector<8x32xbf16>
    %170 = arith.extf %169 : vector<8x32xbf16> to vector<8x32xf32>
    %c16_225 = arith.constant 16 : index
    %c0_226 = arith.constant 0 : index
    %171 = vector.load %arg7[%c16_225, %c0_226] : memref<64x32xf32, #tpu.memory_space<vmem>>, vector<8x32xf32>
    tpu.vector_store %arg7[%c16_225, %c0_226], %170 {strides = array<i32>} : memref<64x32xf32, #tpu.memory_space<vmem>>, vector<8x32xf32>,
    %c0_227 = arith.constant 0 : index
    %c7_228 = arith.constant 7 : index
    %c0_229 = arith.constant 0 : index
    %c0_230 = arith.constant 0 : index
    %172 = vector.load %arg2[%c0_227, %c7_228, %c0_229, %c0_230] : memref<1x18x8x32xbf16, #tpu.memory_space<vmem>>, vector<1x1x8x32xbf16>
    %173 = vector.shape_cast %172 : vector<1x1x8x32xbf16> to vector<8x32xbf16>
    %174 = arith.extf %173 : vector<8x32xbf16> to vector<8x32xf32>
    %c24_231 = arith.constant 24 : index
    %c0_232 = arith.constant 0 : index
    %175 = vector.load %arg7[%c24_231, %c0_232] : memref<64x32xf32, #tpu.memory_space<vmem>>, vector<8x32xf32>
    tpu.vector_store %arg7[%c24_231, %c0_232], %174 {strides = array<i32>} : memref<64x32xf32, #tpu.memory_space<vmem>>, vector<8x32xf32>,
    %c0_233 = arith.constant 0 : index
    %c9_234 = arith.constant 9 : index
    %c0_235 = arith.constant 0 : index
    %c0_236 = arith.constant 0 : index
    %176 = vector.load %arg2[%c0_233, %c9_234, %c0_235, %c0_236] : memref<1x18x8x32xbf16, #tpu.memory_space<vmem>>, vector<1x1x8x32xbf16>
    %177 = vector.shape_cast %176 : vector<1x1x8x32xbf16> to vector<8x32xbf16>
    %178 = arith.extf %177 : vector<8x32xbf16> to vector<8x32xf32>
    %c32_237 = arith.constant 32 : index
    %c0_238 = arith.constant 0 : index
    %179 = vector.load %arg7[%c32_237, %c0_238] : memref<64x32xf32, #tpu.memory_space<vmem>>, vector<8x32xf32>
    tpu.vector_store %arg7[%c32_237, %c0_238], %178 {strides = array<i32>} : memref<64x32xf32, #tpu.memory_space<vmem>>, vector<8x32xf32>,
    %c0_239 = arith.constant 0 : index
    %c11_240 = arith.constant 11 : index
    %c0_241 = arith.constant 0 : index
    %c0_242 = arith.constant 0 : index
    %180 = vector.load %arg2[%c0_239, %c11_240, %c0_241, %c0_242] : memref<1x18x8x32xbf16, #tpu.memory_space<vmem>>, vector<1x1x8x32xbf16>
    %181 = vector.shape_cast %180 : vector<1x1x8x32xbf16> to vector<8x32xbf16>
    %182 = arith.extf %181 : vector<8x32xbf16> to vector<8x32xf32>
    %c40_243 = arith.constant 40 : index
    %c0_244 = arith.constant 0 : index
    %183 = vector.load %arg7[%c40_243, %c0_244] : memref<64x32xf32, #tpu.memory_space<vmem>>, vector<8x32xf32>
    tpu.vector_store %arg7[%c40_243, %c0_244], %182 {strides = array<i32>} : memref<64x32xf32, #tpu.memory_space<vmem>>, vector<8x32xf32>,
    %c0_245 = arith.constant 0 : index
    %c13_246 = arith.constant 13 : index
    %c0_247 = arith.constant 0 : index
    %c0_248 = arith.constant 0 : index
    %184 = vector.load %arg2[%c0_245, %c13_246, %c0_247, %c0_248] : memref<1x18x8x32xbf16, #tpu.memory_space<vmem>>, vector<1x1x8x32xbf16>
    %185 = vector.shape_cast %184 : vector<1x1x8x32xbf16> to vector<8x32xbf16>
    %186 = arith.extf %185 : vector<8x32xbf16> to vector<8x32xf32>
    %c48_249 = arith.constant 48 : index
    %c0_250 = arith.constant 0 : index
    %187 = vector.load %arg7[%c48_249, %c0_250] : memref<64x32xf32, #tpu.memory_space<vmem>>, vector<8x32xf32>
    tpu.vector_store %arg7[%c48_249, %c0_250], %186 {strides = array<i32>} : memref<64x32xf32, #tpu.memory_space<vmem>>, vector<8x32xf32>,
    %c0_251 = arith.constant 0 : index
    %c15_252 = arith.constant 15 : index
    %c0_253 = arith.constant 0 : index
    %c0_254 = arith.constant 0 : index
    %188 = vector.load %arg2[%c0_251, %c15_252, %c0_253, %c0_254] : memref<1x18x8x32xbf16, #tpu.memory_space<vmem>>, vector<1x1x8x32xbf16>
    %189 = vector.shape_cast %188 : vector<1x1x8x32xbf16> to vector<8x32xbf16>
    %190 = arith.extf %189 : vector<8x32xbf16> to vector<8x32xf32>
    %c56_255 = arith.constant 56 : index
    %c0_256 = arith.constant 0 : index
    %191 = vector.load %arg7[%c56_255, %c0_256] : memref<64x32xf32, #tpu.memory_space<vmem>>, vector<8x32xf32>
    tpu.vector_store %arg7[%c56_255, %c0_256], %190 {strides = array<i32>} : memref<64x32xf32, #tpu.memory_space<vmem>>, vector<8x32xf32>,
    %c0_257 = arith.constant 0 : index
    %c0_258 = arith.constant 0 : index
    %192 = vector.load %arg8[%c0_257, %c0_258] : memref<64x64xf32, #tpu.memory_space<vmem>>, vector<64x64xf32>
    %c0_259 = arith.constant 0 : index
    %c0_260 = arith.constant 0 : index
    %193 = vector.load %arg7[%c0_259, %c0_260] : memref<64x32xf32, #tpu.memory_space<vmem>>, vector<64x32xf32>
    %194 = arith.truncf %193 : vector<64x32xf32> to vector<64x32xbf16>
    %c128 = arith.constant 128 : index
    %c0_261 = arith.constant 0 : index
    %195 = vector.load %arg4[%c128, %c0_261] : memref<288x64xbf16, #tpu.memory_space<vmem>>, vector<32x64xbf16>
    %cst_262 = arith.constant dense<0.000000e+00> : vector<64x64xf32>
    %196 = tpu.matmul %194, %195, %cst_262 {dimension_numbers = #tpu.dot_dimension_numbers<[1], [0], [0], [1], [0, 0, 1, 1], [], []>} : vector<64x32xbf16>, vector<32x64xbf16>, vector<64x64xf32> -> vector<64x64xf32>
    %197 = arith.addf %192, %196 : vector<64x64xf32>
    %c0_263 = arith.constant 0 : index
    %c0_264 = arith.constant 0 : index
    %198 = vector.load %arg8[%c0_263, %c0_264] : memref<64x64xf32, #tpu.memory_space<vmem>>, vector<64x64xf32>
    tpu.vector_store %arg8[%c0_263, %c0_264], %197 {strides = array<i32>} : memref<64x64xf32, #tpu.memory_space<vmem>>, vector<64x64xf32>,
    %c0_265 = arith.constant 0 : index
    %c1_266 = arith.constant 1 : index
    %c0_267 = arith.constant 0 : index
    %c0_268 = arith.constant 0 : index
    %199 = vector.load %arg3[%c0_265, %c1_266, %c0_267, %c0_268] : memref<1x18x8x32xbf16, #tpu.memory_space<vmem>>, vector<1x1x8x32xbf16>
    %200 = vector.shape_cast %199 : vector<1x1x8x32xbf16> to vector<8x32xbf16>
    %201 = arith.extf %200 : vector<8x32xbf16> to vector<8x32xf32>
    %c0_269 = arith.constant 0 : index
    %c0_270 = arith.constant 0 : index
    %202 = vector.load %arg7[%c0_269, %c0_270] : memref<64x32xf32, #tpu.memory_space<vmem>>, vector<8x32xf32>
    tpu.vector_store %arg7[%c0_269, %c0_270], %201 {strides = array<i32>} : memref<64x32xf32, #tpu.memory_space<vmem>>, vector<8x32xf32>,
    %c0_271 = arith.constant 0 : index
    %c3_272 = arith.constant 3 : index
    %c0_273 = arith.constant 0 : index
    %c0_274 = arith.constant 0 : index
    %203 = vector.load %arg3[%c0_271, %c3_272, %c0_273, %c0_274] : memref<1x18x8x32xbf16, #tpu.memory_space<vmem>>, vector<1x1x8x32xbf16>
    %204 = vector.shape_cast %203 : vector<1x1x8x32xbf16> to vector<8x32xbf16>
    %205 = arith.extf %204 : vector<8x32xbf16> to vector<8x32xf32>
    %c8_275 = arith.constant 8 : index
    %c0_276 = arith.constant 0 : index
    %206 = vector.load %arg7[%c8_275, %c0_276] : memref<64x32xf32, #tpu.memory_space<vmem>>, vector<8x32xf32>
    tpu.vector_store %arg7[%c8_275, %c0_276], %205 {strides = array<i32>} : memref<64x32xf32, #tpu.memory_space<vmem>>, vector<8x32xf32>,
    %c0_277 = arith.constant 0 : index
    %c5_278 = arith.constant 5 : index
    %c0_279 = arith.constant 0 : index
    %c0_280 = arith.constant 0 : index
    %207 = vector.load %arg3[%c0_277, %c5_278, %c0_279, %c0_280] : memref<1x18x8x32xbf16, #tpu.memory_space<vmem>>, vector<1x1x8x32xbf16>
    %208 = vector.shape_cast %207 : vector<1x1x8x32xbf16> to vector<8x32xbf16>
    %209 = arith.extf %208 : vector<8x32xbf16> to vector<8x32xf32>
    %c16_281 = arith.constant 16 : index
    %c0_282 = arith.constant 0 : index
    %210 = vector.load %arg7[%c16_281, %c0_282] : memref<64x32xf32, #tpu.memory_space<vmem>>, vector<8x32xf32>
    tpu.vector_store %arg7[%c16_281, %c0_282], %209 {strides = array<i32>} : memref<64x32xf32, #tpu.memory_space<vmem>>, vector<8x32xf32>,
    %c0_283 = arith.constant 0 : index
    %c7_284 = arith.constant 7 : index
    %c0_285 = arith.constant 0 : index
    %c0_286 = arith.constant 0 : index
    %211 = vector.load %arg3[%c0_283, %c7_284, %c0_285, %c0_286] : memref<1x18x8x32xbf16, #tpu.memory_space<vmem>>, vector<1x1x8x32xbf16>
    %212 = vector.shape_cast %211 : vector<1x1x8x32xbf16> to vector<8x32xbf16>
    %213 = arith.extf %212 : vector<8x32xbf16> to vector<8x32xf32>
    %c24_287 = arith.constant 24 : index
    %c0_288 = arith.constant 0 : index
    %214 = vector.load %arg7[%c24_287, %c0_288] : memref<64x32xf32, #tpu.memory_space<vmem>>, vector<8x32xf32>
    tpu.vector_store %arg7[%c24_287, %c0_288], %213 {strides = array<i32>} : memref<64x32xf32, #tpu.memory_space<vmem>>, vector<8x32xf32>,
    %c0_289 = arith.constant 0 : index
    %c9_290 = arith.constant 9 : index
    %c0_291 = arith.constant 0 : index
    %c0_292 = arith.constant 0 : index
    %215 = vector.load %arg3[%c0_289, %c9_290, %c0_291, %c0_292] : memref<1x18x8x32xbf16, #tpu.memory_space<vmem>>, vector<1x1x8x32xbf16>
    %216 = vector.shape_cast %215 : vector<1x1x8x32xbf16> to vector<8x32xbf16>
    %217 = arith.extf %216 : vector<8x32xbf16> to vector<8x32xf32>
    %c32_293 = arith.constant 32 : index
    %c0_294 = arith.constant 0 : index
    %218 = vector.load %arg7[%c32_293, %c0_294] : memref<64x32xf32, #tpu.memory_space<vmem>>, vector<8x32xf32>
    tpu.vector_store %arg7[%c32_293, %c0_294], %217 {strides = array<i32>} : memref<64x32xf32, #tpu.memory_space<vmem>>, vector<8x32xf32>,
    %c0_295 = arith.constant 0 : index
    %c11_296 = arith.constant 11 : index
    %c0_297 = arith.constant 0 : index
    %c0_298 = arith.constant 0 : index
    %219 = vector.load %arg3[%c0_295, %c11_296, %c0_297, %c0_298] : memref<1x18x8x32xbf16, #tpu.memory_space<vmem>>, vector<1x1x8x32xbf16>
    %220 = vector.shape_cast %219 : vector<1x1x8x32xbf16> to vector<8x32xbf16>
    %221 = arith.extf %220 : vector<8x32xbf16> to vector<8x32xf32>
    %c40_299 = arith.constant 40 : index
    %c0_300 = arith.constant 0 : index
    %222 = vector.load %arg7[%c40_299, %c0_300] : memref<64x32xf32, #tpu.memory_space<vmem>>, vector<8x32xf32>
    tpu.vector_store %arg7[%c40_299, %c0_300], %221 {strides = array<i32>} : memref<64x32xf32, #tpu.memory_space<vmem>>, vector<8x32xf32>,
    %c0_301 = arith.constant 0 : index
    %c13_302 = arith.constant 13 : index
    %c0_303 = arith.constant 0 : index
    %c0_304 = arith.constant 0 : index
    %223 = vector.load %arg3[%c0_301, %c13_302, %c0_303, %c0_304] : memref<1x18x8x32xbf16, #tpu.memory_space<vmem>>, vector<1x1x8x32xbf16>
    %224 = vector.shape_cast %223 : vector<1x1x8x32xbf16> to vector<8x32xbf16>
    %225 = arith.extf %224 : vector<8x32xbf16> to vector<8x32xf32>
    %c48_305 = arith.constant 48 : index
    %c0_306 = arith.constant 0 : index
    %226 = vector.load %arg7[%c48_305, %c0_306] : memref<64x32xf32, #tpu.memory_space<vmem>>, vector<8x32xf32>
    tpu.vector_store %arg7[%c48_305, %c0_306], %225 {strides = array<i32>} : memref<64x32xf32, #tpu.memory_space<vmem>>, vector<8x32xf32>,
    %c0_307 = arith.constant 0 : index
    %c15_308 = arith.constant 15 : index
    %c0_309 = arith.constant 0 : index
    %c0_310 = arith.constant 0 : index
    %227 = vector.load %arg3[%c0_307, %c15_308, %c0_309, %c0_310] : memref<1x18x8x32xbf16, #tpu.memory_space<vmem>>, vector<1x1x8x32xbf16>
    %228 = vector.shape_cast %227 : vector<1x1x8x32xbf16> to vector<8x32xbf16>
    %229 = arith.extf %228 : vector<8x32xbf16> to vector<8x32xf32>
    %c56_311 = arith.constant 56 : index
    %c0_312 = arith.constant 0 : index
    %230 = vector.load %arg7[%c56_311, %c0_312] : memref<64x32xf32, #tpu.memory_space<vmem>>, vector<8x32xf32>
    tpu.vector_store %arg7[%c56_311, %c0_312], %229 {strides = array<i32>} : memref<64x32xf32, #tpu.memory_space<vmem>>, vector<8x32xf32>,
    %c0_313 = arith.constant 0 : index
    %c0_314 = arith.constant 0 : index
    %231 = vector.load %arg8[%c0_313, %c0_314] : memref<64x64xf32, #tpu.memory_space<vmem>>, vector<64x64xf32>
    %c0_315 = arith.constant 0 : index
    %c0_316 = arith.constant 0 : index
    %232 = vector.load %arg7[%c0_315, %c0_316] : memref<64x32xf32, #tpu.memory_space<vmem>>, vector<64x32xf32>
    %233 = arith.truncf %232 : vector<64x32xf32> to vector<64x32xbf16>
    %c160 = arith.constant 160 : index
    %c0_317 = arith.constant 0 : index
    %234 = vector.load %arg4[%c160, %c0_317] : memref<288x64xbf16, #tpu.memory_space<vmem>>, vector<32x64xbf16>
    %cst_318 = arith.constant dense<0.000000e+00> : vector<64x64xf32>
    %235 = tpu.matmul %233, %234, %cst_318 {dimension_numbers = #tpu.dot_dimension_numbers<[1], [0], [0], [1], [0, 0, 1, 1], [], []>} : vector<64x32xbf16>, vector<32x64xbf16>, vector<64x64xf32> -> vector<64x64xf32>
    %236 = arith.addf %231, %235 : vector<64x64xf32>
    %c0_319 = arith.constant 0 : index
    %c0_320 = arith.constant 0 : index
    %237 = vector.load %arg8[%c0_319, %c0_320] : memref<64x64xf32, #tpu.memory_space<vmem>>, vector<64x64xf32>
    tpu.vector_store %arg8[%c0_319, %c0_320], %236 {strides = array<i32>} : memref<64x64xf32, #tpu.memory_space<vmem>>, vector<64x64xf32>,
    %c0_321 = arith.constant 0 : index
    %c2_322 = arith.constant 2 : index
    %c0_323 = arith.constant 0 : index
    %c0_324 = arith.constant 0 : index
    %238 = vector.load %arg1[%c0_321, %c2_322, %c0_323, %c0_324] : memref<1x18x8x32xbf16, #tpu.memory_space<vmem>>, vector<1x1x8x32xbf16>
    %239 = vector.shape_cast %238 : vector<1x1x8x32xbf16> to vector<8x32xbf16>
    %240 = arith.extf %239 : vector<8x32xbf16> to vector<8x32xf32>
    %c0_325 = arith.constant 0 : index
    %c0_326 = arith.constant 0 : index
    %241 = vector.load %arg7[%c0_325, %c0_326] : memref<64x32xf32, #tpu.memory_space<vmem>>, vector<8x32xf32>
    tpu.vector_store %arg7[%c0_325, %c0_326], %240 {strides = array<i32>} : memref<64x32xf32, #tpu.memory_space<vmem>>, vector<8x32xf32>,
    %c0_327 = arith.constant 0 : index
    %c4_328 = arith.constant 4 : index
    %c0_329 = arith.constant 0 : index
    %c0_330 = arith.constant 0 : index
    %242 = vector.load %arg1[%c0_327, %c4_328, %c0_329, %c0_330] : memref<1x18x8x32xbf16, #tpu.memory_space<vmem>>, vector<1x1x8x32xbf16>
    %243 = vector.shape_cast %242 : vector<1x1x8x32xbf16> to vector<8x32xbf16>
    %244 = arith.extf %243 : vector<8x32xbf16> to vector<8x32xf32>
    %c8_331 = arith.constant 8 : index
    %c0_332 = arith.constant 0 : index
    %245 = vector.load %arg7[%c8_331, %c0_332] : memref<64x32xf32, #tpu.memory_space<vmem>>, vector<8x32xf32>
    tpu.vector_store %arg7[%c8_331, %c0_332], %244 {strides = array<i32>} : memref<64x32xf32, #tpu.memory_space<vmem>>, vector<8x32xf32>,
    %c0_333 = arith.constant 0 : index
    %c6_334 = arith.constant 6 : index
    %c0_335 = arith.constant 0 : index
    %c0_336 = arith.constant 0 : index
    %246 = vector.load %arg1[%c0_333, %c6_334, %c0_335, %c0_336] : memref<1x18x8x32xbf16, #tpu.memory_space<vmem>>, vector<1x1x8x32xbf16>
    %247 = vector.shape_cast %246 : vector<1x1x8x32xbf16> to vector<8x32xbf16>
    %248 = arith.extf %247 : vector<8x32xbf16> to vector<8x32xf32>
    %c16_337 = arith.constant 16 : index
    %c0_338 = arith.constant 0 : index
    %249 = vector.load %arg7[%c16_337, %c0_338] : memref<64x32xf32, #tpu.memory_space<vmem>>, vector<8x32xf32>
    tpu.vector_store %arg7[%c16_337, %c0_338], %248 {strides = array<i32>} : memref<64x32xf32, #tpu.memory_space<vmem>>, vector<8x32xf32>,
    %c0_339 = arith.constant 0 : index
    %c8_340 = arith.constant 8 : index
    %c0_341 = arith.constant 0 : index
    %c0_342 = arith.constant 0 : index
    %250 = vector.load %arg1[%c0_339, %c8_340, %c0_341, %c0_342] : memref<1x18x8x32xbf16, #tpu.memory_space<vmem>>, vector<1x1x8x32xbf16>
    %251 = vector.shape_cast %250 : vector<1x1x8x32xbf16> to vector<8x32xbf16>
    %252 = arith.extf %251 : vector<8x32xbf16> to vector<8x32xf32>
    %c24_343 = arith.constant 24 : index
    %c0_344 = arith.constant 0 : index
    %253 = vector.load %arg7[%c24_343, %c0_344] : memref<64x32xf32, #tpu.memory_space<vmem>>, vector<8x32xf32>
    tpu.vector_store %arg7[%c24_343, %c0_344], %252 {strides = array<i32>} : memref<64x32xf32, #tpu.memory_space<vmem>>, vector<8x32xf32>,
    %c0_345 = arith.constant 0 : index
    %c10_346 = arith.constant 10 : index
    %c0_347 = arith.constant 0 : index
    %c0_348 = arith.constant 0 : index
    %254 = vector.load %arg1[%c0_345, %c10_346, %c0_347, %c0_348] : memref<1x18x8x32xbf16, #tpu.memory_space<vmem>>, vector<1x1x8x32xbf16>
    %255 = vector.shape_cast %254 : vector<1x1x8x32xbf16> to vector<8x32xbf16>
    %256 = arith.extf %255 : vector<8x32xbf16> to vector<8x32xf32>
    %c32_349 = arith.constant 32 : index
    %c0_350 = arith.constant 0 : index
    %257 = vector.load %arg7[%c32_349, %c0_350] : memref<64x32xf32, #tpu.memory_space<vmem>>, vector<8x32xf32>
    tpu.vector_store %arg7[%c32_349, %c0_350], %256 {strides = array<i32>} : memref<64x32xf32, #tpu.memory_space<vmem>>, vector<8x32xf32>,
    %c0_351 = arith.constant 0 : index
    %c12_352 = arith.constant 12 : index
    %c0_353 = arith.constant 0 : index
    %c0_354 = arith.constant 0 : index
    %258 = vector.load %arg1[%c0_351, %c12_352, %c0_353, %c0_354] : memref<1x18x8x32xbf16, #tpu.memory_space<vmem>>, vector<1x1x8x32xbf16>
    %259 = vector.shape_cast %258 : vector<1x1x8x32xbf16> to vector<8x32xbf16>
    %260 = arith.extf %259 : vector<8x32xbf16> to vector<8x32xf32>
    %c40_355 = arith.constant 40 : index
    %c0_356 = arith.constant 0 : index
    %261 = vector.load %arg7[%c40_355, %c0_356] : memref<64x32xf32, #tpu.memory_space<vmem>>, vector<8x32xf32>
    tpu.vector_store %arg7[%c40_355, %c0_356], %260 {strides = array<i32>} : memref<64x32xf32, #tpu.memory_space<vmem>>, vector<8x32xf32>,
    %c0_357 = arith.constant 0 : index
    %c14_358 = arith.constant 14 : index
    %c0_359 = arith.constant 0 : index
    %c0_360 = arith.constant 0 : index
    %262 = vector.load %arg1[%c0_357, %c14_358, %c0_359, %c0_360] : memref<1x18x8x32xbf16, #tpu.memory_space<vmem>>, vector<1x1x8x32xbf16>
    %263 = vector.shape_cast %262 : vector<1x1x8x32xbf16> to vector<8x32xbf16>
    %264 = arith.extf %263 : vector<8x32xbf16> to vector<8x32xf32>
    %c48_361 = arith.constant 48 : index
    %c0_362 = arith.constant 0 : index
    %265 = vector.load %arg7[%c48_361, %c0_362] : memref<64x32xf32, #tpu.memory_space<vmem>>, vector<8x32xf32>
    tpu.vector_store %arg7[%c48_361, %c0_362], %264 {strides = array<i32>} : memref<64x32xf32, #tpu.memory_space<vmem>>, vector<8x32xf32>,
    %c0_363 = arith.constant 0 : index
    %c16_364 = arith.constant 16 : index
    %c0_365 = arith.constant 0 : index
    %c0_366 = arith.constant 0 : index
    %266 = vector.load %arg1[%c0_363, %c16_364, %c0_365, %c0_366] : memref<1x18x8x32xbf16, #tpu.memory_space<vmem>>, vector<1x1x8x32xbf16>
    %267 = vector.shape_cast %266 : vector<1x1x8x32xbf16> to vector<8x32xbf16>
    %268 = arith.extf %267 : vector<8x32xbf16> to vector<8x32xf32>
    %c56_367 = arith.constant 56 : index
    %c0_368 = arith.constant 0 : index
    %269 = vector.load %arg7[%c56_367, %c0_368] : memref<64x32xf32, #tpu.memory_space<vmem>>, vector<8x32xf32>
    tpu.vector_store %arg7[%c56_367, %c0_368], %268 {strides = array<i32>} : memref<64x32xf32, #tpu.memory_space<vmem>>, vector<8x32xf32>,
    %c0_369 = arith.constant 0 : index
    %c0_370 = arith.constant 0 : index
    %270 = vector.load %arg8[%c0_369, %c0_370] : memref<64x64xf32, #tpu.memory_space<vmem>>, vector<64x64xf32>
    %c0_371 = arith.constant 0 : index
    %c0_372 = arith.constant 0 : index
    %271 = vector.load %arg7[%c0_371, %c0_372] : memref<64x32xf32, #tpu.memory_space<vmem>>, vector<64x32xf32>
    %272 = arith.truncf %271 : vector<64x32xf32> to vector<64x32xbf16>
    %c192 = arith.constant 192 : index
    %c0_373 = arith.constant 0 : index
    %273 = vector.load %arg4[%c192, %c0_373] : memref<288x64xbf16, #tpu.memory_space<vmem>>, vector<32x64xbf16>
    %cst_374 = arith.constant dense<0.000000e+00> : vector<64x64xf32>
    %274 = tpu.matmul %272, %273, %cst_374 {dimension_numbers = #tpu.dot_dimension_numbers<[1], [0], [0], [1], [0, 0, 1, 1], [], []>} : vector<64x32xbf16>, vector<32x64xbf16>, vector<64x64xf32> -> vector<64x64xf32>
    %275 = arith.addf %270, %274 : vector<64x64xf32>
    %c0_375 = arith.constant 0 : index
    %c0_376 = arith.constant 0 : index
    %276 = vector.load %arg8[%c0_375, %c0_376] : memref<64x64xf32, #tpu.memory_space<vmem>>, vector<64x64xf32>
    tpu.vector_store %arg8[%c0_375, %c0_376], %275 {strides = array<i32>} : memref<64x64xf32, #tpu.memory_space<vmem>>, vector<64x64xf32>,
    %c0_377 = arith.constant 0 : index
    %c2_378 = arith.constant 2 : index
    %c0_379 = arith.constant 0 : index
    %c0_380 = arith.constant 0 : index
    %277 = vector.load %arg2[%c0_377, %c2_378, %c0_379, %c0_380] : memref<1x18x8x32xbf16, #tpu.memory_space<vmem>>, vector<1x1x8x32xbf16>
    %278 = vector.shape_cast %277 : vector<1x1x8x32xbf16> to vector<8x32xbf16>
    %279 = arith.extf %278 : vector<8x32xbf16> to vector<8x32xf32>
    %c0_381 = arith.constant 0 : index
    %c0_382 = arith.constant 0 : index
    %280 = vector.load %arg7[%c0_381, %c0_382] : memref<64x32xf32, #tpu.memory_space<vmem>>, vector<8x32xf32>
    tpu.vector_store %arg7[%c0_381, %c0_382], %279 {strides = array<i32>} : memref<64x32xf32, #tpu.memory_space<vmem>>, vector<8x32xf32>,
    %c0_383 = arith.constant 0 : index
    %c4_384 = arith.constant 4 : index
    %c0_385 = arith.constant 0 : index
    %c0_386 = arith.constant 0 : index
    %281 = vector.load %arg2[%c0_383, %c4_384, %c0_385, %c0_386] : memref<1x18x8x32xbf16, #tpu.memory_space<vmem>>, vector<1x1x8x32xbf16>
    %282 = vector.shape_cast %281 : vector<1x1x8x32xbf16> to vector<8x32xbf16>
    %283 = arith.extf %282 : vector<8x32xbf16> to vector<8x32xf32>
    %c8_387 = arith.constant 8 : index
    %c0_388 = arith.constant 0 : index
    %284 = vector.load %arg7[%c8_387, %c0_388] : memref<64x32xf32, #tpu.memory_space<vmem>>, vector<8x32xf32>
    tpu.vector_store %arg7[%c8_387, %c0_388], %283 {strides = array<i32>} : memref<64x32xf32, #tpu.memory_space<vmem>>, vector<8x32xf32>,
    %c0_389 = arith.constant 0 : index
    %c6_390 = arith.constant 6 : index
    %c0_391 = arith.constant 0 : index
    %c0_392 = arith.constant 0 : index
    %285 = vector.load %arg2[%c0_389, %c6_390, %c0_391, %c0_392] : memref<1x18x8x32xbf16, #tpu.memory_space<vmem>>, vector<1x1x8x32xbf16>
    %286 = vector.shape_cast %285 : vector<1x1x8x32xbf16> to vector<8x32xbf16>
    %287 = arith.extf %286 : vector<8x32xbf16> to vector<8x32xf32>
    %c16_393 = arith.constant 16 : index
    %c0_394 = arith.constant 0 : index
    %288 = vector.load %arg7[%c16_393, %c0_394] : memref<64x32xf32, #tpu.memory_space<vmem>>, vector<8x32xf32>
    tpu.vector_store %arg7[%c16_393, %c0_394], %287 {strides = array<i32>} : memref<64x32xf32, #tpu.memory_space<vmem>>, vector<8x32xf32>,
    %c0_395 = arith.constant 0 : index
    %c8_396 = arith.constant 8 : index
    %c0_397 = arith.constant 0 : index
    %c0_398 = arith.constant 0 : index
    %289 = vector.load %arg2[%c0_395, %c8_396, %c0_397, %c0_398] : memref<1x18x8x32xbf16, #tpu.memory_space<vmem>>, vector<1x1x8x32xbf16>
    %290 = vector.shape_cast %289 : vector<1x1x8x32xbf16> to vector<8x32xbf16>
    %291 = arith.extf %290 : vector<8x32xbf16> to vector<8x32xf32>
    %c24_399 = arith.constant 24 : index
    %c0_400 = arith.constant 0 : index
    %292 = vector.load %arg7[%c24_399, %c0_400] : memref<64x32xf32, #tpu.memory_space<vmem>>, vector<8x32xf32>
    tpu.vector_store %arg7[%c24_399, %c0_400], %291 {strides = array<i32>} : memref<64x32xf32, #tpu.memory_space<vmem>>, vector<8x32xf32>,
    %c0_401 = arith.constant 0 : index
    %c10_402 = arith.constant 10 : index
    %c0_403 = arith.constant 0 : index
    %c0_404 = arith.constant 0 : index
    %293 = vector.load %arg2[%c0_401, %c10_402, %c0_403, %c0_404] : memref<1x18x8x32xbf16, #tpu.memory_space<vmem>>, vector<1x1x8x32xbf16>
    %294 = vector.shape_cast %293 : vector<1x1x8x32xbf16> to vector<8x32xbf16>
    %295 = arith.extf %294 : vector<8x32xbf16> to vector<8x32xf32>
    %c32_405 = arith.constant 32 : index
    %c0_406 = arith.constant 0 : index
    %296 = vector.load %arg7[%c32_405, %c0_406] : memref<64x32xf32, #tpu.memory_space<vmem>>, vector<8x32xf32>
    tpu.vector_store %arg7[%c32_405, %c0_406], %295 {strides = array<i32>} : memref<64x32xf32, #tpu.memory_space<vmem>>, vector<8x32xf32>,
    %c0_407 = arith.constant 0 : index
    %c12_408 = arith.constant 12 : index
    %c0_409 = arith.constant 0 : index
    %c0_410 = arith.constant 0 : index
    %297 = vector.load %arg2[%c0_407, %c12_408, %c0_409, %c0_410] : memref<1x18x8x32xbf16, #tpu.memory_space<vmem>>, vector<1x1x8x32xbf16>
    %298 = vector.shape_cast %297 : vector<1x1x8x32xbf16> to vector<8x32xbf16>
    %299 = arith.extf %298 : vector<8x32xbf16> to vector<8x32xf32>
    %c40_411 = arith.constant 40 : index
    %c0_412 = arith.constant 0 : index
    %300 = vector.load %arg7[%c40_411, %c0_412] : memref<64x32xf32, #tpu.memory_space<vmem>>, vector<8x32xf32>
    tpu.vector_store %arg7[%c40_411, %c0_412], %299 {strides = array<i32>} : memref<64x32xf32, #tpu.memory_space<vmem>>, vector<8x32xf32>,
    %c0_413 = arith.constant 0 : index
    %c14_414 = arith.constant 14 : index
    %c0_415 = arith.constant 0 : index
    %c0_416 = arith.constant 0 : index
    %301 = vector.load %arg2[%c0_413, %c14_414, %c0_415, %c0_416] : memref<1x18x8x32xbf16, #tpu.memory_space<vmem>>, vector<1x1x8x32xbf16>
    %302 = vector.shape_cast %301 : vector<1x1x8x32xbf16> to vector<8x32xbf16>
    %303 = arith.extf %302 : vector<8x32xbf16> to vector<8x32xf32>
    %c48_417 = arith.constant 48 : index
    %c0_418 = arith.constant 0 : index
    %304 = vector.load %arg7[%c48_417, %c0_418] : memref<64x32xf32, #tpu.memory_space<vmem>>, vector<8x32xf32>
    tpu.vector_store %arg7[%c48_417, %c0_418], %303 {strides = array<i32>} : memref<64x32xf32, #tpu.memory_space<vmem>>, vector<8x32xf32>,
    %c0_419 = arith.constant 0 : index
    %c16_420 = arith.constant 16 : index
    %c0_421 = arith.constant 0 : index
    %c0_422 = arith.constant 0 : index
    %305 = vector.load %arg2[%c0_419, %c16_420, %c0_421, %c0_422] : memref<1x18x8x32xbf16, #tpu.memory_space<vmem>>, vector<1x1x8x32xbf16>
    %306 = vector.shape_cast %305 : vector<1x1x8x32xbf16> to vector<8x32xbf16>
    %307 = arith.extf %306 : vector<8x32xbf16> to vector<8x32xf32>
    %c56_423 = arith.constant 56 : index
    %c0_424 = arith.constant 0 : index
    %308 = vector.load %arg7[%c56_423, %c0_424] : memref<64x32xf32, #tpu.memory_space<vmem>>, vector<8x32xf32>
    tpu.vector_store %arg7[%c56_423, %c0_424], %307 {strides = array<i32>} : memref<64x32xf32, #tpu.memory_space<vmem>>, vector<8x32xf32>,
    %c0_425 = arith.constant 0 : index
    %c0_426 = arith.constant 0 : index
    %309 = vector.load %arg8[%c0_425, %c0_426] : memref<64x64xf32, #tpu.memory_space<vmem>>, vector<64x64xf32>
    %c0_427 = arith.constant 0 : index
    %c0_428 = arith.constant 0 : index
    %310 = vector.load %arg7[%c0_427, %c0_428] : memref<64x32xf32, #tpu.memory_space<vmem>>, vector<64x32xf32>
    %311 = arith.truncf %310 : vector<64x32xf32> to vector<64x32xbf16>
    %c224 = arith.constant 224 : index
    %c0_429 = arith.constant 0 : index
    %312 = vector.load %arg4[%c224, %c0_429] : memref<288x64xbf16, #tpu.memory_space<vmem>>, vector<32x64xbf16>
    %cst_430 = arith.constant dense<0.000000e+00> : vector<64x64xf32>
    %313 = tpu.matmul %311, %312, %cst_430 {dimension_numbers = #tpu.dot_dimension_numbers<[1], [0], [0], [1], [0, 0, 1, 1], [], []>} : vector<64x32xbf16>, vector<32x64xbf16>, vector<64x64xf32> -> vector<64x64xf32>
    %314 = arith.addf %309, %313 : vector<64x64xf32>
    %c0_431 = arith.constant 0 : index
    %c0_432 = arith.constant 0 : index
    %315 = vector.load %arg8[%c0_431, %c0_432] : memref<64x64xf32, #tpu.memory_space<vmem>>, vector<64x64xf32>
    tpu.vector_store %arg8[%c0_431, %c0_432], %314 {strides = array<i32>} : memref<64x64xf32, #tpu.memory_space<vmem>>, vector<64x64xf32>,
    %c0_433 = arith.constant 0 : index
    %c2_434 = arith.constant 2 : index
    %c0_435 = arith.constant 0 : index
    %c0_436 = arith.constant 0 : index
    %316 = vector.load %arg3[%c0_433, %c2_434, %c0_435, %c0_436] : memref<1x18x8x32xbf16, #tpu.memory_space<vmem>>, vector<1x1x8x32xbf16>
    %317 = vector.shape_cast %316 : vector<1x1x8x32xbf16> to vector<8x32xbf16>
    %318 = arith.extf %317 : vector<8x32xbf16> to vector<8x32xf32>
    %c0_437 = arith.constant 0 : index
    %c0_438 = arith.constant 0 : index
    %319 = vector.load %arg7[%c0_437, %c0_438] : memref<64x32xf32, #tpu.memory_space<vmem>>, vector<8x32xf32>
    tpu.vector_store %arg7[%c0_437, %c0_438], %318 {strides = array<i32>} : memref<64x32xf32, #tpu.memory_space<vmem>>, vector<8x32xf32>,
    %c0_439 = arith.constant 0 : index
    %c4_440 = arith.constant 4 : index
    %c0_441 = arith.constant 0 : index
    %c0_442 = arith.constant 0 : index
    %320 = vector.load %arg3[%c0_439, %c4_440, %c0_441, %c0_442] : memref<1x18x8x32xbf16, #tpu.memory_space<vmem>>, vector<1x1x8x32xbf16>
    %321 = vector.shape_cast %320 : vector<1x1x8x32xbf16> to vector<8x32xbf16>
    %322 = arith.extf %321 : vector<8x32xbf16> to vector<8x32xf32>
    %c8_443 = arith.constant 8 : index
    %c0_444 = arith.constant 0 : index
    %323 = vector.load %arg7[%c8_443, %c0_444] : memref<64x32xf32, #tpu.memory_space<vmem>>, vector<8x32xf32>
    tpu.vector_store %arg7[%c8_443, %c0_444], %322 {strides = array<i32>} : memref<64x32xf32, #tpu.memory_space<vmem>>, vector<8x32xf32>,
    %c0_445 = arith.constant 0 : index
    %c6_446 = arith.constant 6 : index
    %c0_447 = arith.constant 0 : index
    %c0_448 = arith.constant 0 : index
    %324 = vector.load %arg3[%c0_445, %c6_446, %c0_447, %c0_448] : memref<1x18x8x32xbf16, #tpu.memory_space<vmem>>, vector<1x1x8x32xbf16>
    %325 = vector.shape_cast %324 : vector<1x1x8x32xbf16> to vector<8x32xbf16>
    %326 = arith.extf %325 : vector<8x32xbf16> to vector<8x32xf32>
    %c16_449 = arith.constant 16 : index
    %c0_450 = arith.constant 0 : index
    %327 = vector.load %arg7[%c16_449, %c0_450] : memref<64x32xf32, #tpu.memory_space<vmem>>, vector<8x32xf32>
    tpu.vector_store %arg7[%c16_449, %c0_450], %326 {strides = array<i32>} : memref<64x32xf32, #tpu.memory_space<vmem>>, vector<8x32xf32>,
    %c0_451 = arith.constant 0 : index
    %c8_452 = arith.constant 8 : index
    %c0_453 = arith.constant 0 : index
    %c0_454 = arith.constant 0 : index
    %328 = vector.load %arg3[%c0_451, %c8_452, %c0_453, %c0_454] : memref<1x18x8x32xbf16, #tpu.memory_space<vmem>>, vector<1x1x8x32xbf16>
    %329 = vector.shape_cast %328 : vector<1x1x8x32xbf16> to vector<8x32xbf16>
    %330 = arith.extf %329 : vector<8x32xbf16> to vector<8x32xf32>
    %c24_455 = arith.constant 24 : index
    %c0_456 = arith.constant 0 : index
    %331 = vector.load %arg7[%c24_455, %c0_456] : memref<64x32xf32, #tpu.memory_space<vmem>>, vector<8x32xf32>
    tpu.vector_store %arg7[%c24_455, %c0_456], %330 {strides = array<i32>} : memref<64x32xf32, #tpu.memory_space<vmem>>, vector<8x32xf32>,
    %c0_457 = arith.constant 0 : index
    %c10_458 = arith.constant 10 : index
    %c0_459 = arith.constant 0 : index
    %c0_460 = arith.constant 0 : index
    %332 = vector.load %arg3[%c0_457, %c10_458, %c0_459, %c0_460] : memref<1x18x8x32xbf16, #tpu.memory_space<vmem>>, vector<1x1x8x32xbf16>
    %333 = vector.shape_cast %332 : vector<1x1x8x32xbf16> to vector<8x32xbf16>
    %334 = arith.extf %333 : vector<8x32xbf16> to vector<8x32xf32>
    %c32_461 = arith.constant 32 : index
    %c0_462 = arith.constant 0 : index
    %335 = vector.load %arg7[%c32_461, %c0_462] : memref<64x32xf32, #tpu.memory_space<vmem>>, vector<8x32xf32>
    tpu.vector_store %arg7[%c32_461, %c0_462], %334 {strides = array<i32>} : memref<64x32xf32, #tpu.memory_space<vmem>>, vector<8x32xf32>,
    %c0_463 = arith.constant 0 : index
    %c12_464 = arith.constant 12 : index
    %c0_465 = arith.constant 0 : index
    %c0_466 = arith.constant 0 : index
    %336 = vector.load %arg3[%c0_463, %c12_464, %c0_465, %c0_466] : memref<1x18x8x32xbf16, #tpu.memory_space<vmem>>, vector<1x1x8x32xbf16>
    %337 = vector.shape_cast %336 : vector<1x1x8x32xbf16> to vector<8x32xbf16>
    %338 = arith.extf %337 : vector<8x32xbf16> to vector<8x32xf32>
    %c40_467 = arith.constant 40 : index
    %c0_468 = arith.constant 0 : index
    %339 = vector.load %arg7[%c40_467, %c0_468] : memref<64x32xf32, #tpu.memory_space<vmem>>, vector<8x32xf32>
    tpu.vector_store %arg7[%c40_467, %c0_468], %338 {strides = array<i32>} : memref<64x32xf32, #tpu.memory_space<vmem>>, vector<8x32xf32>,
    %c0_469 = arith.constant 0 : index
    %c14_470 = arith.constant 14 : index
    %c0_471 = arith.constant 0 : index
    %c0_472 = arith.constant 0 : index
    %340 = vector.load %arg3[%c0_469, %c14_470, %c0_471, %c0_472] : memref<1x18x8x32xbf16, #tpu.memory_space<vmem>>, vector<1x1x8x32xbf16>
    %341 = vector.shape_cast %340 : vector<1x1x8x32xbf16> to vector<8x32xbf16>
    %342 = arith.extf %341 : vector<8x32xbf16> to vector<8x32xf32>
    %c48_473 = arith.constant 48 : index
    %c0_474 = arith.constant 0 : index
    %343 = vector.load %arg7[%c48_473, %c0_474] : memref<64x32xf32, #tpu.memory_space<vmem>>, vector<8x32xf32>
    tpu.vector_store %arg7[%c48_473, %c0_474], %342 {strides = array<i32>} : memref<64x32xf32, #tpu.memory_space<vmem>>, vector<8x32xf32>,
    %c0_475 = arith.constant 0 : index
    %c16_476 = arith.constant 16 : index
    %c0_477 = arith.constant 0 : index
    %c0_478 = arith.constant 0 : index
    %344 = vector.load %arg3[%c0_475, %c16_476, %c0_477, %c0_478] : memref<1x18x8x32xbf16, #tpu.memory_space<vmem>>, vector<1x1x8x32xbf16>
    %345 = vector.shape_cast %344 : vector<1x1x8x32xbf16> to vector<8x32xbf16>
    %346 = arith.extf %345 : vector<8x32xbf16> to vector<8x32xf32>
    %c56_479 = arith.constant 56 : index
    %c0_480 = arith.constant 0 : index
    %347 = vector.load %arg7[%c56_479, %c0_480] : memref<64x32xf32, #tpu.memory_space<vmem>>, vector<8x32xf32>
    tpu.vector_store %arg7[%c56_479, %c0_480], %346 {strides = array<i32>} : memref<64x32xf32, #tpu.memory_space<vmem>>, vector<8x32xf32>,
    %c0_481 = arith.constant 0 : index
    %c0_482 = arith.constant 0 : index
    %348 = vector.load %arg8[%c0_481, %c0_482] : memref<64x64xf32, #tpu.memory_space<vmem>>, vector<64x64xf32>
    %c0_483 = arith.constant 0 : index
    %c0_484 = arith.constant 0 : index
    %349 = vector.load %arg7[%c0_483, %c0_484] : memref<64x32xf32, #tpu.memory_space<vmem>>, vector<64x32xf32>
    %350 = arith.truncf %349 : vector<64x32xf32> to vector<64x32xbf16>
    %c256 = arith.constant 256 : index
    %c0_485 = arith.constant 0 : index
    %351 = vector.load %arg4[%c256, %c0_485] : memref<288x64xbf16, #tpu.memory_space<vmem>>, vector<32x64xbf16>
    %cst_486 = arith.constant dense<0.000000e+00> : vector<64x64xf32>
    %352 = tpu.matmul %350, %351, %cst_486 {dimension_numbers = #tpu.dot_dimension_numbers<[1], [0], [0], [1], [0, 0, 1, 1], [], []>} : vector<64x32xbf16>, vector<32x64xbf16>, vector<64x64xf32> -> vector<64x64xf32>
    %353 = arith.addf %348, %352 : vector<64x64xf32>
    %c0_487 = arith.constant 0 : index
    %c0_488 = arith.constant 0 : index
    %354 = vector.load %arg8[%c0_487, %c0_488] : memref<64x64xf32, #tpu.memory_space<vmem>>, vector<64x64xf32>
    tpu.vector_store %arg8[%c0_487, %c0_488], %353 {strides = array<i32>} : memref<64x64xf32, #tpu.memory_space<vmem>>, vector<64x64xf32>,
    %c0_489 = arith.constant 0 : index
    %c0_490 = arith.constant 0 : index
    %355 = vector.load %arg8[%c0_489, %c0_490] : memref<64x64xf32, #tpu.memory_space<vmem>>, vector<64x64xf32>
    %c0_491 = arith.constant 0 : index
    %c0_492 = arith.constant 0 : index
    %356 = vector.load %arg5[%c0_491, %c0_492] : memref<1x64xf32, #tpu.memory_space<vmem>>, vector<1x64xf32>
    %357 = vector.broadcast %356 : vector<1x64xf32> to vector<64x64xf32>
    %358 = arith.addf %355, %357 : vector<64x64xf32>
    %cst_493 = arith.constant 0.000000e+00 : f32
    %359 = vector.broadcast %cst_493 : f32 to vector<64x64xf32>
    %360 = arith.maximumf %358, %359 : vector<64x64xf32>
    %361 = arith.truncf %360 : vector<64x64xf32> to vector<64x64xbf16>
    %c0_494 = arith.constant 0 : index
    %c0_495 = arith.constant 0 : index
    %c0_496 = arith.constant 0 : index
    %362 = vector.load %arg6[%c0_494, %c0_495, %c0_496] : memref<1x64x64xbf16, #tpu.memory_space<vmem>>, vector<1x64x64xbf16>
    %363 = vector.shape_cast %362 : vector<1x64x64xbf16> to vector<64x64xbf16>
    %364 = vector.shape_cast %361 : vector<64x64xbf16> to vector<1x64x64xbf16>
    tpu.vector_store %arg6[%c0_494, %c0_495, %c0_496], %364 {strides = array<i32>} : memref<1x64x64xbf16, #tpu.memory_space<vmem>>, vector<1x64x64xbf16>,
    return
  }
  func.func @transform_0(%arg0: i32) -> (i32, i32, i32, i32) {
    %c0_i32 = arith.constant 0 : i32
    %c0_i32_0 = arith.constant 0 : i32
    %c0_i32_1 = arith.constant 0 : i32
    %c0_i32_2 = arith.constant 0 : i32
    return %arg0, %c0_i32, %c0_i32_0, %c0_i32_1 : i32, i32, i32, i32
  }
  func.func @transform_1(%arg0: i32) -> (i32, i32, i32, i32) {
    %c0_i32 = arith.constant 0 : i32
    %c0_i32_0 = arith.constant 0 : i32
    %c0_i32_1 = arith.constant 0 : i32
    %c0_i32_2 = arith.constant 0 : i32
    return %arg0, %c0_i32, %c0_i32_0, %c0_i32_1 : i32, i32, i32, i32
  }
  func.func @transform_2(%arg0: i32) -> (i32, i32, i32, i32) {
    %c0_i32 = arith.constant 0 : i32
    %c0_i32_0 = arith.constant 0 : i32
    %c0_i32_1 = arith.constant 0 : i32
    %c0_i32_2 = arith.constant 0 : i32
    return %arg0, %c0_i32, %c0_i32_0, %c0_i32_1 : i32, i32, i32, i32
  }
  func.func @transform_3(%arg0: i32) -> (i32, i32) {
    %c0_i32 = arith.constant 0 : i32
    %c0_i32_0 = arith.constant 0 : i32
    %c0_i32_1 = arith.constant 0 : i32
    return %c0_i32, %c0_i32_0 : i32, i32
  }
  func.func @transform_4(%arg0: i32) -> (i32, i32) {
    %c0_i32 = arith.constant 0 : i32
    %c0_i32_0 = arith.constant 0 : i32
    %c0_i32_1 = arith.constant 0 : i32
    return %c0_i32, %c0_i32_0 : i32, i32
  }
  func.func @transform_5(%arg0: i32) -> (i32, i32, i32) {
    %c0_i32 = arith.constant 0 : i32
    %c0_i32_0 = arith.constant 0 : i32
    %c0_i32_1 = arith.constant 0 : i32
    return %arg0, %c0_i32, %c0_i32_0 : i32, i32, i32
  }
}

module attributes {stable_mosaic.version = 11 : i64} {
  func.func @_conv3x3s2_kernel(%arg0: i32, %arg1: memref<1x10x4x64xbf16, #tpu.memory_space<vmem>>, %arg2: memref<1x10x4x64xbf16, #tpu.memory_space<vmem>>, %arg3: memref<1x10x4x64xbf16, #tpu.memory_space<vmem>>, %arg4: memref<576x128xbf16, #tpu.memory_space<vmem>>, %arg5: memref<1x128xf32, #tpu.memory_space<vmem>>, %arg6: memref<1x32x128xbf16, #tpu.memory_space<vmem>>, %arg7: memref<32x64xf32, #tpu.memory_space<vmem>>, %arg8: memref<32x128xf32, #tpu.memory_space<vmem>>) attributes {dimension_semantics = [#tpu.dimension_semantics<parallel>], iteration_bounds = array<i64: 2>, scalar_prefetch = 0 : i64, scratch_operands = 2 : i64, tpu.core_type = #tpu.core_type<tc>, window_params = [{transform_indices = @transform_0, window_bounds = array<i64: 1, 10, 4, 64>}, {transform_indices = @transform_1, window_bounds = array<i64: 1, 10, 4, 64>}, {transform_indices = @transform_2, window_bounds = array<i64: 1, 10, 4, 64>}, {pipeline_mode = #tpu.pipeline_mode<synchronous>, transform_indices = @transform_3, window_bounds = array<i64: 576, 128>}, {pipeline_mode = #tpu.pipeline_mode<synchronous>, transform_indices = @transform_4, window_bounds = array<i64: 1, 128>}, {transform_indices = @transform_5, window_bounds = array<i64: 1, 32, 128>}]} {
    %cst = arith.constant 0.000000e+00 : f32
    %0 = vector.broadcast %cst : f32 to vector<32x64xf32>
    %c0 = arith.constant 0 : index
    %c0_0 = arith.constant 0 : index
    %1 = vector.load %arg7[%c0, %c0_0] : memref<32x64xf32, #tpu.memory_space<vmem>>, vector<32x64xf32>
    tpu.vector_store %arg7[%c0, %c0_0], %0 {strides = array<i32>} : memref<32x64xf32, #tpu.memory_space<vmem>>, vector<32x64xf32>,
    %cst_1 = arith.constant 0.000000e+00 : f32
    %2 = vector.broadcast %cst_1 : f32 to vector<32x128xf32>
    %c0_2 = arith.constant 0 : index
    %c0_3 = arith.constant 0 : index
    %3 = vector.load %arg8[%c0_2, %c0_3] : memref<32x128xf32, #tpu.memory_space<vmem>>, vector<32x128xf32>
    tpu.vector_store %arg8[%c0_2, %c0_3], %2 {strides = array<i32>} : memref<32x128xf32, #tpu.memory_space<vmem>>, vector<32x128xf32>,
    %c0_4 = arith.constant 0 : index
    %c0_5 = arith.constant 0 : index
    %c0_6 = arith.constant 0 : index
    %c0_7 = arith.constant 0 : index
    %4 = vector.load %arg1[%c0_4, %c0_5, %c0_6, %c0_7] : memref<1x10x4x64xbf16, #tpu.memory_space<vmem>>, vector<1x1x4x64xbf16>
    %5 = vector.shape_cast %4 : vector<1x1x4x64xbf16> to vector<4x64xbf16>
    %6 = arith.extf %5 : vector<4x64xbf16> to vector<4x64xf32>
    %c0_8 = arith.constant 0 : index
    %c0_9 = arith.constant 0 : index
    %7 = vector.load %arg7[%c0_8, %c0_9] : memref<32x64xf32, #tpu.memory_space<vmem>>, vector<4x64xf32>
    tpu.vector_store %arg7[%c0_8, %c0_9], %6 {strides = array<i32>} : memref<32x64xf32, #tpu.memory_space<vmem>>, vector<4x64xf32>,
    %c0_10 = arith.constant 0 : index
    %c2 = arith.constant 2 : index
    %c0_11 = arith.constant 0 : index
    %c0_12 = arith.constant 0 : index
    %8 = vector.load %arg1[%c0_10, %c2, %c0_11, %c0_12] : memref<1x10x4x64xbf16, #tpu.memory_space<vmem>>, vector<1x1x4x64xbf16>
    %9 = vector.shape_cast %8 : vector<1x1x4x64xbf16> to vector<4x64xbf16>
    %10 = arith.extf %9 : vector<4x64xbf16> to vector<4x64xf32>
    %c8 = arith.constant 8 : index
    %c0_13 = arith.constant 0 : index
    %11 = vector.load %arg7[%c8, %c0_13] : memref<32x64xf32, #tpu.memory_space<vmem>>, vector<4x64xf32>
    tpu.vector_store %arg7[%c8, %c0_13], %10 {strides = array<i32>} : memref<32x64xf32, #tpu.memory_space<vmem>>, vector<4x64xf32>,
    %c0_14 = arith.constant 0 : index
    %c4 = arith.constant 4 : index
    %c0_15 = arith.constant 0 : index
    %c0_16 = arith.constant 0 : index
    %12 = vector.load %arg1[%c0_14, %c4, %c0_15, %c0_16] : memref<1x10x4x64xbf16, #tpu.memory_space<vmem>>, vector<1x1x4x64xbf16>
    %13 = vector.shape_cast %12 : vector<1x1x4x64xbf16> to vector<4x64xbf16>
    %14 = arith.extf %13 : vector<4x64xbf16> to vector<4x64xf32>
    %c16 = arith.constant 16 : index
    %c0_17 = arith.constant 0 : index
    %15 = vector.load %arg7[%c16, %c0_17] : memref<32x64xf32, #tpu.memory_space<vmem>>, vector<4x64xf32>
    tpu.vector_store %arg7[%c16, %c0_17], %14 {strides = array<i32>} : memref<32x64xf32, #tpu.memory_space<vmem>>, vector<4x64xf32>,
    %c0_18 = arith.constant 0 : index
    %c6 = arith.constant 6 : index
    %c0_19 = arith.constant 0 : index
    %c0_20 = arith.constant 0 : index
    %16 = vector.load %arg1[%c0_18, %c6, %c0_19, %c0_20] : memref<1x10x4x64xbf16, #tpu.memory_space<vmem>>, vector<1x1x4x64xbf16>
    %17 = vector.shape_cast %16 : vector<1x1x4x64xbf16> to vector<4x64xbf16>
    %18 = arith.extf %17 : vector<4x64xbf16> to vector<4x64xf32>
    %c24 = arith.constant 24 : index
    %c0_21 = arith.constant 0 : index
    %19 = vector.load %arg7[%c24, %c0_21] : memref<32x64xf32, #tpu.memory_space<vmem>>, vector<4x64xf32>
    tpu.vector_store %arg7[%c24, %c0_21], %18 {strides = array<i32>} : memref<32x64xf32, #tpu.memory_space<vmem>>, vector<4x64xf32>,
    %c0_22 = arith.constant 0 : index
    %c0_23 = arith.constant 0 : index
    %20 = vector.load %arg8[%c0_22, %c0_23] : memref<32x128xf32, #tpu.memory_space<vmem>>, vector<32x128xf32>
    %c0_24 = arith.constant 0 : index
    %c0_25 = arith.constant 0 : index
    %21 = vector.load %arg7[%c0_24, %c0_25] : memref<32x64xf32, #tpu.memory_space<vmem>>, vector<32x64xf32>
    %22 = arith.truncf %21 : vector<32x64xf32> to vector<32x64xbf16>
    %c0_26 = arith.constant 0 : index
    %c0_27 = arith.constant 0 : index
    %23 = vector.load %arg4[%c0_26, %c0_27] : memref<576x128xbf16, #tpu.memory_space<vmem>>, vector<64x128xbf16>
    %cst_28 = arith.constant dense<0.000000e+00> : vector<32x128xf32>
    %24 = tpu.matmul %22, %23, %cst_28 {dimension_numbers = #tpu.dot_dimension_numbers<[1], [0], [0], [1], [0, 0, 1, 1], [], []>} : vector<32x64xbf16>, vector<64x128xbf16>, vector<32x128xf32> -> vector<32x128xf32>
    %25 = arith.addf %20, %24 : vector<32x128xf32>
    %c0_29 = arith.constant 0 : index
    %c0_30 = arith.constant 0 : index
    %26 = vector.load %arg8[%c0_29, %c0_30] : memref<32x128xf32, #tpu.memory_space<vmem>>, vector<32x128xf32>
    tpu.vector_store %arg8[%c0_29, %c0_30], %25 {strides = array<i32>} : memref<32x128xf32, #tpu.memory_space<vmem>>, vector<32x128xf32>,
    %c0_31 = arith.constant 0 : index
    %c0_32 = arith.constant 0 : index
    %c0_33 = arith.constant 0 : index
    %c0_34 = arith.constant 0 : index
    %27 = vector.load %arg2[%c0_31, %c0_32, %c0_33, %c0_34] : memref<1x10x4x64xbf16, #tpu.memory_space<vmem>>, vector<1x1x4x64xbf16>
    %28 = vector.shape_cast %27 : vector<1x1x4x64xbf16> to vector<4x64xbf16>
    %29 = arith.extf %28 : vector<4x64xbf16> to vector<4x64xf32>
    %c0_35 = arith.constant 0 : index
    %c0_36 = arith.constant 0 : index
    %30 = vector.load %arg7[%c0_35, %c0_36] : memref<32x64xf32, #tpu.memory_space<vmem>>, vector<4x64xf32>
    tpu.vector_store %arg7[%c0_35, %c0_36], %29 {strides = array<i32>} : memref<32x64xf32, #tpu.memory_space<vmem>>, vector<4x64xf32>,
    %c0_37 = arith.constant 0 : index
    %c2_38 = arith.constant 2 : index
    %c0_39 = arith.constant 0 : index
    %c0_40 = arith.constant 0 : index
    %31 = vector.load %arg2[%c0_37, %c2_38, %c0_39, %c0_40] : memref<1x10x4x64xbf16, #tpu.memory_space<vmem>>, vector<1x1x4x64xbf16>
    %32 = vector.shape_cast %31 : vector<1x1x4x64xbf16> to vector<4x64xbf16>
    %33 = arith.extf %32 : vector<4x64xbf16> to vector<4x64xf32>
    %c8_41 = arith.constant 8 : index
    %c0_42 = arith.constant 0 : index
    %34 = vector.load %arg7[%c8_41, %c0_42] : memref<32x64xf32, #tpu.memory_space<vmem>>, vector<4x64xf32>
    tpu.vector_store %arg7[%c8_41, %c0_42], %33 {strides = array<i32>} : memref<32x64xf32, #tpu.memory_space<vmem>>, vector<4x64xf32>,
    %c0_43 = arith.constant 0 : index
    %c4_44 = arith.constant 4 : index
    %c0_45 = arith.constant 0 : index
    %c0_46 = arith.constant 0 : index
    %35 = vector.load %arg2[%c0_43, %c4_44, %c0_45, %c0_46] : memref<1x10x4x64xbf16, #tpu.memory_space<vmem>>, vector<1x1x4x64xbf16>
    %36 = vector.shape_cast %35 : vector<1x1x4x64xbf16> to vector<4x64xbf16>
    %37 = arith.extf %36 : vector<4x64xbf16> to vector<4x64xf32>
    %c16_47 = arith.constant 16 : index
    %c0_48 = arith.constant 0 : index
    %38 = vector.load %arg7[%c16_47, %c0_48] : memref<32x64xf32, #tpu.memory_space<vmem>>, vector<4x64xf32>
    tpu.vector_store %arg7[%c16_47, %c0_48], %37 {strides = array<i32>} : memref<32x64xf32, #tpu.memory_space<vmem>>, vector<4x64xf32>,
    %c0_49 = arith.constant 0 : index
    %c6_50 = arith.constant 6 : index
    %c0_51 = arith.constant 0 : index
    %c0_52 = arith.constant 0 : index
    %39 = vector.load %arg2[%c0_49, %c6_50, %c0_51, %c0_52] : memref<1x10x4x64xbf16, #tpu.memory_space<vmem>>, vector<1x1x4x64xbf16>
    %40 = vector.shape_cast %39 : vector<1x1x4x64xbf16> to vector<4x64xbf16>
    %41 = arith.extf %40 : vector<4x64xbf16> to vector<4x64xf32>
    %c24_53 = arith.constant 24 : index
    %c0_54 = arith.constant 0 : index
    %42 = vector.load %arg7[%c24_53, %c0_54] : memref<32x64xf32, #tpu.memory_space<vmem>>, vector<4x64xf32>
    tpu.vector_store %arg7[%c24_53, %c0_54], %41 {strides = array<i32>} : memref<32x64xf32, #tpu.memory_space<vmem>>, vector<4x64xf32>,
    %c0_55 = arith.constant 0 : index
    %c0_56 = arith.constant 0 : index
    %43 = vector.load %arg8[%c0_55, %c0_56] : memref<32x128xf32, #tpu.memory_space<vmem>>, vector<32x128xf32>
    %c0_57 = arith.constant 0 : index
    %c0_58 = arith.constant 0 : index
    %44 = vector.load %arg7[%c0_57, %c0_58] : memref<32x64xf32, #tpu.memory_space<vmem>>, vector<32x64xf32>
    %45 = arith.truncf %44 : vector<32x64xf32> to vector<32x64xbf16>
    %c64 = arith.constant 64 : index
    %c0_59 = arith.constant 0 : index
    %46 = vector.load %arg4[%c64, %c0_59] : memref<576x128xbf16, #tpu.memory_space<vmem>>, vector<64x128xbf16>
    %cst_60 = arith.constant dense<0.000000e+00> : vector<32x128xf32>
    %47 = tpu.matmul %45, %46, %cst_60 {dimension_numbers = #tpu.dot_dimension_numbers<[1], [0], [0], [1], [0, 0, 1, 1], [], []>} : vector<32x64xbf16>, vector<64x128xbf16>, vector<32x128xf32> -> vector<32x128xf32>
    %48 = arith.addf %43, %47 : vector<32x128xf32>
    %c0_61 = arith.constant 0 : index
    %c0_62 = arith.constant 0 : index
    %49 = vector.load %arg8[%c0_61, %c0_62] : memref<32x128xf32, #tpu.memory_space<vmem>>, vector<32x128xf32>
    tpu.vector_store %arg8[%c0_61, %c0_62], %48 {strides = array<i32>} : memref<32x128xf32, #tpu.memory_space<vmem>>, vector<32x128xf32>,
    %c0_63 = arith.constant 0 : index
    %c0_64 = arith.constant 0 : index
    %c0_65 = arith.constant 0 : index
    %c0_66 = arith.constant 0 : index
    %50 = vector.load %arg3[%c0_63, %c0_64, %c0_65, %c0_66] : memref<1x10x4x64xbf16, #tpu.memory_space<vmem>>, vector<1x1x4x64xbf16>
    %51 = vector.shape_cast %50 : vector<1x1x4x64xbf16> to vector<4x64xbf16>
    %52 = arith.extf %51 : vector<4x64xbf16> to vector<4x64xf32>
    %c0_67 = arith.constant 0 : index
    %c0_68 = arith.constant 0 : index
    %53 = vector.load %arg7[%c0_67, %c0_68] : memref<32x64xf32, #tpu.memory_space<vmem>>, vector<4x64xf32>
    tpu.vector_store %arg7[%c0_67, %c0_68], %52 {strides = array<i32>} : memref<32x64xf32, #tpu.memory_space<vmem>>, vector<4x64xf32>,
    %c0_69 = arith.constant 0 : index
    %c2_70 = arith.constant 2 : index
    %c0_71 = arith.constant 0 : index
    %c0_72 = arith.constant 0 : index
    %54 = vector.load %arg3[%c0_69, %c2_70, %c0_71, %c0_72] : memref<1x10x4x64xbf16, #tpu.memory_space<vmem>>, vector<1x1x4x64xbf16>
    %55 = vector.shape_cast %54 : vector<1x1x4x64xbf16> to vector<4x64xbf16>
    %56 = arith.extf %55 : vector<4x64xbf16> to vector<4x64xf32>
    %c8_73 = arith.constant 8 : index
    %c0_74 = arith.constant 0 : index
    %57 = vector.load %arg7[%c8_73, %c0_74] : memref<32x64xf32, #tpu.memory_space<vmem>>, vector<4x64xf32>
    tpu.vector_store %arg7[%c8_73, %c0_74], %56 {strides = array<i32>} : memref<32x64xf32, #tpu.memory_space<vmem>>, vector<4x64xf32>,
    %c0_75 = arith.constant 0 : index
    %c4_76 = arith.constant 4 : index
    %c0_77 = arith.constant 0 : index
    %c0_78 = arith.constant 0 : index
    %58 = vector.load %arg3[%c0_75, %c4_76, %c0_77, %c0_78] : memref<1x10x4x64xbf16, #tpu.memory_space<vmem>>, vector<1x1x4x64xbf16>
    %59 = vector.shape_cast %58 : vector<1x1x4x64xbf16> to vector<4x64xbf16>
    %60 = arith.extf %59 : vector<4x64xbf16> to vector<4x64xf32>
    %c16_79 = arith.constant 16 : index
    %c0_80 = arith.constant 0 : index
    %61 = vector.load %arg7[%c16_79, %c0_80] : memref<32x64xf32, #tpu.memory_space<vmem>>, vector<4x64xf32>
    tpu.vector_store %arg7[%c16_79, %c0_80], %60 {strides = array<i32>} : memref<32x64xf32, #tpu.memory_space<vmem>>, vector<4x64xf32>,
    %c0_81 = arith.constant 0 : index
    %c6_82 = arith.constant 6 : index
    %c0_83 = arith.constant 0 : index
    %c0_84 = arith.constant 0 : index
    %62 = vector.load %arg3[%c0_81, %c6_82, %c0_83, %c0_84] : memref<1x10x4x64xbf16, #tpu.memory_space<vmem>>, vector<1x1x4x64xbf16>
    %63 = vector.shape_cast %62 : vector<1x1x4x64xbf16> to vector<4x64xbf16>
    %64 = arith.extf %63 : vector<4x64xbf16> to vector<4x64xf32>
    %c24_85 = arith.constant 24 : index
    %c0_86 = arith.constant 0 : index
    %65 = vector.load %arg7[%c24_85, %c0_86] : memref<32x64xf32, #tpu.memory_space<vmem>>, vector<4x64xf32>
    tpu.vector_store %arg7[%c24_85, %c0_86], %64 {strides = array<i32>} : memref<32x64xf32, #tpu.memory_space<vmem>>, vector<4x64xf32>,
    %c0_87 = arith.constant 0 : index
    %c0_88 = arith.constant 0 : index
    %66 = vector.load %arg8[%c0_87, %c0_88] : memref<32x128xf32, #tpu.memory_space<vmem>>, vector<32x128xf32>
    %c0_89 = arith.constant 0 : index
    %c0_90 = arith.constant 0 : index
    %67 = vector.load %arg7[%c0_89, %c0_90] : memref<32x64xf32, #tpu.memory_space<vmem>>, vector<32x64xf32>
    %68 = arith.truncf %67 : vector<32x64xf32> to vector<32x64xbf16>
    %c128 = arith.constant 128 : index
    %c0_91 = arith.constant 0 : index
    %69 = vector.load %arg4[%c128, %c0_91] : memref<576x128xbf16, #tpu.memory_space<vmem>>, vector<64x128xbf16>
    %cst_92 = arith.constant dense<0.000000e+00> : vector<32x128xf32>
    %70 = tpu.matmul %68, %69, %cst_92 {dimension_numbers = #tpu.dot_dimension_numbers<[1], [0], [0], [1], [0, 0, 1, 1], [], []>} : vector<32x64xbf16>, vector<64x128xbf16>, vector<32x128xf32> -> vector<32x128xf32>
    %71 = arith.addf %66, %70 : vector<32x128xf32>
    %c0_93 = arith.constant 0 : index
    %c0_94 = arith.constant 0 : index
    %72 = vector.load %arg8[%c0_93, %c0_94] : memref<32x128xf32, #tpu.memory_space<vmem>>, vector<32x128xf32>
    tpu.vector_store %arg8[%c0_93, %c0_94], %71 {strides = array<i32>} : memref<32x128xf32, #tpu.memory_space<vmem>>, vector<32x128xf32>,
    %c0_95 = arith.constant 0 : index
    %c1 = arith.constant 1 : index
    %c0_96 = arith.constant 0 : index
    %c0_97 = arith.constant 0 : index
    %73 = vector.load %arg1[%c0_95, %c1, %c0_96, %c0_97] : memref<1x10x4x64xbf16, #tpu.memory_space<vmem>>, vector<1x1x4x64xbf16>
    %74 = vector.shape_cast %73 : vector<1x1x4x64xbf16> to vector<4x64xbf16>
    %75 = arith.extf %74 : vector<4x64xbf16> to vector<4x64xf32>
    %c0_98 = arith.constant 0 : index
    %c0_99 = arith.constant 0 : index
    %76 = vector.load %arg7[%c0_98, %c0_99] : memref<32x64xf32, #tpu.memory_space<vmem>>, vector<4x64xf32>
    tpu.vector_store %arg7[%c0_98, %c0_99], %75 {strides = array<i32>} : memref<32x64xf32, #tpu.memory_space<vmem>>, vector<4x64xf32>,
    %c0_100 = arith.constant 0 : index
    %c3 = arith.constant 3 : index
    %c0_101 = arith.constant 0 : index
    %c0_102 = arith.constant 0 : index
    %77 = vector.load %arg1[%c0_100, %c3, %c0_101, %c0_102] : memref<1x10x4x64xbf16, #tpu.memory_space<vmem>>, vector<1x1x4x64xbf16>
    %78 = vector.shape_cast %77 : vector<1x1x4x64xbf16> to vector<4x64xbf16>
    %79 = arith.extf %78 : vector<4x64xbf16> to vector<4x64xf32>
    %c8_103 = arith.constant 8 : index
    %c0_104 = arith.constant 0 : index
    %80 = vector.load %arg7[%c8_103, %c0_104] : memref<32x64xf32, #tpu.memory_space<vmem>>, vector<4x64xf32>
    tpu.vector_store %arg7[%c8_103, %c0_104], %79 {strides = array<i32>} : memref<32x64xf32, #tpu.memory_space<vmem>>, vector<4x64xf32>,
    %c0_105 = arith.constant 0 : index
    %c5 = arith.constant 5 : index
    %c0_106 = arith.constant 0 : index
    %c0_107 = arith.constant 0 : index
    %81 = vector.load %arg1[%c0_105, %c5, %c0_106, %c0_107] : memref<1x10x4x64xbf16, #tpu.memory_space<vmem>>, vector<1x1x4x64xbf16>
    %82 = vector.shape_cast %81 : vector<1x1x4x64xbf16> to vector<4x64xbf16>
    %83 = arith.extf %82 : vector<4x64xbf16> to vector<4x64xf32>
    %c16_108 = arith.constant 16 : index
    %c0_109 = arith.constant 0 : index
    %84 = vector.load %arg7[%c16_108, %c0_109] : memref<32x64xf32, #tpu.memory_space<vmem>>, vector<4x64xf32>
    tpu.vector_store %arg7[%c16_108, %c0_109], %83 {strides = array<i32>} : memref<32x64xf32, #tpu.memory_space<vmem>>, vector<4x64xf32>,
    %c0_110 = arith.constant 0 : index
    %c7 = arith.constant 7 : index
    %c0_111 = arith.constant 0 : index
    %c0_112 = arith.constant 0 : index
    %85 = vector.load %arg1[%c0_110, %c7, %c0_111, %c0_112] : memref<1x10x4x64xbf16, #tpu.memory_space<vmem>>, vector<1x1x4x64xbf16>
    %86 = vector.shape_cast %85 : vector<1x1x4x64xbf16> to vector<4x64xbf16>
    %87 = arith.extf %86 : vector<4x64xbf16> to vector<4x64xf32>
    %c24_113 = arith.constant 24 : index
    %c0_114 = arith.constant 0 : index
    %88 = vector.load %arg7[%c24_113, %c0_114] : memref<32x64xf32, #tpu.memory_space<vmem>>, vector<4x64xf32>
    tpu.vector_store %arg7[%c24_113, %c0_114], %87 {strides = array<i32>} : memref<32x64xf32, #tpu.memory_space<vmem>>, vector<4x64xf32>,
    %c0_115 = arith.constant 0 : index
    %c0_116 = arith.constant 0 : index
    %89 = vector.load %arg8[%c0_115, %c0_116] : memref<32x128xf32, #tpu.memory_space<vmem>>, vector<32x128xf32>
    %c0_117 = arith.constant 0 : index
    %c0_118 = arith.constant 0 : index
    %90 = vector.load %arg7[%c0_117, %c0_118] : memref<32x64xf32, #tpu.memory_space<vmem>>, vector<32x64xf32>
    %91 = arith.truncf %90 : vector<32x64xf32> to vector<32x64xbf16>
    %c192 = arith.constant 192 : index
    %c0_119 = arith.constant 0 : index
    %92 = vector.load %arg4[%c192, %c0_119] : memref<576x128xbf16, #tpu.memory_space<vmem>>, vector<64x128xbf16>
    %cst_120 = arith.constant dense<0.000000e+00> : vector<32x128xf32>
    %93 = tpu.matmul %91, %92, %cst_120 {dimension_numbers = #tpu.dot_dimension_numbers<[1], [0], [0], [1], [0, 0, 1, 1], [], []>} : vector<32x64xbf16>, vector<64x128xbf16>, vector<32x128xf32> -> vector<32x128xf32>
    %94 = arith.addf %89, %93 : vector<32x128xf32>
    %c0_121 = arith.constant 0 : index
    %c0_122 = arith.constant 0 : index
    %95 = vector.load %arg8[%c0_121, %c0_122] : memref<32x128xf32, #tpu.memory_space<vmem>>, vector<32x128xf32>
    tpu.vector_store %arg8[%c0_121, %c0_122], %94 {strides = array<i32>} : memref<32x128xf32, #tpu.memory_space<vmem>>, vector<32x128xf32>,
    %c0_123 = arith.constant 0 : index
    %c1_124 = arith.constant 1 : index
    %c0_125 = arith.constant 0 : index
    %c0_126 = arith.constant 0 : index
    %96 = vector.load %arg2[%c0_123, %c1_124, %c0_125, %c0_126] : memref<1x10x4x64xbf16, #tpu.memory_space<vmem>>, vector<1x1x4x64xbf16>
    %97 = vector.shape_cast %96 : vector<1x1x4x64xbf16> to vector<4x64xbf16>
    %98 = arith.extf %97 : vector<4x64xbf16> to vector<4x64xf32>
    %c0_127 = arith.constant 0 : index
    %c0_128 = arith.constant 0 : index
    %99 = vector.load %arg7[%c0_127, %c0_128] : memref<32x64xf32, #tpu.memory_space<vmem>>, vector<4x64xf32>
    tpu.vector_store %arg7[%c0_127, %c0_128], %98 {strides = array<i32>} : memref<32x64xf32, #tpu.memory_space<vmem>>, vector<4x64xf32>,
    %c0_129 = arith.constant 0 : index
    %c3_130 = arith.constant 3 : index
    %c0_131 = arith.constant 0 : index
    %c0_132 = arith.constant 0 : index
    %100 = vector.load %arg2[%c0_129, %c3_130, %c0_131, %c0_132] : memref<1x10x4x64xbf16, #tpu.memory_space<vmem>>, vector<1x1x4x64xbf16>
    %101 = vector.shape_cast %100 : vector<1x1x4x64xbf16> to vector<4x64xbf16>
    %102 = arith.extf %101 : vector<4x64xbf16> to vector<4x64xf32>
    %c8_133 = arith.constant 8 : index
    %c0_134 = arith.constant 0 : index
    %103 = vector.load %arg7[%c8_133, %c0_134] : memref<32x64xf32, #tpu.memory_space<vmem>>, vector<4x64xf32>
    tpu.vector_store %arg7[%c8_133, %c0_134], %102 {strides = array<i32>} : memref<32x64xf32, #tpu.memory_space<vmem>>, vector<4x64xf32>,
    %c0_135 = arith.constant 0 : index
    %c5_136 = arith.constant 5 : index
    %c0_137 = arith.constant 0 : index
    %c0_138 = arith.constant 0 : index
    %104 = vector.load %arg2[%c0_135, %c5_136, %c0_137, %c0_138] : memref<1x10x4x64xbf16, #tpu.memory_space<vmem>>, vector<1x1x4x64xbf16>
    %105 = vector.shape_cast %104 : vector<1x1x4x64xbf16> to vector<4x64xbf16>
    %106 = arith.extf %105 : vector<4x64xbf16> to vector<4x64xf32>
    %c16_139 = arith.constant 16 : index
    %c0_140 = arith.constant 0 : index
    %107 = vector.load %arg7[%c16_139, %c0_140] : memref<32x64xf32, #tpu.memory_space<vmem>>, vector<4x64xf32>
    tpu.vector_store %arg7[%c16_139, %c0_140], %106 {strides = array<i32>} : memref<32x64xf32, #tpu.memory_space<vmem>>, vector<4x64xf32>,
    %c0_141 = arith.constant 0 : index
    %c7_142 = arith.constant 7 : index
    %c0_143 = arith.constant 0 : index
    %c0_144 = arith.constant 0 : index
    %108 = vector.load %arg2[%c0_141, %c7_142, %c0_143, %c0_144] : memref<1x10x4x64xbf16, #tpu.memory_space<vmem>>, vector<1x1x4x64xbf16>
    %109 = vector.shape_cast %108 : vector<1x1x4x64xbf16> to vector<4x64xbf16>
    %110 = arith.extf %109 : vector<4x64xbf16> to vector<4x64xf32>
    %c24_145 = arith.constant 24 : index
    %c0_146 = arith.constant 0 : index
    %111 = vector.load %arg7[%c24_145, %c0_146] : memref<32x64xf32, #tpu.memory_space<vmem>>, vector<4x64xf32>
    tpu.vector_store %arg7[%c24_145, %c0_146], %110 {strides = array<i32>} : memref<32x64xf32, #tpu.memory_space<vmem>>, vector<4x64xf32>,
    %c0_147 = arith.constant 0 : index
    %c0_148 = arith.constant 0 : index
    %112 = vector.load %arg8[%c0_147, %c0_148] : memref<32x128xf32, #tpu.memory_space<vmem>>, vector<32x128xf32>
    %c0_149 = arith.constant 0 : index
    %c0_150 = arith.constant 0 : index
    %113 = vector.load %arg7[%c0_149, %c0_150] : memref<32x64xf32, #tpu.memory_space<vmem>>, vector<32x64xf32>
    %114 = arith.truncf %113 : vector<32x64xf32> to vector<32x64xbf16>
    %c256 = arith.constant 256 : index
    %c0_151 = arith.constant 0 : index
    %115 = vector.load %arg4[%c256, %c0_151] : memref<576x128xbf16, #tpu.memory_space<vmem>>, vector<64x128xbf16>
    %cst_152 = arith.constant dense<0.000000e+00> : vector<32x128xf32>
    %116 = tpu.matmul %114, %115, %cst_152 {dimension_numbers = #tpu.dot_dimension_numbers<[1], [0], [0], [1], [0, 0, 1, 1], [], []>} : vector<32x64xbf16>, vector<64x128xbf16>, vector<32x128xf32> -> vector<32x128xf32>
    %117 = arith.addf %112, %116 : vector<32x128xf32>
    %c0_153 = arith.constant 0 : index
    %c0_154 = arith.constant 0 : index
    %118 = vector.load %arg8[%c0_153, %c0_154] : memref<32x128xf32, #tpu.memory_space<vmem>>, vector<32x128xf32>
    tpu.vector_store %arg8[%c0_153, %c0_154], %117 {strides = array<i32>} : memref<32x128xf32, #tpu.memory_space<vmem>>, vector<32x128xf32>,
    %c0_155 = arith.constant 0 : index
    %c1_156 = arith.constant 1 : index
    %c0_157 = arith.constant 0 : index
    %c0_158 = arith.constant 0 : index
    %119 = vector.load %arg3[%c0_155, %c1_156, %c0_157, %c0_158] : memref<1x10x4x64xbf16, #tpu.memory_space<vmem>>, vector<1x1x4x64xbf16>
    %120 = vector.shape_cast %119 : vector<1x1x4x64xbf16> to vector<4x64xbf16>
    %121 = arith.extf %120 : vector<4x64xbf16> to vector<4x64xf32>
    %c0_159 = arith.constant 0 : index
    %c0_160 = arith.constant 0 : index
    %122 = vector.load %arg7[%c0_159, %c0_160] : memref<32x64xf32, #tpu.memory_space<vmem>>, vector<4x64xf32>
    tpu.vector_store %arg7[%c0_159, %c0_160], %121 {strides = array<i32>} : memref<32x64xf32, #tpu.memory_space<vmem>>, vector<4x64xf32>,
    %c0_161 = arith.constant 0 : index
    %c3_162 = arith.constant 3 : index
    %c0_163 = arith.constant 0 : index
    %c0_164 = arith.constant 0 : index
    %123 = vector.load %arg3[%c0_161, %c3_162, %c0_163, %c0_164] : memref<1x10x4x64xbf16, #tpu.memory_space<vmem>>, vector<1x1x4x64xbf16>
    %124 = vector.shape_cast %123 : vector<1x1x4x64xbf16> to vector<4x64xbf16>
    %125 = arith.extf %124 : vector<4x64xbf16> to vector<4x64xf32>
    %c8_165 = arith.constant 8 : index
    %c0_166 = arith.constant 0 : index
    %126 = vector.load %arg7[%c8_165, %c0_166] : memref<32x64xf32, #tpu.memory_space<vmem>>, vector<4x64xf32>
    tpu.vector_store %arg7[%c8_165, %c0_166], %125 {strides = array<i32>} : memref<32x64xf32, #tpu.memory_space<vmem>>, vector<4x64xf32>,
    %c0_167 = arith.constant 0 : index
    %c5_168 = arith.constant 5 : index
    %c0_169 = arith.constant 0 : index
    %c0_170 = arith.constant 0 : index
    %127 = vector.load %arg3[%c0_167, %c5_168, %c0_169, %c0_170] : memref<1x10x4x64xbf16, #tpu.memory_space<vmem>>, vector<1x1x4x64xbf16>
    %128 = vector.shape_cast %127 : vector<1x1x4x64xbf16> to vector<4x64xbf16>
    %129 = arith.extf %128 : vector<4x64xbf16> to vector<4x64xf32>
    %c16_171 = arith.constant 16 : index
    %c0_172 = arith.constant 0 : index
    %130 = vector.load %arg7[%c16_171, %c0_172] : memref<32x64xf32, #tpu.memory_space<vmem>>, vector<4x64xf32>
    tpu.vector_store %arg7[%c16_171, %c0_172], %129 {strides = array<i32>} : memref<32x64xf32, #tpu.memory_space<vmem>>, vector<4x64xf32>,
    %c0_173 = arith.constant 0 : index
    %c7_174 = arith.constant 7 : index
    %c0_175 = arith.constant 0 : index
    %c0_176 = arith.constant 0 : index
    %131 = vector.load %arg3[%c0_173, %c7_174, %c0_175, %c0_176] : memref<1x10x4x64xbf16, #tpu.memory_space<vmem>>, vector<1x1x4x64xbf16>
    %132 = vector.shape_cast %131 : vector<1x1x4x64xbf16> to vector<4x64xbf16>
    %133 = arith.extf %132 : vector<4x64xbf16> to vector<4x64xf32>
    %c24_177 = arith.constant 24 : index
    %c0_178 = arith.constant 0 : index
    %134 = vector.load %arg7[%c24_177, %c0_178] : memref<32x64xf32, #tpu.memory_space<vmem>>, vector<4x64xf32>
    tpu.vector_store %arg7[%c24_177, %c0_178], %133 {strides = array<i32>} : memref<32x64xf32, #tpu.memory_space<vmem>>, vector<4x64xf32>,
    %c0_179 = arith.constant 0 : index
    %c0_180 = arith.constant 0 : index
    %135 = vector.load %arg8[%c0_179, %c0_180] : memref<32x128xf32, #tpu.memory_space<vmem>>, vector<32x128xf32>
    %c0_181 = arith.constant 0 : index
    %c0_182 = arith.constant 0 : index
    %136 = vector.load %arg7[%c0_181, %c0_182] : memref<32x64xf32, #tpu.memory_space<vmem>>, vector<32x64xf32>
    %137 = arith.truncf %136 : vector<32x64xf32> to vector<32x64xbf16>
    %c320 = arith.constant 320 : index
    %c0_183 = arith.constant 0 : index
    %138 = vector.load %arg4[%c320, %c0_183] : memref<576x128xbf16, #tpu.memory_space<vmem>>, vector<64x128xbf16>
    %cst_184 = arith.constant dense<0.000000e+00> : vector<32x128xf32>
    %139 = tpu.matmul %137, %138, %cst_184 {dimension_numbers = #tpu.dot_dimension_numbers<[1], [0], [0], [1], [0, 0, 1, 1], [], []>} : vector<32x64xbf16>, vector<64x128xbf16>, vector<32x128xf32> -> vector<32x128xf32>
    %140 = arith.addf %135, %139 : vector<32x128xf32>
    %c0_185 = arith.constant 0 : index
    %c0_186 = arith.constant 0 : index
    %141 = vector.load %arg8[%c0_185, %c0_186] : memref<32x128xf32, #tpu.memory_space<vmem>>, vector<32x128xf32>
    tpu.vector_store %arg8[%c0_185, %c0_186], %140 {strides = array<i32>} : memref<32x128xf32, #tpu.memory_space<vmem>>, vector<32x128xf32>,
    %c0_187 = arith.constant 0 : index
    %c2_188 = arith.constant 2 : index
    %c0_189 = arith.constant 0 : index
    %c0_190 = arith.constant 0 : index
    %142 = vector.load %arg1[%c0_187, %c2_188, %c0_189, %c0_190] : memref<1x10x4x64xbf16, #tpu.memory_space<vmem>>, vector<1x1x4x64xbf16>
    %143 = vector.shape_cast %142 : vector<1x1x4x64xbf16> to vector<4x64xbf16>
    %144 = arith.extf %143 : vector<4x64xbf16> to vector<4x64xf32>
    %c0_191 = arith.constant 0 : index
    %c0_192 = arith.constant 0 : index
    %145 = vector.load %arg7[%c0_191, %c0_192] : memref<32x64xf32, #tpu.memory_space<vmem>>, vector<4x64xf32>
    tpu.vector_store %arg7[%c0_191, %c0_192], %144 {strides = array<i32>} : memref<32x64xf32, #tpu.memory_space<vmem>>, vector<4x64xf32>,
    %c0_193 = arith.constant 0 : index
    %c4_194 = arith.constant 4 : index
    %c0_195 = arith.constant 0 : index
    %c0_196 = arith.constant 0 : index
    %146 = vector.load %arg1[%c0_193, %c4_194, %c0_195, %c0_196] : memref<1x10x4x64xbf16, #tpu.memory_space<vmem>>, vector<1x1x4x64xbf16>
    %147 = vector.shape_cast %146 : vector<1x1x4x64xbf16> to vector<4x64xbf16>
    %148 = arith.extf %147 : vector<4x64xbf16> to vector<4x64xf32>
    %c8_197 = arith.constant 8 : index
    %c0_198 = arith.constant 0 : index
    %149 = vector.load %arg7[%c8_197, %c0_198] : memref<32x64xf32, #tpu.memory_space<vmem>>, vector<4x64xf32>
    tpu.vector_store %arg7[%c8_197, %c0_198], %148 {strides = array<i32>} : memref<32x64xf32, #tpu.memory_space<vmem>>, vector<4x64xf32>,
    %c0_199 = arith.constant 0 : index
    %c6_200 = arith.constant 6 : index
    %c0_201 = arith.constant 0 : index
    %c0_202 = arith.constant 0 : index
    %150 = vector.load %arg1[%c0_199, %c6_200, %c0_201, %c0_202] : memref<1x10x4x64xbf16, #tpu.memory_space<vmem>>, vector<1x1x4x64xbf16>
    %151 = vector.shape_cast %150 : vector<1x1x4x64xbf16> to vector<4x64xbf16>
    %152 = arith.extf %151 : vector<4x64xbf16> to vector<4x64xf32>
    %c16_203 = arith.constant 16 : index
    %c0_204 = arith.constant 0 : index
    %153 = vector.load %arg7[%c16_203, %c0_204] : memref<32x64xf32, #tpu.memory_space<vmem>>, vector<4x64xf32>
    tpu.vector_store %arg7[%c16_203, %c0_204], %152 {strides = array<i32>} : memref<32x64xf32, #tpu.memory_space<vmem>>, vector<4x64xf32>,
    %c0_205 = arith.constant 0 : index
    %c8_206 = arith.constant 8 : index
    %c0_207 = arith.constant 0 : index
    %c0_208 = arith.constant 0 : index
    %154 = vector.load %arg1[%c0_205, %c8_206, %c0_207, %c0_208] : memref<1x10x4x64xbf16, #tpu.memory_space<vmem>>, vector<1x1x4x64xbf16>
    %155 = vector.shape_cast %154 : vector<1x1x4x64xbf16> to vector<4x64xbf16>
    %156 = arith.extf %155 : vector<4x64xbf16> to vector<4x64xf32>
    %c24_209 = arith.constant 24 : index
    %c0_210 = arith.constant 0 : index
    %157 = vector.load %arg7[%c24_209, %c0_210] : memref<32x64xf32, #tpu.memory_space<vmem>>, vector<4x64xf32>
    tpu.vector_store %arg7[%c24_209, %c0_210], %156 {strides = array<i32>} : memref<32x64xf32, #tpu.memory_space<vmem>>, vector<4x64xf32>,
    %c0_211 = arith.constant 0 : index
    %c0_212 = arith.constant 0 : index
    %158 = vector.load %arg8[%c0_211, %c0_212] : memref<32x128xf32, #tpu.memory_space<vmem>>, vector<32x128xf32>
    %c0_213 = arith.constant 0 : index
    %c0_214 = arith.constant 0 : index
    %159 = vector.load %arg7[%c0_213, %c0_214] : memref<32x64xf32, #tpu.memory_space<vmem>>, vector<32x64xf32>
    %160 = arith.truncf %159 : vector<32x64xf32> to vector<32x64xbf16>
    %c384 = arith.constant 384 : index
    %c0_215 = arith.constant 0 : index
    %161 = vector.load %arg4[%c384, %c0_215] : memref<576x128xbf16, #tpu.memory_space<vmem>>, vector<64x128xbf16>
    %cst_216 = arith.constant dense<0.000000e+00> : vector<32x128xf32>
    %162 = tpu.matmul %160, %161, %cst_216 {dimension_numbers = #tpu.dot_dimension_numbers<[1], [0], [0], [1], [0, 0, 1, 1], [], []>} : vector<32x64xbf16>, vector<64x128xbf16>, vector<32x128xf32> -> vector<32x128xf32>
    %163 = arith.addf %158, %162 : vector<32x128xf32>
    %c0_217 = arith.constant 0 : index
    %c0_218 = arith.constant 0 : index
    %164 = vector.load %arg8[%c0_217, %c0_218] : memref<32x128xf32, #tpu.memory_space<vmem>>, vector<32x128xf32>
    tpu.vector_store %arg8[%c0_217, %c0_218], %163 {strides = array<i32>} : memref<32x128xf32, #tpu.memory_space<vmem>>, vector<32x128xf32>,
    %c0_219 = arith.constant 0 : index
    %c2_220 = arith.constant 2 : index
    %c0_221 = arith.constant 0 : index
    %c0_222 = arith.constant 0 : index
    %165 = vector.load %arg2[%c0_219, %c2_220, %c0_221, %c0_222] : memref<1x10x4x64xbf16, #tpu.memory_space<vmem>>, vector<1x1x4x64xbf16>
    %166 = vector.shape_cast %165 : vector<1x1x4x64xbf16> to vector<4x64xbf16>
    %167 = arith.extf %166 : vector<4x64xbf16> to vector<4x64xf32>
    %c0_223 = arith.constant 0 : index
    %c0_224 = arith.constant 0 : index
    %168 = vector.load %arg7[%c0_223, %c0_224] : memref<32x64xf32, #tpu.memory_space<vmem>>, vector<4x64xf32>
    tpu.vector_store %arg7[%c0_223, %c0_224], %167 {strides = array<i32>} : memref<32x64xf32, #tpu.memory_space<vmem>>, vector<4x64xf32>,
    %c0_225 = arith.constant 0 : index
    %c4_226 = arith.constant 4 : index
    %c0_227 = arith.constant 0 : index
    %c0_228 = arith.constant 0 : index
    %169 = vector.load %arg2[%c0_225, %c4_226, %c0_227, %c0_228] : memref<1x10x4x64xbf16, #tpu.memory_space<vmem>>, vector<1x1x4x64xbf16>
    %170 = vector.shape_cast %169 : vector<1x1x4x64xbf16> to vector<4x64xbf16>
    %171 = arith.extf %170 : vector<4x64xbf16> to vector<4x64xf32>
    %c8_229 = arith.constant 8 : index
    %c0_230 = arith.constant 0 : index
    %172 = vector.load %arg7[%c8_229, %c0_230] : memref<32x64xf32, #tpu.memory_space<vmem>>, vector<4x64xf32>
    tpu.vector_store %arg7[%c8_229, %c0_230], %171 {strides = array<i32>} : memref<32x64xf32, #tpu.memory_space<vmem>>, vector<4x64xf32>,
    %c0_231 = arith.constant 0 : index
    %c6_232 = arith.constant 6 : index
    %c0_233 = arith.constant 0 : index
    %c0_234 = arith.constant 0 : index
    %173 = vector.load %arg2[%c0_231, %c6_232, %c0_233, %c0_234] : memref<1x10x4x64xbf16, #tpu.memory_space<vmem>>, vector<1x1x4x64xbf16>
    %174 = vector.shape_cast %173 : vector<1x1x4x64xbf16> to vector<4x64xbf16>
    %175 = arith.extf %174 : vector<4x64xbf16> to vector<4x64xf32>
    %c16_235 = arith.constant 16 : index
    %c0_236 = arith.constant 0 : index
    %176 = vector.load %arg7[%c16_235, %c0_236] : memref<32x64xf32, #tpu.memory_space<vmem>>, vector<4x64xf32>
    tpu.vector_store %arg7[%c16_235, %c0_236], %175 {strides = array<i32>} : memref<32x64xf32, #tpu.memory_space<vmem>>, vector<4x64xf32>,
    %c0_237 = arith.constant 0 : index
    %c8_238 = arith.constant 8 : index
    %c0_239 = arith.constant 0 : index
    %c0_240 = arith.constant 0 : index
    %177 = vector.load %arg2[%c0_237, %c8_238, %c0_239, %c0_240] : memref<1x10x4x64xbf16, #tpu.memory_space<vmem>>, vector<1x1x4x64xbf16>
    %178 = vector.shape_cast %177 : vector<1x1x4x64xbf16> to vector<4x64xbf16>
    %179 = arith.extf %178 : vector<4x64xbf16> to vector<4x64xf32>
    %c24_241 = arith.constant 24 : index
    %c0_242 = arith.constant 0 : index
    %180 = vector.load %arg7[%c24_241, %c0_242] : memref<32x64xf32, #tpu.memory_space<vmem>>, vector<4x64xf32>
    tpu.vector_store %arg7[%c24_241, %c0_242], %179 {strides = array<i32>} : memref<32x64xf32, #tpu.memory_space<vmem>>, vector<4x64xf32>,
    %c0_243 = arith.constant 0 : index
    %c0_244 = arith.constant 0 : index
    %181 = vector.load %arg8[%c0_243, %c0_244] : memref<32x128xf32, #tpu.memory_space<vmem>>, vector<32x128xf32>
    %c0_245 = arith.constant 0 : index
    %c0_246 = arith.constant 0 : index
    %182 = vector.load %arg7[%c0_245, %c0_246] : memref<32x64xf32, #tpu.memory_space<vmem>>, vector<32x64xf32>
    %183 = arith.truncf %182 : vector<32x64xf32> to vector<32x64xbf16>
    %c448 = arith.constant 448 : index
    %c0_247 = arith.constant 0 : index
    %184 = vector.load %arg4[%c448, %c0_247] : memref<576x128xbf16, #tpu.memory_space<vmem>>, vector<64x128xbf16>
    %cst_248 = arith.constant dense<0.000000e+00> : vector<32x128xf32>
    %185 = tpu.matmul %183, %184, %cst_248 {dimension_numbers = #tpu.dot_dimension_numbers<[1], [0], [0], [1], [0, 0, 1, 1], [], []>} : vector<32x64xbf16>, vector<64x128xbf16>, vector<32x128xf32> -> vector<32x128xf32>
    %186 = arith.addf %181, %185 : vector<32x128xf32>
    %c0_249 = arith.constant 0 : index
    %c0_250 = arith.constant 0 : index
    %187 = vector.load %arg8[%c0_249, %c0_250] : memref<32x128xf32, #tpu.memory_space<vmem>>, vector<32x128xf32>
    tpu.vector_store %arg8[%c0_249, %c0_250], %186 {strides = array<i32>} : memref<32x128xf32, #tpu.memory_space<vmem>>, vector<32x128xf32>,
    %c0_251 = arith.constant 0 : index
    %c2_252 = arith.constant 2 : index
    %c0_253 = arith.constant 0 : index
    %c0_254 = arith.constant 0 : index
    %188 = vector.load %arg3[%c0_251, %c2_252, %c0_253, %c0_254] : memref<1x10x4x64xbf16, #tpu.memory_space<vmem>>, vector<1x1x4x64xbf16>
    %189 = vector.shape_cast %188 : vector<1x1x4x64xbf16> to vector<4x64xbf16>
    %190 = arith.extf %189 : vector<4x64xbf16> to vector<4x64xf32>
    %c0_255 = arith.constant 0 : index
    %c0_256 = arith.constant 0 : index
    %191 = vector.load %arg7[%c0_255, %c0_256] : memref<32x64xf32, #tpu.memory_space<vmem>>, vector<4x64xf32>
    tpu.vector_store %arg7[%c0_255, %c0_256], %190 {strides = array<i32>} : memref<32x64xf32, #tpu.memory_space<vmem>>, vector<4x64xf32>,
    %c0_257 = arith.constant 0 : index
    %c4_258 = arith.constant 4 : index
    %c0_259 = arith.constant 0 : index
    %c0_260 = arith.constant 0 : index
    %192 = vector.load %arg3[%c0_257, %c4_258, %c0_259, %c0_260] : memref<1x10x4x64xbf16, #tpu.memory_space<vmem>>, vector<1x1x4x64xbf16>
    %193 = vector.shape_cast %192 : vector<1x1x4x64xbf16> to vector<4x64xbf16>
    %194 = arith.extf %193 : vector<4x64xbf16> to vector<4x64xf32>
    %c8_261 = arith.constant 8 : index
    %c0_262 = arith.constant 0 : index
    %195 = vector.load %arg7[%c8_261, %c0_262] : memref<32x64xf32, #tpu.memory_space<vmem>>, vector<4x64xf32>
    tpu.vector_store %arg7[%c8_261, %c0_262], %194 {strides = array<i32>} : memref<32x64xf32, #tpu.memory_space<vmem>>, vector<4x64xf32>,
    %c0_263 = arith.constant 0 : index
    %c6_264 = arith.constant 6 : index
    %c0_265 = arith.constant 0 : index
    %c0_266 = arith.constant 0 : index
    %196 = vector.load %arg3[%c0_263, %c6_264, %c0_265, %c0_266] : memref<1x10x4x64xbf16, #tpu.memory_space<vmem>>, vector<1x1x4x64xbf16>
    %197 = vector.shape_cast %196 : vector<1x1x4x64xbf16> to vector<4x64xbf16>
    %198 = arith.extf %197 : vector<4x64xbf16> to vector<4x64xf32>
    %c16_267 = arith.constant 16 : index
    %c0_268 = arith.constant 0 : index
    %199 = vector.load %arg7[%c16_267, %c0_268] : memref<32x64xf32, #tpu.memory_space<vmem>>, vector<4x64xf32>
    tpu.vector_store %arg7[%c16_267, %c0_268], %198 {strides = array<i32>} : memref<32x64xf32, #tpu.memory_space<vmem>>, vector<4x64xf32>,
    %c0_269 = arith.constant 0 : index
    %c8_270 = arith.constant 8 : index
    %c0_271 = arith.constant 0 : index
    %c0_272 = arith.constant 0 : index
    %200 = vector.load %arg3[%c0_269, %c8_270, %c0_271, %c0_272] : memref<1x10x4x64xbf16, #tpu.memory_space<vmem>>, vector<1x1x4x64xbf16>
    %201 = vector.shape_cast %200 : vector<1x1x4x64xbf16> to vector<4x64xbf16>
    %202 = arith.extf %201 : vector<4x64xbf16> to vector<4x64xf32>
    %c24_273 = arith.constant 24 : index
    %c0_274 = arith.constant 0 : index
    %203 = vector.load %arg7[%c24_273, %c0_274] : memref<32x64xf32, #tpu.memory_space<vmem>>, vector<4x64xf32>
    tpu.vector_store %arg7[%c24_273, %c0_274], %202 {strides = array<i32>} : memref<32x64xf32, #tpu.memory_space<vmem>>, vector<4x64xf32>,
    %c0_275 = arith.constant 0 : index
    %c0_276 = arith.constant 0 : index
    %204 = vector.load %arg8[%c0_275, %c0_276] : memref<32x128xf32, #tpu.memory_space<vmem>>, vector<32x128xf32>
    %c0_277 = arith.constant 0 : index
    %c0_278 = arith.constant 0 : index
    %205 = vector.load %arg7[%c0_277, %c0_278] : memref<32x64xf32, #tpu.memory_space<vmem>>, vector<32x64xf32>
    %206 = arith.truncf %205 : vector<32x64xf32> to vector<32x64xbf16>
    %c512 = arith.constant 512 : index
    %c0_279 = arith.constant 0 : index
    %207 = vector.load %arg4[%c512, %c0_279] : memref<576x128xbf16, #tpu.memory_space<vmem>>, vector<64x128xbf16>
    %cst_280 = arith.constant dense<0.000000e+00> : vector<32x128xf32>
    %208 = tpu.matmul %206, %207, %cst_280 {dimension_numbers = #tpu.dot_dimension_numbers<[1], [0], [0], [1], [0, 0, 1, 1], [], []>} : vector<32x64xbf16>, vector<64x128xbf16>, vector<32x128xf32> -> vector<32x128xf32>
    %209 = arith.addf %204, %208 : vector<32x128xf32>
    %c0_281 = arith.constant 0 : index
    %c0_282 = arith.constant 0 : index
    %210 = vector.load %arg8[%c0_281, %c0_282] : memref<32x128xf32, #tpu.memory_space<vmem>>, vector<32x128xf32>
    tpu.vector_store %arg8[%c0_281, %c0_282], %209 {strides = array<i32>} : memref<32x128xf32, #tpu.memory_space<vmem>>, vector<32x128xf32>,
    %c0_283 = arith.constant 0 : index
    %c0_284 = arith.constant 0 : index
    %211 = vector.load %arg8[%c0_283, %c0_284] : memref<32x128xf32, #tpu.memory_space<vmem>>, vector<32x128xf32>
    %c0_285 = arith.constant 0 : index
    %c0_286 = arith.constant 0 : index
    %212 = vector.load %arg5[%c0_285, %c0_286] : memref<1x128xf32, #tpu.memory_space<vmem>>, vector<1x128xf32>
    %213 = vector.broadcast %212 : vector<1x128xf32> to vector<32x128xf32>
    %214 = arith.addf %211, %213 : vector<32x128xf32>
    %cst_287 = arith.constant 0.000000e+00 : f32
    %215 = vector.broadcast %cst_287 : f32 to vector<32x128xf32>
    %216 = arith.maximumf %214, %215 : vector<32x128xf32>
    %217 = arith.truncf %216 : vector<32x128xf32> to vector<32x128xbf16>
    %c0_288 = arith.constant 0 : index
    %c0_289 = arith.constant 0 : index
    %c0_290 = arith.constant 0 : index
    %218 = vector.load %arg6[%c0_288, %c0_289, %c0_290] : memref<1x32x128xbf16, #tpu.memory_space<vmem>>, vector<1x32x128xbf16>
    %219 = vector.shape_cast %218 : vector<1x32x128xbf16> to vector<32x128xbf16>
    %220 = vector.shape_cast %217 : vector<32x128xbf16> to vector<1x32x128xbf16>
    tpu.vector_store %arg6[%c0_288, %c0_289, %c0_290], %220 {strides = array<i32>} : memref<1x32x128xbf16, #tpu.memory_space<vmem>>, vector<1x32x128xbf16>,
    return
  }
  func.func @transform_0(%arg0: i32) -> (i32, i32, i32, i32) {
    %c0_i32 = arith.constant 0 : i32
    %c0_i32_0 = arith.constant 0 : i32
    %c0_i32_1 = arith.constant 0 : i32
    %c0_i32_2 = arith.constant 0 : i32
    return %arg0, %c0_i32, %c0_i32_0, %c0_i32_1 : i32, i32, i32, i32
  }
  func.func @transform_1(%arg0: i32) -> (i32, i32, i32, i32) {
    %c0_i32 = arith.constant 0 : i32
    %c0_i32_0 = arith.constant 0 : i32
    %c0_i32_1 = arith.constant 0 : i32
    %c0_i32_2 = arith.constant 0 : i32
    return %arg0, %c0_i32, %c0_i32_0, %c0_i32_1 : i32, i32, i32, i32
  }
  func.func @transform_2(%arg0: i32) -> (i32, i32, i32, i32) {
    %c0_i32 = arith.constant 0 : i32
    %c0_i32_0 = arith.constant 0 : i32
    %c0_i32_1 = arith.constant 0 : i32
    %c0_i32_2 = arith.constant 0 : i32
    return %arg0, %c0_i32, %c0_i32_0, %c0_i32_1 : i32, i32, i32, i32
  }
  func.func @transform_3(%arg0: i32) -> (i32, i32) {
    %c0_i32 = arith.constant 0 : i32
    %c0_i32_0 = arith.constant 0 : i32
    %c0_i32_1 = arith.constant 0 : i32
    return %c0_i32, %c0_i32_0 : i32, i32
  }
  func.func @transform_4(%arg0: i32) -> (i32, i32) {
    %c0_i32 = arith.constant 0 : i32
    %c0_i32_0 = arith.constant 0 : i32
    %c0_i32_1 = arith.constant 0 : i32
    return %c0_i32, %c0_i32_0 : i32, i32
  }
  func.func @transform_5(%arg0: i32) -> (i32, i32, i32) {
    %c0_i32 = arith.constant 0 : i32
    %c0_i32_0 = arith.constant 0 : i32
    %c0_i32_1 = arith.constant 0 : i32
    return %arg0, %c0_i32, %c0_i32_0 : i32, i32, i32
  }
}

module attributes {stable_mosaic.version = 11 : i64} {
  func.func @_conv3x3s2_kernel(%arg0: i32, %arg1: memref<1x6x2x128xbf16, #tpu.memory_space<vmem>>, %arg2: memref<1x6x2x128xbf16, #tpu.memory_space<vmem>>, %arg3: memref<1x6x2x128xbf16, #tpu.memory_space<vmem>>, %arg4: memref<1152x256xbf16, #tpu.memory_space<vmem>>, %arg5: memref<1x256xf32, #tpu.memory_space<vmem>>, %arg6: memref<1x16x256xbf16, #tpu.memory_space<vmem>>, %arg7: memref<16x128xf32, #tpu.memory_space<vmem>>, %arg8: memref<16x256xf32, #tpu.memory_space<vmem>>) attributes {dimension_semantics = [#tpu.dimension_semantics<parallel>], iteration_bounds = array<i64: 2>, scalar_prefetch = 0 : i64, scratch_operands = 2 : i64, tpu.core_type = #tpu.core_type<tc>, window_params = [{transform_indices = @transform_0, window_bounds = array<i64: 1, 6, 2, 128>}, {transform_indices = @transform_1, window_bounds = array<i64: 1, 6, 2, 128>}, {transform_indices = @transform_2, window_bounds = array<i64: 1, 6, 2, 128>}, {pipeline_mode = #tpu.pipeline_mode<synchronous>, transform_indices = @transform_3, window_bounds = array<i64: 1152, 256>}, {pipeline_mode = #tpu.pipeline_mode<synchronous>, transform_indices = @transform_4, window_bounds = array<i64: 1, 256>}, {transform_indices = @transform_5, window_bounds = array<i64: 1, 16, 256>}]} {
    %cst = arith.constant 0.000000e+00 : f32
    %0 = vector.broadcast %cst : f32 to vector<16x128xf32>
    %c0 = arith.constant 0 : index
    %c0_0 = arith.constant 0 : index
    %1 = vector.load %arg7[%c0, %c0_0] : memref<16x128xf32, #tpu.memory_space<vmem>>, vector<16x128xf32>
    tpu.vector_store %arg7[%c0, %c0_0], %0 {strides = array<i32>} : memref<16x128xf32, #tpu.memory_space<vmem>>, vector<16x128xf32>,
    %cst_1 = arith.constant 0.000000e+00 : f32
    %2 = vector.broadcast %cst_1 : f32 to vector<16x256xf32>
    %c0_2 = arith.constant 0 : index
    %c0_3 = arith.constant 0 : index
    %3 = vector.load %arg8[%c0_2, %c0_3] : memref<16x256xf32, #tpu.memory_space<vmem>>, vector<16x256xf32>
    tpu.vector_store %arg8[%c0_2, %c0_3], %2 {strides = array<i32>} : memref<16x256xf32, #tpu.memory_space<vmem>>, vector<16x256xf32>,
    %c0_4 = arith.constant 0 : index
    %c0_5 = arith.constant 0 : index
    %c0_6 = arith.constant 0 : index
    %c0_7 = arith.constant 0 : index
    %4 = vector.load %arg1[%c0_4, %c0_5, %c0_6, %c0_7] : memref<1x6x2x128xbf16, #tpu.memory_space<vmem>>, vector<1x1x2x128xbf16>
    %5 = vector.shape_cast %4 : vector<1x1x2x128xbf16> to vector<2x128xbf16>
    %6 = arith.extf %5 : vector<2x128xbf16> to vector<2x128xf32>
    %c0_8 = arith.constant 0 : index
    %c0_9 = arith.constant 0 : index
    %7 = vector.load %arg7[%c0_8, %c0_9] : memref<16x128xf32, #tpu.memory_space<vmem>>, vector<2x128xf32>
    tpu.vector_store %arg7[%c0_8, %c0_9], %6 {strides = array<i32>} : memref<16x128xf32, #tpu.memory_space<vmem>>, vector<2x128xf32>,
    %c0_10 = arith.constant 0 : index
    %c2 = arith.constant 2 : index
    %c0_11 = arith.constant 0 : index
    %c0_12 = arith.constant 0 : index
    %8 = vector.load %arg1[%c0_10, %c2, %c0_11, %c0_12] : memref<1x6x2x128xbf16, #tpu.memory_space<vmem>>, vector<1x1x2x128xbf16>
    %9 = vector.shape_cast %8 : vector<1x1x2x128xbf16> to vector<2x128xbf16>
    %10 = arith.extf %9 : vector<2x128xbf16> to vector<2x128xf32>
    %c8 = arith.constant 8 : index
    %c0_13 = arith.constant 0 : index
    %11 = vector.load %arg7[%c8, %c0_13] : memref<16x128xf32, #tpu.memory_space<vmem>>, vector<2x128xf32>
    tpu.vector_store %arg7[%c8, %c0_13], %10 {strides = array<i32>} : memref<16x128xf32, #tpu.memory_space<vmem>>, vector<2x128xf32>,
    %c0_14 = arith.constant 0 : index
    %c0_15 = arith.constant 0 : index
    %12 = vector.load %arg8[%c0_14, %c0_15] : memref<16x256xf32, #tpu.memory_space<vmem>>, vector<16x256xf32>
    %c0_16 = arith.constant 0 : index
    %c0_17 = arith.constant 0 : index
    %13 = vector.load %arg7[%c0_16, %c0_17] : memref<16x128xf32, #tpu.memory_space<vmem>>, vector<16x128xf32>
    %14 = arith.truncf %13 : vector<16x128xf32> to vector<16x128xbf16>
    %c0_18 = arith.constant 0 : index
    %c0_19 = arith.constant 0 : index
    %15 = vector.load %arg4[%c0_18, %c0_19] : memref<1152x256xbf16, #tpu.memory_space<vmem>>, vector<128x256xbf16>
    %cst_20 = arith.constant dense<0.000000e+00> : vector<16x256xf32>
    %16 = tpu.matmul %14, %15, %cst_20 {dimension_numbers = #tpu.dot_dimension_numbers<[1], [0], [0], [1], [0, 0, 1, 1], [], []>} : vector<16x128xbf16>, vector<128x256xbf16>, vector<16x256xf32> -> vector<16x256xf32>
    %17 = arith.addf %12, %16 : vector<16x256xf32>
    %c0_21 = arith.constant 0 : index
    %c0_22 = arith.constant 0 : index
    %18 = vector.load %arg8[%c0_21, %c0_22] : memref<16x256xf32, #tpu.memory_space<vmem>>, vector<16x256xf32>
    tpu.vector_store %arg8[%c0_21, %c0_22], %17 {strides = array<i32>} : memref<16x256xf32, #tpu.memory_space<vmem>>, vector<16x256xf32>,
    %c0_23 = arith.constant 0 : index
    %c0_24 = arith.constant 0 : index
    %c0_25 = arith.constant 0 : index
    %c0_26 = arith.constant 0 : index
    %19 = vector.load %arg2[%c0_23, %c0_24, %c0_25, %c0_26] : memref<1x6x2x128xbf16, #tpu.memory_space<vmem>>, vector<1x1x2x128xbf16>
    %20 = vector.shape_cast %19 : vector<1x1x2x128xbf16> to vector<2x128xbf16>
    %21 = arith.extf %20 : vector<2x128xbf16> to vector<2x128xf32>
    %c0_27 = arith.constant 0 : index
    %c0_28 = arith.constant 0 : index
    %22 = vector.load %arg7[%c0_27, %c0_28] : memref<16x128xf32, #tpu.memory_space<vmem>>, vector<2x128xf32>
    tpu.vector_store %arg7[%c0_27, %c0_28], %21 {strides = array<i32>} : memref<16x128xf32, #tpu.memory_space<vmem>>, vector<2x128xf32>,
    %c0_29 = arith.constant 0 : index
    %c2_30 = arith.constant 2 : index
    %c0_31 = arith.constant 0 : index
    %c0_32 = arith.constant 0 : index
    %23 = vector.load %arg2[%c0_29, %c2_30, %c0_31, %c0_32] : memref<1x6x2x128xbf16, #tpu.memory_space<vmem>>, vector<1x1x2x128xbf16>
    %24 = vector.shape_cast %23 : vector<1x1x2x128xbf16> to vector<2x128xbf16>
    %25 = arith.extf %24 : vector<2x128xbf16> to vector<2x128xf32>
    %c8_33 = arith.constant 8 : index
    %c0_34 = arith.constant 0 : index
    %26 = vector.load %arg7[%c8_33, %c0_34] : memref<16x128xf32, #tpu.memory_space<vmem>>, vector<2x128xf32>
    tpu.vector_store %arg7[%c8_33, %c0_34], %25 {strides = array<i32>} : memref<16x128xf32, #tpu.memory_space<vmem>>, vector<2x128xf32>,
    %c0_35 = arith.constant 0 : index
    %c0_36 = arith.constant 0 : index
    %27 = vector.load %arg8[%c0_35, %c0_36] : memref<16x256xf32, #tpu.memory_space<vmem>>, vector<16x256xf32>
    %c0_37 = arith.constant 0 : index
    %c0_38 = arith.constant 0 : index
    %28 = vector.load %arg7[%c0_37, %c0_38] : memref<16x128xf32, #tpu.memory_space<vmem>>, vector<16x128xf32>
    %29 = arith.truncf %28 : vector<16x128xf32> to vector<16x128xbf16>
    %c128 = arith.constant 128 : index
    %c0_39 = arith.constant 0 : index
    %30 = vector.load %arg4[%c128, %c0_39] : memref<1152x256xbf16, #tpu.memory_space<vmem>>, vector<128x256xbf16>
    %cst_40 = arith.constant dense<0.000000e+00> : vector<16x256xf32>
    %31 = tpu.matmul %29, %30, %cst_40 {dimension_numbers = #tpu.dot_dimension_numbers<[1], [0], [0], [1], [0, 0, 1, 1], [], []>} : vector<16x128xbf16>, vector<128x256xbf16>, vector<16x256xf32> -> vector<16x256xf32>
    %32 = arith.addf %27, %31 : vector<16x256xf32>
    %c0_41 = arith.constant 0 : index
    %c0_42 = arith.constant 0 : index
    %33 = vector.load %arg8[%c0_41, %c0_42] : memref<16x256xf32, #tpu.memory_space<vmem>>, vector<16x256xf32>
    tpu.vector_store %arg8[%c0_41, %c0_42], %32 {strides = array<i32>} : memref<16x256xf32, #tpu.memory_space<vmem>>, vector<16x256xf32>,
    %c0_43 = arith.constant 0 : index
    %c0_44 = arith.constant 0 : index
    %c0_45 = arith.constant 0 : index
    %c0_46 = arith.constant 0 : index
    %34 = vector.load %arg3[%c0_43, %c0_44, %c0_45, %c0_46] : memref<1x6x2x128xbf16, #tpu.memory_space<vmem>>, vector<1x1x2x128xbf16>
    %35 = vector.shape_cast %34 : vector<1x1x2x128xbf16> to vector<2x128xbf16>
    %36 = arith.extf %35 : vector<2x128xbf16> to vector<2x128xf32>
    %c0_47 = arith.constant 0 : index
    %c0_48 = arith.constant 0 : index
    %37 = vector.load %arg7[%c0_47, %c0_48] : memref<16x128xf32, #tpu.memory_space<vmem>>, vector<2x128xf32>
    tpu.vector_store %arg7[%c0_47, %c0_48], %36 {strides = array<i32>} : memref<16x128xf32, #tpu.memory_space<vmem>>, vector<2x128xf32>,
    %c0_49 = arith.constant 0 : index
    %c2_50 = arith.constant 2 : index
    %c0_51 = arith.constant 0 : index
    %c0_52 = arith.constant 0 : index
    %38 = vector.load %arg3[%c0_49, %c2_50, %c0_51, %c0_52] : memref<1x6x2x128xbf16, #tpu.memory_space<vmem>>, vector<1x1x2x128xbf16>
    %39 = vector.shape_cast %38 : vector<1x1x2x128xbf16> to vector<2x128xbf16>
    %40 = arith.extf %39 : vector<2x128xbf16> to vector<2x128xf32>
    %c8_53 = arith.constant 8 : index
    %c0_54 = arith.constant 0 : index
    %41 = vector.load %arg7[%c8_53, %c0_54] : memref<16x128xf32, #tpu.memory_space<vmem>>, vector<2x128xf32>
    tpu.vector_store %arg7[%c8_53, %c0_54], %40 {strides = array<i32>} : memref<16x128xf32, #tpu.memory_space<vmem>>, vector<2x128xf32>,
    %c0_55 = arith.constant 0 : index
    %c0_56 = arith.constant 0 : index
    %42 = vector.load %arg8[%c0_55, %c0_56] : memref<16x256xf32, #tpu.memory_space<vmem>>, vector<16x256xf32>
    %c0_57 = arith.constant 0 : index
    %c0_58 = arith.constant 0 : index
    %43 = vector.load %arg7[%c0_57, %c0_58] : memref<16x128xf32, #tpu.memory_space<vmem>>, vector<16x128xf32>
    %44 = arith.truncf %43 : vector<16x128xf32> to vector<16x128xbf16>
    %c256 = arith.constant 256 : index
    %c0_59 = arith.constant 0 : index
    %45 = vector.load %arg4[%c256, %c0_59] : memref<1152x256xbf16, #tpu.memory_space<vmem>>, vector<128x256xbf16>
    %cst_60 = arith.constant dense<0.000000e+00> : vector<16x256xf32>
    %46 = tpu.matmul %44, %45, %cst_60 {dimension_numbers = #tpu.dot_dimension_numbers<[1], [0], [0], [1], [0, 0, 1, 1], [], []>} : vector<16x128xbf16>, vector<128x256xbf16>, vector<16x256xf32> -> vector<16x256xf32>
    %47 = arith.addf %42, %46 : vector<16x256xf32>
    %c0_61 = arith.constant 0 : index
    %c0_62 = arith.constant 0 : index
    %48 = vector.load %arg8[%c0_61, %c0_62] : memref<16x256xf32, #tpu.memory_space<vmem>>, vector<16x256xf32>
    tpu.vector_store %arg8[%c0_61, %c0_62], %47 {strides = array<i32>} : memref<16x256xf32, #tpu.memory_space<vmem>>, vector<16x256xf32>,
    %c0_63 = arith.constant 0 : index
    %c1 = arith.constant 1 : index
    %c0_64 = arith.constant 0 : index
    %c0_65 = arith.constant 0 : index
    %49 = vector.load %arg1[%c0_63, %c1, %c0_64, %c0_65] : memref<1x6x2x128xbf16, #tpu.memory_space<vmem>>, vector<1x1x2x128xbf16>
    %50 = vector.shape_cast %49 : vector<1x1x2x128xbf16> to vector<2x128xbf16>
    %51 = arith.extf %50 : vector<2x128xbf16> to vector<2x128xf32>
    %c0_66 = arith.constant 0 : index
    %c0_67 = arith.constant 0 : index
    %52 = vector.load %arg7[%c0_66, %c0_67] : memref<16x128xf32, #tpu.memory_space<vmem>>, vector<2x128xf32>
    tpu.vector_store %arg7[%c0_66, %c0_67], %51 {strides = array<i32>} : memref<16x128xf32, #tpu.memory_space<vmem>>, vector<2x128xf32>,
    %c0_68 = arith.constant 0 : index
    %c3 = arith.constant 3 : index
    %c0_69 = arith.constant 0 : index
    %c0_70 = arith.constant 0 : index
    %53 = vector.load %arg1[%c0_68, %c3, %c0_69, %c0_70] : memref<1x6x2x128xbf16, #tpu.memory_space<vmem>>, vector<1x1x2x128xbf16>
    %54 = vector.shape_cast %53 : vector<1x1x2x128xbf16> to vector<2x128xbf16>
    %55 = arith.extf %54 : vector<2x128xbf16> to vector<2x128xf32>
    %c8_71 = arith.constant 8 : index
    %c0_72 = arith.constant 0 : index
    %56 = vector.load %arg7[%c8_71, %c0_72] : memref<16x128xf32, #tpu.memory_space<vmem>>, vector<2x128xf32>
    tpu.vector_store %arg7[%c8_71, %c0_72], %55 {strides = array<i32>} : memref<16x128xf32, #tpu.memory_space<vmem>>, vector<2x128xf32>,
    %c0_73 = arith.constant 0 : index
    %c0_74 = arith.constant 0 : index
    %57 = vector.load %arg8[%c0_73, %c0_74] : memref<16x256xf32, #tpu.memory_space<vmem>>, vector<16x256xf32>
    %c0_75 = arith.constant 0 : index
    %c0_76 = arith.constant 0 : index
    %58 = vector.load %arg7[%c0_75, %c0_76] : memref<16x128xf32, #tpu.memory_space<vmem>>, vector<16x128xf32>
    %59 = arith.truncf %58 : vector<16x128xf32> to vector<16x128xbf16>
    %c384 = arith.constant 384 : index
    %c0_77 = arith.constant 0 : index
    %60 = vector.load %arg4[%c384, %c0_77] : memref<1152x256xbf16, #tpu.memory_space<vmem>>, vector<128x256xbf16>
    %cst_78 = arith.constant dense<0.000000e+00> : vector<16x256xf32>
    %61 = tpu.matmul %59, %60, %cst_78 {dimension_numbers = #tpu.dot_dimension_numbers<[1], [0], [0], [1], [0, 0, 1, 1], [], []>} : vector<16x128xbf16>, vector<128x256xbf16>, vector<16x256xf32> -> vector<16x256xf32>
    %62 = arith.addf %57, %61 : vector<16x256xf32>
    %c0_79 = arith.constant 0 : index
    %c0_80 = arith.constant 0 : index
    %63 = vector.load %arg8[%c0_79, %c0_80] : memref<16x256xf32, #tpu.memory_space<vmem>>, vector<16x256xf32>
    tpu.vector_store %arg8[%c0_79, %c0_80], %62 {strides = array<i32>} : memref<16x256xf32, #tpu.memory_space<vmem>>, vector<16x256xf32>,
    %c0_81 = arith.constant 0 : index
    %c1_82 = arith.constant 1 : index
    %c0_83 = arith.constant 0 : index
    %c0_84 = arith.constant 0 : index
    %64 = vector.load %arg2[%c0_81, %c1_82, %c0_83, %c0_84] : memref<1x6x2x128xbf16, #tpu.memory_space<vmem>>, vector<1x1x2x128xbf16>
    %65 = vector.shape_cast %64 : vector<1x1x2x128xbf16> to vector<2x128xbf16>
    %66 = arith.extf %65 : vector<2x128xbf16> to vector<2x128xf32>
    %c0_85 = arith.constant 0 : index
    %c0_86 = arith.constant 0 : index
    %67 = vector.load %arg7[%c0_85, %c0_86] : memref<16x128xf32, #tpu.memory_space<vmem>>, vector<2x128xf32>
    tpu.vector_store %arg7[%c0_85, %c0_86], %66 {strides = array<i32>} : memref<16x128xf32, #tpu.memory_space<vmem>>, vector<2x128xf32>,
    %c0_87 = arith.constant 0 : index
    %c3_88 = arith.constant 3 : index
    %c0_89 = arith.constant 0 : index
    %c0_90 = arith.constant 0 : index
    %68 = vector.load %arg2[%c0_87, %c3_88, %c0_89, %c0_90] : memref<1x6x2x128xbf16, #tpu.memory_space<vmem>>, vector<1x1x2x128xbf16>
    %69 = vector.shape_cast %68 : vector<1x1x2x128xbf16> to vector<2x128xbf16>
    %70 = arith.extf %69 : vector<2x128xbf16> to vector<2x128xf32>
    %c8_91 = arith.constant 8 : index
    %c0_92 = arith.constant 0 : index
    %71 = vector.load %arg7[%c8_91, %c0_92] : memref<16x128xf32, #tpu.memory_space<vmem>>, vector<2x128xf32>
    tpu.vector_store %arg7[%c8_91, %c0_92], %70 {strides = array<i32>} : memref<16x128xf32, #tpu.memory_space<vmem>>, vector<2x128xf32>,
    %c0_93 = arith.constant 0 : index
    %c0_94 = arith.constant 0 : index
    %72 = vector.load %arg8[%c0_93, %c0_94] : memref<16x256xf32, #tpu.memory_space<vmem>>, vector<16x256xf32>
    %c0_95 = arith.constant 0 : index
    %c0_96 = arith.constant 0 : index
    %73 = vector.load %arg7[%c0_95, %c0_96] : memref<16x128xf32, #tpu.memory_space<vmem>>, vector<16x128xf32>
    %74 = arith.truncf %73 : vector<16x128xf32> to vector<16x128xbf16>
    %c512 = arith.constant 512 : index
    %c0_97 = arith.constant 0 : index
    %75 = vector.load %arg4[%c512, %c0_97] : memref<1152x256xbf16, #tpu.memory_space<vmem>>, vector<128x256xbf16>
    %cst_98 = arith.constant dense<0.000000e+00> : vector<16x256xf32>
    %76 = tpu.matmul %74, %75, %cst_98 {dimension_numbers = #tpu.dot_dimension_numbers<[1], [0], [0], [1], [0, 0, 1, 1], [], []>} : vector<16x128xbf16>, vector<128x256xbf16>, vector<16x256xf32> -> vector<16x256xf32>
    %77 = arith.addf %72, %76 : vector<16x256xf32>
    %c0_99 = arith.constant 0 : index
    %c0_100 = arith.constant 0 : index
    %78 = vector.load %arg8[%c0_99, %c0_100] : memref<16x256xf32, #tpu.memory_space<vmem>>, vector<16x256xf32>
    tpu.vector_store %arg8[%c0_99, %c0_100], %77 {strides = array<i32>} : memref<16x256xf32, #tpu.memory_space<vmem>>, vector<16x256xf32>,
    %c0_101 = arith.constant 0 : index
    %c1_102 = arith.constant 1 : index
    %c0_103 = arith.constant 0 : index
    %c0_104 = arith.constant 0 : index
    %79 = vector.load %arg3[%c0_101, %c1_102, %c0_103, %c0_104] : memref<1x6x2x128xbf16, #tpu.memory_space<vmem>>, vector<1x1x2x128xbf16>
    %80 = vector.shape_cast %79 : vector<1x1x2x128xbf16> to vector<2x128xbf16>
    %81 = arith.extf %80 : vector<2x128xbf16> to vector<2x128xf32>
    %c0_105 = arith.constant 0 : index
    %c0_106 = arith.constant 0 : index
    %82 = vector.load %arg7[%c0_105, %c0_106] : memref<16x128xf32, #tpu.memory_space<vmem>>, vector<2x128xf32>
    tpu.vector_store %arg7[%c0_105, %c0_106], %81 {strides = array<i32>} : memref<16x128xf32, #tpu.memory_space<vmem>>, vector<2x128xf32>,
    %c0_107 = arith.constant 0 : index
    %c3_108 = arith.constant 3 : index
    %c0_109 = arith.constant 0 : index
    %c0_110 = arith.constant 0 : index
    %83 = vector.load %arg3[%c0_107, %c3_108, %c0_109, %c0_110] : memref<1x6x2x128xbf16, #tpu.memory_space<vmem>>, vector<1x1x2x128xbf16>
    %84 = vector.shape_cast %83 : vector<1x1x2x128xbf16> to vector<2x128xbf16>
    %85 = arith.extf %84 : vector<2x128xbf16> to vector<2x128xf32>
    %c8_111 = arith.constant 8 : index
    %c0_112 = arith.constant 0 : index
    %86 = vector.load %arg7[%c8_111, %c0_112] : memref<16x128xf32, #tpu.memory_space<vmem>>, vector<2x128xf32>
    tpu.vector_store %arg7[%c8_111, %c0_112], %85 {strides = array<i32>} : memref<16x128xf32, #tpu.memory_space<vmem>>, vector<2x128xf32>,
    %c0_113 = arith.constant 0 : index
    %c0_114 = arith.constant 0 : index
    %87 = vector.load %arg8[%c0_113, %c0_114] : memref<16x256xf32, #tpu.memory_space<vmem>>, vector<16x256xf32>
    %c0_115 = arith.constant 0 : index
    %c0_116 = arith.constant 0 : index
    %88 = vector.load %arg7[%c0_115, %c0_116] : memref<16x128xf32, #tpu.memory_space<vmem>>, vector<16x128xf32>
    %89 = arith.truncf %88 : vector<16x128xf32> to vector<16x128xbf16>
    %c640 = arith.constant 640 : index
    %c0_117 = arith.constant 0 : index
    %90 = vector.load %arg4[%c640, %c0_117] : memref<1152x256xbf16, #tpu.memory_space<vmem>>, vector<128x256xbf16>
    %cst_118 = arith.constant dense<0.000000e+00> : vector<16x256xf32>
    %91 = tpu.matmul %89, %90, %cst_118 {dimension_numbers = #tpu.dot_dimension_numbers<[1], [0], [0], [1], [0, 0, 1, 1], [], []>} : vector<16x128xbf16>, vector<128x256xbf16>, vector<16x256xf32> -> vector<16x256xf32>
    %92 = arith.addf %87, %91 : vector<16x256xf32>
    %c0_119 = arith.constant 0 : index
    %c0_120 = arith.constant 0 : index
    %93 = vector.load %arg8[%c0_119, %c0_120] : memref<16x256xf32, #tpu.memory_space<vmem>>, vector<16x256xf32>
    tpu.vector_store %arg8[%c0_119, %c0_120], %92 {strides = array<i32>} : memref<16x256xf32, #tpu.memory_space<vmem>>, vector<16x256xf32>,
    %c0_121 = arith.constant 0 : index
    %c2_122 = arith.constant 2 : index
    %c0_123 = arith.constant 0 : index
    %c0_124 = arith.constant 0 : index
    %94 = vector.load %arg1[%c0_121, %c2_122, %c0_123, %c0_124] : memref<1x6x2x128xbf16, #tpu.memory_space<vmem>>, vector<1x1x2x128xbf16>
    %95 = vector.shape_cast %94 : vector<1x1x2x128xbf16> to vector<2x128xbf16>
    %96 = arith.extf %95 : vector<2x128xbf16> to vector<2x128xf32>
    %c0_125 = arith.constant 0 : index
    %c0_126 = arith.constant 0 : index
    %97 = vector.load %arg7[%c0_125, %c0_126] : memref<16x128xf32, #tpu.memory_space<vmem>>, vector<2x128xf32>
    tpu.vector_store %arg7[%c0_125, %c0_126], %96 {strides = array<i32>} : memref<16x128xf32, #tpu.memory_space<vmem>>, vector<2x128xf32>,
    %c0_127 = arith.constant 0 : index
    %c4 = arith.constant 4 : index
    %c0_128 = arith.constant 0 : index
    %c0_129 = arith.constant 0 : index
    %98 = vector.load %arg1[%c0_127, %c4, %c0_128, %c0_129] : memref<1x6x2x128xbf16, #tpu.memory_space<vmem>>, vector<1x1x2x128xbf16>
    %99 = vector.shape_cast %98 : vector<1x1x2x128xbf16> to vector<2x128xbf16>
    %100 = arith.extf %99 : vector<2x128xbf16> to vector<2x128xf32>
    %c8_130 = arith.constant 8 : index
    %c0_131 = arith.constant 0 : index
    %101 = vector.load %arg7[%c8_130, %c0_131] : memref<16x128xf32, #tpu.memory_space<vmem>>, vector<2x128xf32>
    tpu.vector_store %arg7[%c8_130, %c0_131], %100 {strides = array<i32>} : memref<16x128xf32, #tpu.memory_space<vmem>>, vector<2x128xf32>,
    %c0_132 = arith.constant 0 : index
    %c0_133 = arith.constant 0 : index
    %102 = vector.load %arg8[%c0_132, %c0_133] : memref<16x256xf32, #tpu.memory_space<vmem>>, vector<16x256xf32>
    %c0_134 = arith.constant 0 : index
    %c0_135 = arith.constant 0 : index
    %103 = vector.load %arg7[%c0_134, %c0_135] : memref<16x128xf32, #tpu.memory_space<vmem>>, vector<16x128xf32>
    %104 = arith.truncf %103 : vector<16x128xf32> to vector<16x128xbf16>
    %c768 = arith.constant 768 : index
    %c0_136 = arith.constant 0 : index
    %105 = vector.load %arg4[%c768, %c0_136] : memref<1152x256xbf16, #tpu.memory_space<vmem>>, vector<128x256xbf16>
    %cst_137 = arith.constant dense<0.000000e+00> : vector<16x256xf32>
    %106 = tpu.matmul %104, %105, %cst_137 {dimension_numbers = #tpu.dot_dimension_numbers<[1], [0], [0], [1], [0, 0, 1, 1], [], []>} : vector<16x128xbf16>, vector<128x256xbf16>, vector<16x256xf32> -> vector<16x256xf32>
    %107 = arith.addf %102, %106 : vector<16x256xf32>
    %c0_138 = arith.constant 0 : index
    %c0_139 = arith.constant 0 : index
    %108 = vector.load %arg8[%c0_138, %c0_139] : memref<16x256xf32, #tpu.memory_space<vmem>>, vector<16x256xf32>
    tpu.vector_store %arg8[%c0_138, %c0_139], %107 {strides = array<i32>} : memref<16x256xf32, #tpu.memory_space<vmem>>, vector<16x256xf32>,
    %c0_140 = arith.constant 0 : index
    %c2_141 = arith.constant 2 : index
    %c0_142 = arith.constant 0 : index
    %c0_143 = arith.constant 0 : index
    %109 = vector.load %arg2[%c0_140, %c2_141, %c0_142, %c0_143] : memref<1x6x2x128xbf16, #tpu.memory_space<vmem>>, vector<1x1x2x128xbf16>
    %110 = vector.shape_cast %109 : vector<1x1x2x128xbf16> to vector<2x128xbf16>
    %111 = arith.extf %110 : vector<2x128xbf16> to vector<2x128xf32>
    %c0_144 = arith.constant 0 : index
    %c0_145 = arith.constant 0 : index
    %112 = vector.load %arg7[%c0_144, %c0_145] : memref<16x128xf32, #tpu.memory_space<vmem>>, vector<2x128xf32>
    tpu.vector_store %arg7[%c0_144, %c0_145], %111 {strides = array<i32>} : memref<16x128xf32, #tpu.memory_space<vmem>>, vector<2x128xf32>,
    %c0_146 = arith.constant 0 : index
    %c4_147 = arith.constant 4 : index
    %c0_148 = arith.constant 0 : index
    %c0_149 = arith.constant 0 : index
    %113 = vector.load %arg2[%c0_146, %c4_147, %c0_148, %c0_149] : memref<1x6x2x128xbf16, #tpu.memory_space<vmem>>, vector<1x1x2x128xbf16>
    %114 = vector.shape_cast %113 : vector<1x1x2x128xbf16> to vector<2x128xbf16>
    %115 = arith.extf %114 : vector<2x128xbf16> to vector<2x128xf32>
    %c8_150 = arith.constant 8 : index
    %c0_151 = arith.constant 0 : index
    %116 = vector.load %arg7[%c8_150, %c0_151] : memref<16x128xf32, #tpu.memory_space<vmem>>, vector<2x128xf32>
    tpu.vector_store %arg7[%c8_150, %c0_151], %115 {strides = array<i32>} : memref<16x128xf32, #tpu.memory_space<vmem>>, vector<2x128xf32>,
    %c0_152 = arith.constant 0 : index
    %c0_153 = arith.constant 0 : index
    %117 = vector.load %arg8[%c0_152, %c0_153] : memref<16x256xf32, #tpu.memory_space<vmem>>, vector<16x256xf32>
    %c0_154 = arith.constant 0 : index
    %c0_155 = arith.constant 0 : index
    %118 = vector.load %arg7[%c0_154, %c0_155] : memref<16x128xf32, #tpu.memory_space<vmem>>, vector<16x128xf32>
    %119 = arith.truncf %118 : vector<16x128xf32> to vector<16x128xbf16>
    %c896 = arith.constant 896 : index
    %c0_156 = arith.constant 0 : index
    %120 = vector.load %arg4[%c896, %c0_156] : memref<1152x256xbf16, #tpu.memory_space<vmem>>, vector<128x256xbf16>
    %cst_157 = arith.constant dense<0.000000e+00> : vector<16x256xf32>
    %121 = tpu.matmul %119, %120, %cst_157 {dimension_numbers = #tpu.dot_dimension_numbers<[1], [0], [0], [1], [0, 0, 1, 1], [], []>} : vector<16x128xbf16>, vector<128x256xbf16>, vector<16x256xf32> -> vector<16x256xf32>
    %122 = arith.addf %117, %121 : vector<16x256xf32>
    %c0_158 = arith.constant 0 : index
    %c0_159 = arith.constant 0 : index
    %123 = vector.load %arg8[%c0_158, %c0_159] : memref<16x256xf32, #tpu.memory_space<vmem>>, vector<16x256xf32>
    tpu.vector_store %arg8[%c0_158, %c0_159], %122 {strides = array<i32>} : memref<16x256xf32, #tpu.memory_space<vmem>>, vector<16x256xf32>,
    %c0_160 = arith.constant 0 : index
    %c2_161 = arith.constant 2 : index
    %c0_162 = arith.constant 0 : index
    %c0_163 = arith.constant 0 : index
    %124 = vector.load %arg3[%c0_160, %c2_161, %c0_162, %c0_163] : memref<1x6x2x128xbf16, #tpu.memory_space<vmem>>, vector<1x1x2x128xbf16>
    %125 = vector.shape_cast %124 : vector<1x1x2x128xbf16> to vector<2x128xbf16>
    %126 = arith.extf %125 : vector<2x128xbf16> to vector<2x128xf32>
    %c0_164 = arith.constant 0 : index
    %c0_165 = arith.constant 0 : index
    %127 = vector.load %arg7[%c0_164, %c0_165] : memref<16x128xf32, #tpu.memory_space<vmem>>, vector<2x128xf32>
    tpu.vector_store %arg7[%c0_164, %c0_165], %126 {strides = array<i32>} : memref<16x128xf32, #tpu.memory_space<vmem>>, vector<2x128xf32>,
    %c0_166 = arith.constant 0 : index
    %c4_167 = arith.constant 4 : index
    %c0_168 = arith.constant 0 : index
    %c0_169 = arith.constant 0 : index
    %128 = vector.load %arg3[%c0_166, %c4_167, %c0_168, %c0_169] : memref<1x6x2x128xbf16, #tpu.memory_space<vmem>>, vector<1x1x2x128xbf16>
    %129 = vector.shape_cast %128 : vector<1x1x2x128xbf16> to vector<2x128xbf16>
    %130 = arith.extf %129 : vector<2x128xbf16> to vector<2x128xf32>
    %c8_170 = arith.constant 8 : index
    %c0_171 = arith.constant 0 : index
    %131 = vector.load %arg7[%c8_170, %c0_171] : memref<16x128xf32, #tpu.memory_space<vmem>>, vector<2x128xf32>
    tpu.vector_store %arg7[%c8_170, %c0_171], %130 {strides = array<i32>} : memref<16x128xf32, #tpu.memory_space<vmem>>, vector<2x128xf32>,
    %c0_172 = arith.constant 0 : index
    %c0_173 = arith.constant 0 : index
    %132 = vector.load %arg8[%c0_172, %c0_173] : memref<16x256xf32, #tpu.memory_space<vmem>>, vector<16x256xf32>
    %c0_174 = arith.constant 0 : index
    %c0_175 = arith.constant 0 : index
    %133 = vector.load %arg7[%c0_174, %c0_175] : memref<16x128xf32, #tpu.memory_space<vmem>>, vector<16x128xf32>
    %134 = arith.truncf %133 : vector<16x128xf32> to vector<16x128xbf16>
    %c1024 = arith.constant 1024 : index
    %c0_176 = arith.constant 0 : index
    %135 = vector.load %arg4[%c1024, %c0_176] : memref<1152x256xbf16, #tpu.memory_space<vmem>>, vector<128x256xbf16>
    %cst_177 = arith.constant dense<0.000000e+00> : vector<16x256xf32>
    %136 = tpu.matmul %134, %135, %cst_177 {dimension_numbers = #tpu.dot_dimension_numbers<[1], [0], [0], [1], [0, 0, 1, 1], [], []>} : vector<16x128xbf16>, vector<128x256xbf16>, vector<16x256xf32> -> vector<16x256xf32>
    %137 = arith.addf %132, %136 : vector<16x256xf32>
    %c0_178 = arith.constant 0 : index
    %c0_179 = arith.constant 0 : index
    %138 = vector.load %arg8[%c0_178, %c0_179] : memref<16x256xf32, #tpu.memory_space<vmem>>, vector<16x256xf32>
    tpu.vector_store %arg8[%c0_178, %c0_179], %137 {strides = array<i32>} : memref<16x256xf32, #tpu.memory_space<vmem>>, vector<16x256xf32>,
    %c0_180 = arith.constant 0 : index
    %c0_181 = arith.constant 0 : index
    %139 = vector.load %arg8[%c0_180, %c0_181] : memref<16x256xf32, #tpu.memory_space<vmem>>, vector<16x256xf32>
    %c0_182 = arith.constant 0 : index
    %c0_183 = arith.constant 0 : index
    %140 = vector.load %arg5[%c0_182, %c0_183] : memref<1x256xf32, #tpu.memory_space<vmem>>, vector<1x256xf32>
    %141 = vector.broadcast %140 : vector<1x256xf32> to vector<16x256xf32>
    %142 = arith.addf %139, %141 : vector<16x256xf32>
    %cst_184 = arith.constant 0.000000e+00 : f32
    %143 = vector.broadcast %cst_184 : f32 to vector<16x256xf32>
    %144 = arith.maximumf %142, %143 : vector<16x256xf32>
    %145 = arith.truncf %144 : vector<16x256xf32> to vector<16x256xbf16>
    %c0_185 = arith.constant 0 : index
    %c0_186 = arith.constant 0 : index
    %c0_187 = arith.constant 0 : index
    %146 = vector.load %arg6[%c0_185, %c0_186, %c0_187] : memref<1x16x256xbf16, #tpu.memory_space<vmem>>, vector<1x16x256xbf16>
    %147 = vector.shape_cast %146 : vector<1x16x256xbf16> to vector<16x256xbf16>
    %148 = vector.shape_cast %145 : vector<16x256xbf16> to vector<1x16x256xbf16>
    tpu.vector_store %arg6[%c0_185, %c0_186, %c0_187], %148 {strides = array<i32>} : memref<1x16x256xbf16, #tpu.memory_space<vmem>>, vector<1x16x256xbf16>,
    return
  }
  func.func @transform_0(%arg0: i32) -> (i32, i32, i32, i32) {
    %c0_i32 = arith.constant 0 : i32
    %c0_i32_0 = arith.constant 0 : i32
    %c0_i32_1 = arith.constant 0 : i32
    %c0_i32_2 = arith.constant 0 : i32
    return %arg0, %c0_i32, %c0_i32_0, %c0_i32_1 : i32, i32, i32, i32
  }
  func.func @transform_1(%arg0: i32) -> (i32, i32, i32, i32) {
    %c0_i32 = arith.constant 0 : i32
    %c0_i32_0 = arith.constant 0 : i32
    %c0_i32_1 = arith.constant 0 : i32
    %c0_i32_2 = arith.constant 0 : i32
    return %arg0, %c0_i32, %c0_i32_0, %c0_i32_1 : i32, i32, i32, i32
  }
  func.func @transform_2(%arg0: i32) -> (i32, i32, i32, i32) {
    %c0_i32 = arith.constant 0 : i32
    %c0_i32_0 = arith.constant 0 : i32
    %c0_i32_1 = arith.constant 0 : i32
    %c0_i32_2 = arith.constant 0 : i32
    return %arg0, %c0_i32, %c0_i32_0, %c0_i32_1 : i32, i32, i32, i32
  }
  func.func @transform_3(%arg0: i32) -> (i32, i32) {
    %c0_i32 = arith.constant 0 : i32
    %c0_i32_0 = arith.constant 0 : i32
    %c0_i32_1 = arith.constant 0 : i32
    return %c0_i32, %c0_i32_0 : i32, i32
  }
  func.func @transform_4(%arg0: i32) -> (i32, i32) {
    %c0_i32 = arith.constant 0 : i32
    %c0_i32_0 = arith.constant 0 : i32
    %c0_i32_1 = arith.constant 0 : i32
    return %c0_i32, %c0_i32_0 : i32, i32
  }
  func.func @transform_5(%arg0: i32) -> (i32, i32, i32) {
    %c0_i32 = arith.constant 0 : i32
    %c0_i32_0 = arith.constant 0 : i32
    %c0_i32_1 = arith.constant 0 : i32
    return %arg0, %c0_i32, %c0_i32_0 : i32, i32, i32
  }
}

module attributes {stable_mosaic.version = 11 : i64} {
  func.func @_vae_head_kernel(%arg0: i32, %arg1: memref<2x1024xbf16, #tpu.memory_space<vmem>>, %arg2: memref<1024x64xbf16, #tpu.memory_space<vmem>>, %arg3: memref<1x64xf32, #tpu.memory_space<vmem>>, %arg4: memref<2x32xf32, #tpu.memory_space<vmem>>, %arg5: memref<2x32xf32, #tpu.memory_space<vmem>>, %arg6: memref<2x32xf32, #tpu.memory_space<vmem>>, %arg7: memref<2x32xf32, #tpu.memory_space<vmem>>) attributes {dimension_semantics = [#tpu.dimension_semantics<arbitrary>], iteration_bounds = array<i64: 1>, scalar_prefetch = 0 : i64, scratch_operands = 0 : i64, tpu.core_type = #tpu.core_type<tc>, window_params = [{pipeline_mode = #tpu.pipeline_mode<synchronous>, transform_indices = @transform_0, window_bounds = array<i64: 2, 1024>}, {pipeline_mode = #tpu.pipeline_mode<synchronous>, transform_indices = @transform_1, window_bounds = array<i64: 1024, 64>}, {pipeline_mode = #tpu.pipeline_mode<synchronous>, transform_indices = @transform_2, window_bounds = array<i64: 1, 64>}, {pipeline_mode = #tpu.pipeline_mode<synchronous>, transform_indices = @transform_3, window_bounds = array<i64: 2, 32>}, {pipeline_mode = #tpu.pipeline_mode<synchronous>, transform_indices = @transform_4, window_bounds = array<i64: 2, 32>}, {pipeline_mode = #tpu.pipeline_mode<synchronous>, transform_indices = @transform_5, window_bounds = array<i64: 2, 32>}, {pipeline_mode = #tpu.pipeline_mode<synchronous>, transform_indices = @transform_6, window_bounds = array<i64: 2, 32>}]} {
    %c0 = arith.constant 0 : index
    %c0_0 = arith.constant 0 : index
    %0 = vector.load %arg1[%c0, %c0_0] : memref<2x1024xbf16, #tpu.memory_space<vmem>>, vector<2x1024xbf16>
    %c0_1 = arith.constant 0 : index
    %c0_2 = arith.constant 0 : index
    %1 = vector.load %arg2[%c0_1, %c0_2] : memref<1024x64xbf16, #tpu.memory_space<vmem>>, vector<1024x64xbf16>
    %cst = arith.constant dense<0.000000e+00> : vector<2x64xf32>
    %2 = tpu.matmul %0, %1, %cst {dimension_numbers = #tpu.dot_dimension_numbers<[1], [0], [0], [1], [0, 0, 1, 1], [], []>} : vector<2x1024xbf16>, vector<1024x64xbf16>, vector<2x64xf32> -> vector<2x64xf32>
    %c0_3 = arith.constant 0 : index
    %c0_4 = arith.constant 0 : index
    %3 = vector.load %arg3[%c0_3, %c0_4] : memref<1x64xf32, #tpu.memory_space<vmem>>, vector<1x64xf32>
    %4 = vector.broadcast %3 : vector<1x64xf32> to vector<2x64xf32>
    %5 = arith.addf %2, %4 : vector<2x64xf32>
    %6 = vector.extract_strided_slice %5 {offsets = [0, 0], sizes = [2, 32], strides = [1, 1]} : vector<2x64xf32> to vector<2x32xf32>
    %7 = vector.extract_strided_slice %5 {offsets = [0, 32], sizes = [2, 32], strides = [1, 1]} : vector<2x64xf32> to vector<2x32xf32>
    %c0_5 = arith.constant 0 : index
    %c0_6 = arith.constant 0 : index
    %8 = vector.load %arg4[%c0_5, %c0_6] : memref<2x32xf32, #tpu.memory_space<vmem>>, vector<2x32xf32>
    %9 = math.exp %7 : vector<2x32xf32>
    %10 = arith.mulf %8, %9 : vector<2x32xf32>
    %11 = arith.addf %10, %6 : vector<2x32xf32>
    %c0_7 = arith.constant 0 : index
    %c0_8 = arith.constant 0 : index
    %12 = vector.load %arg5[%c0_7, %c0_8] : memref<2x32xf32, #tpu.memory_space<vmem>>, vector<2x32xf32>
    tpu.vector_store %arg5[%c0_7, %c0_8], %11 {strides = array<i32>} : memref<2x32xf32, #tpu.memory_space<vmem>>, vector<2x32xf32>,
    %c0_9 = arith.constant 0 : index
    %c0_10 = arith.constant 0 : index
    %13 = vector.load %arg6[%c0_9, %c0_10] : memref<2x32xf32, #tpu.memory_space<vmem>>, vector<2x32xf32>
    tpu.vector_store %arg6[%c0_9, %c0_10], %7 {strides = array<i32>} : memref<2x32xf32, #tpu.memory_space<vmem>>, vector<2x32xf32>,
    %c0_11 = arith.constant 0 : index
    %c0_12 = arith.constant 0 : index
    %14 = vector.load %arg7[%c0_11, %c0_12] : memref<2x32xf32, #tpu.memory_space<vmem>>, vector<2x32xf32>
    tpu.vector_store %arg7[%c0_11, %c0_12], %6 {strides = array<i32>} : memref<2x32xf32, #tpu.memory_space<vmem>>, vector<2x32xf32>,
    return
  }
  func.func @transform_0(%arg0: i32) -> (i32, i32) {
    %c0_i32 = arith.constant 0 : i32
    %c0_i32_0 = arith.constant 0 : i32
    %c0_i32_1 = arith.constant 0 : i32
    return %c0_i32, %c0_i32_0 : i32, i32
  }
  func.func @transform_1(%arg0: i32) -> (i32, i32) {
    %c0_i32 = arith.constant 0 : i32
    %c0_i32_0 = arith.constant 0 : i32
    %c0_i32_1 = arith.constant 0 : i32
    return %c0_i32, %c0_i32_0 : i32, i32
  }
  func.func @transform_2(%arg0: i32) -> (i32, i32) {
    %c0_i32 = arith.constant 0 : i32
    %c0_i32_0 = arith.constant 0 : i32
    %c0_i32_1 = arith.constant 0 : i32
    return %c0_i32, %c0_i32_0 : i32, i32
  }
  func.func @transform_3(%arg0: i32) -> (i32, i32) {
    %c0_i32 = arith.constant 0 : i32
    %c0_i32_0 = arith.constant 0 : i32
    %c0_i32_1 = arith.constant 0 : i32
    return %c0_i32, %c0_i32_0 : i32, i32
  }
  func.func @transform_4(%arg0: i32) -> (i32, i32) {
    %c0_i32 = arith.constant 0 : i32
    %c0_i32_0 = arith.constant 0 : i32
    %c0_i32_1 = arith.constant 0 : i32
    return %c0_i32, %c0_i32_0 : i32, i32
  }
  func.func @transform_5(%arg0: i32) -> (i32, i32) {
    %c0_i32 = arith.constant 0 : i32
    %c0_i32_0 = arith.constant 0 : i32
    %c0_i32_1 = arith.constant 0 : i32
    return %c0_i32, %c0_i32_0 : i32, i32
  }
  func.func @transform_6(%arg0: i32) -> (i32, i32) {
    %c0_i32 = arith.constant 0 : i32
    %c0_i32_0 = arith.constant 0 : i32
    %c0_i32_1 = arith.constant 0 : i32
    return %c0_i32, %c0_i32_0 : i32, i32
  }
}

</mosaic_0001>

<bundles_post_ra>
// kernel: encoder_forward.5
= control target key start
LH: loop header
LB: loop body
LE: loop exit
PB: predicated region body
PF: predicated region fallthrough
CT: control target
= control target key end

     0   :  { %8 = vsyncpa [#allocation3], 0  ;;  %s1666_s0 = inlined_call_operand.hbm [shape: bf16[512,4], index: 0, kind: input, shape index: {}]   ;;  %s1667_s1 = inlined_call_operand.hbm [shape: bf16[4,32], index: 1, kind: input, shape index: {}]   ;;  %s1668_s2 = inlined_call_operand.hbm [shape: f32[1,32], index: 2, kind: input, shape index: {}]   ;;  %s1669_s3 = inlined_call_operand.hbm [shape: bf16[512,32], index: 3, kind: output, shape index: {}]  }
   0x1   :  { %10 = vsyncpa [#allocation3 + $0x1], 0 }
   0x2   :  { %11 = vsyncpa [#allocation6], 0 }
   0x3   :  { %12 = vsyncpa [#allocation4], 0 }
   0x4   :  { %14 = vsyncpa [#allocation4 + $0x1], 0  ;;  %s1295_s12 = smov 0   ;;  %s1297_s13 = smov 0  }
   0x5   :  { %s1299_s14 = smov 0   ;;  %s1301_s15 = smov 0  }
   0x6 LB: > { %s1316_s16 = sadd.s32 4294967295, %s1265_s15   ;;  %s850_s17 = sadd.s32 4294967294, %s1265_s15   ;;  %s1265_s15 = sphi %s1301_s15, %s1694_s15   ;;  %s1261_s14 = sphi %s1299_s14, %s1693_s14   ;;  %s1257_s13 = sphi %s1297_s13, %s1692_s13   ;;  %s1253_s12 = sphi %s1295_s12, %s1691_s12  }
   0x7   : > { %s1320_s18 = sadd.s32 1, %s1265_s15   ;;  %s27_s19 = sadd.s32 1, %s1261_s14 }
   0x8   : > { %s24_s20 = ssub.s32 %s1265_s15, %s1320_s18  ;;  %p34_p0 = scmp.ne.s32.totalorder %s1261_s14, %s1257_s13 }
   0x9   : > { %p25_p1 = scmp.eq.s32.totalorder %s24_s20, 0  ;;  %p35_p2 = scmp.eq.s32.totalorder %s1265_s15, 0 }
   0xa   : > { %p40_p3 = scmp.ne.s32.totalorder %s1257_s13, %s1253_s12  ;;  %p1670_p4 = scmp.eq.s32.totalorder %s1316_s16, 0 }
   0xb   : > { %s1332_s21 = scalar_select %p25_p1, %s1261_s14, %s27_s19  }
   0xc   : > { %p1334_p5 = por %p35_p2, %p34_p0  ;;  %p1340_p6 = por %p1670_p4, %p40_p3 }
   0xd   : > { %p106_p7 = scmp.eq.s32.totalorder %s1316_s16, 1  ;;  %p112_p8 = scmp.eq.s32.totalorder %s850_s17, 1 }
   0xe   : > { %s1676_s23 = scalar_select %p1340_p6, 1, 0 }
   0xf   : > { %p851_p9 = scmp.ge.s32.totalorder %s1265_s15, 1  ;;  %p119_p10 = scmp.lt.s32.totalorder %s1265_s15, 3 }
  0x10   : > { %p1347_p11 = por %p106_p7, %p34_p0  ;;  %p1351_p12 = por %p112_p8, %p40_p3 }
  0x11   : > { %p1355_p13 = pnand %p851_p9, %p119_p10  ;;  %s1267_s27 = smov [#allocation5]  }
  0x12   : > { %s1677_s24 = scalar_select %p1347_p11, 1, 0 }
  0x13   : > { %s1678_s25 = scalar_select %p1351_p12, 1, 0 }
  0x14   : > { %s1679_s26 = scalar_select %p1355_p13, 1, 0 }
  0x15   : > { %p1034_p2 = pneg %p1355_p13  ;;  %s132_s28 = sshll.u32 %s1267_s27, 4  ;;  %s133_s28 = int_to_ptr.vmem [resolvable:$true] %s132_s28 }
  0x16   : > { %p1051_p4 = scmp.lt.s32.totalorder %s1265_s15, 2  ;;  %p1680_p0 = scmp.eq.s32.totalorder %s1316_s16, 0 }
  0x17   : > { %s1268_s4 = smov [#allocation7]   ;;  %s1109_s8 = scalar_lea.hbm %s1667_s1, 32 }
  0x18   : > { %p1365_p7 = pnand %p1034_p2, %p1680_p0  ;;  %p1371_p3 = pnand %p1051_p4, %p1334_p5 }
  0x19   : > { %s143_s5 = sshll.u32 %s1268_s4, 4  ;;  %p1110_p8 = scmp.ne.s32.totalorder %s1667_s1, %s1109_s8  ;;  %s1375_s5 = int_to_ptr.vmem [resolvable:$true] %s143_s5 }
  0x1a   : > { %s1682_s30 = scalar_select %p1371_p3, 1, 0 }
  0x1b   : > { %p1111_p9 = pneg %p1365_p7  ;;  %p1116_p10 = scmp.lt.u32.totalorder %s1109_s8, %s1667_s1 }
  0x1d   : > { %p1112_p4 = pnand %p1111_p9, %p1110_p8 }
  0x1f   : > { %p1113_p5 = pneg %p1112_p4 }
  0x21   : > { %p1118_p2 = pnand %p1116_p10, %p1113_p5 }
  0x23   : > { %1121 = shalt.err (!%p1118_p2)
}
  0x24   : > { %s1122_s19 = scalar_lea.vmem %s133_s28, 32  ;;  %p1130_p11 = scmp.lt.s32.totalorder %s133_s28, %s133_s28 }
  0x25   : > { %p1123_p0 = scmp.ne.s32.totalorder %s133_s28, %s1122_s19  ;;  %p1131_p6 = scmp.lt.s32.totalorder %s1122_s19, %s1122_s19 }
  0x27   : > { %p1125_p1 = pnand %p1123_p0, %p1111_p9  ;;  %p1132_p13 = por %p1131_p6, %p1130_p11 }
  0x29   : > { %p1126_p12 = pneg %p1125_p1 }
  0x2b   : > { %p1133_p3 = pnand %p1132_p13, %p1126_p12 }
  0x2d   : > { %1136 = shalt.err (!%p1133_p3)
}
  0x2e   : > { %1037 = dma.hbm_to_vmem [thread:$0]  (!%p1365_p7), %s1667_s1, 32, %s133_s28, [#allocation6]  }
  0x2f   : > { %s154_s27 = sand.u32 1, %s1261_s14   ;;  %s1137_s7 = scalar_lea.hbm %s1668_s2, 16 }
  0x30   : > { %p1138_p1 = scmp.ne.s32.totalorder %s1668_s2, %s1137_s7  ;;  %p1144_p12 = scmp.lt.u32.totalorder %s1137_s7, %s1668_s2 }
  0x32   : > { %p1140_p6 = pnand %p1138_p1, %p1111_p9 }
  0x34   : > { %p1141_p11 = pneg %p1140_p6 }
  0x36   : > { %p1146_p13 = pnand %p1144_p12, %p1141_p11 }
  0x38   : > { %1149 = shalt.err (!%p1146_p13)
}
  0x39   : > { %s1150_s28 = scalar_lea.vmem %s1375_s5, 16  ;;  %s1157_s17 = scalar_lea.vmem %s1375_s5, 32 }
  0x3a   : > { %p1151_p3 = scmp.ne.s32.totalorder %s1375_s5, %s1150_s28  ;;  %p1158_p5 = scmp.lt.s32.totalorder %s1375_s5, %s1375_s5 }
  0x3b   : > { %p1159_p10 = scmp.lt.s32.totalorder %s1157_s17, %s1150_s28 }
  0x3c   : > { %p1153_p8 = pnand %p1151_p3, %p1111_p9 }
  0x3d   : > { %p1160_p2 = por %p1159_p10, %p1158_p5 }
  0x3e   : > { %p1154_p4 = pneg %p1153_p8 }
  0x40   : > { %p1161_p0 = pnand %p1160_p2, %p1154_p4 }
  0x42   : > { %1164 = shalt.err (!%p1161_p0)
}
  0x43   : > { %1040 = dma.hbm_to_vmem [thread:$0]  (!%p1365_p7), %s1668_s2, 16, %s1375_s5, [#allocation6]  }
  0x44   : > { %s855_s22 = sshll.u32 %s154_s27, 7  ;;  %s933_s4 = sshll.u32 %s1265_s15, 11 }
  0x45   : > { %s1430_s8 = scalar_lea.hbm %s1666_s0, %s933_s4  ;;  %s158_s29 = scalar_lea.vmem [#allocation2], %s855_s22 }
  0x46   : > { %s165_s9 = sshll.u32 %s158_s29, 4  ;;  %s1434_s10 = scalar_lea.sflag [#allocation3], %s154_s27  ;;  %s1432_s9 = int_to_ptr.vmem [resolvable:$true] %s165_s9 }
  0x47   : > { %s1165_s11 = scalar_lea.hbm %s1430_s8, 2048  ;;  %p1683_p7 = scmp.ne.s32.totalorder %s1682_s30, 0 }
  0x48   : > { %p1166_p9 = scmp.ne.s32.totalorder %s1430_s8, %s1165_s11  ;;  %s1170_s17 = scalar_lea.hbm %s1666_s0, 4096 }
  0x49   : > { %p1167_p1 = pneg %p1683_p7  ;;  %p1171_p12 = scmp.lt.u32.totalorder %s1430_s8, %s1666_s0 }
  0x4a   : > { %p1172_p13 = scmp.lt.u32.totalorder %s1170_s17, %s1165_s11  ;;  %p1174_p8 = scmp.lt.u32.totalorder %s1165_s11, %s1430_s8 }
  0x4b   : > { %p1168_p6 = pnand %p1167_p1, %p1166_p9 }
  0x4c   : > { %p1173_p3 = por %p1172_p13, %p1171_p12 }
  0x4d   : > { %p1169_p11 = pneg %p1168_p6 }
  0x4e   : > { %p1175_p4 = por %p1174_p8, %p1173_p3 }
  0x50   : > { %p1176_p5 = pnand %p1175_p4, %p1169_p11 }
  0x52   : > { %1179 = shalt.err (!%p1176_p5)
}
  0x53   : > { %s1180_s27 = scalar_lea.vmem %s1432_s9, 2048  ;;  %s1269_s22 = smov [#allocation2]  }
  0x54   : > { %p1181_p10 = scmp.ne.s32.totalorder %s1432_s9, %s1180_s27  ;;  %s1185_s4 = sshll.u32 %s1269_s22, 4  ;;  %s1186_s4 = int_to_ptr.vmem [resolvable:$false] %s1185_s4 }
  0x55   : > { %s1187_s6 = scalar_lea.vmem %s1186_s4, 4096  ;;  %p1188_p9 = scmp.lt.s32.totalorder %s1432_s9, %s1186_s4 }
  0x56   : > { %p1183_p2 = pnand %p1181_p10, %p1167_p1  ;;  %p1189_p6 = scmp.lt.s32.totalorder %s1187_s6, %s1180_s27 }
  0x58   : > { %p1184_p0 = pneg %p1183_p2  ;;  %p1190_p12 = por %p1189_p6, %p1188_p9 }
  0x5a   : > { %p1191_p13 = pnand %p1190_p12, %p1184_p0 }
  0x5c   : > { %1194 = shalt.err (!%p1191_p13)
}
  0x5d   : > { %s1270_s7 = smov 64   ;;  %s1271_s29 = smov 4  }
  0x5e   : > { %1044 = dma.hbm_to_vmem [thread:$0]  (!%p1683_p7), %s1430_s8, 2048, %s1432_s9, %s1434_s10, %s1270_s7, %s1270_s7, %s1271_s29  }
  0x5f   : > { %p1684_p1 = scmp.ne.s32.totalorder %s1679_s26, 0 }
  0x60   : > { %s1465_s11 = sand.u32 (!%p1684_p1), 1, %s1257_s13   ;;  %p1685_p11 = scmp.ne.s32.totalorder (!%p1684_p1), %s1676_s23, 0 }
  0x61   : > { %177 = sbr.rel (%p1684_p1) target bundleno = 373 (0x175), region = 32  ;;  %s859_s5 = sshll.u32 (!%p1684_p1), %s1465_s11, 7 }
  0x62   : > { %s180_s28 = scalar_lea.sflag (!%p1684_p1), [#allocation3], %s1465_s11  ;;  %s1471_s17 = scalar_lea.vmem (!%p1684_p1), [#allocation2], %s859_s5 }
  0x68   : > { %1240 = dma.done.wait (%p1685_p11), %s180_s28, 2048  }
  0x69   : > { %1242 = vsyncadd (%p1685_p11), %s180_s28, 4294965248  ;;  %p1686_p7 = scmp.eq.s32.totalorder %s1316_s16, 0 }
  0x6b   : > { %1244 = dma.done.wait (%p1686_p7), [#allocation6], 48   ;;  %p1687_p3 = pmov %p1686_p7 }
  0x6c   : > { %vm386_vm0 = vcmask 1041408   ;;  %vm337_vm1 = vcmask 31744   ;;  %v249_v0 = vld [vmem:[#allocation5] sm:$0x3]  ;;  %v1095_v4 = vld [vmem:[%s1471_s17 + $0x8] sm:$0xff]   ;;  %v1097_v6 = vld [vmem:[%s1471_s17 + $0x10] sm:$0xff]  }
  0x6d   : > { %1246 = vsyncadd (%p1687_p3), [#allocation6], 4294967248  ;;  %1020 = vmatprep.subr.msk.bf16.mxu0 %vm386_vm0, %v249_v0  ;;  %1021 = vmatprep.subr.msk.bf16.mxu1 %vm386_vm0, %v249_v0  ;;  %v388_v1 = vsel %vm386_vm0, %v249_v0, 0  ;;  %v1093_v2 = vld [vmem:[%s1471_s17] sm:$0xff]   ;;  %v1096_v5 = vld [vmem:[%s1471_s17 + $0x48] sm:$0xff]   ;;  %vm711_vm2 = vcmask 257024  }
  0x6e   : > { %985 = vmatpush3.bf16.msra.mxu0 %v388_v1  ;;  %1019 = vmatpush3.bf16.msra.mxu1 %v388_v1  ;;  %v1094_v3 = vld [vmem:[%s1471_s17 + $0x40] sm:$0xff]   ;;  %v1098_v7 = vld [vmem:[%s1471_s17 + $0x50] sm:$0xff]   ;;  %v1099_v8 = vld [vmem:[%s1471_s17 + $0x18] sm:$0xff]   ;;  %s1525_s23 = scalar_lea.vmem [#allocation8], %s859_s5  ;;  %s966_s26 = sshll.u32 %s1316_s16, 11 }
  0x6f   : > { %986 = vmatprep.mubr.msk.bf16.mxu0 %vm337_vm1, %v1093_v2  ;;  %1002 = vmatprep.mubr.msk.bf16.mxu1 %vm337_vm1, %v1094_v3  ;;  %v1100_v9 = vld [vmem:[%s1471_s17 + $0x58] sm:$0xff]   ;;  %v1101_v10 = vld [vmem:[%s1471_s17 + $0x20] sm:$0xff]   ;;  %v1103_v12 = vld [vmem:[%s1471_s17 + $0x28] sm:$0xff]   ;;  %s758_s30 = sshll.u32 %s1525_s23, 4  ;;  %s1610_s9 = scalar_lea.hbm %s1669_s3, %s966_s26  ;;  %s1612_s30 = int_to_ptr.vmem [resolvable:$true] %s758_s30 }
  0x70   : > { %v1102_v11 = vld [vmem:[%s1471_s17 + $0x60] sm:$0xff]   ;;  %v1104_v13 = vld [vmem:[%s1471_s17 + $0x68] sm:$0xff]   ;;  %v1105_v14 = vld [vmem:[%s1471_s17 + $0x30] sm:$0xff]   ;;  %s745_s10 = scalar_lea.sflag [#allocation4], %s1465_s11  ;;  %s1195_s19 = scalar_lea.vmem %s1612_s30, 2048 }
  0x71   : > { %987 = vmatmul.mubr.msk.bf16.vlgmr.msra.gmra.mrb[0].mxu0 %vm337_vm1, %v1095_v4  ;;  %1003 = vmatmul.mubr.msk.bf16.vlgmr.msra.gmra.mrb[0].mxu1 %vm337_vm1, %v1096_v5  ;;  %v1106_v15 = vld [vmem:[%s1471_s17 + $0x70] sm:$0xff]   ;;  %v1107_v16 = vld [vmem:[%s1471_s17 + $0x38] sm:$0xff]   ;;  %v1513_v18 = vld [vmem:[#allocation7] ss:$0 sm:$0xff]  ;;  %p1196_p8 = scmp.ne.s32.totalorder %s1612_s30, %s1195_s19  ;;  %p1688_p4 = scmp.ne.s32.totalorder %s1677_s24, 0 }
  0x72   : > { %990 = vmatprep.mubr.msk.bf16.mxu0 %vm337_vm1, %v1097_v6  ;;  %1006 = vmatprep.mubr.msk.bf16.mxu1 %vm337_vm1, %v1098_v7  ;;  %v1108_v17 = vld [vmem:[%s1471_s17 + $0x78] sm:$0xff]   ;;  %s1272_s20 = smov [#allocation8]  }
  0x73   : > { %p1197_p5 = pnand %p1196_p8, %p1688_p4  ;;  %s1199_s27 = sshll.u32 %s1272_s20, 4  ;;  %s1200_s27 = int_to_ptr.vmem [resolvable:$false] %s1199_s27 }
  0x74   : > { %s1201_s22 = scalar_lea.vmem %s1200_s27, 4096  ;;  %p1202_p2 = scmp.lt.s32.totalorder %s1612_s30, %s1200_s27 }
  0x75   : > { %p1198_p10 = pneg %p1197_p5  ;;  %p1203_p0 = scmp.lt.s32.totalorder %s1201_s22, %s1195_s19 }
  0x77   : > { %p1204_p9 = por %p1203_p0, %p1202_p2 }
  0x79   : > { %991 = vmatmul.mubr.msk.bf16.gmra.mrb[4].mxu0 %vm337_vm1, %v1099_v8  ;;  %1007 = vmatmul.mubr.msk.bf16.gmra.mrb[4].mxu1 %vm337_vm1, %v1100_v9  ;;  %p1205_p6 = pnand %p1204_p9, %p1198_p10 }
  0x7a   : > { %994 = vmatprep.mubr.msk.bf16.mxu0 %vm337_vm1, %v1101_v10  ;;  %1010 = vmatprep.mubr.msk.bf16.mxu1 %vm337_vm1, %v1102_v11 }
  0x81   : > { %995 = vmatmul.mubr.msk.bf16.gmra.mrb[8].mxu0 %vm337_vm1, %v1103_v12  ;;  %1011 = vmatmul.mubr.msk.bf16.gmra.mrb[8].mxu1 %vm337_vm1, %v1104_v13 }
  0x82   : > { %998 = vmatprep.mubr.msk.bf16.mxu0 %vm337_vm1, %v1105_v14  ;;  %1014 = vmatprep.mubr.msk.bf16.mxu1 %vm337_vm1, %v1106_v15 }
  0x89   : > { %999 = vmatmul.mubr.msk.bf16.gmra.mrb[12].mxu0 %vm337_vm1, %v1107_v16  ;;  %1015 = vmatmul.mubr.msk.bf16.gmra.mrb[12].mxu1 %vm337_vm1, %v1108_v17 }
 0x144   : > { %v988_v19 = vpop.f32.mrb[0].mxu0  ;;  %v1004_v21 = vpop.f32.mrb[0].mxu1 }
 0x145   : > { %v433_v20 = vadd.f32 %v988_v19, %v1513_v18  ;;  %v424_v22 = vpop.f32.mrb[1].mxu0  ;;  %v497_v23 = vadd.f32 %v1004_v21, %v1513_v18  ;;  %v488_v25 = vpop.f32.mrb[1].mxu1 }
 0x146   : > { %v425_v24 = vadd.f32 %v1513_v18, %v424_v22  ;;  %v989_v26 = vpop.f32.mrb[2].mxu0  ;;  %v489_v28 = vadd.f32 %v1513_v18, %v488_v25  ;;  %v1005_v30 = vpop.f32.mrb[2].mxu1 }
 0x147   : > { %v553_v27 = vmax.f32 %v433_v20, 0.0  ;;  %v436_v29 = vadd.f32 %v989_v26, %v1513_v18  ;;  %v427_v31 = vpop.f32.mrb[3].mxu0  ;;  %v569_v32 = vmax.f32 %v497_v23, 0.0  ;;  %v500_v34 = vadd.f32 %v1005_v30, %v1513_v18  ;;  %v491_v36 = vpop.f32.mrb[3].mxu1 }
 0x148   : > { %v551_v33 = vmax.f32 %v425_v24, 0.0  ;;  %v428_v35 = vadd.f32 %v1513_v18, %v427_v31  ;;  %v567_v38 = vmax.f32 %v489_v28, 0.0  ;;  %v492_v40 = vadd.f32 %v1513_v18, %v491_v36 }
 0x149   : > { %v936_v37 = vpack.c.bf16 %v553_v27, %v553_v27  ;;  %v554_v39 = vmax.f32 %v436_v29, 0.0  ;;  %v952_v41 = vpack.c.bf16 %v569_v32, %v569_v32  ;;  %v570_v43 = vmax.f32 %v500_v34, 0.0 }
 0x14a   : > { %v934_v42 = vpack.c.bf16 %v551_v33, %v551_v33  ;;  %v552_v44 = vmax.f32 %v428_v35, 0.0  ;;  %v950_v45 = vpack.c.bf16 %v567_v38, %v567_v38  ;;  %v568_v47 = vmax.f32 %v492_v40, 0.0 }
 0x14b   : > { %714 = vst.msk [vmem:[%s1525_s23 + $0x8] sm:$0xf] %vm711_vm2, %v936_v37  ;;  %v937_v46 = vpack.c.bf16 %v554_v39, %v554_v39  ;;  %730 = vst.msk [vmem:[%s1525_s23 + $0x48] sm:$0xf] %vm711_vm2, %v952_v41  ;;  %v953_v48 = vpack.c.bf16 %v570_v43, %v570_v43 }
 0x14c   : > { %712 = vst.msk [vmem:[%s1525_s23] sm:$0xf] %vm711_vm2, %v934_v42  ;;  %v935_v49 = vpack.c.bf16 %v552_v44, %v552_v44  ;;  %v992_v50 = vpop.f32.mrb[4].mxu0  ;;  %728 = vst.msk [vmem:[%s1525_s23 + $0x40] sm:$0xf] %vm711_vm2, %v950_v45  ;;  %v951_v51 = vpack.c.bf16 %v568_v47, %v568_v47  ;;  %v1008_v53 = vpop.f32.mrb[4].mxu1 }
 0x14d   : > { %715 = vst.msk [vmem:[%s1525_s23 + $0xc] sm:$0xf] %vm711_vm2, %v937_v46  ;;  %v449_v52 = vadd.f32 %v992_v50, %v1513_v18  ;;  %v440_v54 = vpop.f32.mrb[5].mxu0  ;;  %731 = vst.msk [vmem:[%s1525_s23 + $0x4c] sm:$0xf] %vm711_vm2, %v953_v48  ;;  %v513_v55 = vadd.f32 %v1008_v53, %v1513_v18  ;;  %v504_v57 = vpop.f32.mrb[5].mxu1 }
 0x14e   : > { %713 = vst.msk [vmem:[%s1525_s23 + $0x4] sm:$0xf] %vm711_vm2, %v935_v49  ;;  %v441_v56 = vadd.f32 %v1513_v18, %v440_v54  ;;  %v993_v58 = vpop.f32.mrb[6].mxu0  ;;  %729 = vst.msk [vmem:[%s1525_s23 + $0x44] sm:$0xf] %vm711_vm2, %v951_v51  ;;  %v505_v60 = vadd.f32 %v1513_v18, %v504_v57  ;;  %v1009_v62 = vpop.f32.mrb[6].mxu1 }
 0x14f   : > { %v557_v59 = vmax.f32 %v449_v52, 0.0  ;;  %v452_v61 = vadd.f32 %v993_v58, %v1513_v18  ;;  %v443_v63 = vpop.f32.mrb[7].mxu0  ;;  %v573_v0 = vmax.f32 %v513_v55, 0.0  ;;  %v516_v2 = vadd.f32 %v1009_v62, %v1513_v18  ;;  %v507_v4 = vpop.f32.mrb[7].mxu1 }
 0x150   : > { %v555_v1 = vmax.f32 %v441_v56, 0.0  ;;  %v444_v3 = vadd.f32 %v1513_v18, %v443_v63  ;;  %v571_v6 = vmax.f32 %v505_v60, 0.0  ;;  %v508_v8 = vadd.f32 %v1513_v18, %v507_v4 }
 0x151   : > { %v940_v5 = vpack.c.bf16 %v557_v59, %v557_v59  ;;  %v558_v7 = vmax.f32 %v452_v61, 0.0  ;;  %v956_v9 = vpack.c.bf16 %v573_v0, %v573_v0  ;;  %v574_v11 = vmax.f32 %v516_v2, 0.0 }
 0x152   : > { %v938_v10 = vpack.c.bf16 %v555_v1, %v555_v1  ;;  %v556_v12 = vmax.f32 %v444_v3, 0.0  ;;  %v954_v13 = vpack.c.bf16 %v571_v6, %v571_v6  ;;  %v572_v15 = vmax.f32 %v508_v8, 0.0 }
 0x153   : > { %718 = vst.msk [vmem:[%s1525_s23 + $0x18] sm:$0xf] %vm711_vm2, %v940_v5  ;;  %v941_v14 = vpack.c.bf16 %v558_v7, %v558_v7  ;;  %734 = vst.msk [vmem:[%s1525_s23 + $0x58] sm:$0xf] %vm711_vm2, %v956_v9  ;;  %v957_v16 = vpack.c.bf16 %v574_v11, %v574_v11 }
 0x154   : > { %716 = vst.msk [vmem:[%s1525_s23 + $0x10] sm:$0xf] %vm711_vm2, %v938_v10  ;;  %v939_v17 = vpack.c.bf16 %v556_v12, %v556_v12  ;;  %v996_v19 = vpop.f32.mrb[8].mxu0  ;;  %732 = vst.msk [vmem:[%s1525_s23 + $0x50] sm:$0xf] %vm711_vm2, %v954_v13  ;;  %v955_v20 = vpack.c.bf16 %v572_v15, %v572_v15  ;;  %v1012_v22 = vpop.f32.mrb[8].mxu1 }
 0x155   : > { %719 = vst.msk [vmem:[%s1525_s23 + $0x1c] sm:$0xf] %vm711_vm2, %v941_v14  ;;  %v465_v21 = vadd.f32 %v996_v19, %v1513_v18  ;;  %v456_v23 = vpop.f32.mrb[9].mxu0  ;;  %735 = vst.msk [vmem:[%s1525_s23 + $0x5c] sm:$0xf] %vm711_vm2, %v957_v16  ;;  %v529_v24 = vadd.f32 %v1012_v22, %v1513_v18  ;;  %v520_v26 = vpop.f32.mrb[9].mxu1 }
 0x156   : > { %717 = vst.msk [vmem:[%s1525_s23 + $0x14] sm:$0xf] %vm711_vm2, %v939_v17  ;;  %v457_v25 = vadd.f32 %v1513_v18, %v456_v23  ;;  %v997_v27 = vpop.f32.mrb[10].mxu0  ;;  %733 = vst.msk [vmem:[%s1525_s23 + $0x54] sm:$0xf] %vm711_vm2, %v955_v20  ;;  %v521_v29 = vadd.f32 %v1513_v18, %v520_v26  ;;  %v1013_v31 = vpop.f32.mrb[10].mxu1 }
 0x157   : > { %v561_v28 = vmax.f32 %v465_v21, 0.0  ;;  %v468_v30 = vadd.f32 %v997_v27, %v1513_v18  ;;  %v459_v32 = vpop.f32.mrb[11].mxu0  ;;  %v577_v33 = vmax.f32 %v529_v24, 0.0  ;;  %v532_v35 = vadd.f32 %v1013_v31, %v1513_v18  ;;  %v523_v37 = vpop.f32.mrb[11].mxu1 }
 0x158   : > { %v559_v34 = vmax.f32 %v457_v25, 0.0  ;;  %v460_v36 = vadd.f32 %v1513_v18, %v459_v32  ;;  %v575_v39 = vmax.f32 %v521_v29, 0.0  ;;  %v524_v41 = vadd.f32 %v1513_v18, %v523_v37 }
 0x159   : > { %v944_v38 = vpack.c.bf16 %v561_v28, %v561_v28  ;;  %v562_v40 = vmax.f32 %v468_v30, 0.0  ;;  %v960_v42 = vpack.c.bf16 %v577_v33, %v577_v33  ;;  %v578_v44 = vmax.f32 %v532_v35, 0.0 }
 0x15a   : > { %v942_v43 = vpack.c.bf16 %v559_v34, %v559_v34  ;;  %v560_v45 = vmax.f32 %v460_v36, 0.0  ;;  %v958_v46 = vpack.c.bf16 %v575_v39, %v575_v39  ;;  %v576_v48 = vmax.f32 %v524_v41, 0.0 }
 0x15b   : > { %722 = vst.msk [vmem:[%s1525_s23 + $0x28] sm:$0xf] %vm711_vm2, %v944_v38  ;;  %v945_v47 = vpack.c.bf16 %v562_v40, %v562_v40  ;;  %738 = vst.msk [vmem:[%s1525_s23 + $0x68] sm:$0xf] %vm711_vm2, %v960_v42  ;;  %v961_v49 = vpack.c.bf16 %v578_v44, %v578_v44 }
 0x15c   : > { %720 = vst.msk [vmem:[%s1525_s23 + $0x20] sm:$0xf] %vm711_vm2, %v942_v43  ;;  %v943_v50 = vpack.c.bf16 %v560_v45, %v560_v45  ;;  %v1000_v51 = vpop.f32.mrb[12].mxu0  ;;  %736 = vst.msk [vmem:[%s1525_s23 + $0x60] sm:$0xf] %vm711_vm2, %v958_v46  ;;  %v959_v52 = vpack.c.bf16 %v576_v48, %v576_v48  ;;  %v1016_v54 = vpop.f32.mrb[12].mxu1 }
 0x15d   : > { %723 = vst.msk [vmem:[%s1525_s23 + $0x2c] sm:$0xf] %vm711_vm2, %v945_v47  ;;  %v481_v53 = vadd.f32 %v1000_v51, %v1513_v18  ;;  %v472_v55 = vpop.f32.mrb[13].mxu0  ;;  %739 = vst.msk [vmem:[%s1525_s23 + $0x6c] sm:$0xf] %vm711_vm2, %v961_v49  ;;  %v545_v56 = vadd.f32 %v1016_v54, %v1513_v18  ;;  %v536_v58 = vpop.f32.mrb[13].mxu1 }
 0x15e   : > { %721 = vst.msk [vmem:[%s1525_s23 + $0x24] sm:$0xf] %vm711_vm2, %v943_v50  ;;  %v473_v57 = vadd.f32 %v1513_v18, %v472_v55  ;;  %v1001_v59 = vpop.f32.mrb[14].mxu0  ;;  %737 = vst.msk [vmem:[%s1525_s23 + $0x64] sm:$0xf] %vm711_vm2, %v959_v52  ;;  %v537_v61 = vadd.f32 %v1513_v18, %v536_v58  ;;  %v1017_v63 = vpop.f32.mrb[14].mxu1 }
 0x15f   : > { %v565_v60 = vmax.f32 %v481_v53, 0.0  ;;  %v484_v62 = vadd.f32 %v1001_v59, %v1513_v18  ;;  %v475_v0 = vpop.f32.mrb[15].mxu0  ;;  %v581_v1 = vmax.f32 %v545_v56, 0.0  ;;  %v548_v3 = vadd.f32 %v1017_v63, %v1513_v18  ;;  %v539_v5 = vpop.f32.mrb[15].mxu1 }
 0x160   : > { %v563_v2 = vmax.f32 %v473_v57, 0.0  ;;  %v476_v4 = vadd.f32 %v1513_v18, %v475_v0  ;;  %v579_v7 = vmax.f32 %v537_v61, 0.0  ;;  %v540_v9 = vadd.f32 %v1513_v18, %v539_v5 }
 0x161   : > { %v948_v6 = vpack.c.bf16 %v565_v60, %v565_v60  ;;  %v566_v8 = vmax.f32 %v484_v62, 0.0  ;;  %v964_v10 = vpack.c.bf16 %v581_v1, %v581_v1  ;;  %v582_v12 = vmax.f32 %v548_v3, 0.0 }
 0x162   : > { %v946_v11 = vpack.c.bf16 %v563_v2, %v563_v2  ;;  %v564_v13 = vmax.f32 %v476_v4, 0.0  ;;  %v962_v14 = vpack.c.bf16 %v579_v7, %v579_v7  ;;  %v580_v16 = vmax.f32 %v540_v9, 0.0 }
 0x163   : > { %726 = vst.msk [vmem:[%s1525_s23 + $0x38] sm:$0xf] %vm711_vm2, %v948_v6  ;;  %v949_v15 = vpack.c.bf16 %v566_v8, %v566_v8  ;;  %742 = vst.msk [vmem:[%s1525_s23 + $0x78] sm:$0xf] %vm711_vm2, %v964_v10  ;;  %v965_v18 = vpack.c.bf16 %v582_v12, %v582_v12 }
 0x164   : > { %724 = vst.msk [vmem:[%s1525_s23 + $0x30] sm:$0xf] %vm711_vm2, %v946_v11  ;;  %v947_v17 = vpack.c.bf16 %v564_v13, %v564_v13  ;;  %740 = vst.msk [vmem:[%s1525_s23 + $0x70] sm:$0xf] %vm711_vm2, %v962_v14  ;;  %v963_v19 = vpack.c.bf16 %v580_v16, %v580_v16 }
 0x165   : > { %727 = vst.msk [vmem:[%s1525_s23 + $0x3c] sm:$0xf] %vm711_vm2, %v949_v15  ;;  %743 = vst.msk [vmem:[%s1525_s23 + $0x7c] sm:$0xf] %vm711_vm2, %v965_v18 }
 0x166   : > { %725 = vst.msk [vmem:[%s1525_s23 + $0x34] sm:$0xf] %vm711_vm2, %v947_v17  ;;  %741 = vst.msk [vmem:[%s1525_s23 + $0x74] sm:$0xf] %vm711_vm2, %v963_v19 }
 0x167   : > { %1208 = shalt.err (!%p1205_p6)
}
 0x168   : > { %s1209_s4 = scalar_lea.hbm %s1610_s9, 2048  ;;  %s1213_s29 = scalar_lea.hbm %s1669_s3, 4096 }
 0x169   : > { %p1210_p12 = scmp.ne.s32.totalorder %s1610_s9, %s1209_s4  ;;  %p1214_p11 = scmp.lt.u32.totalorder %s1610_s9, %s1669_s3 }
 0x16a   : > { %p1215_p7 = scmp.lt.u32.totalorder %s1213_s29, %s1209_s4  ;;  %p1217_p8 = scmp.lt.u32.totalorder %s1209_s4, %s1610_s9 }
 0x16b   : > { %p1211_p13 = pnand %p1210_p12, %p1688_p4 }
 0x16c   : > { %p1216_p3 = por %p1215_p7, %p1214_p11 }
 0x16d   : > { %p1212_p1 = pneg %p1211_p13 }
 0x16e   : > { %p1218_p5 = por %p1217_p8, %p1216_p3 }
 0x170   : > { %p1219_p10 = pnand %p1218_p5, %p1212_p1 }
 0x172   : > { %1222 = shalt.err (!%p1219_p10)
}
 0x173   : > { %s1273_s17 = smov 64   ;;  %s1274_s23 = smov 4  }
 0x174   : > { %1032 = dma.vmem_to_hbm [thread:$0]  (%p1688_p4), %s1612_s30, 2048, %s1610_s9, %s745_s10, %s1273_s17, %s1273_s17, %s1274_s23  }
 0x175 PF: > { %s773_s26 = sand.u32 1, %s1253_s12   ;;  %p1689_p2 = scmp.ne.s32.totalorder %s1678_s25, 0 }
 0x176   : > { %p1690_p0 = scmp.ge.s32.totalorder %s1265_s15, 2  ;;  %s774_s16 = scalar_lea.sflag [#allocation4], %s773_s26 }
 0x178   : > { %p1046_p9 = pnand %p1690_p0, %p1689_p2 }
 0x17a   : > { %1248 = dma.done.wait (!%p1046_p9), %s774_s16, 2048  }
 0x17b   : > { %1250 = vsyncadd (!%p1046_p9), %s774_s16, 4294965248  ;;  %p17_p6 = scmp.ge.s32.totalorder %s1320_s18, 4   ;;  %s1691_s12 = smov %s1257_s13 }
 0x17c   : > { %s1692_s13 = smov %s1261_s14  ;;  %s1693_s14 = smov %s1332_s21 }
 0x17d   : > { %s1694_s15 = smov %s1320_s18  ;;  %19 = sbr.rel (!%p17_p6) target bundleno = 6 (0x6), region = 85 }
 0x184   :  { %779 = vsyncpa [#allocation3], 1 }
 0x185   :  { %781 = vsyncpa [#allocation3 + $0x1], 1 }
 0x186   :  { %782 = vsyncpa [#allocation6], 1 }
 0x187   :  { %783 = vsyncpa [#allocation4], 1 }
 0x188   :  { %785 = vsyncpa [#allocation4 + $0x1], 1 }

// kernel: encoder_forward.6
= control target key start
LH: loop header
LB: loop body
LE: loop exit
PB: predicated region body
PF: predicated region fallthrough
CT: control target
= control target key end

     0   :  { %s3393_s0 = inlined_call_operand.hbm [shape: bf16[2,18,8,32], index: 0, kind: input, shape index: {}]   ;;  %s3394_s1 = inlined_call_operand.hbm [shape: bf16[2,18,8,32], index: 1, kind: input, shape index: {}]   ;;  %s3395_s2 = inlined_call_operand.hbm [shape: bf16[2,18,8,32], index: 2, kind: input, shape index: {}]   ;;  %s3396_s3 = inlined_call_operand.hbm [shape: bf16[288,64], index: 3, kind: input, shape index: {}]   ;;  %s3397_s4 = inlined_call_operand.hbm [shape: f32[1,64], index: 4, kind: input, shape index: {}]   ;;  %s3398_s5 = inlined_call_operand.hbm [shape: bf16[2,64,64], index: 5, kind: output, shape index: {}]  }
   0x1   :  { %3418 = sst [smem:[#allocation21_spill]] %s3394_s1 }
   0x2   :  { %3419 = sst [smem:[#allocation22_spill]] %s3396_s3 }
   0x3   :  { %10 = vsyncpa [#allocation5], 0 }
   0x4   :  { %12 = vsyncpa [#allocation5 + $0x1], 0 }
   0x5   :  { %13 = vsyncpa [#allocation8], 0 }
   0x6   :  { %15 = vsyncpa [#allocation8 + $0x1], 0 }
   0x7   :  { %16 = vsyncpa [#allocation11], 0 }
   0x8   :  { %17 = vsyncpa [#allocation6], 0 }
   0x9   :  { %19 = vsyncpa [#allocation6 + $0x1], 0  ;;  %s2706_s18 = smov 0   ;;  %s2708_s19 = smov 0  }
   0xa   :  { %s2710_s20 = smov 0   ;;  %s2712_s21 = smov 0  }
   0xb LB: > { %3420 = sst [smem:[#allocation18_spill]] %s2663_s21  ;;  %s2727_s22 = sadd.s32 4294967295, %s2663_s21   ;;  %s2663_s21 = sphi %s2712_s21, %s3451_s21   ;;  %s2659_s20 = sphi %s2710_s20, %s3455_s20   ;;  %s2655_s19 = sphi %s2708_s19, %s3454_s19   ;;  %s2651_s18 = sphi %s2706_s18, %s3453_s18  }
   0xc   : > { %s2012_s23 = sadd.s32 4294967294, %s2663_s21   ;;  %s2731_s24 = sadd.s32 1, %s2663_s21  }
   0xd   : > { %3421 = sst [smem:[#allocation19_spill]] %s2731_s24  ;;  %s32_s25 = sadd.s32 1, %s2659_s20 }
   0xe   : > { %s29_s26 = ssub.s32 %s2663_s21, %s2731_s24  ;;  %p39_p0 = scmp.ne.s32.totalorder %s2659_s20, %s2655_s19 }
   0xf   : > { %p30_p1 = scmp.eq.s32.totalorder %s29_s26, 0  ;;  %p40_p2 = scmp.eq.s32.totalorder %s2663_s21, 0 }
  0x10   : > { %p45_p3 = scmp.ne.s32.totalorder %s2655_s19, %s2651_s18  ;;  %p3399_p4 = scmp.eq.s32.totalorder %s2727_s22, 0 }
  0x11   : > { %s2743_s27 = scalar_select %p30_p1, %s2659_s20, %s32_s25  }
  0x12   : > { %p2745_p5 = por %p40_p2, %p39_p0  ;;  %p2751_p6 = por %p3399_p4, %p45_p3 }
  0x13   : > { %3422 = sst [smem:[#allocation20_spill]] %s2743_s27  ;;  %p163_p7 = scmp.eq.s32.totalorder %s2727_s22, 1 }
  0x14   : > { %s3423_s28 = scalar_select %p2745_p5, 1, 0 }
  0x15   : > { %s3424_s29 = scalar_select %p2751_p6, 1, 0 }
  0x16   : > { %p169_p8 = scmp.eq.s32.totalorder %s2012_s23, 1  ;;  %p2013_p9 = scmp.ge.s32.totalorder %s2663_s21, 1 }
  0x17   : > { %p176_p10 = scmp.lt.s32.totalorder %s2663_s21, 3  ;;  %p2758_p11 = por %p163_p7, %p39_p0 }
  0x18   : > { %p2762_p12 = por %p169_p8, %p45_p3  ;;  %s2665_s8 = smov [#allocation10]  }
  0x19   : > { %s3425_s30 = scalar_select %p2758_p11, 1, 0 }
  0x1a   : > { %s3426_s6 = scalar_select %p2762_p12, 1, 0 }
  0x1b   : > { %p2766_p13 = pnand %p2013_p9, %p176_p10  ;;  %s188_s9 = sshll.u32 %s2665_s8, 4  ;;  %s189_s9 = int_to_ptr.vmem [resolvable:$true] %s188_s9 }
  0x1c   : > { %s3403_s11 = sand.u32 1, %s2659_s20   ;;  %s3429_s3 = sld [smem:[#allocation22_spill]] }
  0x1d   : > { %s3427_s7 = scalar_select %p2766_p13, 1, 0 }
  0x1e   : > { %p2359_p1 = pneg %p2766_p13  ;;  %s2783_s12 = smul.u32 72, %s3403_s11 }
  0x20   : > { %p2774_p2 = pnand %p2359_p1, %p3399_p4 }
  0x22   : > { %s3428_s10 = scalar_select %p2774_p2, 1, 0 }
  0x23   : > { %s2443_s15 = scalar_lea.hbm %s3429_s3, 2304  ;;  %p3408_p8 = pneg %p2774_p2 }
  0x24   : > { %p2444_p7 = scmp.ne.s32.totalorder %s3429_s3, %s2443_s15  ;;  %p2450_p1 = scmp.lt.u32.totalorder %s2443_s15, %s3429_s3 }
  0x26   : > { %p2446_p9 = pnand %p3408_p8, %p2444_p7 }
  0x28   : > { %p2447_p10 = pneg %p2446_p9 }
  0x2a   : > { %p2452_p0 = pnand %p2450_p1, %p2447_p10 }
  0x2c   : > { %2455 = shalt.err (!%p2452_p0)
}
  0x2d   : > { %s2456_s26 = scalar_lea.vmem %s189_s9, 2304  ;;  %p2464_p11 = scmp.lt.s32.totalorder %s189_s9, %s189_s9 }
  0x2e   : > { %p2457_p4 = scmp.ne.s32.totalorder %s189_s9, %s2456_s26  ;;  %p2465_p6 = scmp.lt.s32.totalorder %s2456_s26, %s2456_s26 }
  0x30   : > { %p2459_p3 = pnand %p2457_p4, %p3408_p8  ;;  %p2466_p13 = por %p2465_p6, %p2464_p11 }
  0x32   : > { %p2460_p12 = pneg %p2459_p3 }
  0x34   : > { %p2467_p5 = pnand %p2466_p13, %p2460_p12 }
  0x36   : > { %2470 = shalt.err (!%p2467_p5)
}
  0x37   : > { %s3404_s8 = smov 64   ;;  %s3406_s13 = smov 4  }
  0x38   : > { %2362 = dma.hbm_to_vmem [thread:$0]  (!%p2774_p2), %s3429_s3, 2304, %s189_s9, [#allocation11], %s3404_s8, %s3404_s8, %s3406_s13  }
  0x39   : > { %s2811_s16 = smul.u32 1152, %s2663_s21  ;;  %p3430_p4 = scmp.ne.s32.totalorder %s3423_s28, 0 }
  0x3a   : > { %p3431_p5 = scmp.lt.s32.totalorder %s2663_s21, 2  ;;  %s234_s23 = sand.u32 1, %s2663_s21  }
  0x3b   : > { %s3433_s1 = sld [smem:[#allocation21_spill]]  ;;  %s238_s9 = scalar_lea.vmem [#allocation7], %s2783_s12 }
  0x3c   : > { %p2817_p6 = pnand %p3431_p5, %p3430_p4  ;;  %s245_s14 = sshll.u32 %s238_s9, 4  ;;  %s2829_s14 = int_to_ptr.vmem [resolvable:$true] %s245_s14 }
  0x3d   : > { %s2831_s28 = scalar_lea.sflag [#allocation8], %s234_s23 }
  0x3e   : > { %s3432_s17 = scalar_select %p2817_p6, 1, 0 }
  0x3f   : > { %p2837_p12 = pneg %p2817_p6 }
  0x41   : > { %s2826_s11 = scalar_lea.hbm %s3433_s1, %s2811_s16  ;;  %s2476_s13 = scalar_lea.hbm %s3433_s1, 2304 }
  0x42   : > { %s2471_s15 = scalar_lea.hbm %s2826_s11, 1152  ;;  %p2477_p3 = scmp.lt.u32.totalorder %s2826_s11, %s3433_s1 }
  0x43   : > { %p2472_p11 = scmp.ne.s32.totalorder %s2826_s11, %s2471_s15  ;;  %p2478_p7 = scmp.lt.u32.totalorder %s2476_s13, %s2471_s15 }
  0x44   : > { %s3434_s8 = scalar_select %p2837_p12, 1, 0 }
  0x45   : > { %p2474_p13 = pnand %p2837_p12, %p2472_p11  ;;  %p2479_p9 = por %p2478_p7, %p2477_p3 }
  0x46   : > { %p2480_p10 = scmp.lt.u32.totalorder %s2471_s15, %s2826_s11 }
  0x47   : > { %p2475_p0 = pneg %p2474_p13 }
  0x48   : > { %p2481_p1 = por %p2480_p10, %p2479_p9 }
  0x4a   : > { %p2482_p4 = pnand %p2481_p1, %p2475_p0 }
  0x4c   : > { %2485 = shalt.err (!%p2482_p4)
}
  0x4d   : > { %s2486_s23 = scalar_lea.vmem %s2829_s14, 1152  ;;  %s2668_s25 = smov [#allocation7]  }
  0x4e   : > { %p2487_p5 = scmp.ne.s32.totalorder %s2829_s14, %s2486_s23  ;;  %s2491_s26 = sshll.u32 %s2668_s25, 4  ;;  %s2492_s26 = int_to_ptr.vmem [resolvable:$false] %s2491_s26 }
  0x4f   : > { %s2493_s3 = scalar_lea.vmem %s2492_s26, 2304  ;;  %p2494_p8 = scmp.lt.s32.totalorder %s2829_s14, %s2492_s26 }
  0x50   : > { %p2489_p11 = pnand %p2487_p5, %p2837_p12  ;;  %p2495_p2 = scmp.lt.s32.totalorder %s2493_s3, %s2486_s23 }
  0x52   : > { %p2490_p13 = pneg %p2489_p11  ;;  %p2496_p3 = por %p2495_p2, %p2494_p8 }
  0x54   : > { %p2497_p7 = pnand %p2496_p3, %p2490_p13 }
  0x56   : > { %2500 = shalt.err (!%p2497_p7)
}
  0x57   : > { %s3435_s13 = smov 4   ;;  %s3436_s15 = smov 64  }
  0x58   : > { %2372 = dma.hbm_to_vmem [thread:$0]  (!%p2817_p6), %s2826_s11, 1152, %s2829_s14, %s2831_s28, %s3436_s15, %s3436_s15, %s3435_s13  }
  0x59   : > { %s2669_s9 = smov [#allocation12]   ;;  %s2501_s23 = scalar_lea.hbm %s3397_s4, 16 }
  0x5a   : > { %s202_s1 = sshll.u32 %s2669_s9, 4  ;;  %p2502_p2 = scmp.ne.s32.totalorder %s3397_s4, %s2501_s23  ;;  %s203_s1 = int_to_ptr.vmem [resolvable:$true] %s202_s1 }
  0x5b   : > { %p3437_p8 = scmp.ne.s32.totalorder %s3428_s10, 0  ;;  %p2508_p1 = scmp.lt.u32.totalorder %s2501_s23, %s3397_s4 }
  0x5d   : > { %p3438_p0 = pneg %p3437_p8 }
  0x5f   : > { %p2504_p9 = pnand %p2502_p2, %p3438_p0 }
  0x61   : > { %p2505_p10 = pneg %p2504_p9 }
  0x63   : > { %p2510_p4 = pnand %p2508_p1, %p2505_p10 }
  0x65   : > { %2513 = shalt.err (!%p2510_p4)
}
  0x66   : > { %s2514_s11 = scalar_lea.vmem %s203_s1, 16  ;;  %p3439_p11 = pmov %p3438_p0 }
  0x67   : > { %p2515_p5 = scmp.ne.s32.totalorder %s203_s1, %s2514_s11  ;;  %s2521_s27 = scalar_lea.vmem %s203_s1, 32 }
  0x68   : > { %p2522_p7 = scmp.lt.s32.totalorder %s203_s1, %s203_s1  ;;  %p2523_p6 = scmp.lt.s32.totalorder %s2521_s27, %s2514_s11 }
  0x69   : > { %p2517_p13 = pnand %p2515_p5, %p3439_p11 }
  0x6a   : > { %p2524_p12 = por %p2523_p6, %p2522_p7 }
  0x6b   : > { %p2518_p3 = pneg %p2517_p13 }
  0x6d   : > { %p2525_p0 = pnand %p2524_p12, %p2518_p3 }
  0x6f   : > { %2528 = shalt.err (!%p2525_p0)
}
  0x70   : > { %2365 = dma.hbm_to_vmem [thread:$0]  (!%p3437_p8), %s3397_s4, 16, %s203_s1, [#allocation11]  }
  0x71   : > { %s2888_s25 = scalar_lea.hbm %s3393_s0, %s2811_s16  ;;  %s217_s23 = scalar_lea.vmem [#allocation4], %s2783_s12 }
  0x72   : > { %s224_s26 = sshll.u32 %s217_s23, 4  ;;  %s3440_s10 = sand.u32 1, %s2659_s20   ;;  %s2891_s26 = int_to_ptr.vmem [resolvable:$true] %s224_s26 }
  0x73   : > { %s2895_s3 = scalar_lea.sflag [#allocation5], %s3440_s10  ;;  %s2529_s11 = scalar_lea.hbm %s2888_s25, 1152 }
  0x74   : > { %p2530_p6 = scmp.ne.s32.totalorder %s2888_s25, %s2529_s11  ;;  %p3441_p12 = scmp.ne.s32.totalorder %s3434_s8, 0 }
  0x75   : > { %s2534_s14 = scalar_lea.hbm %s3393_s0, 2304  ;;  %p2535_p9 = scmp.lt.u32.totalorder %s2888_s25, %s3393_s0 }
  0x76   : > { %p2532_p2 = pnand %p2530_p6, %p3441_p12  ;;  %p2536_p10 = scmp.lt.u32.totalorder %s2534_s14, %s2529_s11 }
  0x77   : > { %p2538_p4 = scmp.lt.u32.totalorder %s2529_s11, %s2888_s25 }
  0x78   : > { %p2533_p8 = pneg %p2532_p2  ;;  %p2537_p1 = por %p2536_p10, %p2535_p9 }
  0x7a   : > { %p2539_p5 = por %p2538_p4, %p2537_p1 }
  0x7c   : > { %p2540_p11 = pnand %p2539_p5, %p2533_p8 }
  0x7e   : > { %2543 = shalt.err (!%p2540_p11)
}
  0x7f   : > { %s2544_s9 = scalar_lea.vmem %s2891_s26, 1152  ;;  %s2670_s23 = smov [#allocation4]  }
  0x80   : > { %p2545_p13 = scmp.ne.s32.totalorder %s2891_s26, %s2544_s9  ;;  %s2549_s10 = sshll.u32 %s2670_s23, 4  ;;  %s2550_s10 = int_to_ptr.vmem [resolvable:$false] %s2549_s10 }
  0x81   : > { %s2551_s1 = scalar_lea.vmem %s2550_s10, 2304  ;;  %p2552_p0 = scmp.lt.s32.totalorder %s2891_s26, %s2550_s10 }
  0x82   : > { %p2547_p3 = pnand %p2545_p13, %p3441_p12  ;;  %p2553_p6 = scmp.lt.s32.totalorder %s2551_s1, %s2544_s9 }
  0x84   : > { %p2548_p7 = pneg %p2547_p3  ;;  %p2554_p2 = por %p2553_p6, %p2552_p0 }
  0x86   : > { %p2555_p9 = pnand %p2554_p2, %p2548_p7 }
  0x88   : > { %2558 = shalt.err (!%p2555_p9)
}
  0x89   : > { %p3442_p8 = scmp.ne.s32.totalorder %s3432_s17, 0  ;;  %s2926_s14 = scalar_lea.hbm %s3395_s2, %s2811_s16 }
  0x8a   : > { %s259_s21 = scalar_lea.vmem [#allocation9], %s2783_s12  ;;  %s2559_s9 = scalar_lea.hbm %s2926_s14, 1152 }
  0x8b   : > { %2369 = dma.hbm_to_vmem [thread:$0]  (!%p3442_p8), %s2888_s25, 1152, %s2891_s26, %s2895_s3, %s3436_s15, %s3436_s15, %s3435_s13  }
  0x8c   : > { %s266_s24 = sshll.u32 %s259_s21, 4  ;;  %p2560_p10 = scmp.ne.s32.totalorder %s2926_s14, %s2559_s9  ;;  %s2929_s24 = int_to_ptr.vmem [resolvable:$true] %s266_s24 }
  0x8d   : > { %s2564_s26 = scalar_lea.hbm %s3395_s2, 2304  ;;  %p2565_p5 = scmp.lt.u32.totalorder %s2926_s14, %s3395_s2 }
  0x8e   : > { %p2562_p1 = pnand %p2560_p10, %p3441_p12  ;;  %p2566_p11 = scmp.lt.u32.totalorder %s2564_s26, %s2559_s9 }
  0x8f   : > { %p2568_p3 = scmp.lt.u32.totalorder %s2559_s9, %s2926_s14 }
  0x90   : > { %p2563_p4 = pneg %p2562_p1  ;;  %p2567_p13 = por %p2566_p11, %p2565_p5 }
  0x92   : > { %p2569_p7 = por %p2568_p3, %p2567_p13 }
  0x94   : > { %p2570_p0 = pnand %p2569_p7, %p2563_p4 }
  0x96   : > { %2573 = shalt.err (!%p2570_p0)
}
  0x97   : > { %s2574_s12 = scalar_lea.vmem %s2929_s24, 1152  ;;  %s2671_s10 = smov [#allocation9]  }
  0x98   : > { %p2575_p6 = scmp.ne.s32.totalorder %s2929_s24, %s2574_s12  ;;  %s2579_s1 = sshll.u32 %s2671_s10, 4  ;;  %s2580_s1 = int_to_ptr.vmem [resolvable:$false] %s2579_s1 }
  0x99   : > { %s2581_s11 = scalar_lea.vmem %s2580_s1, 2304  ;;  %p2582_p10 = scmp.lt.s32.totalorder %s2929_s24, %s2580_s1 }
  0x9a   : > { %p2577_p2 = pnand %p2575_p6, %p3441_p12  ;;  %p2583_p1 = scmp.lt.s32.totalorder %s2581_s11, %s2574_s12 }
  0x9c   : > { %p2578_p9 = pneg %p2577_p2  ;;  %p2584_p5 = por %p2583_p1, %p2582_p10 }
  0x9e   : > { %p2585_p11 = pnand %p2584_p5, %p2578_p9 }
  0xa0   : > { %2588 = shalt.err (!%p2585_p11)
}
  0xa1   : > { %2375 = dma.hbm_to_vmem [thread:$0]  (!%p3442_p8), %s2926_s14, 1152, %s2929_s24, %s2831_s28, %s3436_s15, %s3436_s15, %s3435_s13  }
  0xa2   : > { %p3443_p12 = scmp.ne.s32.totalorder %s3427_s7, 0 }
  0xa3   : > { %s2959_s8 = sand.u32 (!%p3443_p12), 1, %s2655_s19   ;;  %p3444_p4 = scmp.ne.s32.totalorder (!%p3443_p12), %s3424_s29, 0 }
  0xa4   : > { %278 = sbr.rel (%p3443_p12) target bundleno = 533 (0x215), region = 40  ;;  %s281_s21 = scalar_lea.sflag (!%p3443_p12), [#allocation5], %s2959_s8 }
  0xa5   : > { %s2342_s27 = smul.u32 (!%p3443_p12), 72, %s2959_s8 }
  0xa7   : > { %s2963_s9 = scalar_lea.vmem (!%p3443_p12), [#allocation4], %s2342_s27 }
  0xab   : > { %2634 = dma.done.wait (%p3444_p4), %s281_s21, 1152  }
  0xac   : > { %2636 = vsyncadd (%p3444_p4), %s281_s21, 4294966144  ;;  %s289_s17 = sand.u32 1, %s2727_s22   ;;  %s2970_s28 = scalar_lea.vmem [#allocation7], %s2342_s27 }
  0xad   : > { %s290_s7 = scalar_lea.sflag [#allocation8], %s289_s17 }
  0xae   : > { %2638 = dma.done.wait (%p3444_p4), %s290_s7, 2304  }
  0xaf   : > { %2640 = vsyncadd (%p3444_p4), %s290_s7, 4294964992  ;;  %s2976_s13 = scalar_lea.vmem [#allocation9], %s2342_s27  ;;  %p3445_p8 = scmp.eq.s32.totalorder %s2727_s22, 0 }
  0xb1   : > { %2642 = dma.done.wait (%p3445_p8), [#allocation11], 2320   ;;  %p3446_p13 = pmov %p3445_p8 }
  0xb2   : > { %vm348_vm0 = vcmask 261120   ;;  %vm357_vm1 = vcmask 523264   ;;  %v2672_v0 = vmov 0.0   ;;  %v2425_v1 = vld [vmem:[#allocation10] sm:$0xff]   ;;  %v2426_v2 = vld [vmem:[#allocation10 + $0x8] sm:$0xff]   ;;  %v2999_v3 = vld [vmem:[%s2963_s9] sm:$0xff]  }
  0xb3   : > { %2644 = vsyncadd (%p3446_p13), [#allocation11], 4294964976  ;;  %349 = vst.msk [vmem:[#allocation2] sm:$0xff] %vm348_vm0, %v2672_v0  ;;  %2332 = vmatprep.subr.bf16.mxu1 %v2425_v1  ;;  %2224 = vmatprep.subr.bf16.mxu0 %v2425_v1  ;;  %v3002_v4 = vld [vmem:[%s2963_s9 + $0x8] sm:$0xff]   ;;  %v367_v5 = vunpack.c.l.bf16 %v2999_v3  ;;  %v3007_v7 = vld [vmem:[%s2963_s9 + $0x20] sm:$0xff]   ;;  %s2023_s29 = sshll.u32 %s2959_s8, 5 }
  0xb4   : > { %350 = vst.msk [vmem:[#allocation2 + $0x8] sm:$0xff] %vm348_vm0, %v2672_v0  ;;  %351 = vst.msk [vmem:[#allocation2 + $0x10] sm:$0xff] %vm348_vm0, %v2672_v0  ;;  %2334 = vmatpush3.bf16.msra.mxu1 %v2425_v1  ;;  %2225 = vmatpush3.bf16.msra.mxu0 %v2425_v1  ;;  %v371_v6 = vunpack.c.l.bf16 %v3002_v4  ;;  %v3010_v8 = vld [vmem:[%s2963_s9 + $0x28] sm:$0xff]   ;;  %v3013_v9 = vld [vmem:[%s2970_s28] sm:$0xff]   ;;  %v383_v10 = vunpack.c.l.bf16 %v3007_v7  ;;  %vm1854_vm2 = vcmask 519168   ;;  %s346_s15 = scalar_lea.vmem [#allocation13], %s2023_s29 }
  0xb5   : > { %352 = vst.msk [vmem:[#allocation2 + $0x18] sm:$0xff] %vm348_vm0, %v2672_v0  ;;  %353 = vst.msk [vmem:[#allocation2 + $0x20] sm:$0xff] %vm348_vm0, %v2672_v0  ;;  %2333 = vmatprep.subr.bf16.mxu1 %v2426_v2  ;;  %2226 = vmatprep.subr.bf16.mxu0 %v2426_v2  ;;  %v387_v11 = vunpack.c.l.bf16 %v3010_v8  ;;  %v3019_v12 = vld [vmem:[#allocation10 + $0x10] sm:$0xff]   ;;  %v3022_v13 = vld [vmem:[%s2963_s9 + $0x10] sm:$0xff]   ;;  %v527_v24 = vunpack.c.l.bf16 %v3013_v9  ;;  %s2169_s14 = sshll.u32 %s2727_s22, 9  ;;  %s1877_s24 = sshll.u32 %s346_s15, 4  ;;  %s3346_s24 = int_to_ptr.vmem [resolvable:$true] %s1877_s24 }
  0xb6   : > { %354 = vst.msk [vmem:[#allocation2 + $0x28] sm:$0xff] %vm348_vm0, %v2672_v0  ;;  %355 = vst.msk [vmem:[#allocation2 + $0x30] sm:$0xff] %vm348_vm0, %v2672_v0  ;;  %v3025_v14 = vld [vmem:[%s2970_s28 + $0x8] sm:$0xff]   ;;  %v3030_v15 = vld [vmem:[%s2970_s28 + $0x20] sm:$0xff]   ;;  %v375_v16 = vunpack.c.l.bf16 %v3022_v13  ;;  %s3344_s26 = scalar_lea.hbm %s3398_s5, %s2169_s14  ;;  %s1864_s22 = scalar_lea.sflag [#allocation6], %s2959_s8 }
  0xb7   : > { %356 = vst.msk [vmem:[#allocation2 + $0x38] sm:$0xff] %vm348_vm0, %v2672_v0  ;;  %368 = vst.msk [vmem:[#allocation2] sm:$0xff] %vm348_vm0, %v367_v5  ;;  %v3034_v17 = vld [vmem:[%s2963_s9 + $0x18] sm:$0xff]   ;;  %v3041_v20 = vld [vmem:[%s2963_s9 + $0x30] sm:$0xff]   ;;  %v531_v25 = vunpack.c.l.bf16 %v3025_v14  ;;  %v543_v28 = vunpack.c.l.bf16 %v3030_v15  ;;  %s2589_s3 = scalar_lea.vmem %s3346_s24, 512  ;;  %p3447_p7 = scmp.ne.s32.totalorder %s3425_s30, 0 }
  0xb8   : > { %360 = vst.msk [vmem:[#allocation3 + $0x10] sm:$0xff] %vm357_vm1, %v2672_v0  ;;  %358 = vst.msk [vmem:[#allocation3] sm:$0xff] %vm357_vm1, %v2672_v0  ;;  %2335 = vmatpush3.bf16.msra.mxu1 %v2426_v2  ;;  %2227 = vmatpush3.bf16.msra.mxu0 %v2426_v2  ;;  %v3037_v18 = vld [vmem:[%s2970_s28 + $0x28] sm:$0xff]   ;;  %v379_v19 = vunpack.c.l.bf16 %v3034_v17  ;;  %v391_v22 = vunpack.c.l.bf16 %v3041_v20  ;;  %v3054_v26 = vld [vmem:[%s2970_s28 + $0x10] sm:$0xff]   ;;  %p2590_p3 = scmp.ne.s32.totalorder %s3346_s24, %s2589_s3  ;;  %s2673_s16 = smov [#allocation13]  }
  0xb9   : > { %359 = vst.msk [vmem:[#allocation3 + $0x8] sm:$0xff] %vm357_vm1, %v2672_v0  ;;  %361 = vst.msk [vmem:[#allocation3 + $0x18] sm:$0xff] %vm357_vm1, %v2672_v0  ;;  %v3044_v21 = vld [vmem:[%s2963_s9 + $0x38] sm:$0xff]   ;;  %2236 = vmatprep.subr.bf16.mxu1 %v3019_v12  ;;  %v3057_v27 = vld [vmem:[%s2970_s28 + $0x18] sm:$0xff]   ;;  %v547_v29 = vunpack.c.l.bf16 %v3037_v18  ;;  %v535_v35 = vunpack.c.l.bf16 %v3054_v26  ;;  %s2593_s12 = sshll.u32 %s2673_s16, 4  ;;  %s2594_s12 = int_to_ptr.vmem [resolvable:$false] %s2593_s12 }
  0xba   : > { %362 = vst.msk [vmem:[#allocation3 + $0x20] sm:$0xff] %vm357_vm1, %v2672_v0  ;;  %363 = vst.msk [vmem:[#allocation3 + $0x28] sm:$0xff] %vm357_vm1, %v2672_v0  ;;  %v395_v23 = vunpack.c.l.bf16 %v3044_v21  ;;  %v3064_v30 = vld [vmem:[%s2970_s28 + $0x30] sm:$0xff]   ;;  %v3067_v31 = vld [vmem:[%s2970_s28 + $0x38] sm:$0xff]   ;;  %v539_v39 = vunpack.c.l.bf16 %v3057_v27  ;;  %p2591_p0 = pnand %p2590_p3, %p3447_p7  ;;  %s2595_s10 = scalar_lea.vmem %s2594_s12, 1024 }
  0xbb   : > { %364 = vst.msk [vmem:[#allocation3 + $0x30] sm:$0xff] %vm357_vm1, %v2672_v0  ;;  %365 = vst.msk [vmem:[#allocation3 + $0x38] sm:$0xff] %vm357_vm1, %v2672_v0  ;;  %v2429_v32 = vld [vmem:[#allocation10 + $0x20] sm:$0xff]   ;;  %v3074_v40 = vld [vmem:[%s2976_s13] sm:$0xff]   ;;  %v551_v42 = vunpack.c.l.bf16 %v3064_v30  ;;  %v555_v43 = vunpack.c.l.bf16 %v3067_v31  ;;  %p2596_p2 = scmp.lt.s32.totalorder %s3346_s24, %s2594_s12  ;;  %p2597_p9 = scmp.lt.s32.totalorder %s2595_s10, %s2589_s3 }
  0xbc   : > { %372 = vst.msk [vmem:[#allocation2 + $0x8] sm:$0xff] %vm348_vm0, %v371_v6  ;;  %384 = vst.msk [vmem:[#allocation2 + $0x20] sm:$0xff] %vm348_vm0, %v383_v10  ;;  %2248 = vmatprep.subr.bf16.mxu0 %v2429_v32  ;;  %v3081_v44 = vld [vmem:[%s2976_s13 + $0x8] sm:$0xff]   ;;  %v3085_v46 = vld [vmem:[%s2976_s13 + $0x10] sm:$0xff]   ;;  %v687_v56 = vunpack.c.l.bf16 %v3074_v40  ;;  %p2592_p6 = pneg %p2591_p0 }
  0xbd   : > { %388 = vst.msk [vmem:[#allocation2 + $0x28] sm:$0xff] %vm348_vm0, %v387_v11  ;;  %376 = vst.msk [vmem:[#allocation2 + $0x10] sm:$0xff] %vm348_vm0, %v375_v16  ;;  %v3088_v47 = vld [vmem:[%s2976_s13 + $0x20] sm:$0xff]   ;;  %v3091_v48 = vld [vmem:[%s2976_s13 + $0x28] sm:$0xff]   ;;  %v691_v57 = vunpack.c.l.bf16 %v3081_v44  ;;  %v695_v1 = vunpack.c.l.bf16 %v3085_v46  ;;  %p2598_p10 = por %p2597_p9, %p2596_p2 }
  0xbe   : > { %380 = vst.msk [vmem:[#allocation2 + $0x18] sm:$0xff] %vm348_vm0, %v379_v19  ;;  %392 = vst.msk [vmem:[#allocation2 + $0x30] sm:$0xff] %vm348_vm0, %v391_v22  ;;  %v405_v33 = vld [vmem:[#allocation2] sm:$0xff]  ;;  %v2428_v50 = vld [vmem:[#allocation10 + $0x18] sm:$0xff]   ;;  %v703_v59 = vunpack.c.l.bf16 %v3088_v47  ;;  %v707_v60 = vunpack.c.l.bf16 %v3091_v48 }
  0xbf   : > { %396 = vst.msk [vmem:[#allocation2 + $0x38] sm:$0xff] %vm348_vm0, %v395_v23  ;;  %528 = vst.msk [vmem:[#allocation2] sm:$0xff] %vm348_vm0, %v527_v24  ;;  %v3096_v51 = vld [vmem:[%s2976_s13 + $0x18] sm:$0xff]   ;;  %v3106_v61 = vld [vmem:[%s2976_s13 + $0x30] sm:$0xff]   ;;  %p2599_p1 = pnand %p2598_p10, %p2592_p6 }
  0xc0   : > { %v2431_v52 = vld [vmem:[#allocation10 + $0x28] sm:$0xff]   ;;  %v699_v5 = vunpack.c.l.bf16 %v3096_v51  ;;  %v3118_v11 = vld [vmem:[#allocation10 + $0x40] sm:$0xff]   ;;  %v2430_v16 = vld [vmem:[#allocation10 + $0x30] sm:$0xff]  }
  0xc1   : > { %v3110_v62 = vld [vmem:[%s2976_s13 + $0x38] sm:$0xff]  }
  0xc2   : > { %v715_v19 = vunpack.c.l.bf16 %v3110_v62 }
  0xc3   : > { %v406_v34 = vld [vmem:[#allocation2 + $0x8] sm:$0xff]  ;;  %v409_v37 = vld [vmem:[#allocation2 + $0x20] sm:$0xff] }
  0xc4   : > { %v413_v36 = vpack.c.bf16 %v406_v34, %v405_v33  ;;  %532 = vst.msk [vmem:[#allocation2 + $0x8] sm:$0xff] %vm348_vm0, %v531_v25  ;;  %v410_v38 = vld [vmem:[#allocation2 + $0x28] sm:$0xff]  ;;  %544 = vst.msk [vmem:[#allocation2 + $0x20] sm:$0xff] %vm348_vm0, %v543_v28  ;;  %v407_v45 = vld [vmem:[#allocation2 + $0x10] sm:$0xff]  ;;  %v848_v28 = vunpack.c.h.bf16 %v2999_v3 }
  0xc5   : > { %v415_v41 = vpack.c.bf16 %v410_v38, %v409_v37  ;;  %548 = vst.msk [vmem:[#allocation2 + $0x28] sm:$0xff] %vm348_vm0, %v547_v29  ;;  %v408_v49 = vld [vmem:[#allocation2 + $0x18] sm:$0xff]  ;;  %536 = vst.msk [vmem:[#allocation2 + $0x10] sm:$0xff] %vm348_vm0, %v535_v35  ;;  %v411_v54 = vld [vmem:[#allocation2 + $0x30] sm:$0xff]  ;;  %v852_v29 = vunpack.c.h.bf16 %v3002_v4  ;;  %v864_v35 = vunpack.c.h.bf16 %v3007_v7  ;;  %v856_v4 = vunpack.c.h.bf16 %v3022_v13 }
  0xc6   : > { %2228 = vmatprep.mubr.msk.bf16.mxu0 %vm348_vm0, %v413_v36  ;;  %v414_v53 = vpack.c.bf16 %v408_v49, %v407_v45  ;;  %540 = vst.msk [vmem:[#allocation2 + $0x18] sm:$0xff] %vm348_vm0, %v539_v39  ;;  %v412_v55 = vld [vmem:[#allocation2 + $0x38] sm:$0xff]  ;;  %552 = vst.msk [vmem:[#allocation2 + $0x30] sm:$0xff] %vm348_vm0, %v551_v42  ;;  %v565_v63 = vld [vmem:[#allocation2] sm:$0xff]  ;;  %v868_v36 = vunpack.c.h.bf16 %v3010_v8  ;;  %v860_v39 = vunpack.c.h.bf16 %v3034_v17  ;;  %v872_v8 = vunpack.c.h.bf16 %v3041_v20 }
  0xc7   : > { %2232 = vmatprep.mubr.msk.bf16.mxu1 %vm348_vm0, %v415_v41  ;;  %v416_v58 = vpack.c.bf16 %v412_v55, %v411_v54  ;;  %556 = vst.msk [vmem:[#allocation2 + $0x38] sm:$0xff] %vm348_vm0, %v555_v43  ;;  %688 = vst.msk [vmem:[#allocation2] sm:$0xff] %vm348_vm0, %v687_v56  ;;  %v2432_v34 = vld [vmem:[#allocation10 + $0x38] sm:$0xff]   ;;  %v876_v13 = vunpack.c.h.bf16 %v3044_v21  ;;  %v3144_v42 = vld [vmem:[#allocation10 + $0x50] sm:$0xff]   ;;  %v1009_v20 = vunpack.c.h.bf16 %v3013_v9  ;;  %v1013_v21 = vunpack.c.h.bf16 %v3025_v14 }
  0xc8   : > { %2229 = vmatmul.mubr.msk.bf16.vlgmr.msra.gmra.mrb[0].mxu0 %vm348_vm0, %v414_v53  ;;  %v2434_v54 = vld [vmem:[#allocation10 + $0x48] sm:$0xff]   ;;  %v1025_v55 = vunpack.c.h.bf16 %v3030_v15  ;;  %v1029_v56 = vunpack.c.h.bf16 %v3037_v18  ;;  %v1017_v14 = vunpack.c.h.bf16 %v3054_v26  ;;  %v1021_v15 = vunpack.c.h.bf16 %v3057_v27 }
  0xc9   : > { %2233 = vmatmul.mubr.msk.bf16.vlgmr.msra.gmra.mrb[0].mxu1 %vm348_vm0, %v416_v58  ;;  %2249 = vmatpush3.bf16.msra.mxu0 %v2429_v32  ;;  %v3160_v58 = vld [vmem:[#allocation10 + $0x60] sm:$0xff]   ;;  %v1033_v26 = vunpack.c.h.bf16 %v3064_v30  ;;  %v1174_v30 = vunpack.c.h.bf16 %v3081_v44  ;;  %v1178_v44 = vunpack.c.h.bf16 %v3085_v46  ;;  %v1194_v46 = vunpack.c.h.bf16 %v3106_v61 }
  0xca   : > { %2237 = vmatpush3.bf16.msra.mxu1 %v3019_v12  ;;  %2250 = vmatprep.subr.bf16.mxu0 %v2431_v52  ;;  %v711_v12 = vunpack.c.l.bf16 %v3106_v61 }
  0xcb   : > { %v566_v0 = vld [vmem:[#allocation2 + $0x8] sm:$0xff]  ;;  %v569_v6 = vld [vmem:[#allocation2 + $0x20] sm:$0xff]  ;;  %2238 = vmatprep.subr.bf16.mxu1 %v2428_v50 }
  0xcc   : > { %v573_v2 = vpack.c.bf16 %v566_v0, %v565_v63  ;;  %692 = vst.msk [vmem:[#allocation2 + $0x8] sm:$0xff] %vm348_vm0, %v691_v57  ;;  %v570_v10 = vld [vmem:[#allocation2 + $0x28] sm:$0xff]  ;;  %704 = vst.msk [vmem:[#allocation2 + $0x20] sm:$0xff] %vm348_vm0, %v703_v59  ;;  %v567_v22 = vld [vmem:[#allocation2 + $0x10] sm:$0xff]  ;;  %v1037_v63 = vunpack.c.h.bf16 %v3067_v31 }
  0xcd   : > { %708 = vst.msk [vmem:[#allocation2 + $0x28] sm:$0xff] %vm348_vm0, %v707_v60  ;;  %v568_v23 = vld [vmem:[#allocation2 + $0x18] sm:$0xff]  ;;  %696 = vst.msk [vmem:[#allocation2 + $0x10] sm:$0xff] %vm348_vm0, %v695_v1  ;;  %2251 = vmatpush3.bf16.msra.mxu0 %v2431_v52  ;;  %v575_v25 = vpack.c.bf16 %v570_v10, %v569_v6  ;;  %v571_v32 = vld [vmem:[#allocation2 + $0x30] sm:$0xff] }
  0xce   : > { %2240 = vmatprep.mubr.msk.bf16.mxu1 %vm348_vm0, %v573_v2  ;;  %2239 = vmatpush3.bf16.msra.mxu1 %v2428_v50  ;;  %v574_v24 = vpack.c.bf16 %v568_v23, %v567_v22  ;;  %700 = vst.msk [vmem:[#allocation2 + $0x18] sm:$0xff] %vm348_vm0, %v699_v5  ;;  %v572_v33 = vld [vmem:[#allocation2 + $0x38] sm:$0xff]  ;;  %712 = vst.msk [vmem:[#allocation2 + $0x30] sm:$0xff] %vm348_vm0, %v711_v12  ;;  %v725_v37 = vld [vmem:[#allocation2] sm:$0xff]  ;;  %v1190_v12 = vunpack.c.h.bf16 %v3091_v48 }
  0xcf   : > { %2272 = vmatprep.subr.bf16.mxu0 %v3118_v11  ;;  %2260 = vmatprep.subr.bf16.mxu1 %v2430_v16  ;;  %716 = vst.msk [vmem:[#allocation2 + $0x38] sm:$0xff] %vm348_vm0, %v715_v19  ;;  %849 = vst.msk [vmem:[#allocation2] sm:$0xff] %vm348_vm0, %v848_v28  ;;  %v576_v45 = vpack.c.bf16 %v572_v33, %v571_v32  ;;  %v2436_v31 = vld [vmem:[#allocation10 + $0x58] sm:$0xff]   ;;  %v3193_v28 = vld [vmem:[#allocation10 + $0x70] sm:$0xff]  }
  0xd0   : > { %v2109_v32 = vld [vmem:[%s2963_s9 + $0x28] ss:$8 sps:$4 sm:$0xff]  }
  0xd1   : > { %2241 = vmatmul.mubr.msk.bf16.vlgmr.msra.gmra.mrb[4].mxu1 %vm348_vm0, %v574_v24  ;;  %v1198_v24 = vunpack.c.h.bf16 %v3110_v62 }
  0xd2   : > { %2261 = vmatpush3.bf16.msra.mxu1 %v2430_v16  ;;  %2244 = vmatprep.mubr.msk.bf16.mxu1 %vm348_vm0, %v575_v25  ;;  %v1186_v16 = vunpack.c.h.bf16 %v3088_v47  ;;  %v1182_v47 = vunpack.c.h.bf16 %v3096_v51  ;;  %v2105_v25 = vld [vmem:[%s2963_s9 + $0x8] ss:$8 sps:$4 sm:$0xff]  }
  0xd3   : > { %v726_v3 = vld [vmem:[#allocation2 + $0x8] sm:$0xff]  ;;  %v729_v41 = vld [vmem:[#allocation2 + $0x20] sm:$0xff]  ;;  %2262 = vmatprep.subr.bf16.mxu1 %v2432_v34 }
  0xd4   : > { %v733_v38 = vpack.c.bf16 %v726_v3, %v725_v37  ;;  %853 = vst.msk [vmem:[#allocation2 + $0x8] sm:$0xff] %vm348_vm0, %v852_v29  ;;  %v730_v7 = vld [vmem:[#allocation2 + $0x28] sm:$0xff]  ;;  %865 = vst.msk [vmem:[#allocation2 + $0x20] sm:$0xff] %vm348_vm0, %v864_v35  ;;  %v727_v43 = vld [vmem:[#allocation2 + $0x10] sm:$0xff]  ;;  %v1333_v37 = vunpack.c.h.bf16 %v2105_v25 }
  0xd5   : > { %869 = vst.msk [vmem:[#allocation2 + $0x28] sm:$0xff] %vm348_vm0, %v868_v36  ;;  %v728_v49 = vld [vmem:[#allocation2 + $0x18] sm:$0xff]  ;;  %857 = vst.msk [vmem:[#allocation2 + $0x10] sm:$0xff] %vm348_vm0, %v856_v4  ;;  %v735_v50 = vpack.c.bf16 %v730_v7, %v729_v41  ;;  %v731_v52 = vld [vmem:[#allocation2 + $0x30] sm:$0xff]  ;;  %v1330_v36 = vunpack.c.l.bf16 %v2105_v25 }
  0xd6   : > { %2252 = vmatprep.mubr.msk.bf16.mxu0 %vm348_vm0, %v733_v38  ;;  %v734_v17 = vpack.c.bf16 %v728_v49, %v727_v43  ;;  %861 = vst.msk [vmem:[#allocation2 + $0x18] sm:$0xff] %vm348_vm0, %v860_v39  ;;  %2263 = vmatpush3.bf16.msra.mxu1 %v2432_v34  ;;  %v732_v53 = vld [vmem:[#allocation2 + $0x38] sm:$0xff]  ;;  %873 = vst.msk [vmem:[#allocation2 + $0x30] sm:$0xff] %vm348_vm0, %v872_v8  ;;  %v886_v9 = vld [vmem:[#allocation2] sm:$0xff]  ;;  %v1342_v38 = vunpack.c.l.bf16 %v2109_v32  ;;  %v1345_v39 = vunpack.c.h.bf16 %v2109_v32 }
  0xd7   : > { %877 = vst.msk [vmem:[#allocation2 + $0x38] sm:$0xff] %vm348_vm0, %v876_v13  ;;  %2284 = vmatprep.subr.bf16.mxu1 %v3144_v42  ;;  %1010 = vst.msk [vmem:[#allocation2] sm:$0xff] %vm348_vm0, %v1009_v20  ;;  %v736_v0 = vpack.c.bf16 %v732_v53, %v731_v52  ;;  %v2107_v3 = vld [vmem:[%s2963_s9 + $0x18] ss:$8 sps:$4 sm:$0xff]   ;;  %v3213_v53 = vld [vmem:[#allocation10 + $0x80] sm:$0xff]  }
  0xd8   : > { %2253 = vmatmul.mubr.msk.bf16.vlgmr.msra.gmra.mrb[4].mxu0 %vm348_vm0, %v734_v17  ;;  %v2438_v4 = vld [vmem:[#allocation10 + $0x68] sm:$0xff]   ;;  %v1336_v13 = vunpack.c.l.bf16 %v2107_v3  ;;  %v1339_v43 = vunpack.c.h.bf16 %v2107_v3 }
  0xd9   : > { %2245 = vmatmul.mubr.msk.bf16.gmra.mrb[8].mxu1 %vm348_vm0, %v576_v45  ;;  %2273 = vmatpush3.bf16.msra.mxu0 %v3118_v11  ;;  %v1170_v11 = vunpack.c.h.bf16 %v3074_v40  ;;  %v2111_v41 = vld [vmem:[%s2963_s9 + $0x38] ss:$8 sps:$4 sm:$0xff]  }
  0xda   : > { %2256 = vmatprep.mubr.msk.bf16.mxu0 %vm348_vm0, %v735_v50  ;;  %2274 = vmatprep.subr.bf16.mxu0 %v2434_v54  ;;  %v1348_v17 = vunpack.c.l.bf16 %v2111_v41  ;;  %v1352_v50 = vunpack.c.h.bf16 %v2111_v41  ;;  %v2119_v52 = vld [vmem:[%s2970_s28 + $0x8] ss:$8 sps:$4 sm:$0xff]  }
  0xdb   : > { %v887_v57 = vld [vmem:[#allocation2 + $0x8] sm:$0xff]  ;;  %v890_v18 = vld [vmem:[#allocation2 + $0x20] sm:$0xff]  ;;  %v2442_v25 = vld [vmem:[#allocation10 + $0x88] sm:$0xff]  }
  0xdc   : > { %v894_v59 = vpack.c.bf16 %v887_v57, %v886_v9  ;;  %1014 = vst.msk [vmem:[#allocation2 + $0x8] sm:$0xff] %vm348_vm0, %v1013_v21  ;;  %v891_v60 = vld [vmem:[#allocation2 + $0x28] sm:$0xff]  ;;  %1026 = vst.msk [vmem:[#allocation2 + $0x20] sm:$0xff] %vm348_vm0, %v1025_v55  ;;  %v888_v1 = vld [vmem:[#allocation2 + $0x10] sm:$0xff] }
  0xdd   : > { %1030 = vst.msk [vmem:[#allocation2 + $0x28] sm:$0xff] %vm348_vm0, %v1029_v56  ;;  %v889_v2 = vld [vmem:[#allocation2 + $0x18] sm:$0xff]  ;;  %1018 = vst.msk [vmem:[#allocation2 + $0x10] sm:$0xff] %vm348_vm0, %v1017_v14  ;;  %2275 = vmatpush3.bf16.msra.mxu0 %v2434_v54  ;;  %v896_v5 = vpack.c.bf16 %v891_v60, %v890_v18  ;;  %v892_v6 = vld [vmem:[#allocation2 + $0x30] sm:$0xff] }
  0xde   : > { %2264 = vmatprep.mubr.msk.bf16.mxu1 %vm348_vm0, %v894_v59  ;;  %v895_v27 = vpack.c.bf16 %v889_v2, %v888_v1  ;;  %1022 = vst.msk [vmem:[#allocation2 + $0x18] sm:$0xff] %vm348_vm0, %v1021_v15  ;;  %v893_v10 = vld [vmem:[#allocation2 + $0x38] sm:$0xff]  ;;  %2296 = vmatprep.subr.bf16.mxu0 %v3160_v58  ;;  %1034 = vst.msk [vmem:[#allocation2 + $0x30] sm:$0xff] %vm348_vm0, %v1033_v26  ;;  %v1047_v19 = vld [vmem:[#allocation2] sm:$0xff]  ;;  %v1487_v59 = vunpack.c.h.bf16 %v2119_v52 }
  0xdf   : > { %1038 = vst.msk [vmem:[#allocation2 + $0x38] sm:$0xff] %vm348_vm0, %v1037_v63  ;;  %1171 = vst.msk [vmem:[#allocation2] sm:$0xff] %vm348_vm0, %v1170_v11  ;;  %v897_v51 = vpack.c.bf16 %v893_v10, %v892_v6  ;;  %v2123_v54 = vld [vmem:[%s2970_s28 + $0x28] ss:$8 sps:$4 sm:$0xff]   ;;  %v2121_v15 = vld [vmem:[%s2970_s28 + $0x18] ss:$8 sps:$4 sm:$0xff]  }
  0xe0   : > { %2257 = vmatmul.mubr.msk.bf16.gmra.mrb[8].mxu0 %vm348_vm0, %v736_v0  ;;  %v2440_v18 = vld [vmem:[#allocation10 + $0x78] sm:$0xff]   ;;  %v1496_v60 = vunpack.c.l.bf16 %v2123_v54  ;;  %v1499_v26 = vunpack.c.h.bf16 %v2123_v54  ;;  %v1490_v2 = vunpack.c.l.bf16 %v2121_v15 }
  0xe1   : > { %2265 = vmatmul.mubr.msk.bf16.vlgmr.msra.gmra.mrb[12].mxu1 %vm348_vm0, %v895_v27  ;;  %v2125_v63 = vld [vmem:[%s2970_s28 + $0x38] ss:$8 sps:$4 sm:$0xff]   ;;  %v2139_v32 = vld [vmem:[%s2976_s13 + $0x38] ss:$8 sps:$4 sm:$0xff]  }
  0xe2   : > { %2268 = vmatprep.mubr.msk.bf16.mxu1 %vm348_vm0, %v896_v5  ;;  %2285 = vmatpush3.bf16.msra.mxu1 %v3144_v42  ;;  %v1493_v5 = vunpack.c.h.bf16 %v2121_v15  ;;  %v1502_v11 = vunpack.c.l.bf16 %v2125_v63  ;;  %v1660_v3 = vunpack.c.h.bf16 %v2139_v32  ;;  %v400_v15 = vld [vmem:[#allocation3 + $0x18] sm:$0xff] }
  0xe3   : > { %v1048_v40 = vld [vmem:[#allocation2 + $0x8] sm:$0xff]  ;;  %v1051_v48 = vld [vmem:[#allocation2 + $0x20] sm:$0xff]  ;;  %2286 = vmatprep.subr.bf16.mxu1 %v2436_v31 }
  0xe4   : > { %v1055_v22 = vpack.c.bf16 %v1048_v40, %v1047_v19  ;;  %1175 = vst.msk [vmem:[#allocation2 + $0x8] sm:$0xff] %vm348_vm0, %v1174_v30  ;;  %v1052_v23 = vld [vmem:[#allocation2 + $0x28] sm:$0xff]  ;;  %1187 = vst.msk [vmem:[#allocation2 + $0x20] sm:$0xff] %vm348_vm0, %v1186_v16  ;;  %v1049_v29 = vld [vmem:[#allocation2 + $0x10] sm:$0xff]  ;;  %v1506_v30 = vunpack.c.h.bf16 %v2125_v63 }
  0xe5   : > { %1191 = vst.msk [vmem:[#allocation2 + $0x28] sm:$0xff] %vm348_vm0, %v1190_v12  ;;  %v1050_v33 = vld [vmem:[#allocation2 + $0x18] sm:$0xff]  ;;  %1179 = vst.msk [vmem:[#allocation2 + $0x10] sm:$0xff] %vm348_vm0, %v1178_v44  ;;  %v1057_v34 = vpack.c.bf16 %v1052_v23, %v1051_v48  ;;  %v1053_v61 = vld [vmem:[#allocation2 + $0x30] sm:$0xff] }
  0xe6   : > { %2276 = vmatprep.mubr.msk.bf16.mxu0 %vm348_vm0, %v1055_v22  ;;  %v1056_v35 = vpack.c.bf16 %v1050_v33, %v1049_v29  ;;  %1183 = vst.msk [vmem:[#allocation2 + $0x18] sm:$0xff] %vm348_vm0, %v1182_v47  ;;  %2287 = vmatpush3.bf16.msra.mxu1 %v2436_v31  ;;  %v1054_v62 = vld [vmem:[#allocation2 + $0x38] sm:$0xff]  ;;  %1195 = vst.msk [vmem:[#allocation2 + $0x30] sm:$0xff] %vm348_vm0, %v1194_v46  ;;  %v1208_v7 = vld [vmem:[#allocation2] sm:$0xff] }
  0xe7   : > { %1199 = vst.msk [vmem:[#allocation2 + $0x38] sm:$0xff] %vm348_vm0, %v1198_v24  ;;  %2308 = vmatprep.subr.bf16.mxu1 %v3193_v28  ;;  %1331 = vst.msk [vmem:[#allocation2] sm:$0xff] %vm348_vm0, %v1330_v36  ;;  %v1058_v20 = vpack.c.bf16 %v1054_v62, %v1053_v61  ;;  %v2133_v31 = vld [vmem:[%s2976_s13 + $0x8] ss:$8 sps:$4 sm:$0xff]   ;;  %v2135_v24 = vld [vmem:[%s2976_s13 + $0x18] ss:$8 sps:$4 sm:$0xff]  }
  0xe8   : > { %2277 = vmatmul.mubr.msk.bf16.vlgmr.msra.gmra.mrb[12].mxu0 %vm348_vm0, %v1056_v35  ;;  %v2137_v12 = vld [vmem:[%s2976_s13 + $0x28] ss:$8 sps:$4 sm:$0xff]   ;;  %v1638_v23 = vunpack.c.l.bf16 %v2133_v31  ;;  %v1641_v46 = vunpack.c.h.bf16 %v2133_v31  ;;  %v1647_v61 = vunpack.c.h.bf16 %v2135_v24 }
  0xe9   : > { %2269 = vmatmul.mubr.msk.bf16.gmra.mrb[16].mxu1 %vm348_vm0, %v897_v51  ;;  %2280 = vmatprep.mubr.msk.bf16.mxu0 %vm348_vm0, %v1057_v34  ;;  %v1653_v29 = vunpack.c.h.bf16 %v2137_v12  ;;  %v1644_v34 = vunpack.c.l.bf16 %v2135_v24  ;;  %v404_v63 = vld [vmem:[#allocation3 + $0x38] sm:$0xff] }
  0xea   : > { %2297 = vmatpush3.bf16.msra.mxu0 %v3160_v58  ;;  %v1484_v58 = vunpack.c.l.bf16 %v2119_v52 }
  0xeb   : > { %v1209_v8 = vld [vmem:[#allocation2 + $0x8] sm:$0xff]  ;;  %v1212_v45 = vld [vmem:[#allocation2 + $0x20] sm:$0xff]  ;;  %2298 = vmatprep.subr.bf16.mxu0 %v2438_v4 }
  0xec   : > { %v1216_v42 = vpack.c.bf16 %v1209_v8, %v1208_v7  ;;  %1334 = vst.msk [vmem:[#allocation2 + $0x8] sm:$0xff] %vm348_vm0, %v1333_v37  ;;  %v1213_v49 = vld [vmem:[#allocation2 + $0x28] sm:$0xff]  ;;  %1343 = vst.msk [vmem:[#allocation2 + $0x20] sm:$0xff] %vm348_vm0, %v1342_v38  ;;  %v1210_v21 = vld [vmem:[#allocation2 + $0x10] sm:$0xff]  ;;  %v1656_v37 = vunpack.c.l.bf16 %v2139_v32 }
  0xed   : > { %1346 = vst.msk [vmem:[#allocation2 + $0x28] sm:$0xff] %vm348_vm0, %v1345_v39  ;;  %v1211_v55 = vld [vmem:[#allocation2 + $0x18] sm:$0xff]  ;;  %1337 = vst.msk [vmem:[#allocation2 + $0x10] sm:$0xff] %vm348_vm0, %v1336_v13  ;;  %v1218_v9 = vpack.c.bf16 %v1213_v49, %v1212_v45  ;;  %v1214_v57 = vld [vmem:[#allocation2 + $0x30] sm:$0xff] }
  0xee   : > { %2288 = vmatprep.mubr.msk.bf16.mxu1 %vm348_vm0, %v1216_v42  ;;  %v1217_v56 = vpack.c.bf16 %v1211_v55, %v1210_v21  ;;  %1340 = vst.msk [vmem:[#allocation2 + $0x18] sm:$0xff] %vm348_vm0, %v1339_v43  ;;  %2299 = vmatpush3.bf16.msra.mxu0 %v2438_v4  ;;  %v1215_v14 = vld [vmem:[#allocation2 + $0x38] sm:$0xff]  ;;  %1349 = vst.msk [vmem:[#allocation2 + $0x30] sm:$0xff] %vm348_vm0, %v1348_v17  ;;  %v1362_v0 = vld [vmem:[#allocation2] sm:$0xff] }
  0xef   : > { %1353 = vst.msk [vmem:[#allocation2 + $0x38] sm:$0xff] %vm348_vm0, %v1352_v50  ;;  %2320 = vmatprep.subr.bf16.mxu0 %v3213_v53  ;;  %1485 = vst.msk [vmem:[#allocation2] sm:$0xff] %vm348_vm0, %v1484_v58  ;;  %v1219_v19 = vpack.c.bf16 %v1215_v14, %v1214_v57  ;;  %v403_v57 = vld [vmem:[#allocation3 + $0x30] sm:$0xff]  ;;  %v397_v14 = vld [vmem:[#allocation3] sm:$0xff] }
  0xf0   : > { %2281 = vmatmul.mubr.msk.bf16.gmra.mrb[16].mxu0 %vm348_vm0, %v1058_v20 }
  0xf1   : > { %2289 = vmatmul.mubr.msk.bf16.vlgmr.msra.gmra.mrb[20].mxu1 %vm348_vm0, %v1217_v56 }
  0xf2   : > { %2292 = vmatprep.mubr.msk.bf16.mxu1 %vm348_vm0, %v1218_v9  ;;  %2309 = vmatpush3.bf16.msra.mxu1 %v3193_v28  ;;  %v1650_v28 = vunpack.c.l.bf16 %v2137_v12  ;;  %v399_v9 = vld [vmem:[#allocation3 + $0x10] sm:$0xff] }
  0xf3   : > { %v1363_v1 = vld [vmem:[#allocation2 + $0x8] sm:$0xff]  ;;  %v1366_v6 = vld [vmem:[#allocation2 + $0x20] sm:$0xff]  ;;  %2310 = vmatprep.subr.bf16.mxu1 %v2440_v18 }
  0xf4   : > { %v1370_v27 = vpack.c.bf16 %v1363_v1, %v1362_v0  ;;  %1488 = vst.msk [vmem:[#allocation2 + $0x8] sm:$0xff] %vm348_vm0, %v1487_v59  ;;  %v1367_v10 = vld [vmem:[#allocation2 + $0x28] sm:$0xff]  ;;  %1497 = vst.msk [vmem:[#allocation2 + $0x20] sm:$0xff] %vm348_vm0, %v1496_v60  ;;  %v1364_v16 = vld [vmem:[#allocation2 + $0x10] sm:$0xff] }
  0xf5   : > { %1500 = vst.msk [vmem:[#allocation2 + $0x28] sm:$0xff] %vm348_vm0, %v1499_v26  ;;  %v1365_v40 = vld [vmem:[#allocation2 + $0x18] sm:$0xff]  ;;  %1491 = vst.msk [vmem:[#allocation2 + $0x10] sm:$0xff] %vm348_vm0, %v1490_v2  ;;  %v1372_v44 = vpack.c.bf16 %v1367_v10, %v1366_v6  ;;  %v1368_v47 = vld [vmem:[#allocation2 + $0x30] sm:$0xff] }
  0xf6   : > { %2300 = vmatprep.mubr.msk.bf16.mxu0 %vm348_vm0, %v1370_v27  ;;  %v1371_v22 = vpack.c.bf16 %v1365_v40, %v1364_v16  ;;  %1494 = vst.msk [vmem:[#allocation2 + $0x18] sm:$0xff] %vm348_vm0, %v1493_v5  ;;  %2311 = vmatpush3.bf16.msra.mxu1 %v2440_v18  ;;  %v1369_v48 = vld [vmem:[#allocation2 + $0x38] sm:$0xff]  ;;  %1503 = vst.msk [vmem:[#allocation2 + $0x30] sm:$0xff] %vm348_vm0, %v1502_v11  ;;  %v1516_v51 = vld [vmem:[#allocation2] sm:$0xff] }
  0xf7   : > { %1507 = vst.msk [vmem:[#allocation2 + $0x38] sm:$0xff] %vm348_vm0, %v1506_v30  ;;  %1639 = vst.msk [vmem:[#allocation2] sm:$0xff] %vm348_vm0, %v1638_v23  ;;  %v1373_v4 = vpack.c.bf16 %v1369_v48, %v1368_v47  ;;  %v401_v59 = vld [vmem:[#allocation3 + $0x20] sm:$0xff]  ;;  %v398_v0 = vld [vmem:[#allocation3 + $0x8] sm:$0xff] }
  0xf8   : > { %2301 = vmatmul.mubr.msk.bf16.vlgmr.msra.gmra.mrb[20].mxu0 %vm348_vm0, %v1371_v22  ;;  %v402_v6 = vld [vmem:[#allocation3 + $0x28] sm:$0xff] }
  0xf9   : > { %2293 = vmatmul.mubr.msk.bf16.gmra.mrb[24].mxu1 %vm348_vm0, %v1219_v19  ;;  %2304 = vmatprep.mubr.msk.bf16.mxu0 %vm348_vm0, %v1372_v44 }
  0xfa   : > { %2321 = vmatpush3.bf16.msra.mxu0 %v3213_v53 }
  0xfb   : > { %v1517_v33 = vld [vmem:[#allocation2 + $0x8] sm:$0xff]  ;;  %v1520_v62 = vld [vmem:[#allocation2 + $0x20] sm:$0xff]  ;;  %2322 = vmatprep.subr.bf16.mxu0 %v2442_v25 }
  0xfc   : > { %v1524_v35 = vpack.c.bf16 %v1517_v33, %v1516_v51  ;;  %1642 = vst.msk [vmem:[#allocation2 + $0x8] sm:$0xff] %vm348_vm0, %v1641_v46  ;;  %v1521_v36 = vld [vmem:[#allocation2 + $0x28] sm:$0xff]  ;;  %1651 = vst.msk [vmem:[#allocation2 + $0x20] sm:$0xff] %vm348_vm0, %v1650_v28  ;;  %v1518_v38 = vld [vmem:[#allocation2 + $0x10] sm:$0xff] }
  0xfd   : > { %1654 = vst.msk [vmem:[#allocation2 + $0x28] sm:$0xff] %vm348_vm0, %v1653_v29  ;;  %v1519_v39 = vld [vmem:[#allocation2 + $0x18] sm:$0xff]  ;;  %1645 = vst.msk [vmem:[#allocation2 + $0x10] sm:$0xff] %vm348_vm0, %v1644_v34  ;;  %v1526_v7 = vpack.c.bf16 %v1521_v36, %v1520_v62  ;;  %v1522_v8 = vld [vmem:[#allocation2 + $0x30] sm:$0xff] }
  0xfe   : > { %2312 = vmatprep.mubr.msk.bf16.mxu1 %vm348_vm0, %v1524_v35  ;;  %v1525_v41 = vpack.c.bf16 %v1519_v39, %v1518_v38  ;;  %1648 = vst.msk [vmem:[#allocation2 + $0x18] sm:$0xff] %vm348_vm0, %v1647_v61  ;;  %2323 = vmatpush3.bf16.msra.mxu0 %v2442_v25  ;;  %v1523_v13 = vld [vmem:[#allocation2 + $0x38] sm:$0xff]  ;;  %1657 = vst.msk [vmem:[#allocation2 + $0x30] sm:$0xff] %vm348_vm0, %v1656_v37  ;;  %v1670_v42 = vld [vmem:[#allocation2] sm:$0xff] }
  0xff   : > { %1661 = vst.msk [vmem:[#allocation2 + $0x38] sm:$0xff] %vm348_vm0, %v1660_v3  ;;  %v1527_v52 = vpack.c.bf16 %v1523_v13, %v1522_v8 }
 0x100   : > { %2305 = vmatmul.mubr.msk.bf16.gmra.mrb[24].mxu0 %vm348_vm0, %v1373_v4 }
 0x101   : > { %2313 = vmatmul.mubr.msk.bf16.vlgmr.msra.gmra.mrb[28].mxu1 %vm348_vm0, %v1525_v41 }
 0x102   : > { %2316 = vmatprep.mubr.msk.bf16.mxu1 %vm348_vm0, %v1526_v7 }
 0x103   : > { %v1671_v43 = vld [vmem:[#allocation2 + $0x8] sm:$0xff]  ;;  %v1674_v49 = vld [vmem:[#allocation2 + $0x20] sm:$0xff] }
 0x104   : > { %v1678_v45 = vpack.c.bf16 %v1671_v43, %v1670_v42  ;;  %v1675_v17 = vld [vmem:[#allocation2 + $0x28] sm:$0xff]  ;;  %v1672_v50 = vld [vmem:[#allocation2 + $0x10] sm:$0xff] }
 0x105   : > { %v1673_v53 = vld [vmem:[#allocation2 + $0x18] sm:$0xff]  ;;  %v1680_v20 = vpack.c.bf16 %v1675_v17, %v1674_v49  ;;  %v1676_v54 = vld [vmem:[#allocation2 + $0x30] sm:$0xff] }
 0x106   : > { %2324 = vmatprep.mubr.msk.bf16.mxu0 %vm348_vm0, %v1678_v45  ;;  %v1679_v21 = vpack.c.bf16 %v1673_v53, %v1672_v50  ;;  %v1677_v55 = vld [vmem:[#allocation2 + $0x38] sm:$0xff] }
 0x107   : > { %v1681_v56 = vpack.c.bf16 %v1677_v55, %v1676_v54 }
 0x108   : > { %2325 = vmatmul.mubr.msk.bf16.vlgmr.msra.gmra.mrb[28].mxu0 %vm348_vm0, %v1679_v21 }
 0x109   : > { %2317 = vmatmul.mubr.msk.bf16.gmra.mrb[32].mxu1 %vm348_vm0, %v1527_v52  ;;  %2328 = vmatprep.mubr.msk.bf16.mxu0 %vm348_vm0, %v1680_v20 }
 0x110   : > { %2329 = vmatmul.mubr.msk.bf16.gmra.mrb[32].mxu0 %vm348_vm0, %v1681_v56 }
 0x19b   : > { %v2230_v58 = vpop.f32.mrb[0].mxu0 }
 0x19c   : > { %v512_v18 = vadd.f32 %v2230_v58, %v399_v9  ;;  %v2234_v60 = vpop.f32.mrb[0].mxu1  ;;  %v479_v26 = vpop.f32.mrb[1].mxu0 }
 0x19d   : > { %v516_v1 = vadd.f32 %v2234_v60, %v403_v57  ;;  %v510_v2 = vadd.f32 %v479_v26, %v397_v14  ;;  %v495_v27 = vpop.f32.mrb[1].mxu1  ;;  %v2231_v5 = vpop.f32.mrb[2].mxu0 }
 0x19e   : > { %520 = vst.msk [vmem:[#allocation3 + $0x10] sm:$0xff] %vm357_vm1, %v512_v18  ;;  %v514_v10 = vadd.f32 %v495_v27, %v401_v59  ;;  %v513_v11 = vadd.f32 %v2231_v5, %v400_v15  ;;  %v2235_v30 = vpop.f32.mrb[2].mxu1  ;;  %v482_v31 = vpop.f32.mrb[3].mxu0 }
 0x19f   : > { %524 = vst.msk [vmem:[#allocation3 + $0x30] sm:$0xff] %vm357_vm1, %v516_v1  ;;  %518 = vst.msk [vmem:[#allocation3] sm:$0xff] %vm357_vm1, %v510_v2  ;;  %v517_v16 = vadd.f32 %v2235_v30, %v404_v63  ;;  %v511_v12 = vadd.f32 %v482_v31, %v398_v0  ;;  %v498_v19 = vpop.f32.mrb[3].mxu1 }
 0x1a0   : > { %522 = vst.msk [vmem:[#allocation3 + $0x20] sm:$0xff] %vm357_vm1, %v514_v10  ;;  %521 = vst.msk [vmem:[#allocation3 + $0x18] sm:$0xff] %vm357_vm1, %v513_v11  ;;  %v515_v40 = vadd.f32 %v498_v19, %v402_v6 }
 0x1a1   : > { %525 = vst.msk [vmem:[#allocation3 + $0x38] sm:$0xff] %vm357_vm1, %v517_v16  ;;  %519 = vst.msk [vmem:[#allocation3 + $0x8] sm:$0xff] %vm357_vm1, %v511_v12 }
 0x1a2   : > { %523 = vst.msk [vmem:[#allocation3 + $0x28] sm:$0xff] %vm357_vm1, %v515_v40 }
 0x1a4   : > { %v2242_v44 = vpop.f32.mrb[4].mxu1 }
 0x1a5   : > { %v559_v22 = vld [vmem:[#allocation3 + $0x10] sm:$0xff]  ;;  %v639_v47 = vpop.f32.mrb[5].mxu1 }
 0x1a6   : > { %v672_v48 = vadd.f32 %v2242_v44, %v559_v22  ;;  %v557_v23 = vld [vmem:[#allocation3] sm:$0xff]  ;;  %v2243_v46 = vpop.f32.mrb[6].mxu1  ;;  %v563_v34 = vld [vmem:[#allocation3 + $0x30] sm:$0xff] }
 0x1a7   : > { %v670_v24 = vadd.f32 %v639_v47, %v557_v23  ;;  %v560_v25 = vld [vmem:[#allocation3 + $0x18] sm:$0xff]  ;;  %v642_v28 = vpop.f32.mrb[7].mxu1  ;;  %v561_v36 = vld [vmem:[#allocation3 + $0x20] sm:$0xff] }
 0x1a8   : > { %680 = vst.msk [vmem:[#allocation3 + $0x10] sm:$0xff] %vm357_vm1, %v672_v48  ;;  %v673_v29 = vadd.f32 %v2243_v46, %v560_v25  ;;  %v558_v32 = vld [vmem:[#allocation3 + $0x8] sm:$0xff]  ;;  %v564_v38 = vld [vmem:[#allocation3 + $0x38] sm:$0xff] }
 0x1a9   : > { %678 = vst.msk [vmem:[#allocation3] sm:$0xff] %vm357_vm1, %v670_v24  ;;  %v671_v51 = vadd.f32 %v642_v28, %v558_v32  ;;  %v562_v13 = vld [vmem:[#allocation3 + $0x28] sm:$0xff] }
 0x1aa   : > { %681 = vst.msk [vmem:[#allocation3 + $0x18] sm:$0xff] %vm357_vm1, %v673_v29 }
 0x1ab   : > { %679 = vst.msk [vmem:[#allocation3 + $0x8] sm:$0xff] %vm357_vm1, %v671_v51  ;;  %v2254_v33 = vpop.f32.mrb[4].mxu0 }
 0x1ac   : > { %v2246_v35 = vpop.f32.mrb[8].mxu1  ;;  %v799_v61 = vpop.f32.mrb[5].mxu0 }
 0x1ad   : > { %v676_v62 = vadd.f32 %v2246_v35, %v563_v34  ;;  %v655_v37 = vpop.f32.mrb[9].mxu1  ;;  %v2255_v3 = vpop.f32.mrb[6].mxu0 }
 0x1ae   : > { %v674_v4 = vadd.f32 %v655_v37, %v561_v36  ;;  %v2247_v39 = vpop.f32.mrb[10].mxu1  ;;  %v802_v41 = vpop.f32.mrb[7].mxu0 }
 0x1af   : > { %684 = vst.msk [vmem:[#allocation3 + $0x30] sm:$0xff] %vm357_vm1, %v676_v62  ;;  %v719_v7 = vld [vmem:[#allocation3 + $0x10] sm:$0xff]  ;;  %v677_v8 = vadd.f32 %v2247_v39, %v564_v38  ;;  %v658_v42 = vpop.f32.mrb[11].mxu1 }
 0x1b0   : > { %v832_v43 = vadd.f32 %v2254_v33, %v719_v7  ;;  %682 = vst.msk [vmem:[#allocation3 + $0x20] sm:$0xff] %vm357_vm1, %v674_v4  ;;  %v717_v45 = vld [vmem:[#allocation3] sm:$0xff]  ;;  %v675_v49 = vadd.f32 %v658_v42, %v562_v13 }
 0x1b1   : > { %v830_v17 = vadd.f32 %v799_v61, %v717_v45  ;;  %685 = vst.msk [vmem:[#allocation3 + $0x38] sm:$0xff] %vm357_vm1, %v677_v8  ;;  %v720_v50 = vld [vmem:[#allocation3 + $0x18] sm:$0xff] }
 0x1b2   : > { %840 = vst.msk [vmem:[#allocation3 + $0x10] sm:$0xff] %vm357_vm1, %v832_v43  ;;  %v833_v52 = vadd.f32 %v2255_v3, %v720_v50  ;;  %683 = vst.msk [vmem:[#allocation3 + $0x28] sm:$0xff] %vm357_vm1, %v675_v49  ;;  %v718_v53 = vld [vmem:[#allocation3 + $0x8] sm:$0xff] }
 0x1b3   : > { %838 = vst.msk [vmem:[#allocation3] sm:$0xff] %vm357_vm1, %v830_v17  ;;  %v831_v20 = vadd.f32 %v802_v41, %v718_v53  ;;  %v2258_v21 = vpop.f32.mrb[8].mxu0 }
 0x1b4   : > { %841 = vst.msk [vmem:[#allocation3 + $0x18] sm:$0xff] %vm357_vm1, %v833_v52  ;;  %v815_v54 = vpop.f32.mrb[9].mxu0  ;;  %v2266_v55 = vpop.f32.mrb[12].mxu1 }
 0x1b5   : > { %839 = vst.msk [vmem:[#allocation3 + $0x8] sm:$0xff] %vm357_vm1, %v831_v20  ;;  %v2259_v56 = vpop.f32.mrb[10].mxu0  ;;  %v960_v9 = vpop.f32.mrb[13].mxu1 }
 0x1b6   : > { %v723_v57 = vld [vmem:[#allocation3 + $0x30] sm:$0xff]  ;;  %v818_v14 = vpop.f32.mrb[11].mxu0  ;;  %v2267_v58 = vpop.f32.mrb[14].mxu1 }
 0x1b7   : > { %v836_v59 = vadd.f32 %v2258_v21, %v723_v57  ;;  %v721_v15 = vld [vmem:[#allocation3 + $0x20] sm:$0xff]  ;;  %v963_v18 = vpop.f32.mrb[15].mxu1 }
 0x1b8   : > { %v834_v60 = vadd.f32 %v815_v54, %v721_v15  ;;  %v724_v26 = vld [vmem:[#allocation3 + $0x38] sm:$0xff] }
 0x1b9   : > { %844 = vst.msk [vmem:[#allocation3 + $0x30] sm:$0xff] %vm357_vm1, %v836_v59  ;;  %v880_v63 = vld [vmem:[#allocation3 + $0x10] sm:$0xff]  ;;  %v837_v0 = vadd.f32 %v2259_v56, %v724_v26  ;;  %v722_v1 = vld [vmem:[#allocation3 + $0x28] sm:$0xff] }
 0x1ba   : > { %842 = vst.msk [vmem:[#allocation3 + $0x20] sm:$0xff] %vm357_vm1, %v834_v60  ;;  %v993_v2 = vadd.f32 %v2266_v55, %v880_v63  ;;  %v878_v27 = vld [vmem:[#allocation3] sm:$0xff]  ;;  %v835_v5 = vadd.f32 %v818_v14, %v722_v1 }
 0x1bb   : > { %845 = vst.msk [vmem:[#allocation3 + $0x38] sm:$0xff] %vm357_vm1, %v837_v0  ;;  %v991_v6 = vadd.f32 %v960_v9, %v878_v27  ;;  %v881_v10 = vld [vmem:[#allocation3 + $0x18] sm:$0xff]  ;;  %v2278_v11 = vpop.f32.mrb[12].mxu0 }
 0x1bc   : > { %1001 = vst.msk [vmem:[#allocation3 + $0x10] sm:$0xff] %vm357_vm1, %v993_v2  ;;  %843 = vst.msk [vmem:[#allocation3 + $0x28] sm:$0xff] %vm357_vm1, %v835_v5  ;;  %v994_v30 = vadd.f32 %v2267_v58, %v881_v10  ;;  %v879_v31 = vld [vmem:[#allocation3 + $0x8] sm:$0xff]  ;;  %v2270_v16 = vpop.f32.mrb[16].mxu1  ;;  %v1121_v12 = vpop.f32.mrb[13].mxu0 }
 0x1bd   : > { %999 = vst.msk [vmem:[#allocation3] sm:$0xff] %vm357_vm1, %v991_v6  ;;  %v992_v19 = vadd.f32 %v963_v18, %v879_v31  ;;  %v976_v40 = vpop.f32.mrb[17].mxu1  ;;  %v2279_v44 = vpop.f32.mrb[14].mxu0 }
 0x1be   : > { %1002 = vst.msk [vmem:[#allocation3 + $0x18] sm:$0xff] %vm357_vm1, %v994_v30  ;;  %v2271_v22 = vpop.f32.mrb[18].mxu1  ;;  %v1124_v47 = vpop.f32.mrb[15].mxu0 }
 0x1bf   : > { %1000 = vst.msk [vmem:[#allocation3 + $0x8] sm:$0xff] %vm357_vm1, %v992_v19  ;;  %v979_v48 = vpop.f32.mrb[19].mxu1 }
 0x1c0   : > { %v884_v23 = vld [vmem:[#allocation3 + $0x30] sm:$0xff] }
 0x1c1   : > { %v997_v46 = vadd.f32 %v2270_v16, %v884_v23  ;;  %v882_v24 = vld [vmem:[#allocation3 + $0x20] sm:$0xff] }
 0x1c2   : > { %v995_v25 = vadd.f32 %v976_v40, %v882_v24  ;;  %v885_v28 = vld [vmem:[#allocation3 + $0x38] sm:$0xff] }
 0x1c3   : > { %1005 = vst.msk [vmem:[#allocation3 + $0x30] sm:$0xff] %vm357_vm1, %v997_v46  ;;  %v998_v29 = vadd.f32 %v2271_v22, %v885_v28  ;;  %v1041_v32 = vld [vmem:[#allocation3 + $0x10] sm:$0xff]  ;;  %v883_v51 = vld [vmem:[#allocation3 + $0x28] sm:$0xff]  ;;  %v2282_v33 = vpop.f32.mrb[16].mxu0 }
 0x1c4   : > { %1003 = vst.msk [vmem:[#allocation3 + $0x20] sm:$0xff] %vm357_vm1, %v995_v25  ;;  %v1154_v34 = vadd.f32 %v2278_v11, %v1041_v32  ;;  %v996_v35 = vadd.f32 %v979_v48, %v883_v51  ;;  %v1039_v61 = vld [vmem:[#allocation3] sm:$0xff]  ;;  %v1137_v62 = vpop.f32.mrb[17].mxu0  ;;  %v2290_v36 = vpop.f32.mrb[20].mxu1 }
 0x1c5   : > { %1006 = vst.msk [vmem:[#allocation3 + $0x38] sm:$0xff] %vm357_vm1, %v998_v29  ;;  %v1152_v37 = vadd.f32 %v1121_v12, %v1039_v61  ;;  %v1042_v3 = vld [vmem:[#allocation3 + $0x18] sm:$0xff]  ;;  %v2283_v4 = vpop.f32.mrb[18].mxu0  ;;  %v1282_v38 = vpop.f32.mrb[21].mxu1 }
 0x1c6   : > { %1162 = vst.msk [vmem:[#allocation3 + $0x10] sm:$0xff] %vm357_vm1, %v1154_v34  ;;  %1004 = vst.msk [vmem:[#allocation3 + $0x28] sm:$0xff] %vm357_vm1, %v996_v35  ;;  %v1155_v39 = vadd.f32 %v2279_v44, %v1042_v3  ;;  %v1040_v41 = vld [vmem:[#allocation3 + $0x8] sm:$0xff]  ;;  %v1140_v7 = vpop.f32.mrb[19].mxu0  ;;  %v2291_v8 = vpop.f32.mrb[22].mxu1 }
 0x1c7   : > { %1160 = vst.msk [vmem:[#allocation3] sm:$0xff] %vm357_vm1, %v1152_v37  ;;  %v1153_v13 = vadd.f32 %v1124_v47, %v1040_v41  ;;  %v1285_v42 = vpop.f32.mrb[23].mxu1 }
 0x1c8   : > { %1163 = vst.msk [vmem:[#allocation3 + $0x18] sm:$0xff] %vm357_vm1, %v1155_v39 }
 0x1c9   : > { %1161 = vst.msk [vmem:[#allocation3 + $0x8] sm:$0xff] %vm357_vm1, %v1153_v13 }
 0x1ca   : > { %v1045_v43 = vld [vmem:[#allocation3 + $0x30] sm:$0xff] }
 0x1cb   : > { %v1158_v45 = vadd.f32 %v2282_v33, %v1045_v43  ;;  %v1043_v49 = vld [vmem:[#allocation3 + $0x20] sm:$0xff]  ;;  %v2302_v17 = vpop.f32.mrb[20].mxu0 }
 0x1cc   : > { %v1156_v50 = vadd.f32 %v1137_v62, %v1043_v49  ;;  %v1046_v52 = vld [vmem:[#allocation3 + $0x38] sm:$0xff]  ;;  %v2294_v53 = vpop.f32.mrb[24].mxu1  ;;  %v1436_v20 = vpop.f32.mrb[21].mxu0 }
 0x1cd   : > { %1166 = vst.msk [vmem:[#allocation3 + $0x30] sm:$0xff] %vm357_vm1, %v1158_v45  ;;  %v1159_v21 = vadd.f32 %v2283_v4, %v1046_v52  ;;  %v1202_v54 = vld [vmem:[#allocation3 + $0x10] sm:$0xff]  ;;  %v1044_v55 = vld [vmem:[#allocation3 + $0x28] sm:$0xff]  ;;  %v1298_v56 = vpop.f32.mrb[25].mxu1  ;;  %v2303_v9 = vpop.f32.mrb[22].mxu0 }
 0x1ce   : > { %1164 = vst.msk [vmem:[#allocation3 + $0x20] sm:$0xff] %vm357_vm1, %v1156_v50  ;;  %v1315_v57 = vadd.f32 %v2290_v36, %v1202_v54  ;;  %v1157_v14 = vadd.f32 %v1140_v7, %v1044_v55  ;;  %v1200_v58 = vld [vmem:[#allocation3] sm:$0xff]  ;;  %v2295_v59 = vpop.f32.mrb[26].mxu1  ;;  %v1439_v15 = vpop.f32.mrb[23].mxu0 }
 0x1cf   : > { %1167 = vst.msk [vmem:[#allocation3 + $0x38] sm:$0xff] %vm357_vm1, %v1159_v21  ;;  %v1313_v18 = vadd.f32 %v1282_v38, %v1200_v58  ;;  %v1203_v60 = vld [vmem:[#allocation3 + $0x18] sm:$0xff]  ;;  %v1301_v26 = vpop.f32.mrb[27].mxu1 }
 0x1d0   : > { %1323 = vst.msk [vmem:[#allocation3 + $0x10] sm:$0xff] %vm357_vm1, %v1315_v57  ;;  %1165 = vst.msk [vmem:[#allocation3 + $0x28] sm:$0xff] %vm357_vm1, %v1157_v14  ;;  %v1316_v63 = vadd.f32 %v2291_v8, %v1203_v60  ;;  %v1201_v0 = vld [vmem:[#allocation3 + $0x8] sm:$0xff] }
 0x1d1   : > { %1321 = vst.msk [vmem:[#allocation3] sm:$0xff] %vm357_vm1, %v1313_v18  ;;  %v1314_v1 = vadd.f32 %v1285_v42, %v1201_v0 }
 0x1d2   : > { %1324 = vst.msk [vmem:[#allocation3 + $0x18] sm:$0xff] %vm357_vm1, %v1316_v63 }
 0x1d3   : > { %1322 = vst.msk [vmem:[#allocation3 + $0x8] sm:$0xff] %vm357_vm1, %v1314_v1  ;;  %v2306_v2 = vpop.f32.mrb[24].mxu0 }
 0x1d4   : > { %v1206_v27 = vld [vmem:[#allocation3 + $0x30] sm:$0xff]  ;;  %v1452_v5 = vpop.f32.mrb[25].mxu0  ;;  %v2314_v6 = vpop.f32.mrb[28].mxu1 }
 0x1d5   : > { %v1319_v10 = vadd.f32 %v2294_v53, %v1206_v27  ;;  %v1204_v11 = vld [vmem:[#allocation3 + $0x20] sm:$0xff]  ;;  %v2307_v30 = vpop.f32.mrb[26].mxu0  ;;  %v1590_v31 = vpop.f32.mrb[29].mxu1 }
 0x1d6   : > { %v1317_v16 = vadd.f32 %v1298_v56, %v1204_v11  ;;  %v1207_v12 = vld [vmem:[#allocation3 + $0x38] sm:$0xff]  ;;  %v1455_v19 = vpop.f32.mrb[27].mxu0  ;;  %v2315_v40 = vpop.f32.mrb[30].mxu1  ;;  %v2147_v11 = vld [vmem:[#allocation12] ss:$0 sm:$0xff] }
 0x1d7   : > { %1327 = vst.msk [vmem:[#allocation3 + $0x30] sm:$0xff] %vm357_vm1, %v1319_v10  ;;  %v1320_v44 = vadd.f32 %v2295_v59, %v1207_v12  ;;  %v1356_v22 = vld [vmem:[#allocation3 + $0x10] sm:$0xff]  ;;  %v1205_v47 = vld [vmem:[#allocation3 + $0x28] sm:$0xff]  ;;  %v1593_v48 = vpop.f32.mrb[31].mxu1 }
 0x1d8   : > { %1325 = vst.msk [vmem:[#allocation3 + $0x20] sm:$0xff] %vm357_vm1, %v1317_v16  ;;  %v1469_v23 = vadd.f32 %v2302_v17, %v1356_v22  ;;  %v1318_v46 = vadd.f32 %v1301_v26, %v1205_v47  ;;  %v1354_v24 = vld [vmem:[#allocation3] sm:$0xff] }
 0x1d9   : > { %1328 = vst.msk [vmem:[#allocation3 + $0x38] sm:$0xff] %vm357_vm1, %v1320_v44  ;;  %v1467_v25 = vadd.f32 %v1436_v20, %v1354_v24  ;;  %v1357_v28 = vld [vmem:[#allocation3 + $0x18] sm:$0xff] }
 0x1da   : > { %1477 = vst.msk [vmem:[#allocation3 + $0x10] sm:$0xff] %vm357_vm1, %v1469_v23  ;;  %1326 = vst.msk [vmem:[#allocation3 + $0x28] sm:$0xff] %vm357_vm1, %v1318_v46  ;;  %v1470_v29 = vadd.f32 %v2303_v9, %v1357_v28  ;;  %v1355_v32 = vld [vmem:[#allocation3 + $0x8] sm:$0xff] }
 0x1db   : > { %1475 = vst.msk [vmem:[#allocation3] sm:$0xff] %vm357_vm1, %v1467_v25  ;;  %v1468_v51 = vadd.f32 %v1439_v15, %v1355_v32  ;;  %v2326_v33 = vpop.f32.mrb[28].mxu0 }
 0x1dc   : > { %1478 = vst.msk [vmem:[#allocation3 + $0x18] sm:$0xff] %vm357_vm1, %v1470_v29  ;;  %v2318_v34 = vpop.f32.mrb[32].mxu1  ;;  %v1744_v35 = vpop.f32.mrb[29].mxu0 }
 0x1dd   : > { %1476 = vst.msk [vmem:[#allocation3 + $0x8] sm:$0xff] %vm357_vm1, %v1468_v51  ;;  %v1606_v61 = vpop.f32.mrb[33].mxu1  ;;  %v2327_v62 = vpop.f32.mrb[30].mxu0 }
 0x1de   : > { %v1360_v36 = vld [vmem:[#allocation3 + $0x30] sm:$0xff]  ;;  %v2319_v37 = vpop.f32.mrb[34].mxu1  ;;  %v1747_v3 = vpop.f32.mrb[31].mxu0 }
 0x1df   : > { %v1473_v4 = vadd.f32 %v2306_v2, %v1360_v36  ;;  %v1358_v38 = vld [vmem:[#allocation3 + $0x20] sm:$0xff]  ;;  %v1609_v39 = vpop.f32.mrb[35].mxu1 }
 0x1e0   : > { %v1471_v41 = vadd.f32 %v1452_v5, %v1358_v38  ;;  %v1361_v7 = vld [vmem:[#allocation3 + $0x38] sm:$0xff] }
 0x1e1   : > { %1481 = vst.msk [vmem:[#allocation3 + $0x30] sm:$0xff] %vm357_vm1, %v1473_v4  ;;  %v1474_v8 = vadd.f32 %v2307_v30, %v1361_v7  ;;  %v1510_v13 = vld [vmem:[#allocation3 + $0x10] sm:$0xff]  ;;  %v1359_v42 = vld [vmem:[#allocation3 + $0x28] sm:$0xff] }
 0x1e2   : > { %1479 = vst.msk [vmem:[#allocation3 + $0x20] sm:$0xff] %vm357_vm1, %v1471_v41  ;;  %v1623_v43 = vadd.f32 %v2314_v6, %v1510_v13  ;;  %v1472_v45 = vadd.f32 %v1455_v19, %v1359_v42  ;;  %v1508_v49 = vld [vmem:[#allocation3] sm:$0xff] }
 0x1e3   : > { %1482 = vst.msk [vmem:[#allocation3 + $0x38] sm:$0xff] %vm357_vm1, %v1474_v8  ;;  %v1621_v17 = vadd.f32 %v1590_v31, %v1508_v49  ;;  %v1511_v50 = vld [vmem:[#allocation3 + $0x18] sm:$0xff]  ;;  %v2330_v52 = vpop.f32.mrb[32].mxu0 }
 0x1e4   : > { %1631 = vst.msk [vmem:[#allocation3 + $0x10] sm:$0xff] %vm357_vm1, %v1623_v43  ;;  %1480 = vst.msk [vmem:[#allocation3 + $0x28] sm:$0xff] %vm357_vm1, %v1472_v45  ;;  %v1624_v53 = vadd.f32 %v2315_v40, %v1511_v50  ;;  %v1509_v20 = vld [vmem:[#allocation3 + $0x8] sm:$0xff]  ;;  %v1760_v21 = vpop.f32.mrb[33].mxu0 }
 0x1e5   : > { %1629 = vst.msk [vmem:[#allocation3] sm:$0xff] %vm357_vm1, %v1621_v17  ;;  %v1622_v54 = vadd.f32 %v1593_v48, %v1509_v20  ;;  %v2331_v55 = vpop.f32.mrb[34].mxu0 }
 0x1e6   : > { %1632 = vst.msk [vmem:[#allocation3 + $0x18] sm:$0xff] %vm357_vm1, %v1624_v53  ;;  %v1763_v56 = vpop.f32.mrb[35].mxu0 }
 0x1e7   : > { %1630 = vst.msk [vmem:[#allocation3 + $0x8] sm:$0xff] %vm357_vm1, %v1622_v54 }
 0x1e8   : > { %v1514_v9 = vld [vmem:[#allocation3 + $0x30] sm:$0xff] }
 0x1e9   : > { %v1627_v57 = vadd.f32 %v2318_v34, %v1514_v9  ;;  %v1512_v14 = vld [vmem:[#allocation3 + $0x20] sm:$0xff] }
 0x1ea   : > { %v1625_v58 = vadd.f32 %v1606_v61, %v1512_v14  ;;  %v1515_v59 = vld [vmem:[#allocation3 + $0x38] sm:$0xff] }
 0x1eb   : > { %1635 = vst.msk [vmem:[#allocation3 + $0x30] sm:$0xff] %vm357_vm1, %v1627_v57  ;;  %v1628_v15 = vadd.f32 %v2319_v37, %v1515_v59  ;;  %v1664_v18 = vld [vmem:[#allocation3 + $0x10] sm:$0xff]  ;;  %v1513_v60 = vld [vmem:[#allocation3 + $0x28] sm:$0xff] }
 0x1ec   : > { %1633 = vst.msk [vmem:[#allocation3 + $0x20] sm:$0xff] %vm357_vm1, %v1625_v58  ;;  %v1777_v26 = vadd.f32 %v2326_v33, %v1664_v18  ;;  %v1626_v63 = vadd.f32 %v1609_v39, %v1513_v60  ;;  %v1662_v0 = vld [vmem:[#allocation3] sm:$0xff] }
 0x1ed   : > { %1636 = vst.msk [vmem:[#allocation3 + $0x38] sm:$0xff] %vm357_vm1, %v1628_v15  ;;  %v1775_v1 = vadd.f32 %v1744_v35, %v1662_v0  ;;  %v1665_v2 = vld [vmem:[#allocation3 + $0x18] sm:$0xff] }
 0x1ee   : > { %1785 = vst.msk [vmem:[#allocation3 + $0x10] sm:$0xff] %vm357_vm1, %v1777_v26  ;;  %1634 = vst.msk [vmem:[#allocation3 + $0x28] sm:$0xff] %vm357_vm1, %v1626_v63  ;;  %v1778_v27 = vadd.f32 %v2327_v62, %v1665_v2  ;;  %v1663_v5 = vld [vmem:[#allocation3 + $0x8] sm:$0xff] }
 0x1ef   : > { %1783 = vst.msk [vmem:[#allocation3] sm:$0xff] %vm357_vm1, %v1775_v1  ;;  %v1776_v6 = vadd.f32 %v1747_v3, %v1663_v5 }
 0x1f0   : > { %1786 = vst.msk [vmem:[#allocation3 + $0x18] sm:$0xff] %vm357_vm1, %v1778_v27 }
 0x1f1   : > { %1784 = vst.msk [vmem:[#allocation3 + $0x8] sm:$0xff] %vm357_vm1, %v1776_v6 }
 0x1f2   : > { %v1668_v10 = vld [vmem:[#allocation3 + $0x30] sm:$0xff] }
 0x1f3   : > { %v1781_v30 = vadd.f32 %v2330_v52, %v1668_v10  ;;  %v1666_v31 = vld [vmem:[#allocation3 + $0x20] sm:$0xff] }
 0x1f4   : > { %v1779_v16 = vadd.f32 %v1760_v21, %v1666_v31  ;;  %v1669_v12 = vld [vmem:[#allocation3 + $0x38] sm:$0xff] }
 0x1f5   : > { %v1793_v19 = vld [vmem:[#allocation3 + $0x10] sm:$0xff]  ;;  %1789 = vst.msk [vmem:[#allocation3 + $0x30] sm:$0xff] %vm357_vm1, %v1781_v30  ;;  %v1782_v40 = vadd.f32 %v2331_v55, %v1669_v12  ;;  %v1667_v44 = vld [vmem:[#allocation3 + $0x28] sm:$0xff] }
 0x1f6   : > { %v1808_v22 = vadd.f32 %v2147_v11, %v1793_v19  ;;  %v1791_v47 = vld [vmem:[#allocation3] sm:$0xff]  ;;  %1787 = vst.msk [vmem:[#allocation3 + $0x20] sm:$0xff] %vm357_vm1, %v1779_v16  ;;  %v1780_v48 = vadd.f32 %v1763_v56, %v1667_v44 }
 0x1f7   : > { %v1806_v23 = vadd.f32 %v2147_v11, %v1791_v47  ;;  %v1794_v46 = vld [vmem:[#allocation3 + $0x18] sm:$0xff]  ;;  %1790 = vst.msk [vmem:[#allocation3 + $0x38] sm:$0xff] %vm357_vm1, %v1782_v40 }
 0x1f8   : > { %v1816_v24 = vmax.f32 %v1808_v22, 0.0  ;;  %v1809_v25 = vadd.f32 %v2147_v11, %v1794_v46  ;;  %v1792_v28 = vld [vmem:[#allocation3 + $0x8] sm:$0xff]  ;;  %1788 = vst.msk [vmem:[#allocation3 + $0x28] sm:$0xff] %vm357_vm1, %v1780_v48 }
 0x1f9   : > { %v1814_v29 = vmax.f32 %v1806_v23, 0.0  ;;  %v1807_v32 = vadd.f32 %v2147_v11, %v1792_v28 }
 0x1fa   : > { %v2163_v51 = vpack.c.bf16 %v1816_v24, %v1816_v24  ;;  %v1817_v33 = vmax.f32 %v1809_v25, 0.0 }
 0x1fb   : > { %v2161_v34 = vpack.c.bf16 %v1814_v29, %v1814_v29  ;;  %v1815_v35 = vmax.f32 %v1807_v32, 0.0 }
 0x1fc   : > { %v2164_v61 = vpack.c.bf16 %v1817_v33, %v1817_v33  ;;  %v1797_v62 = vld [vmem:[#allocation3 + $0x30] sm:$0xff]  ;;  %1857 = vst.msk [vmem:[%s346_s15 + $0x8] sm:$0xf] %vm1854_vm2, %v2163_v51 }
 0x1fd   : > { %v2162_v36 = vpack.c.bf16 %v1815_v35, %v1815_v35  ;;  %v1812_v37 = vadd.f32 %v2147_v11, %v1797_v62  ;;  %v1795_v3 = vld [vmem:[#allocation3 + $0x20] sm:$0xff]  ;;  %1855 = vst.msk [vmem:[%s346_s15] sm:$0xf] %vm1854_vm2, %v2161_v34 }
 0x1fe   : > { %v1810_v4 = vadd.f32 %v2147_v11, %v1795_v3  ;;  %v1798_v38 = vld [vmem:[#allocation3 + $0x38] sm:$0xff]  ;;  %1858 = vst.msk [vmem:[%s346_s15 + $0xc] sm:$0xf] %vm1854_vm2, %v2164_v61 }
 0x1ff   : > { %v1820_v39 = vmax.f32 %v1812_v37, 0.0  ;;  %v1813_v41 = vadd.f32 %v2147_v11, %v1798_v38  ;;  %v1796_v7 = vld [vmem:[#allocation3 + $0x28] sm:$0xff]  ;;  %1856 = vst.msk [vmem:[%s346_s15 + $0x4] sm:$0xf] %vm1854_vm2, %v2162_v36 }
 0x200   : > { %v1818_v8 = vmax.f32 %v1810_v4, 0.0  ;;  %v1811_v13 = vadd.f32 %v2147_v11, %v1796_v7 }
 0x201   : > { %v2167_v42 = vpack.c.bf16 %v1820_v39, %v1820_v39  ;;  %v1821_v43 = vmax.f32 %v1813_v41, 0.0 }
 0x202   : > { %v2165_v45 = vpack.c.bf16 %v1818_v8, %v1818_v8  ;;  %v1819_v49 = vmax.f32 %v1811_v13, 0.0 }
 0x203   : > { %v2168_v17 = vpack.c.bf16 %v1821_v43, %v1821_v43  ;;  %1861 = vst.msk [vmem:[%s346_s15 + $0x18] sm:$0xf] %vm1854_vm2, %v2167_v42 }
 0x204   : > { %v2166_v50 = vpack.c.bf16 %v1819_v49, %v1819_v49  ;;  %1859 = vst.msk [vmem:[%s346_s15 + $0x10] sm:$0xf] %vm1854_vm2, %v2165_v45 }
 0x205   : > { %1862 = vst.msk [vmem:[%s346_s15 + $0x1c] sm:$0xf] %vm1854_vm2, %v2168_v17 }
 0x206   : > { %1860 = vst.msk [vmem:[%s346_s15 + $0x14] sm:$0xf] %vm1854_vm2, %v2166_v50 }
 0x207   : > { %2602 = shalt.err (!%p2599_p1)
}
 0x208   : > { %s2603_s1 = scalar_lea.hbm %s3344_s26, 512  ;;  %s2607_s21 = scalar_lea.hbm %s3398_s5, 1024 }
 0x209   : > { %p2604_p5 = scmp.ne.s32.totalorder %s3344_s26, %s2603_s1  ;;  %p2608_p4 = scmp.lt.u32.totalorder %s3344_s26, %s3398_s5 }
 0x20a   : > { %p2609_p8 = scmp.lt.u32.totalorder %s2607_s21, %s2603_s1  ;;  %p2611_p3 = scmp.lt.u32.totalorder %s2603_s1, %s3344_s26 }
 0x20b   : > { %p2605_p11 = pnand %p2604_p5, %p3447_p7 }
 0x20c   : > { %p2610_p13 = por %p2609_p8, %p2608_p4 }
 0x20d   : > { %p2606_p12 = pneg %p2605_p11 }
 0x20e   : > { %p2612_p0 = por %p2611_p3, %p2610_p13 }
 0x210   : > { %p2613_p6 = pnand %p2612_p0, %p2606_p12 }
 0x212   : > { %2616 = shalt.err (!%p2613_p6)
}
 0x213   : > { %s2674_s7 = smov 64   ;;  %s2675_s28 = smov 4  }
 0x214   : > { %2357 = dma.vmem_to_hbm [thread:$0]  (%p3447_p7), %s3346_s24, 512, %s3344_s26, %s1864_s22, %s2674_s7, %s2674_s7, %s2675_s28  }
 0x215 PF: > { %s3448_s13 = sld [smem:[#allocation18_spill]]  ;;  %s1892_s29 = sand.u32 1, %s2651_s18  }
 0x216   : > { %p3449_p2 = scmp.ne.s32.totalorder %s3426_s6, 0  ;;  %s1893_s15 = scalar_lea.sflag [#allocation6], %s1892_s29 }
 0x21b   : > { %p3450_p9 = scmp.ge.s32.totalorder %s3448_s13, 2 }
 0x21d   : > { %p2377_p10 = pnand %p3450_p9, %p3449_p2 }
 0x21f   : > { %2646 = dma.done.wait (!%p2377_p10), %s1893_s15, 512  }
 0x220   : > { %2648 = vsyncadd (!%p2377_p10), %s1893_s15, 4294966784  ;;  %s3451_s21 = sld [smem:[#allocation19_spill]]  ;;  %s3452_s14 = sld [smem:[#allocation20_spill]] }
 0x221   : > { %s3453_s18 = smov %s2655_s19  ;;  %s3454_s19 = smov %s2659_s20 }
 0x226   : > { %p22_p1 = scmp.ge.s32.totalorder %s3451_s21, 4   ;;  %s3455_s20 = smov %s3452_s14 }
 0x228   :  { %24 = sbr.rel (!%p22_p1) target bundleno = 11 (0xb), region = 165 }
 0x22f   :  { %1898 = vsyncpa [#allocation5], 1 }
 0x230   :  { %1900 = vsyncpa [#allocation5 + $0x1], 1 }
 0x231   :  { %1901 = vsyncpa [#allocation8], 1 }
 0x232   :  { %1903 = vsyncpa [#allocation8 + $0x1], 1 }
 0x233   :  { %1904 = vsyncpa [#allocation11], 1 }
 0x234   :  { %1905 = vsyncpa [#allocation6], 1 }
 0x235   :  { %1907 = vsyncpa [#allocation6 + $0x1], 1 }

// kernel: encoder_forward.7
= control target key start
LH: loop header
LB: loop body
LE: loop exit
PB: predicated region body
PF: predicated region fallthrough
CT: control target
= control target key end

     0   :  { %s2765_s0 = inlined_call_operand.hbm [shape: bf16[2,10,4,64], index: 0, kind: input, shape index: {}]   ;;  %s2766_s1 = inlined_call_operand.hbm [shape: bf16[2,10,4,64], index: 1, kind: input, shape index: {}]   ;;  %s2767_s2 = inlined_call_operand.hbm [shape: bf16[2,10,4,64], index: 2, kind: input, shape index: {}]   ;;  %s2768_s3 = inlined_call_operand.hbm [shape: bf16[576,128], index: 3, kind: input, shape index: {}]   ;;  %s2769_s4 = inlined_call_operand.hbm [shape: f32[1,128], index: 4, kind: input, shape index: {}]   ;;  %s2770_s5 = inlined_call_operand.hbm [shape: bf16[2,32,128], index: 5, kind: output, shape index: {}]  }
   0x1   :  { %2786 = sst [smem:[#allocation21_spill]] %s2766_s1 }
   0x2   :  { %2787 = sst [smem:[#allocation22_spill]] %s2768_s3 }
   0x3   :  { %10 = vsyncpa [#allocation5], 0 }
   0x4   :  { %12 = vsyncpa [#allocation5 + $0x1], 0 }
   0x5   :  { %13 = vsyncpa [#allocation8], 0 }
   0x6   :  { %15 = vsyncpa [#allocation8 + $0x1], 0 }
   0x7   :  { %16 = vsyncpa [#allocation11], 0 }
   0x8   :  { %17 = vsyncpa [#allocation6], 0 }
   0x9   :  { %19 = vsyncpa [#allocation6 + $0x1], 0  ;;  %s2334_s18 = smov 0   ;;  %s2336_s19 = smov 0  }
   0xa   :  { %s2338_s20 = smov 0   ;;  %s2340_s21 = smov 0  }
   0xb LB: > { %2788 = sst [smem:[#allocation18_spill]] %s2289_s21  ;;  %s2355_s22 = sadd.s32 4294967295, %s2289_s21   ;;  %s2289_s21 = sphi %s2340_s21, %s2817_s21   ;;  %s2285_s20 = sphi %s2338_s20, %s2821_s20   ;;  %s2281_s19 = sphi %s2336_s19, %s2820_s19   ;;  %s2277_s18 = sphi %s2334_s18, %s2819_s18  }
   0xc   : > { %s1623_s23 = sadd.s32 4294967294, %s2289_s21   ;;  %s2359_s24 = sadd.s32 1, %s2289_s21  }
   0xd   : > { %2789 = sst [smem:[#allocation19_spill]] %s2359_s24  ;;  %s32_s25 = sadd.s32 1, %s2285_s20 }
   0xe   : > { %s29_s26 = ssub.s32 %s2289_s21, %s2359_s24  ;;  %p39_p0 = scmp.ne.s32.totalorder %s2285_s20, %s2281_s19 }
   0xf   : > { %p30_p1 = scmp.eq.s32.totalorder %s29_s26, 0  ;;  %p40_p2 = scmp.eq.s32.totalorder %s2289_s21, 0 }
  0x10   : > { %p45_p3 = scmp.ne.s32.totalorder %s2281_s19, %s2277_s18  ;;  %p2771_p4 = scmp.eq.s32.totalorder %s2355_s22, 0 }
  0x11   : > { %s2371_s27 = scalar_select %p30_p1, %s2285_s20, %s32_s25  }
  0x12   : > { %p2373_p5 = por %p40_p2, %p39_p0  ;;  %p2379_p6 = por %p2771_p4, %p45_p3 }
  0x13   : > { %2790 = sst [smem:[#allocation20_spill]] %s2371_s27  ;;  %p163_p7 = scmp.eq.s32.totalorder %s2355_s22, 1 }
  0x14   : > { %s2791_s28 = scalar_select %p2373_p5, 1, 0 }
  0x15   : > { %s2792_s29 = scalar_select %p2379_p6, 1, 0 }
  0x16   : > { %p169_p8 = scmp.eq.s32.totalorder %s1623_s23, 1  ;;  %p1624_p9 = scmp.ge.s32.totalorder %s2289_s21, 1 }
  0x17   : > { %p176_p10 = scmp.lt.s32.totalorder %s2289_s21, 3  ;;  %p2386_p11 = por %p163_p7, %p39_p0 }
  0x18   : > { %p2390_p12 = por %p169_p8, %p45_p3  ;;  %s2291_s8 = smov [#allocation10]  }
  0x19   : > { %s2793_s30 = scalar_select %p2386_p11, 1, 0 }
  0x1a   : > { %s2794_s6 = scalar_select %p2390_p12, 1, 0 }
  0x1b   : > { %p2394_p13 = pnand %p1624_p9, %p176_p10  ;;  %s188_s9 = sshll.u32 %s2291_s8, 4  ;;  %s189_s9 = int_to_ptr.vmem [resolvable:$true] %s188_s9 }
  0x1c   : > { %s2775_s11 = sand.u32 1, %s2285_s20   ;;  %s2797_s3 = sld [smem:[#allocation22_spill]] }
  0x1d   : > { %s2795_s7 = scalar_select %p2394_p13, 1, 0 }
  0x1e   : > { %p1965_p1 = pneg %p2394_p13  ;;  %s2411_s12 = smul.u32 20, %s2775_s11 }
  0x20   : > { %p2402_p2 = pnand %p1965_p1, %p2771_p4 }
  0x22   : > { %s2796_s10 = scalar_select %p2402_p2, 1, 0 }
  0x23   : > { %s2069_s15 = scalar_lea.hbm %s2797_s3, 4608  ;;  %p2776_p8 = pneg %p2402_p2 }
  0x24   : > { %p2070_p7 = scmp.ne.s32.totalorder %s2797_s3, %s2069_s15  ;;  %p2076_p1 = scmp.lt.u32.totalorder %s2069_s15, %s2797_s3 }
  0x26   : > { %p2072_p9 = pnand %p2776_p8, %p2070_p7 }
  0x28   : > { %p2073_p10 = pneg %p2072_p9 }
  0x2a   : > { %p2078_p0 = pnand %p2076_p1, %p2073_p10 }
  0x2c   : > { %2081 = shalt.err (!%p2078_p0)
}
  0x2d   : > { %s2082_s26 = scalar_lea.vmem %s189_s9, 4608  ;;  %p2090_p11 = scmp.lt.s32.totalorder %s189_s9, %s189_s9 }
  0x2e   : > { %p2083_p4 = scmp.ne.s32.totalorder %s189_s9, %s2082_s26  ;;  %p2091_p6 = scmp.lt.s32.totalorder %s2082_s26, %s2082_s26 }
  0x30   : > { %p2085_p3 = pnand %p2083_p4, %p2776_p8  ;;  %p2092_p13 = por %p2091_p6, %p2090_p11 }
  0x32   : > { %p2086_p12 = pneg %p2085_p3 }
  0x34   : > { %p2093_p5 = pnand %p2092_p13, %p2086_p12 }
  0x36   : > { %2096 = shalt.err (!%p2093_p5)
}
  0x37   : > { %s2292_s8 = smov 64   ;;  %s2293_s13 = smov 4  }
  0x38   : > { %1968 = dma.hbm_to_vmem [thread:$0]  (!%p2402_p2), %s2797_s3, 4608, %s189_s9, [#allocation11], %s2292_s8, %s2292_s8, %s2293_s13  }
  0x39   : > { %s2436_s16 = smul.u32 320, %s2289_s21  ;;  %p2798_p4 = scmp.ne.s32.totalorder %s2791_s28, 0 }
  0x3a   : > { %p2799_p0 = scmp.lt.s32.totalorder %s2289_s21, 2  ;;  %s234_s23 = sand.u32 1, %s2289_s21  }
  0x3b   : > { %s2801_s1 = sld [smem:[#allocation21_spill]]  ;;  %s238_s9 = scalar_lea.vmem [#allocation7], %s2411_s12 }
  0x3c   : > { %p2442_p6 = pnand %p2799_p0, %p2798_p4  ;;  %s245_s8 = sshll.u32 %s238_s9, 4  ;;  %s2454_s8 = int_to_ptr.vmem [resolvable:$true] %s245_s8 }
  0x3d   : > { %s2456_s28 = scalar_lea.sflag [#allocation8], %s234_s23 }
  0x3e   : > { %s2800_s17 = scalar_select %p2442_p6, 1, 0 }
  0x3f   : > { %p2462_p11 = pneg %p2442_p6 }
  0x41   : > { %s2451_s11 = scalar_lea.hbm %s2801_s1, %s2436_s16  ;;  %s2102_s26 = scalar_lea.hbm %s2801_s1, 640 }
  0x42   : > { %s2097_s13 = scalar_lea.hbm %s2451_s11, 320  ;;  %p2103_p3 = scmp.lt.u32.totalorder %s2451_s11, %s2801_s1 }
  0x43   : > { %p2098_p5 = scmp.ne.s32.totalorder %s2451_s11, %s2097_s13  ;;  %p2104_p7 = scmp.lt.u32.totalorder %s2102_s26, %s2097_s13 }
  0x44   : > { %s2802_s14 = scalar_select %p2462_p11, 1, 0 }
  0x45   : > { %p2100_p12 = pnand %p2462_p11, %p2098_p5  ;;  %p2105_p9 = por %p2104_p7, %p2103_p3 }
  0x46   : > { %p2106_p10 = scmp.lt.u32.totalorder %s2097_s13, %s2451_s11 }
  0x47   : > { %p2101_p13 = pneg %p2100_p12 }
  0x48   : > { %p2107_p1 = por %p2106_p10, %p2105_p9 }
  0x4a   : > { %p2108_p4 = pnand %p2107_p1, %p2101_p13 }
  0x4c   : > { %2111 = shalt.err (!%p2108_p4)
}
  0x4d   : > { %s2112_s23 = scalar_lea.vmem %s2454_s8, 320  ;;  %s2294_s15 = smov [#allocation7]  }
  0x4e   : > { %p2113_p0 = scmp.ne.s32.totalorder %s2454_s8, %s2112_s23  ;;  %s2117_s25 = sshll.u32 %s2294_s15, 4  ;;  %s2118_s25 = int_to_ptr.vmem [resolvable:$false] %s2117_s25 }
  0x4f   : > { %s2119_s3 = scalar_lea.vmem %s2118_s25, 640  ;;  %p2120_p8 = scmp.lt.s32.totalorder %s2454_s8, %s2118_s25 }
  0x50   : > { %p2115_p5 = pnand %p2113_p0, %p2462_p11  ;;  %p2121_p2 = scmp.lt.s32.totalorder %s2119_s3, %s2112_s23 }
  0x52   : > { %p2116_p12 = pneg %p2115_p5  ;;  %p2122_p3 = por %p2121_p2, %p2120_p8 }
  0x54   : > { %p2123_p7 = pnand %p2122_p3, %p2116_p12 }
  0x56   : > { %2126 = shalt.err (!%p2123_p7)
}
  0x57   : > { %s2295_s13 = smov 32   ;;  %s2296_s26 = smov 2  }
  0x58   : > { %1978 = dma.hbm_to_vmem [thread:$0]  (!%p2442_p6), %s2451_s11, 320, %s2454_s8, %s2456_s28, %s2295_s13, %s2295_s13, %s2296_s26  }
  0x59   : > { %s2297_s9 = smov [#allocation12]   ;;  %s2127_s3 = scalar_lea.hbm %s2769_s4, 16 }
  0x5a   : > { %s202_s15 = sshll.u32 %s2297_s9, 4  ;;  %p2128_p2 = scmp.ne.s32.totalorder %s2769_s4, %s2127_s3  ;;  %s203_s15 = int_to_ptr.vmem [resolvable:$true] %s202_s15 }
  0x5b   : > { %p2803_p8 = scmp.ne.s32.totalorder %s2796_s10, 0  ;;  %p2134_p1 = scmp.lt.u32.totalorder %s2127_s3, %s2769_s4 }
  0x5d   : > { %p2804_p13 = pneg %p2803_p8 }
  0x5f   : > { %p2130_p9 = pnand %p2128_p2, %p2804_p13 }
  0x61   : > { %p2131_p10 = pneg %p2130_p9 }
  0x63   : > { %p2136_p4 = pnand %p2134_p1, %p2131_p10 }
  0x65   : > { %2139 = shalt.err (!%p2136_p4)
}
  0x66   : > { %s2140_s11 = scalar_lea.vmem %s203_s15, 16  ;;  %p2805_p5 = pmov %p2804_p13 }
  0x67   : > { %p2141_p0 = scmp.ne.s32.totalorder %s203_s15, %s2140_s11  ;;  %s2147_s8 = scalar_lea.vmem %s203_s15, 32 }
  0x68   : > { %p2148_p7 = scmp.lt.s32.totalorder %s203_s15, %s203_s15  ;;  %p2149_p6 = scmp.lt.s32.totalorder %s2147_s8, %s2140_s11 }
  0x69   : > { %p2143_p12 = pnand %p2141_p0, %p2805_p5 }
  0x6a   : > { %p2150_p11 = por %p2149_p6, %p2148_p7 }
  0x6b   : > { %p2144_p3 = pneg %p2143_p12 }
  0x6d   : > { %p2151_p2 = pnand %p2150_p11, %p2144_p3 }
  0x6f   : > { %2154 = shalt.err (!%p2151_p2)
}
  0x70   : > { %1971 = dma.hbm_to_vmem [thread:$0]  (!%p2803_p8), %s2769_s4, 16, %s203_s15, [#allocation11]  }
  0x71   : > { %s2513_s9 = scalar_lea.hbm %s2765_s0, %s2436_s16  ;;  %s217_s25 = scalar_lea.vmem [#allocation4], %s2411_s12 }
  0x72   : > { %s224_s23 = sshll.u32 %s217_s25, 4  ;;  %s2806_s10 = sand.u32 1, %s2285_s20   ;;  %s2516_s23 = int_to_ptr.vmem [resolvable:$true] %s224_s23 }
  0x73   : > { %s2520_s3 = scalar_lea.sflag [#allocation5], %s2806_s10  ;;  %s2155_s11 = scalar_lea.hbm %s2513_s9, 320 }
  0x74   : > { %p2156_p6 = scmp.ne.s32.totalorder %s2513_s9, %s2155_s11  ;;  %p2807_p11 = scmp.ne.s32.totalorder %s2802_s14, 0 }
  0x75   : > { %s2160_s1 = scalar_lea.hbm %s2765_s0, 640  ;;  %p2161_p9 = scmp.lt.u32.totalorder %s2513_s9, %s2765_s0 }
  0x76   : > { %p2158_p8 = pnand %p2156_p6, %p2807_p11  ;;  %p2162_p10 = scmp.lt.u32.totalorder %s2160_s1, %s2155_s11 }
  0x77   : > { %p2164_p4 = scmp.lt.u32.totalorder %s2155_s11, %s2513_s9 }
  0x78   : > { %p2159_p13 = pneg %p2158_p8  ;;  %p2163_p1 = por %p2162_p10, %p2161_p9 }
  0x7a   : > { %p2165_p0 = por %p2164_p4, %p2163_p1 }
  0x7c   : > { %p2166_p5 = pnand %p2165_p0, %p2159_p13 }
  0x7e   : > { %2169 = shalt.err (!%p2166_p5)
}
  0x7f   : > { %s2170_s27 = scalar_lea.vmem %s2516_s23, 320  ;;  %s2298_s25 = smov [#allocation4]  }
  0x80   : > { %p2171_p12 = scmp.ne.s32.totalorder %s2516_s23, %s2170_s27  ;;  %s2175_s10 = sshll.u32 %s2298_s25, 4  ;;  %s2176_s10 = int_to_ptr.vmem [resolvable:$false] %s2175_s10 }
  0x81   : > { %s2177_s15 = scalar_lea.vmem %s2176_s10, 640  ;;  %p2178_p2 = scmp.lt.s32.totalorder %s2516_s23, %s2176_s10 }
  0x82   : > { %p2173_p3 = pnand %p2171_p12, %p2807_p11  ;;  %p2179_p6 = scmp.lt.s32.totalorder %s2177_s15, %s2170_s27 }
  0x84   : > { %p2174_p7 = pneg %p2173_p3  ;;  %p2180_p8 = por %p2179_p6, %p2178_p2 }
  0x86   : > { %p2181_p9 = pnand %p2180_p8, %p2174_p7 }
  0x88   : > { %2184 = shalt.err (!%p2181_p9)
}
  0x89   : > { %p2808_p13 = scmp.ne.s32.totalorder %s2800_s17, 0  ;;  %s2551_s1 = scalar_lea.hbm %s2767_s2, %s2436_s16 }
  0x8a   : > { %s259_s21 = scalar_lea.vmem [#allocation9], %s2411_s12  ;;  %s2185_s27 = scalar_lea.hbm %s2551_s1, 320 }
  0x8b   : > { %1975 = dma.hbm_to_vmem [thread:$0]  (!%p2808_p13), %s2513_s9, 320, %s2516_s23, %s2520_s3, %s2295_s13, %s2295_s13, %s2296_s26  }
  0x8c   : > { %s266_s24 = sshll.u32 %s259_s21, 4  ;;  %p2186_p10 = scmp.ne.s32.totalorder %s2551_s1, %s2185_s27  ;;  %s2554_s24 = int_to_ptr.vmem [resolvable:$true] %s266_s24 }
  0x8d   : > { %s2190_s23 = scalar_lea.hbm %s2767_s2, 640  ;;  %p2191_p0 = scmp.lt.u32.totalorder %s2551_s1, %s2767_s2 }
  0x8e   : > { %p2188_p1 = pnand %p2186_p10, %p2807_p11  ;;  %p2192_p5 = scmp.lt.u32.totalorder %s2190_s23, %s2185_s27 }
  0x8f   : > { %p2194_p3 = scmp.lt.u32.totalorder %s2185_s27, %s2551_s1 }
  0x90   : > { %p2189_p4 = pneg %p2188_p1  ;;  %p2193_p12 = por %p2192_p5, %p2191_p0 }
  0x92   : > { %p2195_p7 = por %p2194_p3, %p2193_p12 }
  0x94   : > { %p2196_p2 = pnand %p2195_p7, %p2189_p4 }
  0x96   : > { %2199 = shalt.err (!%p2196_p2)
}
  0x97   : > { %s2200_s12 = scalar_lea.vmem %s2554_s24, 320  ;;  %s2299_s10 = smov [#allocation9]  }
  0x98   : > { %p2201_p6 = scmp.ne.s32.totalorder %s2554_s24, %s2200_s12  ;;  %s2205_s15 = sshll.u32 %s2299_s10, 4  ;;  %s2206_s15 = int_to_ptr.vmem [resolvable:$false] %s2205_s15 }
  0x99   : > { %s2207_s11 = scalar_lea.vmem %s2206_s15, 640  ;;  %p2208_p10 = scmp.lt.s32.totalorder %s2554_s24, %s2206_s15 }
  0x9a   : > { %p2203_p8 = pnand %p2201_p6, %p2807_p11  ;;  %p2209_p1 = scmp.lt.s32.totalorder %s2207_s11, %s2200_s12 }
  0x9c   : > { %p2204_p9 = pneg %p2203_p8  ;;  %p2210_p0 = por %p2209_p1, %p2208_p10 }
  0x9e   : > { %p2211_p5 = pnand %p2210_p0, %p2204_p9 }
  0xa0   : > { %2214 = shalt.err (!%p2211_p5)
}
  0xa1   : > { %1981 = dma.hbm_to_vmem [thread:$0]  (!%p2808_p13), %s2551_s1, 320, %s2554_s24, %s2456_s28, %s2295_s13, %s2295_s13, %s2296_s26  }
  0xa2   : > { %p2809_p11 = scmp.ne.s32.totalorder %s2795_s7, 0 }
  0xa3   : > { %s2584_s14 = sand.u32 (!%p2809_p11), 1, %s2281_s19   ;;  %p2810_p4 = scmp.ne.s32.totalorder (!%p2809_p11), %s2792_s29, 0 }
  0xa4   : > { %278 = sbr.rel (%p2809_p11) target bundleno = 528 (0x210), region = 40  ;;  %s281_s21 = scalar_lea.sflag (!%p2809_p11), [#allocation5], %s2584_s14 }
  0xa5   : > { %s1948_s8 = smul.u32 (!%p2809_p11), 20, %s2584_s14 }
  0xa7   : > { %s2588_s27 = scalar_lea.vmem (!%p2809_p11), [#allocation4], %s1948_s8 }
  0xab   : > { %2260 = dma.done.wait (%p2810_p4), %s281_s21, 320  }
  0xac   : > { %2262 = vsyncadd (%p2810_p4), %s281_s21, 4294966976  ;;  %s289_s17 = sand.u32 1, %s2355_s22   ;;  %s2595_s28 = scalar_lea.vmem [#allocation7], %s1948_s8 }
  0xad   : > { %s290_s7 = scalar_lea.sflag [#allocation8], %s289_s17 }
  0xae   : > { %2264 = dma.done.wait (%p2810_p4), %s290_s7, 640  }
  0xaf   : > { %2266 = vsyncadd (%p2810_p4), %s290_s7, 4294966656  ;;  %s2601_s13 = scalar_lea.vmem [#allocation9], %s1948_s8  ;;  %p2811_p13 = scmp.eq.s32.totalorder %s2355_s22, 0 }
  0xb1   : > { %2268 = dma.done.wait (%p2811_p13), [#allocation11], 4624   ;;  %p2812_p12 = pmov %p2811_p13 }
  0xb2   : > { %vm348_vm0 = vcmask 523264   ;;  %v2300_v0 = vmov 0.0   ;;  %v2033_v1 = vld [vmem:[#allocation10] sm:$0xff]   ;;  %v2034_v2 = vld [vmem:[#allocation10 + $0x8] sm:$0xff]   ;;  %v2035_v3 = vld [vmem:[#allocation10 + $0x10] sm:$0xff]   ;;  %vm359_vm1 = vcmask 519168  }
  0xb3   : > { %2270 = vsyncadd (%p2812_p12), [#allocation11], 4294962672  ;;  %349 = vst.msk [vmem:[#allocation2] sm:$0xff] %vm348_vm0, %v2300_v0  ;;  %1802 = vmatprep.subr.bf16.mxu1 %v2033_v1  ;;  %v357_v4 = vld [vmem:[%s2588_s27] sm:$0x3]  ;;  %v2040_v17 = vld [vmem:[#allocation10 + $0x80] sm:$0xff]  }
  0xb4   : > { %350 = vst.msk [vmem:[#allocation2 + $0x8] sm:$0xff] %vm348_vm0, %v2300_v0  ;;  %351 = vst.msk [vmem:[#allocation2 + $0x10] sm:$0xff] %vm348_vm0, %v2300_v0  ;;  %1803 = vmatpush3.bf16.msra.mxu1 %v2033_v1  ;;  %v1635_v5 = vld [vmem:[%s2588_s27 + $0x4] sm:$0x3]  ;;  %v358_v6 = vunpack.c.l.bf16 %v357_v4  ;;  %v2036_v8 = vld [vmem:[#allocation10 + $0x18] sm:$0xff]   ;;  %1850 = vmatprep.subr.bf16.mxu0 %v2040_v17  ;;  %s1634_s29 = sshll.u32 %s2584_s14, 4 }
  0xb5   : > { %352 = vst.msk [vmem:[#allocation2 + $0x18] sm:$0xff] %vm348_vm0, %v2300_v0  ;;  %1804 = vmatprep.subr.bf16.mxu1 %v2034_v2  ;;  %v363_v7 = vunpack.c.l.bf16 %v1635_v5  ;;  %v1636_v9 = vld [vmem:[%s2588_s27 + $0x8] sm:$0x3]  ;;  %v1637_v10 = vld [vmem:[%s2588_s27 + $0xc] sm:$0x3]  ;;  %1851 = vmatpush3.bf16.msra.mxu0 %v2040_v17  ;;  %v2046_v41 = vld [vmem:[#allocation10 + $0x98] sm:$0xff]  }
  0xb6   : > { %360 = vst.msk [vmem:[#allocation2] sm:$0xf] %vm359_vm1, %v358_v6  ;;  %v478_v11 = vld [vmem:[%s2595_s28] sm:$0x3]  ;;  %v1644_v12 = vld [vmem:[%s2595_s28 + $0x4] sm:$0x3]  ;;  %v367_v13 = vunpack.c.l.bf16 %v1636_v9  ;;  %v371_v14 = vunpack.c.l.bf16 %v1637_v10 }
  0xb7   : > { %364 = vst.msk [vmem:[#allocation2 + $0x8] sm:$0xf] %vm359_vm1, %v363_v7  ;;  %v1645_v15 = vld [vmem:[%s2595_s28 + $0x8] sm:$0x3]  ;;  %v1646_v16 = vld [vmem:[%s2595_s28 + $0xc] sm:$0x3]  ;;  %v479_v18 = vunpack.c.l.bf16 %v478_v11  ;;  %v483_v19 = vunpack.c.l.bf16 %v1644_v12 }
  0xb8   : > { %1805 = vmatpush3.bf16.msra.mxu1 %v2034_v2  ;;  %368 = vst.msk [vmem:[#allocation2 + $0x10] sm:$0xf] %vm359_vm1, %v367_v13  ;;  %372 = vst.msk [vmem:[#allocation2 + $0x18] sm:$0xf] %vm359_vm1, %v371_v14  ;;  %v2037_v20 = vld [vmem:[#allocation10 + $0x20] sm:$0xff]   ;;  %v2042_v21 = vld [vmem:[#allocation10 + $0x88] sm:$0xff]   ;;  %v487_v22 = vunpack.c.l.bf16 %v1645_v15  ;;  %v491_v23 = vunpack.c.l.bf16 %v1646_v16 }
  0xb9   : > { %1806 = vmatprep.subr.bf16.mxu1 %v2035_v3  ;;  %1852 = vmatprep.subr.bf16.mxu0 %v2042_v21  ;;  %v598_v27 = vld [vmem:[%s2601_s13] sm:$0x3]  ;;  %v1653_v30 = vld [vmem:[%s2601_s13 + $0x4] sm:$0x3]  ;;  %v1654_v33 = vld [vmem:[%s2601_s13 + $0x8] sm:$0x3] }
  0xba   : > { %v2038_v32 = vld [vmem:[#allocation10 + $0x28] sm:$0xff]   ;;  %1853 = vmatpush3.bf16.msra.mxu0 %v2042_v21  ;;  %v1655_v34 = vld [vmem:[%s2601_s13 + $0xc] sm:$0x3]  ;;  %v599_v35 = vunpack.c.l.bf16 %v598_v27  ;;  %v603_v36 = vunpack.c.l.bf16 %v1653_v30  ;;  %v2044_v37 = vld [vmem:[#allocation10 + $0x90] sm:$0xff]   ;;  %v607_v39 = vunpack.c.l.bf16 %v1654_v33  ;;  %s346_s26 = scalar_lea.vmem [#allocation13], %s1634_s29  ;;  %s1736_s24 = sshll.u32 %s2355_s22, 8 }
  0xbb   : > { %v2039_v38 = vld [vmem:[#allocation10 + $0x30] sm:$0xff]   ;;  %v611_v40 = vunpack.c.l.bf16 %v1655_v34  ;;  %1854 = vmatprep.subr.bf16.mxu0 %v2044_v37  ;;  %v2041_v44 = vld [vmem:[#allocation10 + $0x38] sm:$0xff]   ;;  %v1663_v47 = vld [vmem:[%s2588_s27 + $0x6] sm:$0x3]  ;;  %s1488_s1 = sshll.u32 %s346_s26, 4  ;;  %s2721_s23 = scalar_lea.hbm %s2770_s5, %s1736_s24  ;;  %s2716_s1 = int_to_ptr.vmem [resolvable:$true] %s1488_s1 }
  0xbc   : > { %1807 = vmatpush3.bf16.msra.mxu1 %v2035_v3  ;;  %v1662_v46 = vld [vmem:[%s2588_s27 + $0x2] sm:$0x3]  ;;  %v2640_v50 = vld [vmem:[#allocation10 + $0xa0] sm:$0xff]   ;;  %v1665_v52 = vld [vmem:[%s2588_s27 + $0xe] sm:$0x3]  ;;  %v724_v54 = vunpack.c.l.bf16 %v1663_v47  ;;  %s1475_s3 = scalar_lea.sflag [#allocation6], %s2584_s14 }
  0xbd   : > { %1808 = vmatprep.subr.bf16.mxu1 %v2036_v8  ;;  %v377_v24 = vld [vmem:[#allocation2] sm:$0xff]  ;;  %v1664_v51 = vld [vmem:[%s2588_s27 + $0xa] sm:$0x3]  ;;  %v720_v53 = vunpack.c.l.bf16 %v1662_v46  ;;  %v732_v57 = vunpack.c.l.bf16 %v1665_v52  ;;  %v1675_v4 = vld [vmem:[%s2595_s28 + $0xe] sm:$0x3]  ;;  %s2215_s22 = scalar_lea.vmem %s2716_s1, 256 }
  0xbe   : > { %v378_v25 = vld [vmem:[#allocation2 + $0x8] sm:$0xff]  ;;  %480 = vst.msk [vmem:[#allocation2] sm:$0xf] %vm359_vm1, %v479_v18  ;;  %1855 = vmatpush3.bf16.msra.mxu0 %v2044_v37  ;;  %v2043_v55 = vld [vmem:[#allocation10 + $0x40] sm:$0xff]   ;;  %v728_v56 = vunpack.c.l.bf16 %v1664_v51  ;;  %v1674_v1 = vld [vmem:[%s2595_s28 + $0xa] sm:$0x3]  ;;  %p2216_p3 = scmp.ne.s32.totalorder %s2716_s1, %s2215_s22 }
  0xbf   : > { %v381_v26 = vpack.c.bf16 %v378_v25, %v377_v24  ;;  %484 = vst.msk [vmem:[#allocation2 + $0x8] sm:$0xf] %vm359_vm1, %v483_v19  ;;  %v379_v28 = vld [vmem:[#allocation2 + $0x10] sm:$0xff]  ;;  %v380_v29 = vld [vmem:[#allocation2 + $0x18] sm:$0xff]  ;;  %1856 = vmatprep.subr.bf16.mxu0 %v2046_v41  ;;  %v1673_v61 = vld [vmem:[%s2595_s28 + $0x6] sm:$0x3]  ;;  %v849_v7 = vunpack.c.l.bf16 %v1674_v1 }
  0xc0   : > { %1809 = vmatpush3.bf16.msra.mxu1 %v2036_v8  ;;  %v382_v31 = vpack.c.bf16 %v380_v29, %v379_v28  ;;  %488 = vst.msk [vmem:[#allocation2 + $0x10] sm:$0xf] %vm359_vm1, %v487_v22  ;;  %492 = vst.msk [vmem:[#allocation2 + $0x18] sm:$0xf] %vm359_vm1, %v491_v23  ;;  %v1672_v60 = vld [vmem:[%s2595_s28 + $0x2] sm:$0x3]  ;;  %v845_v6 = vunpack.c.l.bf16 %v1673_v61  ;;  %v853_v8 = vunpack.c.l.bf16 %v1675_v4 }
  0xc1   : > { %1814 = vmatprep.subr.bf16.mxu1 %v2037_v20  ;;  %1810 = vmatprep.mubr.msk.bf16.mxu1 %vm348_vm0, %v381_v26  ;;  %v2045_v3 = vld [vmem:[#allocation10 + $0x48] sm:$0xff]   ;;  %v841_v5 = vunpack.c.l.bf16 %v1672_v60  ;;  %v2047_v9 = vld [vmem:[#allocation10 + $0x50] sm:$0xff]   ;;  %v2049_v16 = vld [vmem:[#allocation10 + $0x58] sm:$0xff]   ;;  %p2813_p7 = scmp.ne.s32.totalorder %s2793_s30, 0  ;;  %s2301_s16 = smov [#allocation13]  }
  0xc2   : > { %1857 = vmatpush3.bf16.msra.mxu0 %v2046_v41  ;;  %v1682_v12 = vld [vmem:[%s2601_s13 + $0x2] sm:$0x3]  ;;  %v1683_v13 = vld [vmem:[%s2601_s13 + $0x6] sm:$0x3]  ;;  %v1684_v17 = vld [vmem:[%s2601_s13 + $0xa] sm:$0x3] }
  0xc3   : > { %1811 = vmatmul.mubr.msk.bf16.vlgmr.msra.gmra.mrb[0].mxu1 %vm348_vm0, %v382_v31  ;;  %1862 = vmatprep.subr.bf16.mxu0 %v2640_v50  ;;  %v1685_v18 = vld [vmem:[%s2601_s13 + $0xe] sm:$0x3]  ;;  %v962_v19 = vunpack.c.l.bf16 %v1682_v12  ;;  %v970_v21 = vunpack.c.l.bf16 %v1684_v17  ;;  %v1692_v26 = vld [vmem:[%s2588_s27 + $0x4] sm:$0x3]  ;;  %v1693_v31 = vld [vmem:[%s2588_s27 + $0x8] sm:$0x3]  ;;  %p2217_p2 = pnand %p2216_p3, %p2813_p7 }
  0xc4   : > { %1815 = vmatpush3.bf16.msra.mxu1 %v2037_v20  ;;  %v966_v20 = vunpack.c.l.bf16 %v1683_v13  ;;  %v974_v22 = vunpack.c.l.bf16 %v1685_v18  ;;  %v2051_v23 = vld [vmem:[#allocation10 + $0x60] sm:$0xff]   ;;  %v2050_v28 = vld [vmem:[#allocation10 + $0xa8] sm:$0xff]   ;;  %v2055_v41 = vld [vmem:[#allocation10 + $0x70] sm:$0xff]   ;;  %s2219_s12 = sshll.u32 %s2301_s16, 4  ;;  %s2220_s12 = int_to_ptr.vmem [resolvable:$false] %s2219_s12 }
  0xc5   : > { %1816 = vmatprep.subr.bf16.mxu1 %v2038_v32  ;;  %v497_v42 = vld [vmem:[#allocation2] sm:$0xff]  ;;  %v2054_v51 = vld [vmem:[#allocation10 + $0xb8] sm:$0xff]   ;;  %v1713_v4 = vld [vmem:[%s2601_s13 + $0x8] sm:$0x3]  ;;  %p2218_p6 = pneg %p2217_p2  ;;  %s2221_s10 = scalar_lea.vmem %s2220_s12, 512 }
  0xc6   : > { %v498_v43 = vld [vmem:[#allocation2 + $0x8] sm:$0xff]  ;;  %600 = vst.msk [vmem:[#allocation2] sm:$0xf] %vm359_vm1, %v599_v35  ;;  %v2053_v30 = vld [vmem:[#allocation10 + $0x68] sm:$0xff]   ;;  %v2057_v52 = vld [vmem:[#allocation10 + $0x78] sm:$0xff]   ;;  %p2222_p8 = scmp.lt.s32.totalorder %s2716_s1, %s2220_s12  ;;  %p2223_p9 = scmp.lt.s32.totalorder %s2221_s10, %s2215_s22 }
  0xc7   : > { %v501_v45 = vpack.c.bf16 %v498_v43, %v497_v42  ;;  %604 = vst.msk [vmem:[#allocation2 + $0x8] sm:$0xf] %vm359_vm1, %v603_v36  ;;  %v499_v48 = vld [vmem:[#allocation2 + $0x10] sm:$0xff]  ;;  %v500_v49 = vld [vmem:[#allocation2 + $0x18] sm:$0xff]  ;;  %v1694_v35 = vld [vmem:[%s2588_s27 + $0xc] sm:$0x3] }
  0xc8   : > { %1817 = vmatpush3.bf16.msra.mxu1 %v2038_v32  ;;  %608 = vst.msk [vmem:[#allocation2 + $0x10] sm:$0xf] %vm359_vm1, %v607_v39  ;;  %612 = vst.msk [vmem:[#allocation2 + $0x18] sm:$0xf] %vm359_vm1, %v611_v40  ;;  %v502_v62 = vpack.c.bf16 %v500_v49, %v499_v48  ;;  %v1695_v36 = vld [vmem:[%s2588_s27 + $0x10] sm:$0x3]  ;;  %v1085_v39 = vunpack.c.l.bf16 %v1693_v31  ;;  %v1088_v42 = vunpack.c.l.bf16 %v1694_v35  ;;  %p2224_p10 = por %p2223_p9, %p2222_p8 }
  0xc9   : > { %1818 = vmatprep.subr.bf16.mxu1 %v2039_v38  ;;  %1822 = vmatprep.mubr.msk.bf16.mxu1 %vm348_vm0, %v501_v45  ;;  %v2052_v40 = vld [vmem:[#allocation10 + $0xb0] sm:$0xff]   ;;  %v1092_v43 = vunpack.c.l.bf16 %v1695_v36  ;;  %v2060_v17 = vld [vmem:[#allocation10 + $0xd8] sm:$0xff]   ;;  %v2061_v18 = vld [vmem:[#allocation10 + $0xe0] sm:$0xff]  }
  0xca   : > { %v1702_v47 = vld [vmem:[%s2595_s28 + $0x4] sm:$0x3]  ;;  %v2068_v31 = vld [vmem:[#allocation10 + $0x118] sm:$0xff]   ;;  %p2225_p1 = pnand %p2224_p10, %p2218_p6 }
  0xcc   : > { %1819 = vmatpush3.bf16.msra.mxu1 %v2039_v38  ;;  %v1082_v38 = vunpack.c.l.bf16 %v1692_v26 }
  0xcd   : > { %1820 = vmatprep.subr.bf16.mxu1 %v2041_v44  ;;  %v617_v58 = vld [vmem:[#allocation2] sm:$0xff] }
  0xce   : > { %v618_v59 = vld [vmem:[#allocation2 + $0x8] sm:$0xff]  ;;  %721 = vst.msk [vmem:[#allocation2] sm:$0xf] %vm359_vm1, %v720_v53 }
  0xcf   : > { %725 = vst.msk [vmem:[#allocation2 + $0x8] sm:$0xf] %vm359_vm1, %v724_v54  ;;  %v2649_v63 = vld [vmem:[#allocation2 + $0x10] sm:$0xff]  ;;  %v620_v0 = vld [vmem:[#allocation2 + $0x18] sm:$0xff]  ;;  %v621_v2 = vpack.c.bf16 %v618_v59, %v617_v58 }
  0xd0   : > { %1821 = vmatpush3.bf16.msra.mxu1 %v2041_v44  ;;  %729 = vst.msk [vmem:[#allocation2 + $0x10] sm:$0xf] %vm359_vm1, %v728_v56  ;;  %733 = vst.msk [vmem:[#allocation2 + $0x18] sm:$0xf] %vm359_vm1, %v732_v57  ;;  %v622_v29 = vpack.c.bf16 %v620_v0, %v2649_v63  ;;  %v1704_v53 = vld [vmem:[%s2595_s28 + $0xc] sm:$0x3] }
  0xd1   : > { %1826 = vmatprep.subr.bf16.mxu1 %v2043_v55  ;;  %v1705_v54 = vld [vmem:[%s2595_s28 + $0x10] sm:$0x3]  ;;  %v1206_v58 = vunpack.c.l.bf16 %v1704_v53  ;;  %v1712_v0 = vld [vmem:[%s2601_s13 + $0x4] sm:$0x3] }
  0xd2   : > { %v2056_v57 = vld [vmem:[#allocation10 + $0xc0] sm:$0xff]   ;;  %v1210_v59 = vunpack.c.l.bf16 %v1705_v54 }
  0xd3   : > { %1823 = vmatmul.mubr.msk.bf16.vlgmr.msra.gmra.mrb[0].mxu1 %vm348_vm0, %v502_v62 }
  0xd4   : > { %1827 = vmatpush3.bf16.msra.mxu1 %v2043_v55  ;;  %1834 = vmatprep.mubr.msk.bf16.mxu1 %vm348_vm0, %v621_v2  ;;  %v1200_v55 = vunpack.c.l.bf16 %v1702_v47 }
  0xd5   : > { %1828 = vmatprep.subr.bf16.mxu1 %v2045_v3  ;;  %v738_v10 = vld [vmem:[#allocation2] sm:$0xff] }
  0xd6   : > { %v739_v11 = vld [vmem:[#allocation2 + $0x8] sm:$0xff]  ;;  %842 = vst.msk [vmem:[#allocation2] sm:$0xf] %vm359_vm1, %v841_v5  ;;  %v2058_v5 = vld [vmem:[#allocation10 + $0xc8] sm:$0xff]  }
  0xd7   : > { %846 = vst.msk [vmem:[#allocation2 + $0x8] sm:$0xf] %vm359_vm1, %v845_v6  ;;  %v2661_v14 = vld [vmem:[#allocation2 + $0x10] sm:$0xff]  ;;  %v2663_v15 = vld [vmem:[#allocation2 + $0x18] sm:$0xff]  ;;  %v742_v37 = vpack.c.bf16 %v739_v11, %v738_v10  ;;  %v2059_v10 = vld [vmem:[#allocation10 + $0xd0] sm:$0xff]  }
  0xd8   : > { %1829 = vmatpush3.bf16.msra.mxu1 %v2045_v3  ;;  %850 = vst.msk [vmem:[#allocation2 + $0x10] sm:$0xf] %vm359_vm1, %v849_v7  ;;  %854 = vst.msk [vmem:[#allocation2 + $0x18] sm:$0xf] %vm359_vm1, %v853_v8  ;;  %v743_v63 = vpack.c.bf16 %v2663_v15, %v2661_v14  ;;  %v1714_v6 = vld [vmem:[%s2601_s13 + $0xc] sm:$0x3]  ;;  %v1318_v8 = vunpack.c.l.bf16 %v1712_v0 }
  0xd9   : > { %1830 = vmatprep.subr.bf16.mxu1 %v2047_v9  ;;  %v1715_v7 = vld [vmem:[%s2601_s13 + $0x10] sm:$0x3]  ;;  %v1324_v11 = vunpack.c.l.bf16 %v1714_v6 }
  0xda   : > { %v1328_v12 = vunpack.c.l.bf16 %v1715_v7 }
  0xdc   : > { %1831 = vmatpush3.bf16.msra.mxu1 %v2047_v9  ;;  %v1321_v9 = vunpack.c.l.bf16 %v1713_v4 }
  0xdd   : > { %1832 = vmatprep.subr.bf16.mxu1 %v2049_v16  ;;  %v859_v24 = vld [vmem:[#allocation2] sm:$0xff] }
  0xde   : > { %v860_v25 = vld [vmem:[#allocation2 + $0x8] sm:$0xff]  ;;  %963 = vst.msk [vmem:[#allocation2] sm:$0xf] %vm359_vm1, %v962_v19 }
  0xdf   : > { %v863_v27 = vpack.c.bf16 %v860_v25, %v859_v24  ;;  %967 = vst.msk [vmem:[#allocation2 + $0x8] sm:$0xf] %vm359_vm1, %v966_v20  ;;  %v861_v32 = vld [vmem:[#allocation2 + $0x10] sm:$0xff]  ;;  %v862_v33 = vld [vmem:[#allocation2 + $0x18] sm:$0xff] }
  0xe0   : > { %1833 = vmatpush3.bf16.msra.mxu1 %v2049_v16  ;;  %v864_v34 = vpack.c.bf16 %v862_v33, %v861_v32  ;;  %971 = vst.msk [vmem:[#allocation2 + $0x10] sm:$0xf] %vm359_vm1, %v970_v21  ;;  %975 = vst.msk [vmem:[#allocation2 + $0x18] sm:$0xf] %vm359_vm1, %v974_v22  ;;  %v2062_v21 = vld [vmem:[#allocation10 + $0xe8] sm:$0xff]   ;;  %v2063_v22 = vld [vmem:[#allocation10 + $0xf0] sm:$0xff]  }
  0xe1   : > { %1858 = vmatprep.mubr.msk.bf16.mxu0 %vm348_vm0, %v863_v27  ;;  %1838 = vmatprep.subr.bf16.mxu1 %v2051_v23  ;;  %v2065_v24 = vld [vmem:[#allocation10 + $0x100] sm:$0xff]  }
  0xe2   : > { %1859 = vmatmul.mubr.msk.bf16.vlgmr.msra.gmra.mrb[0].mxu0 %vm348_vm0, %v864_v34 }
  0xe3   : > { %1835 = vmatmul.mubr.msk.bf16.vlgmr.msra.gmra.mrb[0].mxu1 %vm348_vm0, %v622_v29  ;;  %1863 = vmatpush3.bf16.msra.mxu0 %v2640_v50  ;;  %v1703_v50 = vld [vmem:[%s2595_s28 + $0x8] sm:$0x3] }
  0xe4   : > { %1839 = vmatpush3.bf16.msra.mxu1 %v2051_v23  ;;  %1864 = vmatprep.subr.bf16.mxu0 %v2050_v28  ;;  %v1203_v56 = vunpack.c.l.bf16 %v1703_v50  ;;  %v2064_v23 = vld [vmem:[#allocation10 + $0xf8] sm:$0xff]   ;;  %v2066_v29 = vld [vmem:[#allocation10 + $0x108] sm:$0xff]  }
  0xe5   : > { %1840 = vmatprep.subr.bf16.mxu1 %v2053_v30  ;;  %v980_v44 = vld [vmem:[#allocation2] sm:$0xff]  ;;  %1846 = vmatprep.mubr.msk.bf16.mxu1 %vm348_vm0, %v742_v37 }
  0xe6   : > { %v981_v45 = vld [vmem:[#allocation2 + $0x8] sm:$0xff]  ;;  %1083 = vst.msk [vmem:[#allocation2] sm:$0xf] %vm359_vm1, %v1082_v38 }
  0xe7   : > { %v984_v46 = vpack.c.bf16 %v981_v45, %v980_v44  ;;  %1086 = vst.msk [vmem:[#allocation2 + $0x8] sm:$0xf] %vm359_vm1, %v1085_v39  ;;  %1865 = vmatpush3.bf16.msra.mxu0 %v2050_v28  ;;  %v982_v48 = vld [vmem:[#allocation2 + $0x10] sm:$0xff]  ;;  %v983_v49 = vld [vmem:[#allocation2 + $0x18] sm:$0xff] }
  0xe8   : > { %1841 = vmatpush3.bf16.msra.mxu1 %v2053_v30  ;;  %1866 = vmatprep.subr.bf16.mxu0 %v2052_v40  ;;  %1089 = vst.msk [vmem:[#allocation2 + $0x10] sm:$0xf] %vm359_vm1, %v1088_v42  ;;  %1093 = vst.msk [vmem:[#allocation2 + $0x18] sm:$0xf] %vm359_vm1, %v1092_v43  ;;  %v985_v62 = vpack.c.bf16 %v983_v49, %v982_v48  ;;  %v2067_v30 = vld [vmem:[#allocation10 + $0x110] sm:$0xff]  }
  0xe9   : > { %1842 = vmatprep.subr.bf16.mxu1 %v2055_v41  ;;  %1870 = vmatprep.mubr.msk.bf16.mxu0 %vm348_vm0, %v984_v46 }
  0xeb   : > { %1867 = vmatpush3.bf16.msra.mxu0 %v2052_v40  ;;  %v1722_v40 = vld [vmem:[#allocation12] ss:$0 sm:$0xff] }
  0xec   : > { %1843 = vmatpush3.bf16.msra.mxu1 %v2055_v41  ;;  %1868 = vmatprep.subr.bf16.mxu0 %v2054_v51 }
  0xed   : > { %1844 = vmatprep.subr.bf16.mxu1 %v2057_v52  ;;  %v1098_v60 = vld [vmem:[#allocation2] sm:$0xff] }
  0xee   : > { %v1099_v61 = vld [vmem:[#allocation2 + $0x8] sm:$0xff]  ;;  %1201 = vst.msk [vmem:[#allocation2] sm:$0xf] %vm359_vm1, %v1200_v55 }
  0xef   : > { %1204 = vst.msk [vmem:[#allocation2 + $0x8] sm:$0xf] %vm359_vm1, %v1203_v56  ;;  %1869 = vmatpush3.bf16.msra.mxu0 %v2054_v51  ;;  %v1102_v1 = vpack.c.bf16 %v1099_v61, %v1098_v60  ;;  %v1100_v2 = vld [vmem:[#allocation2 + $0x10] sm:$0xff]  ;;  %v1101_v3 = vld [vmem:[#allocation2 + $0x18] sm:$0xff] }
  0xf0   : > { %1845 = vmatpush3.bf16.msra.mxu1 %v2057_v52  ;;  %1874 = vmatprep.subr.bf16.mxu0 %v2056_v57  ;;  %1207 = vst.msk [vmem:[#allocation2 + $0x10] sm:$0xf] %vm359_vm1, %v1206_v58  ;;  %1211 = vst.msk [vmem:[#allocation2 + $0x18] sm:$0xf] %vm359_vm1, %v1210_v59  ;;  %v1103_v19 = vpack.c.bf16 %v1101_v3, %v1100_v2 }
  0xf2   : > { %1871 = vmatmul.mubr.msk.bf16.vlgmr.msra.gmra.mrb[0].mxu0 %vm348_vm0, %v985_v62 }
  0xf3   : > { %1847 = vmatmul.mubr.msk.bf16.vlgmr.msra.gmra.mrb[0].mxu1 %vm348_vm0, %v743_v63  ;;  %1875 = vmatpush3.bf16.msra.mxu0 %v2056_v57 }
  0xf4   : > { %1882 = vmatprep.mubr.msk.bf16.mxu0 %vm348_vm0, %v1102_v1  ;;  %1876 = vmatprep.subr.bf16.mxu0 %v2058_v5 }
  0xf5   : > { %v1216_v13 = vld [vmem:[#allocation2] sm:$0xff] }
  0xf6   : > { %v1217_v14 = vld [vmem:[#allocation2 + $0x8] sm:$0xff]  ;;  %1319 = vst.msk [vmem:[#allocation2] sm:$0xf] %vm359_vm1, %v1318_v8 }
  0xf7   : > { %1322 = vst.msk [vmem:[#allocation2 + $0x8] sm:$0xf] %vm359_vm1, %v1321_v9  ;;  %1877 = vmatpush3.bf16.msra.mxu0 %v2058_v5  ;;  %v1218_v15 = vld [vmem:[#allocation2 + $0x10] sm:$0xff]  ;;  %v1219_v16 = vld [vmem:[#allocation2 + $0x18] sm:$0xff]  ;;  %v1220_v20 = vpack.c.bf16 %v1217_v14, %v1216_v13 }
  0xf8   : > { %1878 = vmatprep.subr.bf16.mxu0 %v2059_v10  ;;  %1325 = vst.msk [vmem:[#allocation2 + $0x10] sm:$0xf] %vm359_vm1, %v1324_v11  ;;  %1329 = vst.msk [vmem:[#allocation2 + $0x18] sm:$0xf] %vm359_vm1, %v1328_v12  ;;  %v1221_v27 = vpack.c.bf16 %v1219_v16, %v1218_v15 }
  0xfb   : > { %1879 = vmatpush3.bf16.msra.mxu0 %v2059_v10 }
  0xfc   : > { %1880 = vmatprep.subr.bf16.mxu0 %v2060_v17 }
  0xfd   : > { %v1334_v25 = vld [vmem:[#allocation2] sm:$0xff] }
  0xfe   : > { %v1335_v26 = vld [vmem:[#allocation2 + $0x8] sm:$0xff] }
  0xff   : > { %1881 = vmatpush3.bf16.msra.mxu0 %v2060_v17  ;;  %v1338_v28 = vpack.c.bf16 %v1335_v26, %v1334_v25  ;;  %v1336_v32 = vld [vmem:[#allocation2 + $0x10] sm:$0xff]  ;;  %v1337_v33 = vld [vmem:[#allocation2 + $0x18] sm:$0xff] }
 0x100   : > { %1886 = vmatprep.subr.bf16.mxu0 %v2061_v18  ;;  %v1339_v34 = vpack.c.bf16 %v1337_v33, %v1336_v32 }
 0x102   : > { %1883 = vmatmul.mubr.msk.bf16.vlgmr.msra.gmra.mrb[0].mxu0 %vm348_vm0, %v1103_v19 }
 0x103   : > { %1887 = vmatpush3.bf16.msra.mxu0 %v2061_v18  ;;  %1894 = vmatprep.mubr.msk.bf16.mxu0 %vm348_vm0, %v1220_v20 }
 0x104   : > { %1888 = vmatprep.subr.bf16.mxu0 %v2062_v21 }
 0x107   : > { %1889 = vmatpush3.bf16.msra.mxu0 %v2062_v21 }
 0x108   : > { %1890 = vmatprep.subr.bf16.mxu0 %v2063_v22 }
 0x10b   : > { %1891 = vmatpush3.bf16.msra.mxu0 %v2063_v22 }
 0x10c   : > { %1892 = vmatprep.subr.bf16.mxu0 %v2064_v23 }
 0x10f   : > { %1893 = vmatpush3.bf16.msra.mxu0 %v2064_v23 }
 0x110   : > { %1898 = vmatprep.subr.bf16.mxu0 %v2065_v24 }
 0x112   : > { %1895 = vmatmul.mubr.msk.bf16.vlgmr.msra.gmra.mrb[0].mxu0 %vm348_vm0, %v1221_v27 }
 0x113   : > { %1899 = vmatpush3.bf16.msra.mxu0 %v2065_v24  ;;  %1906 = vmatprep.mubr.msk.bf16.mxu0 %vm348_vm0, %v1338_v28 }
 0x114   : > { %1900 = vmatprep.subr.bf16.mxu0 %v2066_v29 }
 0x117   : > { %1901 = vmatpush3.bf16.msra.mxu0 %v2066_v29 }
 0x118   : > { %1902 = vmatprep.subr.bf16.mxu0 %v2067_v30 }
 0x11b   : > { %1903 = vmatpush3.bf16.msra.mxu0 %v2067_v30 }
 0x11c   : > { %1904 = vmatprep.subr.bf16.mxu0 %v2068_v31 }
 0x11f   : > { %1905 = vmatpush3.bf16.msra.mxu0 %v2068_v31 }
 0x122   : > { %1907 = vmatmul.mubr.msk.bf16.vlgmr.msra.gmra.mrb[0].mxu0 %vm348_vm0, %v1339_v34 }
 0x1c6   : > { %v1848_v35 = vpop.f32.mrb[0].mxu1 }
 0x1c7   : > { %v816_v36 = vpop.f32.mrb[1].mxu1 }
 0x1c8   : > { %v1849_v37 = vpop.f32.mrb[2].mxu1 }
 0x1c9   : > { %v819_v38 = vpop.f32.mrb[3].mxu1 }
 0x1f5   : > { %v1908_v39 = vpop.f32.mrb[0].mxu0 }
 0x1f6   : > { %v1910_v41 = vadd.f32 %v1908_v39, %v1848_v35  ;;  %v1412_v42 = vpop.f32.mrb[1].mxu0 }
 0x1f7   : > { %v1911_v43 = vadd.f32 %v1412_v42, %v816_v36  ;;  %v1909_v44 = vpop.f32.mrb[2].mxu0 }
 0x1f8   : > { %v1448_v45 = vadd.f32 %v1910_v41, %v1722_v40  ;;  %v1912_v46 = vadd.f32 %v1909_v44, %v1849_v37  ;;  %v1415_v47 = vpop.f32.mrb[3].mxu0 }
 0x1f9   : > { %v1446_v48 = vadd.f32 %v1911_v43, %v1722_v40  ;;  %v1913_v49 = vadd.f32 %v1415_v47, %v819_v38 }
 0x1fa   : > { %v1449_v50 = vadd.f32 %v1912_v46, %v1722_v40  ;;  %v1452_v52 = vmax.f32 %v1448_v45, 0.0 }
 0x1fb   : > { %v1447_v51 = vadd.f32 %v1913_v49, %v1722_v40  ;;  %v1450_v54 = vmax.f32 %v1446_v48, 0.0 }
 0x1fc   : > { %v1453_v53 = vmax.f32 %v1449_v50, 0.0 }
 0x1fd   : > { %v1451_v55 = vmax.f32 %v1447_v51, 0.0 }
 0x1fe   : > { %v1745_v56 = vpack.c.bf16 %v1453_v53, %v1452_v52 }
 0x1ff   : > { %v1740_v57 = vpack.c.bf16 %v1451_v55, %v1450_v54 }
 0x200   : > { %1747 = vst [vmem:[%s346_s26 + $0x8] sm:$0xff] %v1745_v56  }
 0x201   : > { %1741 = vst [vmem:[%s346_s26] sm:$0xff] %v1740_v57  }
 0x202   : > { %2228 = shalt.err (!%p2225_p1)
}
 0x203   : > { %s2229_s15 = scalar_lea.hbm %s2721_s23, 256  ;;  %s2233_s21 = scalar_lea.hbm %s2770_s5, 512 }
 0x204   : > { %p2230_p0 = scmp.ne.s32.totalorder %s2721_s23, %s2229_s15  ;;  %p2234_p4 = scmp.lt.u32.totalorder %s2721_s23, %s2770_s5 }
 0x205   : > { %p2235_p13 = scmp.lt.u32.totalorder %s2233_s21, %s2229_s15  ;;  %p2237_p3 = scmp.lt.u32.totalorder %s2229_s15, %s2721_s23 }
 0x206   : > { %p2231_p5 = pnand %p2230_p0, %p2813_p7 }
 0x207   : > { %p2236_p12 = por %p2235_p13, %p2234_p4 }
 0x208   : > { %p2232_p11 = pneg %p2231_p5 }
 0x209   : > { %p2238_p2 = por %p2237_p3, %p2236_p12 }
 0x20b   : > { %p2239_p6 = pnand %p2238_p2, %p2232_p11 }
 0x20d   : > { %2242 = shalt.err (!%p2239_p6)
}
 0x20e   : > { %s2302_s7 = smov 64   ;;  %s2303_s28 = smov 4  }
 0x20f   : > { %1963 = dma.vmem_to_hbm [thread:$0]  (%p2813_p7), %s2716_s1, 256, %s2721_s23, %s1475_s3, %s2302_s7, %s2302_s7, %s2303_s28  }
 0x210 PF: > { %s2814_s13 = sld [smem:[#allocation18_spill]]  ;;  %s1503_s29 = sand.u32 1, %s2277_s18  }
 0x211   : > { %p2815_p8 = scmp.ne.s32.totalorder %s2794_s6, 0  ;;  %s1504_s26 = scalar_lea.sflag [#allocation6], %s1503_s29 }
 0x216   : > { %p2816_p9 = scmp.ge.s32.totalorder %s2814_s13, 2 }
 0x218   : > { %p1983_p10 = pnand %p2816_p9, %p2815_p8 }
 0x21a   : > { %2272 = dma.done.wait (!%p1983_p10), %s1504_s26, 256  }
 0x21b   : > { %2274 = vsyncadd (!%p1983_p10), %s1504_s26, 4294967040  ;;  %s2817_s21 = sld [smem:[#allocation19_spill]]  ;;  %s2818_s24 = sld [smem:[#allocation20_spill]] }
 0x21c   : > { %s2819_s18 = smov %s2281_s19  ;;  %s2820_s19 = smov %s2285_s20 }
 0x221   : > { %p22_p1 = scmp.ge.s32.totalorder %s2817_s21, 4   ;;  %s2821_s20 = smov %s2818_s24 }
 0x223   :  { %24 = sbr.rel (!%p22_p1) target bundleno = 11 (0xb), region = 141 }
 0x22a   :  { %1509 = vsyncpa [#allocation5], 1 }
 0x22b   :  { %1511 = vsyncpa [#allocation5 + $0x1], 1 }
 0x22c   :  { %1512 = vsyncpa [#allocation8], 1 }
 0x22d   :  { %1514 = vsyncpa [#allocation8 + $0x1], 1 }
 0x22e   :  { %1515 = vsyncpa [#allocation11], 1 }
 0x22f   :  { %1516 = vsyncpa [#allocation6], 1 }
 0x230   :  { %1518 = vsyncpa [#allocation6 + $0x1], 1 }

// kernel: encoder_forward.8
= control target key start
LH: loop header
LB: loop body
LE: loop exit
PB: predicated region body
PF: predicated region fallthrough
CT: control target
= control target key end

     0   :  { %s3170_s0 = inlined_call_operand.hbm [shape: bf16[2,6,2,128], index: 0, kind: input, shape index: {}]   ;;  %s3171_s1 = inlined_call_operand.hbm [shape: bf16[2,6,2,128], index: 1, kind: input, shape index: {}]   ;;  %s3172_s2 = inlined_call_operand.hbm [shape: bf16[2,6,2,128], index: 2, kind: input, shape index: {}]   ;;  %s3173_s3 = inlined_call_operand.hbm [shape: bf16[1152,256], index: 3, kind: input, shape index: {}]   ;;  %s3174_s4 = inlined_call_operand.hbm [shape: f32[1,256], index: 4, kind: input, shape index: {}]   ;;  %s3175_s5 = inlined_call_operand.hbm [shape: bf16[2,16,256], index: 5, kind: output, shape index: {}]  }
   0x1   :  { %3191 = sst [smem:[#allocation21_spill]] %s3171_s1 }
   0x2   :  { %3192 = sst [smem:[#allocation22_spill]] %s3173_s3 }
   0x3   :  { %10 = vsyncpa [#allocation5], 0 }
   0x4   :  { %12 = vsyncpa [#allocation5 + $0x1], 0 }
   0x5   :  { %13 = vsyncpa [#allocation8], 0 }
   0x6   :  { %15 = vsyncpa [#allocation8 + $0x1], 0 }
   0x7   :  { %16 = vsyncpa [#allocation11], 0 }
   0x8   :  { %17 = vsyncpa [#allocation6], 0 }
   0x9   :  { %19 = vsyncpa [#allocation6 + $0x1], 0  ;;  %s2780_s18 = smov 0   ;;  %s2782_s19 = smov 0  }
   0xa   :  { %s2784_s20 = smov 0   ;;  %s2786_s21 = smov 0  }
   0xb LB: > { %3193 = sst [smem:[#allocation18_spill]] %s2734_s21  ;;  %s2801_s22 = sadd.s32 4294967295, %s2734_s21   ;;  %s2734_s21 = sphi %s2786_s21, %s3222_s21   ;;  %s2730_s20 = sphi %s2784_s20, %s3226_s20   ;;  %s2726_s19 = sphi %s2782_s19, %s3225_s19   ;;  %s2722_s18 = sphi %s2780_s18, %s3224_s18  }
   0xc   : > { %s1993_s23 = sadd.s32 4294967294, %s2734_s21   ;;  %s2805_s24 = sadd.s32 1, %s2734_s21  }
   0xd   : > { %3194 = sst [smem:[#allocation19_spill]] %s2805_s24  ;;  %s32_s25 = sadd.s32 1, %s2730_s20 }
   0xe   : > { %s29_s26 = ssub.s32 %s2734_s21, %s2805_s24  ;;  %p39_p0 = scmp.ne.s32.totalorder %s2730_s20, %s2726_s19 }
   0xf   : > { %p30_p1 = scmp.eq.s32.totalorder %s29_s26, 0  ;;  %p40_p2 = scmp.eq.s32.totalorder %s2734_s21, 0 }
  0x10   : > { %p45_p3 = scmp.ne.s32.totalorder %s2726_s19, %s2722_s18  ;;  %p3176_p4 = scmp.eq.s32.totalorder %s2801_s22, 0 }
  0x11   : > { %s2817_s27 = scalar_select %p30_p1, %s2730_s20, %s32_s25  }
  0x12   : > { %p2819_p5 = por %p40_p2, %p39_p0  ;;  %p2825_p6 = por %p3176_p4, %p45_p3 }
  0x13   : > { %3195 = sst [smem:[#allocation20_spill]] %s2817_s27  ;;  %p163_p7 = scmp.eq.s32.totalorder %s2801_s22, 1 }
  0x14   : > { %s3196_s28 = scalar_select %p2819_p5, 1, 0 }
  0x15   : > { %s3197_s29 = scalar_select %p2825_p6, 1, 0 }
  0x16   : > { %p169_p8 = scmp.eq.s32.totalorder %s1993_s23, 1  ;;  %p1994_p9 = scmp.ge.s32.totalorder %s2734_s21, 1 }
  0x17   : > { %p176_p10 = scmp.lt.s32.totalorder %s2734_s21, 3  ;;  %p2832_p11 = por %p163_p7, %p39_p0 }
  0x18   : > { %p2836_p12 = por %p169_p8, %p45_p3  ;;  %s2736_s8 = smov [#allocation10]  }
  0x19   : > { %s3198_s30 = scalar_select %p2832_p11, 1, 0 }
  0x1a   : > { %s3199_s6 = scalar_select %p2836_p12, 1, 0 }
  0x1b   : > { %p2840_p13 = pnand %p1994_p9, %p176_p10  ;;  %s188_s9 = sshll.u32 %s2736_s8, 4  ;;  %s189_s9 = int_to_ptr.vmem [resolvable:$true] %s188_s9 }
  0x1c   : > { %s3180_s11 = sand.u32 1, %s2730_s20   ;;  %s3202_s3 = sld [smem:[#allocation22_spill]] }
  0x1d   : > { %s3200_s7 = scalar_select %p2840_p13, 1, 0 }
  0x1e   : > { %p2229_p1 = pneg %p2840_p13  ;;  %s2857_s12 = smul.u32 6, %s3180_s11 }
  0x20   : > { %p2848_p2 = pnand %p2229_p1, %p3176_p4 }
  0x22   : > { %s3201_s10 = scalar_select %p2848_p2, 1, 0 }
  0x23   : > { %s2514_s15 = scalar_lea.hbm %s3202_s3, 18432  ;;  %p3181_p8 = pneg %p2848_p2 }
  0x24   : > { %p2515_p7 = scmp.ne.s32.totalorder %s3202_s3, %s2514_s15  ;;  %p2521_p1 = scmp.lt.u32.totalorder %s2514_s15, %s3202_s3 }
  0x26   : > { %p2517_p9 = pnand %p3181_p8, %p2515_p7 }
  0x28   : > { %p2518_p10 = pneg %p2517_p9 }
  0x2a   : > { %p2523_p0 = pnand %p2521_p1, %p2518_p10 }
  0x2c   : > { %2526 = shalt.err (!%p2523_p0)
}
  0x2d   : > { %s2527_s26 = scalar_lea.vmem %s189_s9, 18432  ;;  %p2535_p11 = scmp.lt.s32.totalorder %s189_s9, %s189_s9 }
  0x2e   : > { %p2528_p4 = scmp.ne.s32.totalorder %s189_s9, %s2527_s26  ;;  %p2536_p6 = scmp.lt.s32.totalorder %s2527_s26, %s2527_s26 }
  0x30   : > { %p2530_p3 = pnand %p2528_p4, %p3181_p8  ;;  %p2537_p13 = por %p2536_p6, %p2535_p11 }
  0x32   : > { %p2531_p12 = pneg %p2530_p3 }
  0x34   : > { %p2538_p5 = pnand %p2537_p13, %p2531_p12 }
  0x36   : > { %2541 = shalt.err (!%p2538_p5)
}
  0x37   : > { %s2737_s8 = smov 128   ;;  %s2738_s13 = smov 8  }
  0x38   : > { %2232 = dma.hbm_to_vmem [thread:$0]  (!%p2848_p2), %s3202_s3, 18432, %s189_s9, [#allocation11], %s2737_s8, %s2737_s8, %s2738_s13  }
  0x39   : > { %s2882_s16 = smul.u32 96, %s2734_s21  ;;  %p3203_p4 = scmp.ne.s32.totalorder %s3196_s28, 0 }
  0x3a   : > { %p3204_p0 = scmp.lt.s32.totalorder %s2734_s21, 2  ;;  %s234_s23 = sand.u32 1, %s2734_s21  }
  0x3b   : > { %s3206_s1 = sld [smem:[#allocation21_spill]]  ;;  %s238_s9 = scalar_lea.vmem [#allocation7], %s2857_s12 }
  0x3c   : > { %p2888_p6 = pnand %p3204_p0, %p3203_p4  ;;  %s245_s8 = sshll.u32 %s238_s9, 4  ;;  %s2900_s8 = int_to_ptr.vmem [resolvable:$true] %s245_s8 }
  0x3d   : > { %s2902_s28 = scalar_lea.sflag [#allocation8], %s234_s23 }
  0x3e   : > { %s3205_s17 = scalar_select %p2888_p6, 1, 0 }
  0x3f   : > { %p2908_p11 = pneg %p2888_p6 }
  0x41   : > { %s2897_s11 = scalar_lea.hbm %s3206_s1, %s2882_s16  ;;  %s2547_s26 = scalar_lea.hbm %s3206_s1, 192 }
  0x42   : > { %s2542_s13 = scalar_lea.hbm %s2897_s11, 96  ;;  %p2548_p3 = scmp.lt.u32.totalorder %s2897_s11, %s3206_s1 }
  0x43   : > { %p2543_p5 = scmp.ne.s32.totalorder %s2897_s11, %s2542_s13  ;;  %p2549_p7 = scmp.lt.u32.totalorder %s2547_s26, %s2542_s13 }
  0x44   : > { %s3207_s14 = scalar_select %p2908_p11, 1, 0 }
  0x45   : > { %p2545_p12 = pnand %p2908_p11, %p2543_p5  ;;  %p2550_p9 = por %p2549_p7, %p2548_p3 }
  0x46   : > { %p2551_p10 = scmp.lt.u32.totalorder %s2542_s13, %s2897_s11 }
  0x47   : > { %p2546_p13 = pneg %p2545_p12 }
  0x48   : > { %p2552_p1 = por %p2551_p10, %p2550_p9 }
  0x4a   : > { %p2553_p4 = pnand %p2552_p1, %p2546_p13 }
  0x4c   : > { %2556 = shalt.err (!%p2553_p4)
}
  0x4d   : > { %s2557_s23 = scalar_lea.vmem %s2900_s8, 96  ;;  %s2739_s15 = smov [#allocation7]  }
  0x4e   : > { %p2558_p0 = scmp.ne.s32.totalorder %s2900_s8, %s2557_s23  ;;  %s2562_s25 = sshll.u32 %s2739_s15, 4  ;;  %s2563_s25 = int_to_ptr.vmem [resolvable:$false] %s2562_s25 }
  0x4f   : > { %s2564_s3 = scalar_lea.vmem %s2563_s25, 192  ;;  %p2565_p8 = scmp.lt.s32.totalorder %s2900_s8, %s2563_s25 }
  0x50   : > { %p2560_p5 = pnand %p2558_p0, %p2908_p11  ;;  %p2566_p2 = scmp.lt.s32.totalorder %s2564_s3, %s2557_s23 }
  0x52   : > { %p2561_p12 = pneg %p2560_p5  ;;  %p2567_p3 = por %p2566_p2, %p2565_p8 }
  0x54   : > { %p2568_p7 = pnand %p2567_p3, %p2561_p12 }
  0x56   : > { %2571 = shalt.err (!%p2568_p7)
}
  0x57   : > { %s2740_s13 = smov 16   ;;  %s2741_s26 = smov 1  }
  0x58   : > { %2242 = dma.hbm_to_vmem [thread:$0]  (!%p2888_p6), %s2897_s11, 96, %s2900_s8, %s2902_s28, %s2740_s13, %s2740_s13, %s2741_s26  }
  0x59   : > { %s2742_s9 = smov [#allocation12]   ;;  %s2572_s3 = scalar_lea.hbm %s3174_s4, 32 }
  0x5a   : > { %s202_s15 = sshll.u32 %s2742_s9, 4  ;;  %p2573_p2 = scmp.ne.s32.totalorder %s3174_s4, %s2572_s3  ;;  %s203_s15 = int_to_ptr.vmem [resolvable:$true] %s202_s15 }
  0x5b   : > { %p3208_p8 = scmp.ne.s32.totalorder %s3201_s10, 0  ;;  %p2579_p1 = scmp.lt.u32.totalorder %s2572_s3, %s3174_s4 }
  0x5d   : > { %p3209_p13 = pneg %p3208_p8 }
  0x5f   : > { %p2575_p9 = pnand %p2573_p2, %p3209_p13 }
  0x61   : > { %p2576_p10 = pneg %p2575_p9 }
  0x63   : > { %p2581_p4 = pnand %p2579_p1, %p2576_p10 }
  0x65   : > { %2584 = shalt.err (!%p2581_p4)
}
  0x66   : > { %s2585_s11 = scalar_lea.vmem %s203_s15, 32  ;;  %p3210_p5 = pmov %p3209_p13 }
  0x67   : > { %p2586_p0 = scmp.ne.s32.totalorder %s203_s15, %s2585_s11  ;;  %p2593_p7 = scmp.lt.s32.totalorder %s203_s15, %s203_s15 }
  0x68   : > { %p2594_p6 = scmp.lt.s32.totalorder %s2585_s11, %s2585_s11 }
  0x69   : > { %p2588_p12 = pnand %p2586_p0, %p3210_p5 }
  0x6a   : > { %p2595_p11 = por %p2594_p6, %p2593_p7 }
  0x6b   : > { %p2589_p3 = pneg %p2588_p12 }
  0x6d   : > { %p2596_p2 = pnand %p2595_p11, %p2589_p3 }
  0x6f   : > { %2599 = shalt.err (!%p2596_p2)
}
  0x70   : > { %2235 = dma.hbm_to_vmem [thread:$0]  (!%p3208_p8), %s3174_s4, 32, %s203_s15, [#allocation11]  }
  0x71   : > { %s2959_s8 = scalar_lea.hbm %s3170_s0, %s2882_s16  ;;  %s217_s9 = scalar_lea.vmem [#allocation4], %s2857_s12 }
  0x72   : > { %s224_s25 = sshll.u32 %s217_s9, 4  ;;  %s3211_s10 = sand.u32 1, %s2730_s20   ;;  %s2962_s25 = int_to_ptr.vmem [resolvable:$true] %s224_s25 }
  0x73   : > { %s2966_s23 = scalar_lea.sflag [#allocation5], %s3211_s10  ;;  %s2600_s3 = scalar_lea.hbm %s2959_s8, 96 }
  0x74   : > { %p2601_p6 = scmp.ne.s32.totalorder %s2959_s8, %s2600_s3  ;;  %p3212_p11 = scmp.ne.s32.totalorder %s3207_s14, 0 }
  0x75   : > { %s2605_s1 = scalar_lea.hbm %s3170_s0, 192  ;;  %p2606_p9 = scmp.lt.u32.totalorder %s2959_s8, %s3170_s0 }
  0x76   : > { %p2603_p8 = pnand %p2601_p6, %p3212_p11  ;;  %p2607_p10 = scmp.lt.u32.totalorder %s2605_s1, %s2600_s3 }
  0x77   : > { %p2609_p4 = scmp.lt.u32.totalorder %s2600_s3, %s2959_s8 }
  0x78   : > { %p2604_p13 = pneg %p2603_p8  ;;  %p2608_p1 = por %p2607_p10, %p2606_p9 }
  0x7a   : > { %p2610_p0 = por %p2609_p4, %p2608_p1 }
  0x7c   : > { %p2611_p5 = pnand %p2610_p0, %p2604_p13 }
  0x7e   : > { %2614 = shalt.err (!%p2611_p5)
}
  0x7f   : > { %s2615_s24 = scalar_lea.vmem %s2962_s25, 96  ;;  %s2743_s9 = smov [#allocation4]  }
  0x80   : > { %p2616_p12 = scmp.ne.s32.totalorder %s2962_s25, %s2615_s24  ;;  %s2620_s10 = sshll.u32 %s2743_s9, 4  ;;  %s2621_s10 = int_to_ptr.vmem [resolvable:$false] %s2620_s10 }
  0x81   : > { %s2622_s15 = scalar_lea.vmem %s2621_s10, 192  ;;  %p2623_p2 = scmp.lt.s32.totalorder %s2962_s25, %s2621_s10 }
  0x82   : > { %p2618_p3 = pnand %p2616_p12, %p3212_p11  ;;  %p2624_p6 = scmp.lt.s32.totalorder %s2622_s15, %s2615_s24 }
  0x84   : > { %p2619_p7 = pneg %p2618_p3  ;;  %p2625_p8 = por %p2624_p6, %p2623_p2 }
  0x86   : > { %p2626_p9 = pnand %p2625_p8, %p2619_p7 }
  0x88   : > { %2629 = shalt.err (!%p2626_p9)
}
  0x89   : > { %p3213_p13 = scmp.ne.s32.totalorder %s3205_s17, 0  ;;  %s2997_s1 = scalar_lea.hbm %s3172_s2, %s2882_s16 }
  0x8a   : > { %s259_s27 = scalar_lea.vmem [#allocation9], %s2857_s12  ;;  %s2630_s24 = scalar_lea.hbm %s2997_s1, 96 }
  0x8b   : > { %2239 = dma.hbm_to_vmem [thread:$0]  (!%p3213_p13), %s2959_s8, 96, %s2962_s25, %s2966_s23, %s2740_s13, %s2740_s13, %s2741_s26  }
  0x8c   : > { %s266_s21 = sshll.u32 %s259_s27, 4  ;;  %p2631_p10 = scmp.ne.s32.totalorder %s2997_s1, %s2630_s24  ;;  %s3000_s21 = int_to_ptr.vmem [resolvable:$true] %s266_s21 }
  0x8d   : > { %s2635_s25 = scalar_lea.hbm %s3172_s2, 192  ;;  %p2636_p0 = scmp.lt.u32.totalorder %s2997_s1, %s3172_s2 }
  0x8e   : > { %p2633_p1 = pnand %p2631_p10, %p3212_p11  ;;  %p2637_p5 = scmp.lt.u32.totalorder %s2635_s25, %s2630_s24 }
  0x8f   : > { %p2639_p3 = scmp.lt.u32.totalorder %s2630_s24, %s2997_s1 }
  0x90   : > { %p2634_p4 = pneg %p2633_p1  ;;  %p2638_p12 = por %p2637_p5, %p2636_p0 }
  0x92   : > { %p2640_p7 = por %p2639_p3, %p2638_p12 }
  0x94   : > { %p2641_p2 = pnand %p2640_p7, %p2634_p4 }
  0x96   : > { %2644 = shalt.err (!%p2641_p2)
}
  0x97   : > { %s2645_s12 = scalar_lea.vmem %s3000_s21, 96  ;;  %s2744_s10 = smov [#allocation9]  }
  0x98   : > { %p2646_p6 = scmp.ne.s32.totalorder %s3000_s21, %s2645_s12  ;;  %s2650_s15 = sshll.u32 %s2744_s10, 4  ;;  %s2651_s15 = int_to_ptr.vmem [resolvable:$false] %s2650_s15 }
  0x99   : > { %s2652_s3 = scalar_lea.vmem %s2651_s15, 192  ;;  %p2653_p10 = scmp.lt.s32.totalorder %s3000_s21, %s2651_s15 }
  0x9a   : > { %p2648_p8 = pnand %p2646_p6, %p3212_p11  ;;  %p2654_p1 = scmp.lt.s32.totalorder %s2652_s3, %s2645_s12 }
  0x9c   : > { %p2649_p9 = pneg %p2648_p8  ;;  %p2655_p0 = por %p2654_p1, %p2653_p10 }
  0x9e   : > { %p2656_p5 = pnand %p2655_p0, %p2649_p9 }
  0xa0   : > { %2659 = shalt.err (!%p2656_p5)
}
  0xa1   : > { %2245 = dma.hbm_to_vmem [thread:$0]  (!%p3213_p13), %s2997_s1, 96, %s3000_s21, %s2902_s28, %s2740_s13, %s2740_s13, %s2741_s26  }
  0xa2   : > { %p3214_p11 = scmp.ne.s32.totalorder %s3200_s7, 0 }
  0xa3   : > { %s3030_s14 = sand.u32 (!%p3214_p11), 1, %s2726_s19   ;;  %p3215_p4 = scmp.ne.s32.totalorder (!%p3214_p11), %s3197_s29, 0 }
  0xa4   : > { %278 = sbr.rel (%p3214_p11) target bundleno = 599 (0x257), region = 40  ;;  %s281_s27 = scalar_lea.sflag (!%p3214_p11), [#allocation5], %s3030_s14 }
  0xa5   : > { %s2212_s11 = smul.u32 (!%p3214_p11), 6, %s3030_s14 }
  0xa7   : > { %s3034_s24 = scalar_lea.vmem (!%p3214_p11), [#allocation4], %s2212_s11 }
  0xab   : > { %2705 = dma.done.wait (%p3215_p4), %s281_s27, 96  }
  0xac   : > { %2707 = vsyncadd (%p3215_p4), %s281_s27, 4294967200  ;;  %s289_s17 = sand.u32 1, %s2801_s22   ;;  %s3041_s28 = scalar_lea.vmem [#allocation7], %s2212_s11 }
  0xad   : > { %s290_s7 = scalar_lea.sflag [#allocation8], %s289_s17 }
  0xae   : > { %2709 = dma.done.wait (%p3215_p4), %s290_s7, 192  }
  0xaf   : > { %2711 = vsyncadd (%p3215_p4), %s290_s7, 4294967104  ;;  %s3047_s13 = scalar_lea.vmem [#allocation9], %s2212_s11  ;;  %p3216_p13 = scmp.eq.s32.totalorder %s2801_s22, 0 }
  0xb1   : > { %2713 = dma.done.wait (%p3216_p13), [#allocation11], 18464   ;;  %p3217_p12 = pmov %p3216_p13 }
  0xb2   : > { %v2745_v0 = vmov 0   ;;  %v2746_v1 = vmov 0.0   ;;  %v2298_v2 = vld [vmem:[#allocation10 + $0x4] ss:$8 sps:$4 sm:$0xff]   ;;  %v2300_v3 = vld [vmem:[#allocation10] ss:$8 sps:$4 sm:$0xff]  }
  0xb3   : > { %2715 = vsyncadd (%p3217_p12), [#allocation11], 4294948832  ;;  %496 = vmatprep.mubr.bf16.mxu1 %v2745_v0  ;;  %348 = vst [vmem:[#allocation2] sm:$0xff] %v2746_v1  ;;  %1142 = vmatprep.mubr.bf16.mxu0 %v2745_v0  ;;  %v2301_v4 = vld [vmem:[#allocation10 + $0x14] ss:$8 sps:$4 sm:$0xff]   ;;  %s2004_s29 = sshll.u32 %s3030_s14, 4 }
  0xb4   : > { %349 = vst [vmem:[#allocation2 + $0x8] sm:$0xff] %v2746_v1  ;;  %464 = vmatprep.subr.bf16.mxu1 %v2298_v2  ;;  %v2303_v5 = vld [vmem:[#allocation10 + $0x10] ss:$8 sps:$4 sm:$0xff]   ;;  %v2304_v6 = vld [vmem:[#allocation10 + $0x24] ss:$8 sps:$4 sm:$0xff]   ;;  %s346_s26 = scalar_lea.vmem [#allocation13], %s2004_s29 }
  0xb5   : > { %465 = vmatpush1.bf16.msra.mxu1 %v2300_v3  ;;  %v2307_v7 = vld [vmem:[#allocation10 + $0x204] ss:$8 sps:$4 sm:$0xff]   ;;  %v2309_v8 = vld [vmem:[#allocation10 + $0x200] ss:$8 sps:$4 sm:$0xff]   ;;  %v2313_v10 = vld [vmem:[#allocation10 + $0x214] ss:$8 sps:$4 sm:$0xff]  }
  0xb6   : > { %466 = vmatprep.subr.bf16.mxu1 %v2301_v4  ;;  %v2306_v9 = vld [vmem:[#allocation10 + $0x20] ss:$8 sps:$4 sm:$0xff]   ;;  %1110 = vmatprep.subr.bf16.mxu0 %v2307_v7  ;;  %v2315_v11 = vld [vmem:[#allocation10 + $0x210] ss:$8 sps:$4 sm:$0xff]   ;;  %v2310_v12 = vld [vmem:[#allocation10 + $0x34] ss:$8 sps:$4 sm:$0xff]  }
  0xb7   : > { %1111 = vmatpush1.bf16.msra.mxu0 %v2309_v8  ;;  %v2312_v13 = vld [vmem:[#allocation10 + $0x30] ss:$8 sps:$4 sm:$0xff]   ;;  %v2319_v14 = vld [vmem:[#allocation10 + $0x224] ss:$8 sps:$4 sm:$0xff]   ;;  %v2321_v16 = vld [vmem:[#allocation10 + $0x220] ss:$8 sps:$4 sm:$0xff]  }
  0xb8   : > { %1112 = vmatprep.subr.bf16.mxu0 %v2313_v10  ;;  %v2316_v15 = vld [vmem:[#allocation10 + $0x44] ss:$8 sps:$4 sm:$0xff]   ;;  %v2325_v17 = vld [vmem:[#allocation10 + $0x234] ss:$8 sps:$4 sm:$0xff]   ;;  %v2318_v18 = vld [vmem:[#allocation10 + $0x40] ss:$8 sps:$4 sm:$0xff]  }
  0xb9   : > { %467 = vmatpush1.bf16.msra.mxu1 %v2303_v5  ;;  %v2322_v19 = vld [vmem:[#allocation10 + $0x54] ss:$8 sps:$4 sm:$0xff]   ;;  %v2327_v20 = vld [vmem:[#allocation10 + $0x230] ss:$8 sps:$4 sm:$0xff]   ;;  %v2331_v21 = vld [vmem:[#allocation10 + $0x244] ss:$8 sps:$4 sm:$0xff]  }
  0xba   : > { %468 = vmatprep.subr.bf16.mxu1 %v2304_v6  ;;  %v2324_v22 = vld [vmem:[#allocation10 + $0x50] ss:$8 sps:$4 sm:$0xff]   ;;  %v2328_v23 = vld [vmem:[#allocation10 + $0x64] ss:$8 sps:$4 sm:$0xff]   ;;  %v2333_v24 = vld [vmem:[#allocation10 + $0x240] ss:$8 sps:$4 sm:$0xff]  }
  0xbb   : > { %1113 = vmatpush1.bf16.msra.mxu0 %v2315_v11  ;;  %v2337_v25 = vld [vmem:[#allocation10 + $0x254] ss:$8 sps:$4 sm:$0xff]   ;;  %v2330_v28 = vld [vmem:[#allocation10 + $0x60] ss:$8 sps:$4 sm:$0xff]   ;;  %v2339_v32 = vld [vmem:[#allocation10 + $0x250] ss:$8 sps:$4 sm:$0xff]  }
  0xbc   : > { %1114 = vmatprep.subr.bf16.mxu0 %v2319_v14  ;;  %v354_v26 = vld [vmem:[%s3034_s24] sm:$0x1]  ;;  %v2005_v27 = vld [vmem:[%s3034_s24 + $0x2] sm:$0x1]  ;;  %v515_v33 = vld [vmem:[%s3041_s28] sm:$0x1] }
  0xbd   : > { %469 = vmatpush1.bf16.msra.mxu1 %v2306_v9  ;;  %v355_v29 = vunpack.c.l.bf16 %v354_v26  ;;  %v359_v30 = vunpack.c.l.bf16 %v2005_v27  ;;  %v2334_v31 = vld [vmem:[#allocation10 + $0x74] ss:$8 sps:$4 sm:$0xff]   ;;  %v2022_v34 = vld [vmem:[%s3041_s28 + $0x2] sm:$0x1]  ;;  %v2343_v35 = vld [vmem:[#allocation10 + $0x264] ss:$8 sps:$4 sm:$0xff]   ;;  %v516_v37 = vunpack.c.l.bf16 %v515_v33 }
  0xbe   : > { %470 = vmatprep.subr.bf16.mxu1 %v2310_v12  ;;  %v2336_v36 = vld [vmem:[#allocation10 + $0x70] ss:$8 sps:$4 sm:$0xff]   ;;  %v520_v38 = vunpack.c.l.bf16 %v2022_v34  ;;  %v2345_v39 = vld [vmem:[#allocation10 + $0x260] ss:$8 sps:$4 sm:$0xff]   ;;  %v2342_v40 = vld [vmem:[#allocation10 + $0x84] ss:$8 sps:$4 sm:$0xff]  }
  0xbf   : > { %1115 = vmatpush1.bf16.msra.mxu0 %v2321_v16  ;;  %356 = vst [vmem:[#allocation2] sm:$0x3] %v355_v29  ;;  %360 = vst [vmem:[#allocation2 + $0x8] sm:$0x3] %v359_v30  ;;  %v2349_v41 = vld [vmem:[#allocation10 + $0x274] ss:$8 sps:$4 sm:$0xff]  }
  0xc0   : > { %1116 = vmatprep.subr.bf16.mxu0 %v2325_v17  ;;  %v2340_v42 = vld [vmem:[#allocation10 + $0x80] ss:$8 sps:$4 sm:$0xff]   ;;  %v2348_v45 = vld [vmem:[#allocation10 + $0x94] ss:$8 sps:$4 sm:$0xff]   ;;  %v2351_v46 = vld [vmem:[#allocation10 + $0x270] ss:$8 sps:$4 sm:$0xff]  }
  0xc1   : > { %471 = vmatpush1.bf16.msra.mxu1 %v2312_v13  ;;  %v2357_v48 = vld [vmem:[#allocation10 + $0x284] ss:$8 sps:$4 sm:$0xff]   ;;  %v676_v49 = vld [vmem:[%s3047_s13] sm:$0x1]  ;;  %v2039_v50 = vld [vmem:[%s3047_s13 + $0x2] sm:$0x1] }
  0xc2   : > { %472 = vmatprep.subr.bf16.mxu1 %v2316_v15  ;;  %v2346_v51 = vld [vmem:[#allocation10 + $0x90] ss:$8 sps:$4 sm:$0xff]   ;;  %v677_v52 = vunpack.c.l.bf16 %v676_v49  ;;  %v681_v53 = vunpack.c.l.bf16 %v2039_v50  ;;  %v2354_v54 = vld [vmem:[#allocation10 + $0xa4] ss:$8 sps:$4 sm:$0xff]   ;;  %v2352_v55 = vld [vmem:[#allocation10 + $0xa0] ss:$8 sps:$4 sm:$0xff]  }
  0xc3   : > { %1117 = vmatpush1.bf16.msra.mxu0 %v2327_v20  ;;  %v2056_v58 = vld [vmem:[%s3034_s24 + $0x1] sm:$0x1]  ;;  %v2057_v59 = vld [vmem:[%s3034_s24 + $0x3] sm:$0x1]  ;;  %v2358_v63 = vld [vmem:[#allocation10 + $0xb0] ss:$8 sps:$4 sm:$0xff]  }
  0xc4   : > { %1118 = vmatprep.subr.bf16.mxu0 %v2331_v21  ;;  %v2360_v60 = vld [vmem:[#allocation10 + $0xb4] ss:$8 sps:$4 sm:$0xff]   ;;  %v839_v61 = vunpack.c.l.bf16 %v2056_v58  ;;  %v843_v62 = vunpack.c.l.bf16 %v2057_v59  ;;  %v2366_v1 = vld [vmem:[#allocation10 + $0xc4] ss:$8 sps:$4 sm:$0xff]   ;;  %v2364_v5 = vld [vmem:[#allocation10 + $0xc0] ss:$8 sps:$4 sm:$0xff]  }
  0xc5   : > { %473 = vmatpush1.bf16.msra.mxu1 %v2318_v18  ;;  %v2074_v4 = vld [vmem:[%s3041_s28 + $0x1] sm:$0x1]  ;;  %v2075_v6 = vld [vmem:[%s3041_s28 + $0x3] sm:$0x1]  ;;  %v2372_v7 = vld [vmem:[#allocation10 + $0xd4] ss:$8 sps:$4 sm:$0xff]  }
  0xc6   : > { %474 = vmatprep.subr.bf16.mxu1 %v2322_v19  ;;  %v365_v43 = vld [vmem:[#allocation2] sm:$0xff]  ;;  %v366_v44 = vld [vmem:[#allocation2 + $0x8] sm:$0xff]  ;;  %v1001_v8 = vunpack.c.l.bf16 %v2074_v4  ;;  %v1005_v9 = vunpack.c.l.bf16 %v2075_v6  ;;  %v2376_v15 = vld [vmem:[#allocation10 + $0xe0] ss:$8 sps:$4 sm:$0xff]   ;;  %s1858_s1 = sshll.u32 %s346_s26, 4  ;;  %s2173_s21 = sshll.u32 %s2801_s22, 8  ;;  %s3121_s1 = int_to_ptr.vmem [resolvable:$true] %s1858_s1 }
  0xc7   : > { %1119 = vmatpush1.bf16.msra.mxu0 %v2333_v24  ;;  %v367_v47 = vpack.c.bf16 %v366_v44, %v365_v43  ;;  %517 = vst [vmem:[#allocation2] sm:$0x3] %v516_v37  ;;  %521 = vst [vmem:[#allocation2 + $0x8] sm:$0x3] %v520_v38  ;;  %v2370_v10 = vld [vmem:[#allocation10 + $0xd0] ss:$8 sps:$4 sm:$0xff]   ;;  %s3126_s25 = scalar_lea.hbm %s3175_s5, %s2173_s21 }
  0xc8   : > { %1120 = vmatprep.subr.bf16.mxu0 %v2337_v25  ;;  %v2378_v11 = vld [vmem:[#allocation10 + $0xe4] ss:$8 sps:$4 sm:$0xff]   ;;  %v2092_v14 = vld [vmem:[%s3047_s13 + $0x1] sm:$0x1]  ;;  %v2093_v17 = vld [vmem:[%s3047_s13 + $0x3] sm:$0x1] }
  0xc9   : > { %475 = vmatpush1.bf16.msra.mxu1 %v2324_v22  ;;  %v2384_v18 = vld [vmem:[#allocation10 + $0xf4] ss:$8 sps:$4 sm:$0xff]   ;;  %v1163_v19 = vunpack.c.l.bf16 %v2092_v14  ;;  %v1167_v20 = vunpack.c.l.bf16 %v2093_v17  ;;  %v2382_v21 = vld [vmem:[#allocation10 + $0xf0] ss:$8 sps:$4 sm:$0xff]   ;;  %v2355_v22 = vld [vmem:[#allocation10 + $0x280] ss:$8 sps:$4 sm:$0xff]  }
  0xca   : > { %476 = vmatprep.subr.bf16.mxu1 %v2328_v23  ;;  %v2390_v23 = vld [vmem:[#allocation10 + $0x104] ss:$8 sps:$4 sm:$0xff]   ;;  %v2363_v24 = vld [vmem:[#allocation10 + $0x294] ss:$8 sps:$4 sm:$0xff]   ;;  %v2388_v25 = vld [vmem:[#allocation10 + $0x100] ss:$8 sps:$4 sm:$0xff]  }
  0xcb   : > { %1121 = vmatpush1.bf16.msra.mxu0 %v2339_v32  ;;  %v2396_v30 = vld [vmem:[#allocation10 + $0x114] ss:$8 sps:$4 sm:$0xff]   ;;  %v2111_v32 = vld [vmem:[%s3034_s24 + $0x4] sm:$0x1]  ;;  %v2361_v33 = vld [vmem:[#allocation10 + $0x290] ss:$8 sps:$4 sm:$0xff]  }
  0xcc   : > { %1122 = vmatprep.subr.bf16.mxu0 %v2343_v35  ;;  %v2369_v34 = vld [vmem:[#allocation10 + $0x2a4] ss:$8 sps:$4 sm:$0xff]   ;;  %v2394_v35 = vld [vmem:[#allocation10 + $0x110] ss:$8 sps:$4 sm:$0xff]   ;;  %v1328_v37 = vunpack.c.l.bf16 %v2111_v32  ;;  %v2400_v43 = vld [vmem:[#allocation10 + $0x120] ss:$8 sps:$4 sm:$0xff]  }
  0xcd   : > { %477 = vmatpush1.bf16.msra.mxu1 %v2330_v28  ;;  %v2402_v38 = vld [vmem:[#allocation10 + $0x124] ss:$8 sps:$4 sm:$0xff]   ;;  %v2408_v44 = vld [vmem:[#allocation10 + $0x134] ss:$8 sps:$4 sm:$0xff]   ;;  %v2379_v49 = vld [vmem:[#allocation10 + $0x2c0] ss:$8 sps:$4 sm:$0xff]  }
  0xce   : > { %478 = vmatprep.subr.bf16.mxu1 %v2334_v31  ;;  %v3062_v56 = vld [vmem:[#allocation2] sm:$0xff]  ;;  %v3064_v57 = vld [vmem:[#allocation2 + $0x8] sm:$0xff]  ;;  %v2110_v31 = vld [vmem:[%s3034_s24 + $0x2] sm:$0x1]  ;;  %s1845_s23 = scalar_lea.sflag [#allocation6], %s3030_s14  ;;  %s2660_s16 = scalar_lea.vmem %s3121_s1, 256 }
  0xcf   : > { %1123 = vmatpush1.bf16.msra.mxu0 %v2345_v39  ;;  %678 = vst [vmem:[#allocation2] sm:$0x3] %v677_v52  ;;  %682 = vst [vmem:[#allocation2 + $0x8] sm:$0x3] %v681_v53  ;;  %v528_v28 = vpack.c.bf16 %v3064_v57, %v3062_v56  ;;  %v2367_v39 = vld [vmem:[#allocation10 + $0x2a0] ss:$8 sps:$4 sm:$0xff]   ;;  %p2661_p3 = scmp.ne.s32.totalorder %s3121_s1, %s2660_s16 }
  0xd0   : > { %1124 = vmatprep.subr.bf16.mxu0 %v2349_v41  ;;  %v2387_v50 = vld [vmem:[#allocation10 + $0x2d4] ss:$8 sps:$4 sm:$0xff]   ;;  %v2128_v52 = vld [vmem:[%s3041_s28 + $0x2] sm:$0x1]  ;;  %v2429_v32 = vld [vmem:[#allocation10 + $0x344] ss:$8 sps:$4 sm:$0xff]  }
  0xd1   : > { %479 = vmatpush1.bf16.msra.mxu1 %v2336_v36  ;;  %v1324_v36 = vunpack.c.l.bf16 %v2110_v31  ;;  %v1485_v53 = vunpack.c.l.bf16 %v2128_v52  ;;  %v2385_v58 = vld [vmem:[#allocation10 + $0x2d0] ss:$8 sps:$4 sm:$0xff]   ;;  %v2424_v4 = vld [vmem:[#allocation10 + $0x160] ss:$8 sps:$4 sm:$0xff]   ;;  %v2411_v14 = vld [vmem:[#allocation10 + $0x314] ss:$8 sps:$4 sm:$0xff]  }
  0xd2   : > { %625 = vmatprep.subr.bf16.mxu1 %v2342_v40  ;;  %v2375_v40 = vld [vmem:[#allocation10 + $0x2b4] ss:$8 sps:$4 sm:$0xff]   ;;  %v2397_v6 = vld [vmem:[#allocation10 + $0x2f0] ss:$8 sps:$4 sm:$0xff]   ;;  %v2436_v17 = vld [vmem:[#allocation10 + $0x180] ss:$8 sps:$4 sm:$0xff]  }
  0xd3   : > { %1125 = vmatpush1.bf16.msra.mxu0 %v2351_v46  ;;  %v2381_v46 = vld [vmem:[#allocation10 + $0x2c4] ss:$8 sps:$4 sm:$0xff]   ;;  %v2421_v31 = vld [vmem:[#allocation10 + $0x330] ss:$8 sps:$4 sm:$0xff]   ;;  %v2459_v52 = vld [vmem:[#allocation10 + $0x394] ss:$8 sps:$4 sm:$0xff]  }
  0xd4   : > { %497 = vmatmul.mubr.bf16.vlgmr.msra.gmra.mrb[0].mxu1 %v367_v47  ;;  %1272 = vmatprep.subr.bf16.mxu0 %v2357_v48  ;;  %v2406_v47 = vld [vmem:[#allocation10 + $0x130] ss:$8 sps:$4 sm:$0xff]   ;;  %v2414_v48 = vld [vmem:[#allocation10 + $0x144] ss:$8 sps:$4 sm:$0xff]   ;;  %p3218_p7 = scmp.ne.s32.totalorder %s3198_s30, 0  ;;  %s2747_s22 = smov [#allocation13]  }
  0xd5   : > { %626 = vmatpush1.bf16.msra.mxu1 %v2340_v42  ;;  %657 = vmatprep.mubr.bf16.mxu1 %v2745_v0  ;;  %s2664_s12 = sshll.u32 %s2747_s22, 4  ;;  %s2665_s12 = int_to_ptr.vmem [resolvable:$false] %s2664_s12 }
  0xd6   : > { %627 = vmatprep.subr.bf16.mxu1 %v2348_v45  ;;  %v3068_v2 = vld [vmem:[#allocation2] sm:$0xff]  ;;  %v3070_v3 = vld [vmem:[#allocation2 + $0x8] sm:$0xff]  ;;  %p2662_p2 = pnand %p2661_p3, %p3218_p7  ;;  %s2666_s10 = scalar_lea.vmem %s2665_s12, 512 }
  0xd7   : > { %840 = vst [vmem:[#allocation2] sm:$0x3] %v839_v61  ;;  %844 = vst [vmem:[#allocation2 + $0x8] sm:$0x3] %v843_v62  ;;  %v2373_v45 = vld [vmem:[#allocation10 + $0x2b0] ss:$8 sps:$4 sm:$0xff]   ;;  %p2667_p8 = scmp.lt.s32.totalorder %s3121_s1, %s2665_s12  ;;  %p2668_p9 = scmp.lt.s32.totalorder %s2666_s10, %s2660_s16 }
  0xd8   : > { %v2418_v61 = vld [vmem:[#allocation10 + $0x150] ss:$8 sps:$4 sm:$0xff]   ;;  %v2426_v62 = vld [vmem:[#allocation10 + $0x164] ss:$8 sps:$4 sm:$0xff]   ;;  %p2663_p6 = pneg %p2662_p2 }
  0xd9   : > { %628 = vmatpush1.bf16.msra.mxu1 %v2346_v51  ;;  %v2412_v51 = vld [vmem:[#allocation10 + $0x140] ss:$8 sps:$4 sm:$0xff]   ;;  %p2669_p10 = por %p2668_p9, %p2667_p8 }
  0xda   : > { %629 = vmatprep.subr.bf16.mxu1 %v2354_v54  ;;  %v2129_v54 = vld [vmem:[%s3041_s28 + $0x4] sm:$0x1] }
  0xdb   : > { %v1489_v57 = vunpack.c.l.bf16 %v2129_v54  ;;  %v2465_v54 = vld [vmem:[#allocation10 + $0x3a4] ss:$8 sps:$4 sm:$0xff]   ;;  %p2670_p1 = pnand %p2669_p10, %p2663_p6 }
  0xdd   : > { %630 = vmatpush1.bf16.msra.mxu1 %v2352_v55  ;;  %v2420_v55 = vld [vmem:[#allocation10 + $0x154] ss:$8 sps:$4 sm:$0xff]  }
  0xde   : > { %631 = vmatprep.subr.bf16.mxu1 %v2360_v60  ;;  %v3074_v12 = vld [vmem:[#allocation2] sm:$0xff]  ;;  %v3076_v13 = vld [vmem:[#allocation2 + $0x8] sm:$0xff] }
  0xdf   : > { %1002 = vst [vmem:[#allocation2] sm:$0x3] %v1001_v8  ;;  %1006 = vst [vmem:[#allocation2 + $0x8] sm:$0x3] %v1005_v9  ;;  %v851_v16 = vpack.c.bf16 %v3076_v13, %v3074_v12  ;;  %v2393_v60 = vld [vmem:[#allocation10 + $0x2e4] ss:$8 sps:$4 sm:$0xff]  }
  0xe0   : > { %v2430_v8 = vld [vmem:[#allocation10 + $0x170] ss:$8 sps:$4 sm:$0xff]   ;;  %v2438_v9 = vld [vmem:[#allocation10 + $0x184] ss:$8 sps:$4 sm:$0xff]   ;;  %v2484_v13 = vld [vmem:[#allocation10 + $0x3e0] ss:$8 sps:$4 sm:$0xff]  }
  0xe1   : > { %632 = vmatpush1.bf16.msra.mxu1 %v2358_v63  ;;  %v2391_v63 = vld [vmem:[#allocation10 + $0x2e0] ss:$8 sps:$4 sm:$0xff]   ;;  %v2486_v12 = vld [vmem:[#allocation10 + $0x3e4] ss:$8 sps:$4 sm:$0xff]  }
  0xe2   : > { %633 = vmatprep.subr.bf16.mxu1 %v2366_v1  ;;  %v2399_v1 = vld [vmem:[#allocation10 + $0x2f4] ss:$8 sps:$4 sm:$0xff]  }
  0xe5   : > { %634 = vmatpush1.bf16.msra.mxu1 %v2364_v5  ;;  %v2432_v5 = vld [vmem:[#allocation10 + $0x174] ss:$8 sps:$4 sm:$0xff]  }
  0xe6   : > { %635 = vmatprep.subr.bf16.mxu1 %v2372_v7  ;;  %v1011_v26 = vld [vmem:[#allocation2] sm:$0xff]  ;;  %v1012_v27 = vld [vmem:[#allocation2 + $0x8] sm:$0xff] }
  0xe7   : > { %v1013_v29 = vpack.c.bf16 %v1012_v27, %v1011_v26  ;;  %1164 = vst [vmem:[#allocation2] sm:$0x3] %v1163_v19  ;;  %1168 = vst [vmem:[#allocation2 + $0x8] sm:$0x3] %v1167_v20  ;;  %v2405_v7 = vld [vmem:[#allocation10 + $0x304] ss:$8 sps:$4 sm:$0xff]  }
  0xe8   : > { %v2444_v19 = vld [vmem:[#allocation10 + $0x194] ss:$8 sps:$4 sm:$0xff]   ;;  %v2417_v20 = vld [vmem:[#allocation10 + $0x324] ss:$8 sps:$4 sm:$0xff]   ;;  %v2415_v27 = vld [vmem:[#allocation10 + $0x320] ss:$8 sps:$4 sm:$0xff]  }
  0xe9   : > { %636 = vmatpush1.bf16.msra.mxu1 %v2370_v10  ;;  %1143 = vmatmul.mubr.bf16.vlgmr.msra.gmra.mrb[0].mxu0 %v1013_v29  ;;  %v2403_v10 = vld [vmem:[#allocation10 + $0x300] ss:$8 sps:$4 sm:$0xff]  }
  0xea   : > { %637 = vmatprep.subr.bf16.mxu1 %v2378_v11  ;;  %1273 = vmatpush1.bf16.msra.mxu0 %v2355_v22  ;;  %v2146_v22 = vld [vmem:[%s3047_s13 + $0x2] sm:$0x1]  ;;  %v2448_v29 = vld [vmem:[#allocation10 + $0x1a0] ss:$8 sps:$4 sm:$0xff]  }
  0xeb   : > { %1274 = vmatprep.subr.bf16.mxu0 %v2363_v24  ;;  %1304 = vmatprep.mubr.bf16.mxu0 %v2745_v0 }
  0xed   : > { %638 = vmatpush1.bf16.msra.mxu1 %v2376_v15  ;;  %v689_v15 = vpack.c.bf16 %v3070_v3, %v3068_v2  ;;  %v2450_v3 = vld [vmem:[#allocation10 + $0x1a4] ss:$8 sps:$4 sm:$0xff]  }
  0xee   : > { %639 = vmatprep.subr.bf16.mxu1 %v2384_v18  ;;  %1275 = vmatpush1.bf16.msra.mxu0 %v2361_v33  ;;  %v3088_v41 = vld [vmem:[#allocation2] sm:$0xff]  ;;  %v3090_v42 = vld [vmem:[#allocation2 + $0x8] sm:$0xff] }
  0xef   : > { %1276 = vmatprep.subr.bf16.mxu0 %v2369_v34  ;;  %1325 = vst [vmem:[#allocation2] sm:$0x3] %v1324_v36  ;;  %1329 = vst [vmem:[#allocation2 + $0x8] sm:$0x3] %v1328_v37  ;;  %v1175_v11 = vpack.c.bf16 %v3090_v42, %v3088_v41  ;;  %v2409_v18 = vld [vmem:[#allocation10 + $0x310] ss:$8 sps:$4 sm:$0xff]  }
  0xf0   : > { %v2454_v33 = vld [vmem:[#allocation10 + $0x1b0] ss:$8 sps:$4 sm:$0xff]   ;;  %v2462_v34 = vld [vmem:[#allocation10 + $0x1c4] ss:$8 sps:$4 sm:$0xff]   ;;  %v2435_v36 = vld [vmem:[#allocation10 + $0x354] ss:$8 sps:$4 sm:$0xff]  }
  0xf1   : > { %640 = vmatpush1.bf16.msra.mxu1 %v2382_v21  ;;  %v2442_v21 = vld [vmem:[#allocation10 + $0x190] ss:$8 sps:$4 sm:$0xff]   ;;  %v2460_v37 = vld [vmem:[#allocation10 + $0x1c0] ss:$8 sps:$4 sm:$0xff]   ;;  %v2474_v42 = vld [vmem:[#allocation10 + $0x1e4] ss:$8 sps:$4 sm:$0xff]  }
  0xf2   : > { %786 = vmatprep.subr.bf16.mxu1 %v2390_v23  ;;  %1277 = vmatpush1.bf16.msra.mxu0 %v2367_v39  ;;  %v2147_v23 = vld [vmem:[%s3047_s13 + $0x4] sm:$0x1] }
  0xf3   : > { %1278 = vmatprep.subr.bf16.mxu0 %v2375_v40  ;;  %v1650_v26 = vunpack.c.l.bf16 %v2147_v23  ;;  %v2433_v39 = vld [vmem:[#allocation10 + $0x350] ss:$8 sps:$4 sm:$0xff]   ;;  %v2441_v40 = vld [vmem:[#allocation10 + $0x364] ss:$8 sps:$4 sm:$0xff]  }
  0xf4   : > { %658 = vmatmul.mubr.bf16.vlgmr.msra.gmra.mrb[0].mxu1 %v528_v28  ;;  %v2423_v28 = vld [vmem:[#allocation10 + $0x334] ss:$8 sps:$4 sm:$0xff]   ;;  %v2466_v41 = vld [vmem:[#allocation10 + $0x1d0] ss:$8 sps:$4 sm:$0xff]  }
  0xf5   : > { %787 = vmatpush1.bf16.msra.mxu1 %v2388_v25  ;;  %818 = vmatprep.mubr.bf16.mxu1 %v2745_v0  ;;  %v1646_v25 = vunpack.c.l.bf16 %v2146_v22 }
  0xf6   : > { %788 = vmatprep.subr.bf16.mxu1 %v2396_v30  ;;  %1279 = vmatpush1.bf16.msra.mxu0 %v2373_v45  ;;  %v3094_v56 = vld [vmem:[#allocation2] sm:$0xff]  ;;  %v3096_v59 = vld [vmem:[#allocation2 + $0x8] sm:$0xff]  ;;  %v2472_v45 = vld [vmem:[#allocation10 + $0x1e0] ss:$8 sps:$4 sm:$0xff]  }
  0xf7   : > { %1280 = vmatprep.subr.bf16.mxu0 %v2381_v46  ;;  %1486 = vst [vmem:[#allocation2] sm:$0x3] %v1485_v53  ;;  %1490 = vst [vmem:[#allocation2 + $0x8] sm:$0x3] %v1489_v57  ;;  %v2456_v30 = vld [vmem:[#allocation10 + $0x1b4] ss:$8 sps:$4 sm:$0xff]  }
  0xf8   : > { %v2480_v46 = vld [vmem:[#allocation10 + $0x1f4] ss:$8 sps:$4 sm:$0xff]   ;;  %v2457_v53 = vld [vmem:[#allocation10 + $0x390] ss:$8 sps:$4 sm:$0xff]  }
  0xf9   : > { %789 = vmatpush1.bf16.msra.mxu1 %v2394_v35  ;;  %v2427_v35 = vld [vmem:[#allocation10 + $0x340] ss:$8 sps:$4 sm:$0xff]   ;;  %v2469_v57 = vld [vmem:[#allocation10 + $0x3b0] ss:$8 sps:$4 sm:$0xff]  }
  0xfa   : > { %790 = vmatprep.subr.bf16.mxu1 %v2402_v38  ;;  %1281 = vmatpush1.bf16.msra.mxu0 %v2379_v49  ;;  %v2468_v38 = vld [vmem:[#allocation10 + $0x1d4] ss:$8 sps:$4 sm:$0xff]   ;;  %v2478_v49 = vld [vmem:[#allocation10 + $0x1f0] ss:$8 sps:$4 sm:$0xff]  }
  0xfb   : > { %1282 = vmatprep.subr.bf16.mxu0 %v2387_v50  ;;  %v1336_v50 = vpack.c.bf16 %v3096_v59, %v3094_v56  ;;  %v2471_v56 = vld [vmem:[#allocation10 + $0x3b4] ss:$8 sps:$4 sm:$0xff]   ;;  %v2475_v59 = vld [vmem:[#allocation10 + $0x3c0] ss:$8 sps:$4 sm:$0xff]  }
  0xfd   : > { %791 = vmatpush1.bf16.msra.mxu1 %v2400_v43  ;;  %v2439_v43 = vld [vmem:[#allocation10 + $0x360] ss:$8 sps:$4 sm:$0xff]  }
  0xfe   : > { %792 = vmatprep.subr.bf16.mxu1 %v2408_v44  ;;  %1283 = vmatpush1.bf16.msra.mxu0 %v2385_v58  ;;  %v3104_v24 = vld [vmem:[#allocation2] sm:$0xff]  ;;  %v3106_v2 = vld [vmem:[#allocation2 + $0x8] sm:$0xff] }
  0xff   : > { %1284 = vmatprep.subr.bf16.mxu0 %v2393_v60  ;;  %1647 = vst [vmem:[#allocation2] sm:$0x3] %v1646_v25  ;;  %1651 = vst [vmem:[#allocation2 + $0x8] sm:$0x3] %v1650_v26  ;;  %v2447_v44 = vld [vmem:[#allocation10 + $0x374] ss:$8 sps:$4 sm:$0xff]  }
 0x100   : > { %v2477_v58 = vld [vmem:[#allocation10 + $0x3c4] ss:$8 sps:$4 sm:$0xff]   ;;  %v2483_v60 = vld [vmem:[#allocation10 + $0x3d4] ss:$8 sps:$4 sm:$0xff]  }
 0x101   : > { %793 = vmatpush1.bf16.msra.mxu1 %v2406_v47  ;;  %v2445_v47 = vld [vmem:[#allocation10 + $0x370] ss:$8 sps:$4 sm:$0xff]  }
 0x102   : > { %794 = vmatprep.subr.bf16.mxu1 %v2414_v48  ;;  %1285 = vmatpush1.bf16.msra.mxu0 %v2391_v63  ;;  %v2453_v48 = vld [vmem:[#allocation10 + $0x384] ss:$8 sps:$4 sm:$0xff]  }
 0x103   : > { %1286 = vmatprep.subr.bf16.mxu0 %v2399_v1  ;;  %v2492_v63 = vld [vmem:[#allocation10 + $0x404] ss:$8 sps:$4 sm:$0xff]   ;;  %v1497_v1 = vpack.c.bf16 %v3106_v2, %v3104_v24 }
 0x105   : > { %795 = vmatpush1.bf16.msra.mxu1 %v2412_v51  ;;  %v2451_v51 = vld [vmem:[#allocation10 + $0x380] ss:$8 sps:$4 sm:$0xff]  }
 0x106   : > { %796 = vmatprep.subr.bf16.mxu1 %v2420_v55  ;;  %1287 = vmatpush1.bf16.msra.mxu0 %v2397_v6  ;;  %v2463_v55 = vld [vmem:[#allocation10 + $0x3a0] ss:$8 sps:$4 sm:$0xff]   ;;  %v2493_v6 = vld [vmem:[#allocation10 + $0x410] ss:$8 sps:$4 sm:$0xff]  }
 0x107   : > { %1433 = vmatprep.subr.bf16.mxu0 %v2405_v7  ;;  %v2498_v7 = vld [vmem:[#allocation10 + $0x424] ss:$8 sps:$4 sm:$0xff]   ;;  %v1657_v22 = vld [vmem:[#allocation2 + $0x8] sm:$0xff] }
 0x109   : > { %797 = vmatpush1.bf16.msra.mxu1 %v2418_v61  ;;  %1305 = vmatmul.mubr.bf16.vlgmr.msra.gmra.mrb[0].mxu0 %v1175_v11  ;;  %v2481_v61 = vld [vmem:[#allocation10 + $0x3d0] ss:$8 sps:$4 sm:$0xff]   ;;  %v2504_v11 = vld [vmem:[#allocation10 + $0x444] ss:$8 sps:$4 sm:$0xff]  }
 0x10a   : > { %798 = vmatprep.subr.bf16.mxu1 %v2426_v62  ;;  %1434 = vmatpush1.bf16.msra.mxu0 %v2403_v10  ;;  %v2487_v62 = vld [vmem:[#allocation10 + $0x3f0] ss:$8 sps:$4 sm:$0xff]  }
 0x10b   : > { %1435 = vmatprep.subr.bf16.mxu0 %v2411_v14  ;;  %1465 = vmatprep.mubr.bf16.mxu0 %v2745_v0  ;;  %v2499_v10 = vld [vmem:[#allocation10 + $0x430] ss:$8 sps:$4 sm:$0xff]   ;;  %v2502_v14 = vld [vmem:[#allocation10 + $0x440] ss:$8 sps:$4 sm:$0xff]  }
 0x10d   : > { %799 = vmatpush1.bf16.msra.mxu1 %v2424_v4  ;;  %v2490_v4 = vld [vmem:[#allocation10 + $0x400] ss:$8 sps:$4 sm:$0xff]  }
 0x10e   : > { %800 = vmatprep.subr.bf16.mxu1 %v2432_v5  ;;  %1436 = vmatpush1.bf16.msra.mxu0 %v2409_v18  ;;  %v2495_v5 = vld [vmem:[#allocation10 + $0x414] ss:$8 sps:$4 sm:$0xff]   ;;  %v2510_v18 = vld [vmem:[#allocation10 + $0x464] ss:$8 sps:$4 sm:$0xff]  }
 0x10f   : > { %1437 = vmatprep.subr.bf16.mxu0 %v2417_v20  ;;  %v2511_v20 = vld [vmem:[#allocation10 + $0x470] ss:$8 sps:$4 sm:$0xff]  }
 0x111   : > { %801 = vmatpush1.bf16.msra.mxu1 %v2430_v8  ;;  %v2496_v8 = vld [vmem:[#allocation10 + $0x420] ss:$8 sps:$4 sm:$0xff]  }
 0x112   : > { %948 = vmatprep.subr.bf16.mxu1 %v2438_v9  ;;  %1438 = vmatpush1.bf16.msra.mxu0 %v2415_v27  ;;  %v2501_v9 = vld [vmem:[#allocation10 + $0x434] ss:$8 sps:$4 sm:$0xff]  }
 0x113   : > { %1439 = vmatprep.subr.bf16.mxu0 %v2423_v28 }
 0x114   : > { %819 = vmatmul.mubr.bf16.vlgmr.msra.gmra.mrb[0].mxu1 %v689_v15  ;;  %v2507_v15 = vld [vmem:[#allocation10 + $0x454] ss:$8 sps:$4 sm:$0xff]  }
 0x115   : > { %949 = vmatpush1.bf16.msra.mxu1 %v2436_v17  ;;  %980 = vmatprep.mubr.bf16.mxu1 %v2745_v0  ;;  %v2505_v17 = vld [vmem:[#allocation10 + $0x450] ss:$8 sps:$4 sm:$0xff]  }
 0x116   : > { %950 = vmatprep.subr.bf16.mxu1 %v2444_v19  ;;  %1440 = vmatpush1.bf16.msra.mxu0 %v2421_v31  ;;  %v2513_v19 = vld [vmem:[#allocation10 + $0x474] ss:$8 sps:$4 sm:$0xff]  }
 0x117   : > { %1441 = vmatprep.subr.bf16.mxu0 %v2429_v32 }
 0x119   : > { %951 = vmatpush1.bf16.msra.mxu1 %v2442_v21  ;;  %v1656_v21 = vld [vmem:[#allocation2] sm:$0xff] }
 0x11a   : > { %952 = vmatprep.subr.bf16.mxu1 %v2450_v3  ;;  %1442 = vmatpush1.bf16.msra.mxu0 %v2427_v35  ;;  %v1658_v23 = vpack.c.bf16 %v1657_v22, %v1656_v21  ;;  %v1812_v3 = vlaneseq }
 0x11b   : > { %1443 = vmatprep.subr.bf16.mxu0 %v2435_v36 }
 0x11c   : > { %v1813_v27 = vshrl.u32 %v1812_v3, 7 }
 0x11d   : > { %953 = vmatpush1.bf16.msra.mxu1 %v2448_v29  ;;  %v1810_v29 = vld [vmem:[#allocation12] sm:$0x3] }
 0x11e   : > { %954 = vmatprep.subr.bf16.mxu1 %v2456_v30  ;;  %1444 = vmatpush1.bf16.msra.mxu0 %v2433_v39  ;;  %v1814_v28 = vsub.s32 0, %v1813_v27  ;;  %v1818_v30 = vsub.s32 1, %v1813_v27 }
 0x11f   : > { %1445 = vmatprep.subr.bf16.mxu0 %v2441_v40 }
 0x120   : > { %v1815_v31 = vrot.slane %v1810_v29, %v1814_v28 }
 0x121   : > { %955 = vmatpush1.bf16.msra.mxu1 %v2454_v33  ;;  %v1819_v33 = vrot.slane %v1810_v29, %v1818_v30 }
 0x122   : > { %956 = vmatprep.subr.bf16.mxu1 %v2462_v34  ;;  %1446 = vmatpush1.bf16.msra.mxu0 %v2439_v43 }
 0x123   : > { %1447 = vmatprep.subr.bf16.mxu0 %v2447_v44 }
 0x125   : > { %957 = vmatpush1.bf16.msra.mxu1 %v2460_v37 }
 0x126   : > { %958 = vmatprep.subr.bf16.mxu1 %v2468_v38  ;;  %1448 = vmatpush1.bf16.msra.mxu0 %v2445_v47 }
 0x127   : > { %1594 = vmatprep.subr.bf16.mxu0 %v2453_v48 }
 0x129   : > { %959 = vmatpush1.bf16.msra.mxu1 %v2466_v41  ;;  %1466 = vmatmul.mubr.bf16.vlgmr.msra.gmra.mrb[0].mxu0 %v1336_v50 }
 0x12a   : > { %960 = vmatprep.subr.bf16.mxu1 %v2474_v42  ;;  %1595 = vmatpush1.bf16.msra.mxu0 %v2451_v51 }
 0x12b   : > { %1596 = vmatprep.subr.bf16.mxu0 %v2459_v52  ;;  %1626 = vmatprep.mubr.bf16.mxu0 %v2745_v0 }
 0x12d   : > { %961 = vmatpush1.bf16.msra.mxu1 %v2472_v45 }
 0x12e   : > { %962 = vmatprep.subr.bf16.mxu1 %v2480_v46  ;;  %1597 = vmatpush1.bf16.msra.mxu0 %v2457_v53 }
 0x12f   : > { %1598 = vmatprep.subr.bf16.mxu0 %v2465_v54 }
 0x131   : > { %963 = vmatpush1.bf16.msra.mxu1 %v2478_v49 }
 0x132   : > { %1599 = vmatpush1.bf16.msra.mxu0 %v2463_v55 }
 0x133   : > { %1600 = vmatprep.subr.bf16.mxu0 %v2471_v56 }
 0x134   : > { %981 = vmatmul.mubr.bf16.vlgmr.msra.gmra.mrb[0].mxu1 %v851_v16  ;;  %v2489_v16 = vld [vmem:[#allocation10 + $0x3f4] ss:$8 sps:$4 sm:$0xff]  }
 0x136   : > { %1601 = vmatpush1.bf16.msra.mxu0 %v2469_v57 }
 0x137   : > { %1602 = vmatprep.subr.bf16.mxu0 %v2477_v58 }
 0x13a   : > { %1603 = vmatpush1.bf16.msra.mxu0 %v2475_v59 }
 0x13b   : > { %1604 = vmatprep.subr.bf16.mxu0 %v2483_v60 }
 0x13e   : > { %1605 = vmatpush1.bf16.msra.mxu0 %v2481_v61 }
 0x13f   : > { %1606 = vmatprep.subr.bf16.mxu0 %v2486_v12 }
 0x142   : > { %1607 = vmatpush1.bf16.msra.mxu0 %v2484_v13 }
 0x143   : > { %1608 = vmatprep.subr.bf16.mxu0 %v2489_v16 }
 0x146   : > { %1609 = vmatpush1.bf16.msra.mxu0 %v2487_v62 }
 0x147   : > { %1755 = vmatprep.subr.bf16.mxu0 %v2492_v63 }
 0x149   : > { %1627 = vmatmul.mubr.bf16.vlgmr.msra.gmra.mrb[0].mxu0 %v1497_v1 }
 0x14a   : > { %1756 = vmatpush1.bf16.msra.mxu0 %v2490_v4  ;;  %1787 = vmatprep.mubr.bf16.mxu0 %v2745_v0  ;;  %v2508_v0 = vld [vmem:[#allocation10 + $0x460] ss:$8 sps:$4 sm:$0xff]  }
 0x14b   : > { %1757 = vmatprep.subr.bf16.mxu0 %v2495_v5 }
 0x14e   : > { %1758 = vmatpush1.bf16.msra.mxu0 %v2493_v6 }
 0x14f   : > { %1759 = vmatprep.subr.bf16.mxu0 %v2498_v7 }
 0x152   : > { %1760 = vmatpush1.bf16.msra.mxu0 %v2496_v8 }
 0x153   : > { %1761 = vmatprep.subr.bf16.mxu0 %v2501_v9 }
 0x156   : > { %1762 = vmatpush1.bf16.msra.mxu0 %v2499_v10 }
 0x157   : > { %1763 = vmatprep.subr.bf16.mxu0 %v2504_v11 }
 0x15a   : > { %1764 = vmatpush1.bf16.msra.mxu0 %v2502_v14 }
 0x15b   : > { %1765 = vmatprep.subr.bf16.mxu0 %v2507_v15 }
 0x15e   : > { %1766 = vmatpush1.bf16.msra.mxu0 %v2505_v17 }
 0x15f   : > { %1767 = vmatprep.subr.bf16.mxu0 %v2510_v18 }
 0x162   : > { %1768 = vmatpush1.bf16.msra.mxu0 %v2508_v0 }
 0x163   : > { %1769 = vmatprep.subr.bf16.mxu0 %v2513_v19 }
 0x166   : > { %1770 = vmatpush1.bf16.msra.mxu0 %v2511_v20 }
 0x169   : > { %1788 = vmatmul.mubr.bf16.vlgmr.msra.gmra.mrb[0].mxu0 %v1658_v23 }
 0x207   : > { %v982_v24 = vpop.f32.mrb[0].mxu1 }
 0x208   : > { %v984_v25 = vpop.f32.mrb[1].mxu1 }
 0x209   : > { %v986_v26 = vpop.f32.mrb[2].mxu1 }
 0x20a   : > { %v988_v2 = vpop.f32.mrb[3].mxu1 }
 0x23c   : > { %v1789_v32 = vpop.f32.mrb[0].mxu0 }
 0x23d   : > { %v2174_v34 = vadd.f32 %v1789_v32, %v982_v24  ;;  %v1791_v35 = vpop.f32.mrb[1].mxu0 }
 0x23e   : > { %v2175_v36 = vadd.f32 %v1791_v35, %v984_v25  ;;  %v1793_v37 = vpop.f32.mrb[2].mxu0 }
 0x23f   : > { %v1822_v38 = vadd.f32 %v2174_v34, %v1815_v31  ;;  %v2176_v39 = vadd.f32 %v1793_v37, %v986_v26  ;;  %v1795_v40 = vpop.f32.mrb[3].mxu0 }
 0x240   : > { %v1823_v41 = vadd.f32 %v2175_v36, %v1819_v33  ;;  %v2177_v42 = vadd.f32 %v1795_v40, %v988_v2 }
 0x241   : > { %v1826_v43 = vmax.f32 %v1822_v38, 0.0  ;;  %v1824_v44 = vadd.f32 %v2176_v39, %v1815_v31 }
 0x242   : > { %v1827_v45 = vmax.f32 %v1823_v41, 0.0  ;;  %v1825_v46 = vadd.f32 %v2177_v42, %v1819_v33 }
 0x243   : > { %v1828_v47 = vmax.f32 %v1824_v44, 0.0 }
 0x244   : > { %v2171_v48 = vpack.c.bf16 %v1827_v45, %v1826_v43  ;;  %v1829_v49 = vmax.f32 %v1825_v46, 0.0 }
 0x246   : > { %1842 = vst [vmem:[%s346_s26] sm:$0xff] %v2171_v48  ;;  %v2172_v50 = vpack.c.bf16 %v1829_v49, %v1828_v47 }
 0x248   : > { %1843 = vst [vmem:[%s346_s26 + $0x8] sm:$0xff] %v2172_v50 }
 0x249   : > { %2673 = shalt.err (!%p2670_p1)
}
 0x24a   : > { %s2674_s15 = scalar_lea.hbm %s3126_s25, 256  ;;  %s2678_s27 = scalar_lea.hbm %s3175_s5, 512 }
 0x24b   : > { %p2675_p0 = scmp.ne.s32.totalorder %s3126_s25, %s2674_s15  ;;  %p2679_p4 = scmp.lt.u32.totalorder %s3126_s25, %s3175_s5 }
 0x24c   : > { %p2680_p13 = scmp.lt.u32.totalorder %s2678_s27, %s2674_s15  ;;  %p2682_p3 = scmp.lt.u32.totalorder %s2674_s15, %s3126_s25 }
 0x24d   : > { %p2676_p5 = pnand %p2675_p0, %p3218_p7 }
 0x24e   : > { %p2681_p12 = por %p2680_p13, %p2679_p4 }
 0x24f   : > { %p2677_p11 = pneg %p2676_p5 }
 0x250   : > { %p2683_p2 = por %p2682_p3, %p2681_p12 }
 0x252   : > { %p2684_p6 = pnand %p2683_p2, %p2677_p11 }
 0x254   : > { %2687 = shalt.err (!%p2684_p6)
}
 0x255   : > { %s2748_s7 = smov 128   ;;  %s2749_s28 = smov 8  }
 0x256   : > { %2227 = dma.vmem_to_hbm [thread:$0]  (%p3218_p7), %s3121_s1, 256, %s3126_s25, %s1845_s23, %s2748_s7, %s2748_s7, %s2749_s28  }
 0x257 PF: > { %s3219_s13 = sld [smem:[#allocation18_spill]]  ;;  %s1873_s29 = sand.u32 1, %s2722_s18  }
 0x258   : > { %p3220_p8 = scmp.ne.s32.totalorder %s3199_s6, 0  ;;  %s1874_s26 = scalar_lea.sflag [#allocation6], %s1873_s29 }
 0x25d   : > { %p3221_p9 = scmp.ge.s32.totalorder %s3219_s13, 2 }
 0x25f   : > { %p2247_p10 = pnand %p3221_p9, %p3220_p8 }
 0x261   : > { %2717 = dma.done.wait (!%p2247_p10), %s1874_s26, 256  }
 0x262   : > { %2719 = vsyncadd (!%p2247_p10), %s1874_s26, 4294967040  ;;  %s3222_s21 = sld [smem:[#allocation19_spill]]  ;;  %s3223_s9 = sld [smem:[#allocation20_spill]] }
 0x263   : > { %s3224_s18 = smov %s2726_s19  ;;  %s3225_s19 = smov %s2730_s20 }
 0x268   : > { %p22_p1 = scmp.ge.s32.totalorder %s3222_s21, 4   ;;  %s3226_s20 = smov %s3223_s9 }
 0x26a   :  { %24 = sbr.rel (!%p22_p1) target bundleno = 11 (0xb), region = 129 }
 0x271   :  { %1879 = vsyncpa [#allocation5], 1 }
 0x272   :  { %1881 = vsyncpa [#allocation5 + $0x1], 1 }
 0x273   :  { %1882 = vsyncpa [#allocation8], 1 }
 0x274   :  { %1884 = vsyncpa [#allocation8 + $0x1], 1 }
 0x275   :  { %1885 = vsyncpa [#allocation11], 1 }
 0x276   :  { %1886 = vsyncpa [#allocation6], 1 }
 0x277   :  { %1888 = vsyncpa [#allocation6 + $0x1], 1 }

// kernel: encoder_forward.9
= control target key start
LH: loop header
LB: loop body
LE: loop exit
PB: predicated region body
PF: predicated region fallthrough
CT: control target
= control target key end

     0   :  { %12 = vsyncpa [#allocation3], 0  ;;  %s1426_s0 = inlined_call_operand.hbm [shape: bf16[2,1024], index: 0, kind: input, shape index: {}]   ;;  %s1427_s1 = inlined_call_operand.hbm [shape: bf16[1024,64], index: 1, kind: input, shape index: {}]   ;;  %s1428_s2 = inlined_call_operand.hbm [shape: f32[1,64], index: 2, kind: input, shape index: {}]   ;;  %s1429_s3 = inlined_call_operand.hbm [shape: f32[2,32], index: 3, kind: input, shape index: {}]   ;;  %s1430_s4 = inlined_call_operand.hbm [shape: f32[2,32], index: 4, kind: output, shape index: {0}]   ;;  %s1431_s5 = inlined_call_operand.hbm [shape: f32[2,32], index: 5, kind: output, shape index: {1}]   ;;  %s1432_s6 = inlined_call_operand.hbm [shape: f32[2,32], index: 6, kind: output, shape index: {2}]  }
   0x1   :  { %13 = vsyncpa [#allocation6], 0 }
   0x2   :  { %14 = vsyncpa [#allocation9], 0 }
   0x3   :  { %15 = vsyncpa [#allocation4], 0 }
   0x4   :  { %16 = vsyncpa [#allocation12], 0  ;;  %s1266_s21 = smov [#allocation5]   ;;  %s1102_s25 = scalar_lea.hbm %s1427_s1, 8192 }
   0x5   :  { %s32_s22 = sshll.u32 %s1266_s21, 4  ;;  %p1103_p0 = scmp.ne.s32.totalorder %s1427_s1, %s1102_s25  ;;  %s33_s22 = int_to_ptr.vmem [resolvable:$true] %s32_s22 }
   0x6   :  { %p1106_p1 = scmp.lt.u32.totalorder %s1102_s25, %s1427_s1 }
   0x8   :  { %p1108_p2 = pnand %p1106_p1, %p1103_p0 }
   0xa   :  { %1111 = shalt.err (!%p1108_p2)
}
   0xb   :  { %s1112_s30 = scalar_lea.vmem %s33_s22, 8192  ;;  %p1117_p4 = scmp.lt.s32.totalorder %s33_s22, %s33_s22 }
   0xc   :  { %p1113_p3 = scmp.ne.s32.totalorder %s33_s22, %s1112_s30  ;;  %p1118_p5 = scmp.lt.s32.totalorder %s1112_s30, %s1112_s30 }
   0xe   :  { %p1119_p6 = por %p1118_p5, %p1117_p4 }
  0x10   :  { %p1120_p7 = pnand %p1119_p6, %p1113_p3 }
  0x12   :  { %1123 = shalt.err (!%p1120_p7)
}
  0x13   :  { %s1267_s7 = smov 64   ;;  %s1268_s8 = smov 4  }
  0x14   :  { %38 = dma.hbm_to_vmem [thread:$0]  %s1427_s1, 8192, %s33_s22, [#allocation6], %s1267_s7, %s1267_s7, %s1268_s8  }
  0x15   :  { %s1269_s11 = smov [#allocation2]   ;;  %s1270_s13 = smov [#allocation7]  }
  0x16   :  { %s23_s12 = sshll.u32 %s1269_s11, 4  ;;  %s45_s14 = sshll.u32 %s1270_s13, 4  ;;  %s24_s12 = int_to_ptr.vmem [resolvable:$true] %s23_s12  ;;  %s46_s14 = int_to_ptr.vmem [resolvable:$true] %s45_s14 }
  0x17   :  { %s1124_s17 = scalar_lea.hbm %s1426_s0, 128 }
  0x18   :  { %p1125_p8 = scmp.ne.s32.totalorder %s1426_s0, %s1124_s17  ;;  %p1128_p9 = scmp.lt.u32.totalorder %s1124_s17, %s1426_s0 }
  0x1a   :  { %p1130_p10 = pnand %p1128_p9, %p1125_p8 }
  0x1c   :  { %1133 = shalt.err (!%p1130_p10)
}
  0x1d   :  { %s1134_s1 = scalar_lea.vmem %s24_s12, 128  ;;  %p1139_p12 = scmp.lt.s32.totalorder %s24_s12, %s24_s12 }
  0x1e   :  { %p1135_p11 = scmp.ne.s32.totalorder %s24_s12, %s1134_s1  ;;  %p1140_p13 = scmp.lt.s32.totalorder %s1134_s1, %s1134_s1 }
  0x20   :  { %p1141_p0 = por %p1140_p13, %p1139_p12 }
  0x22   :  { %p1142_p1 = pnand %p1141_p0, %p1135_p11 }
  0x24   :  { %1145 = shalt.err (!%p1142_p1)
}
  0x25   :  { %26 = dma.hbm_to_vmem [thread:$0]  %s1426_s0, 128, %s24_s12, [#allocation3]  }
  0x26   :  { %s1146_s26 = scalar_lea.hbm %s1428_s2, 16 }
  0x27   :  { %p1147_p2 = scmp.ne.s32.totalorder %s1428_s2, %s1146_s26  ;;  %p1150_p3 = scmp.lt.u32.totalorder %s1146_s26, %s1428_s2 }
  0x29   :  { %p1152_p4 = pnand %p1150_p3, %p1147_p2 }
  0x2b   :  { %1155 = shalt.err (!%p1152_p4)
}
  0x2c   :  { %s1156_s7 = scalar_lea.vmem %s46_s14, 16  ;;  %s1160_s8 = scalar_lea.vmem %s46_s14, 32 }
  0x2d   :  { %p1157_p5 = scmp.ne.s32.totalorder %s46_s14, %s1156_s7  ;;  %p1161_p6 = scmp.lt.s32.totalorder %s46_s14, %s46_s14 }
  0x2e   :  { %p1162_p7 = scmp.lt.s32.totalorder %s1160_s8, %s1156_s7 }
  0x30   :  { %p1163_p8 = por %p1162_p7, %p1161_p6 }
  0x32   :  { %p1164_p9 = pnand %p1163_p8, %p1157_p5 }
  0x34   :  { %1167 = shalt.err (!%p1164_p9)
}
  0x35   :  { %48 = dma.hbm_to_vmem [thread:$0]  %s1428_s2, 16, %s46_s14, [#allocation6]  }
  0x36   :  { %s1271_s10 = smov [#allocation8]   ;;  %s1168_s15 = scalar_lea.hbm %s1429_s3, 32 }
  0x37   :  { %s55_s11 = sshll.u32 %s1271_s10, 4  ;;  %p1169_p10 = scmp.ne.s32.totalorder %s1429_s3, %s1168_s15  ;;  %s56_s11 = int_to_ptr.vmem [resolvable:$true] %s55_s11 }
  0x38   :  { %p1172_p11 = scmp.lt.u32.totalorder %s1168_s15, %s1429_s3 }
  0x3a   :  { %p1174_p12 = pnand %p1172_p11, %p1169_p10 }
  0x3c   :  { %1177 = shalt.err (!%p1174_p12)
}
  0x3d   :  { %s1178_s20 = scalar_lea.vmem %s56_s11, 32  ;;  %p1183_p0 = scmp.lt.s32.totalorder %s56_s11, %s56_s11 }
  0x3e   :  { %p1179_p13 = scmp.ne.s32.totalorder %s56_s11, %s1178_s20  ;;  %p1184_p1 = scmp.lt.s32.totalorder %s1178_s20, %s1178_s20 }
  0x40   :  { %p1185_p2 = por %p1184_p1, %p1183_p0 }
  0x42   :  { %p1186_p3 = pnand %p1185_p2, %p1179_p13 }
  0x44   :  { %1189 = shalt.err (!%p1186_p3)
}
  0x45   :  { %58 = dma.hbm_to_vmem [thread:$0]  %s1429_s3, 32, %s56_s11, [#allocation9]  }
  0x46   :  { %1256 = dma.done.wait [#allocation3], 128  }
  0x47   :  { %1257 = vsyncadd [#allocation3], 4294967168 }
  0x48   :  { %1258 = dma.done.wait [#allocation6], 8208  }
  0x49   :  { %1259 = vsyncadd [#allocation6], 4294959088 }
  0x4a   :  { %1260 = dma.done.wait [#allocation9], 32  }
  0x4b   :  { %1261 = vsyncadd [#allocation9], 4294967264  ;;  %v1035_v0 = vld [vmem:[#allocation5 + $0x40] sm:$0xff]   ;;  %v1039_v4 = vld [vmem:[#allocation5 + $0x48] sm:$0xff]   ;;  %v1272_v22 = vmov 1966171168   ;;  %v213_v24 = vlaneseq }
  0x4c   :  { %v1036_v1 = vld [vmem:[#allocation5 + $0xc0] sm:$0xff]   ;;  %936 = vmatprep.subr.bf16.mxu0 %v1035_v0  ;;  %v1040_v5 = vld [vmem:[#allocation5 + $0xc8] sm:$0xff]   ;;  %v1043_v8 = vld [vmem:[#allocation5 + $0x50] sm:$0xff]   ;;  %v211_v23 = vunpack.c.l.s4 %v1272_v22  ;;  %vm819_vm0 = vcmask 254976   ;;  %s1273_s3 = smov 96   ;;  %s1274_s21 = smov [#allocation11]  }
  0x4d   :  { %v1037_v2 = vld [vmem:[#allocation5] sm:$0xff]   ;;  %958 = vmatprep.subr.bf16.mxu1 %v1036_v1  ;;  %v1041_v6 = vld [vmem:[#allocation5 + $0x8] sm:$0xff]   ;;  %v1044_v9 = vld [vmem:[#allocation5 + $0xd0] sm:$0xff]   ;;  %v214_v30 = vshrl.u32 %v213_v24, 7  ;;  %s843_s1 = sshll.u32 %s1274_s21, 4  ;;  %s1275_s22 = smov [#allocation10]   ;;  %s844_s1 = int_to_ptr.vmem [resolvable:$true] %s843_s1 }
  0x4e   :  { %v1038_v3 = vld [vmem:[#allocation5 + $0x80] sm:$0xff]   ;;  %937 = vmatpush3.bf16.msra.mxu0 %v1037_v2  ;;  %v1042_v7 = vld [vmem:[#allocation5 + $0x88] sm:$0xff]   ;;  %v1045_v10 = vld [vmem:[#allocation5 + $0x10] sm:$0xff]   ;;  %v212_v29 = vunpack.c.0.s8 %v211_v23  ;;  %s833_s23 = sshll.u32 %s1275_s22, 4  ;;  %s1276_s24 = smov [#allocation13]   ;;  %s1374_s23 = int_to_ptr.vmem [resolvable:$true] %s833_s23 }
  0x4f   :  { %959 = vmatpush3.bf16.msra.mxu1 %v1038_v3  ;;  %938 = vmatprep.subr.bf16.mxu0 %v1039_v4  ;;  %v1046_v11 = vld [vmem:[#allocation5 + $0x90] sm:$0xff]   ;;  %v1047_v12 = vld [vmem:[#allocation5 + $0x58] sm:$0xff]   ;;  %v1051_v16 = vld [vmem:[#allocation5 + $0x60] sm:$0xff]   ;;  %s853_s25 = sshll.u32 %s1276_s24, 4  ;;  %s1190_s26 = scalar_lea.vmem %s844_s1, 32  ;;  %s1378_s25 = int_to_ptr.vmem [resolvable:$true] %s853_s25 }
  0x50   :  { %960 = vmatprep.subr.bf16.mxu1 %v1040_v5  ;;  %v1048_v13 = vld [vmem:[#allocation5 + $0xd8] sm:$0xff]   ;;  %v1052_v17 = vld [vmem:[#allocation5 + $0xe0] sm:$0xff]   ;;  %v1055_v20 = vld [vmem:[#allocation5 + $0x68] sm:$0xff]   ;;  %v1360_v35 = vsub.s32 %v212_v29, %v214_v30  ;;  %p1191_p4 = scmp.ne.s32.totalorder %s844_s1, %s1190_s26  ;;  %p1195_p5 = scmp.lt.s32.totalorder %s844_s1, %s844_s1 }
  0x51   :  { %v1049_v14 = vld [vmem:[#allocation5 + $0x18] sm:$0xff]   ;;  %v1053_v18 = vld [vmem:[#allocation5 + $0x20] sm:$0xff]   ;;  %v1056_v21 = vld [vmem:[#allocation5 + $0xe8] sm:$0xff]   ;;  %p1196_p6 = scmp.lt.s32.totalorder %s1190_s26, %s1190_s26 }
  0x52   :  { %939 = vmatpush3.bf16.msra.mxu0 %v1041_v6  ;;  %v1050_v15 = vld [vmem:[#allocation5 + $0x98] sm:$0xff]   ;;  %v1054_v19 = vld [vmem:[#allocation5 + $0xa0] sm:$0xff]   ;;  %v1057_v25 = vld [vmem:[#allocation5 + $0x28] sm:$0xff]  }
  0x53   :  { %961 = vmatpush3.bf16.msra.mxu1 %v1042_v7  ;;  %940 = vmatprep.subr.bf16.mxu0 %v1043_v8  ;;  %v1058_v26 = vld [vmem:[#allocation5 + $0xa8] sm:$0xff]   ;;  %v1059_v27 = vld [vmem:[#allocation5 + $0x70] sm:$0xff]   ;;  %v1063_v33 = vld [vmem:[#allocation5 + $0x78] sm:$0xff]   ;;  %p1197_p7 = por %p1196_p6, %p1195_p5 }
  0x54   :  { %962 = vmatprep.subr.bf16.mxu1 %v1044_v9  ;;  %v1060_v28 = vld [vmem:[#allocation5 + $0xf0] sm:$0xff]   ;;  %v1064_v34 = vld [vmem:[#allocation5 + $0xf8] sm:$0xff]   ;;  %v1068_v41 = vld [vmem:[#allocation5 + $0x140] sm:$0xff]  }
  0x55   :  { %v1061_v31 = vld [vmem:[#allocation5 + $0x30] sm:$0xff]   ;;  %v1065_v36 = vld [vmem:[#allocation5 + $0x38] sm:$0xff]   ;;  %v1069_v42 = vld [vmem:[#allocation5 + $0x1c0] sm:$0xff]   ;;  %p1198_p8 = pnand %p1197_p7, %p1191_p4 }
  0x56   :  { %941 = vmatpush3.bf16.msra.mxu0 %v1045_v10  ;;  %v1062_v32 = vld [vmem:[#allocation5 + $0xb0] sm:$0xff]   ;;  %v1066_v37 = vld [vmem:[#allocation5 + $0xb8] sm:$0xff]   ;;  %v1070_v47 = vld [vmem:[#allocation5 + $0x100] sm:$0xff]  }
  0x57   :  { %963 = vmatpush3.bf16.msra.mxu1 %v1046_v11  ;;  %942 = vmatprep.subr.bf16.mxu0 %v1047_v12  ;;  %v72_v38 = vld [vmem:[#allocation2] sm:$0xff]  ;;  %v1072_v50 = vld [vmem:[#allocation5 + $0x148] sm:$0xff]   ;;  %v1071_v52 = vld [vmem:[#allocation5 + $0x180] sm:$0xff]  }
  0x58   :  { %964 = vmatprep.subr.bf16.mxu1 %v1048_v13  ;;  %v209_v39 = vcombine.high %v72_v38, %v72_v38  ;;  %v216_v40 = vrot.slane %v72_v38, %v1360_v35  ;;  %v1073_v54 = vld [vmem:[#allocation5 + $0x1c8] sm:$0xff]   ;;  %v1076_v57 = vld [vmem:[#allocation5 + $0x150] sm:$0xff]   ;;  %v1080_v61 = vld [vmem:[#allocation5 + $0x158] sm:$0xff]  }
  0x59   :  { %v1074_v55 = vld [vmem:[#allocation5 + $0x108] sm:$0xff]   ;;  %v1077_v59 = vld [vmem:[#allocation5 + $0x1d0] sm:$0xff]   ;;  %v1081_v63 = vld [vmem:[#allocation5 + $0x1d8] sm:$0xff]  }
  0x5a   :  { %943 = vmatpush3.bf16.msra.mxu0 %v1049_v14  ;;  %v224_v43 = vcombine.high %v216_v40, %v216_v40  ;;  %v232_v44 = vrot.slane %v216_v40, %v1360_v35  ;;  %v1365_v45 = vrot.slane %v209_v39, %v1360_v35  ;;  %v1075_v58 = vld [vmem:[#allocation5 + $0x188] sm:$0xff]   ;;  %v1078_v60 = vld [vmem:[#allocation5 + $0x110] sm:$0xff]   ;;  %v1082_v0 = vld [vmem:[#allocation5 + $0x118] sm:$0xff]  }
  0x5b   :  { %965 = vmatpush3.bf16.msra.mxu1 %v1050_v15  ;;  %944 = vmatprep.subr.bf16.mxu0 %v1051_v16  ;;  %v1079_v62 = vld [vmem:[#allocation5 + $0x190] sm:$0xff]   ;;  %v1084_v1 = vld [vmem:[#allocation5 + $0x160] sm:$0xff]   ;;  %v1083_v2 = vld [vmem:[#allocation5 + $0x198] sm:$0xff]  }
  0x5c   :  { %966 = vmatprep.subr.bf16.mxu1 %v1052_v17  ;;  %v246_v46 = vrot.slane %v224_v43, %v1360_v35  ;;  %v225_v48 = vcombine.high %v1365_v45, %v1365_v45  ;;  %v254_v49 = vcombine.high %v232_v44, %v232_v44  ;;  %v1085_v3 = vld [vmem:[#allocation5 + $0x1e0] sm:$0xff]   ;;  %v1088_v5 = vld [vmem:[#allocation5 + $0x168] sm:$0xff]   ;;  %v1092_v9 = vld [vmem:[#allocation5 + $0x170] sm:$0xff]   ;;  %v239_v17 = vrot.slane %v1365_v45, %v1360_v35 }
  0x5d   :  { %v1086_v4 = vld [vmem:[#allocation5 + $0x120] sm:$0xff]   ;;  %v1089_v7 = vld [vmem:[#allocation5 + $0x1e8] sm:$0xff]   ;;  %v1093_v11 = vld [vmem:[#allocation5 + $0x1f0] sm:$0xff]  }
  0x5e   :  { %945 = vmatpush3.bf16.msra.mxu0 %v1053_v18  ;;  %682 = vmatprep.mubr.bf16.mxu0 %v246_v46  ;;  %v256_v51 = vcombine.high %v246_v46, %v246_v46  ;;  %v253_v53 = vrot.slane %v225_v48, %v1360_v35  ;;  %v1087_v6 = vld [vmem:[#allocation5 + $0x1a0] sm:$0xff]   ;;  %v1090_v8 = vld [vmem:[#allocation5 + $0x128] sm:$0xff]   ;;  %v1094_v12 = vld [vmem:[#allocation5 + $0x130] sm:$0xff]  }
  0x5f   :  { %967 = vmatpush3.bf16.msra.mxu1 %v1054_v19  ;;  %946 = vmatprep.subr.bf16.mxu0 %v1055_v20  ;;  %v1091_v10 = vld [vmem:[#allocation5 + $0x1a8] sm:$0xff]   ;;  %v1096_v13 = vld [vmem:[#allocation5 + $0x178] sm:$0xff]   ;;  %v1095_v14 = vld [vmem:[#allocation5 + $0x1b0] sm:$0xff]   ;;  %v255_v19 = vcombine.high %v239_v17, %v239_v17 }
  0x60   :  { %968 = vmatprep.subr.bf16.mxu1 %v1056_v21  ;;  %722 = vmatprep.mubr.bf16.mxu1 %v256_v51  ;;  %v257_v56 = vcombine.high %v253_v53, %v253_v53  ;;  %v1097_v15 = vld [vmem:[#allocation5 + $0x1f8] sm:$0xff]   ;;  %v871_v21 = vld [vmem:[#allocation7] ss:$0 sm:$0xff] }
  0x61   :  { %v1098_v16 = vld [vmem:[#allocation5 + $0x138] sm:$0xff]  }
  0x62   :  { %947 = vmatpush3.bf16.msra.mxu0 %v1057_v25  ;;  %v1099_v18 = vld [vmem:[#allocation5 + $0x1b8] sm:$0xff]  }
  0x63   :  { %969 = vmatpush3.bf16.msra.mxu1 %v1058_v26  ;;  %948 = vmatprep.subr.bf16.mxu0 %v1059_v27 }
  0x64   :  { %970 = vmatprep.subr.bf16.mxu1 %v1060_v28 }
  0x66   :  { %949 = vmatpush3.bf16.msra.mxu0 %v1061_v31 }
  0x67   :  { %971 = vmatpush3.bf16.msra.mxu1 %v1062_v32  ;;  %950 = vmatprep.subr.bf16.mxu0 %v1063_v33 }
  0x68   :  { %972 = vmatprep.subr.bf16.mxu1 %v1064_v34 }
  0x6a   :  { %951 = vmatpush3.bf16.msra.mxu0 %v1065_v36 }
  0x6b   :  { %973 = vmatpush3.bf16.msra.mxu1 %v1066_v37  ;;  %980 = vmatprep.subr.bf16.mxu0 %v1068_v41 }
  0x6c   :  { %1002 = vmatprep.subr.bf16.mxu1 %v1069_v42 }
  0x6d   :  { %683 = vmatmul.mubr.bf16.vlgmr.msra.gmra.mrb[0].mxu0 %v232_v44 }
  0x6e   :  { %981 = vmatpush3.bf16.msra.mxu0 %v1070_v47  ;;  %723 = vmatmul.mubr.bf16.vlgmr.msra.gmra.mrb[0].mxu1 %v254_v49  ;;  %v810_v47 = vld [vmem:[#allocation8] sm:$0x3] }
  0x6f   :  { %982 = vmatprep.subr.bf16.mxu0 %v1072_v50  ;;  %1003 = vmatpush3.bf16.msra.mxu1 %v1071_v52 }
  0x70   :  { %762 = vmatprep.mubr.bf16.mxu0 %v253_v53  ;;  %1004 = vmatprep.subr.bf16.mxu1 %v1073_v54 }
  0x71   :  { %802 = vmatprep.mubr.bf16.mxu1 %v257_v56 }
  0x72   :  { %983 = vmatpush3.bf16.msra.mxu0 %v1074_v55 }
  0x73   :  { %984 = vmatprep.subr.bf16.mxu0 %v1076_v57  ;;  %1005 = vmatpush3.bf16.msra.mxu1 %v1075_v58 }
  0x74   :  { %1006 = vmatprep.subr.bf16.mxu1 %v1077_v59 }
  0x76   :  { %985 = vmatpush3.bf16.msra.mxu0 %v1078_v60 }
  0x77   :  { %986 = vmatprep.subr.bf16.mxu0 %v1080_v61  ;;  %1007 = vmatpush3.bf16.msra.mxu1 %v1079_v62 }
  0x78   :  { %1008 = vmatprep.subr.bf16.mxu1 %v1081_v63 }
  0x7a   :  { %987 = vmatpush3.bf16.msra.mxu0 %v1082_v0 }
  0x7b   :  { %988 = vmatprep.subr.bf16.mxu0 %v1084_v1  ;;  %1009 = vmatpush3.bf16.msra.mxu1 %v1083_v2 }
  0x7c   :  { %1010 = vmatprep.subr.bf16.mxu1 %v1085_v3 }
  0x7e   :  { %989 = vmatpush3.bf16.msra.mxu0 %v1086_v4 }
  0x7f   :  { %990 = vmatprep.subr.bf16.mxu0 %v1088_v5  ;;  %1011 = vmatpush3.bf16.msra.mxu1 %v1087_v6 }
  0x80   :  { %1012 = vmatprep.subr.bf16.mxu1 %v1089_v7 }
  0x82   :  { %991 = vmatpush3.bf16.msra.mxu0 %v1090_v8 }
  0x83   :  { %992 = vmatprep.subr.bf16.mxu0 %v1092_v9  ;;  %1013 = vmatpush3.bf16.msra.mxu1 %v1091_v10 }
  0x84   :  { %1014 = vmatprep.subr.bf16.mxu1 %v1093_v11 }
  0x86   :  { %993 = vmatpush3.bf16.msra.mxu0 %v1094_v12 }
  0x87   :  { %994 = vmatprep.subr.bf16.mxu0 %v1096_v13  ;;  %1015 = vmatpush3.bf16.msra.mxu1 %v1095_v14 }
  0x88   :  { %1016 = vmatprep.subr.bf16.mxu1 %v1097_v15 }
  0x8a   :  { %995 = vmatpush3.bf16.msra.mxu0 %v1098_v16 }
  0x8b   :  { %1017 = vmatpush3.bf16.msra.mxu1 %v1099_v18 }
  0x8d   :  { %763 = vmatmul.mubr.bf16.vlgmr.msra.gmra.mrb[4].mxu0 %v239_v17 }
  0x8e   :  { %803 = vmatmul.mubr.bf16.vlgmr.msra.gmra.mrb[4].mxu1 %v255_v19 }
 0x140   :  { %v952_v20 = vpop.f32.mrb[0].mxu0 }
 0x141   :  { %v953_v22 = vpop.f32.mrb[1].mxu0  ;;  %v974_v23 = vpop.f32.mrb[0].mxu1 }
 0x142   :  { %v954_v24 = vadd.f32 %v953_v22, %v952_v20  ;;  %v955_v25 = vpop.f32.mrb[2].mxu0  ;;  %v975_v26 = vpop.f32.mrb[1].mxu1 }
 0x143   :  { %v956_v27 = vpop.f32.mrb[3].mxu0  ;;  %v976_v29 = vadd.f32 %v975_v26, %v974_v23  ;;  %v977_v30 = vpop.f32.mrb[2].mxu1 }
 0x144   :  { %v685_v28 = vadd.f32 %v954_v24, %v871_v21  ;;  %v978_v31 = vpop.f32.mrb[3].mxu1 }
 0x146   :  { %v725_v32 = vadd.f32 %v976_v29, %v685_v28 }
 0x160   :  { %v996_v33 = vpop.f32.mrb[4].mxu0 }
 0x161   :  { %v997_v34 = vpop.f32.mrb[5].mxu0  ;;  %v1018_v35 = vpop.f32.mrb[4].mxu1 }
 0x162   :  { %v998_v36 = vadd.f32 %v997_v34, %v996_v33  ;;  %v999_v37 = vpop.f32.mrb[6].mxu0  ;;  %v1019_v38 = vpop.f32.mrb[5].mxu1 }
 0x163   :  { %v1000_v39 = vpop.f32.mrb[7].mxu0  ;;  %v1020_v41 = vadd.f32 %v1019_v38, %v1018_v35  ;;  %v1021_v42 = vpop.f32.mrb[6].mxu1 }
 0x164   :  { %v765_v40 = vadd.f32 %v998_v36, %v725_v32  ;;  %v1022_v43 = vpop.f32.mrb[7].mxu1 }
 0x166   :  { %v805_v44 = vadd.f32 %v1020_v41, %v765_v40 }
 0x168   :  { %v811_v45 = vmul.f32 1.442695, %v805_v44  ;;  %826 = vst.msk [vmem:[#allocation13] sm:$0x3] %vm819_vm0, %v805_v44 }
 0x16a   :  { %1100 = vpow2.f32 %v811_v45 }
 0x174   :  { %v1101_v46 = vpop.eup %1100 }
 0x175   :  { %814 = vrot.lane.b32.xlu0 %v1101_v46, %s1273_s3 }
 0x179   :  { %822 = vrot.lane.b32.xlu0 %v805_v44, %s1273_s3 }
 0x1e7   :  { %v815_v48 = vpop.permute.xlu0 %814 }
 0x1e8   :  { %v817_v49 = vmul.f32 %v815_v48, %v810_v47 }
 0x1ea   :  { %v818_v50 = vadd.f32 %v817_v49, %v805_v44 }
 0x1eb   :  { %v823_v51 = vpop.permute.xlu0 %822 }
 0x1ec   :  { %825 = vst.msk [vmem:[#allocation11] sm:$0x3] %vm819_vm0, %v823_v51  ;;  %820 = vst.msk [vmem:[#allocation10] sm:$0x3] %vm819_vm0, %v818_v50 }
 0x1ed   :  { %1201 = shalt.err (!%p1198_p8)
}
 0x1ee   :  { %s1202_s29 = scalar_lea.hbm %s1431_s5, 32 }
 0x1ef   :  { %p1203_p9 = scmp.ne.s32.totalorder %s1431_s5, %s1202_s29  ;;  %p1206_p10 = scmp.lt.u32.totalorder %s1202_s29, %s1431_s5 }
 0x1f1   :  { %p1208_p11 = pnand %p1206_p10, %p1203_p9 }
 0x1f3   :  { %1211 = shalt.err (!%p1208_p11)
}
 0x1f4   :  { %846 = dma.vmem_to_hbm [thread:$0]  %s844_s1, 32, %s1431_s5, [#allocation12]  }
 0x1f5   :  { %s1212_s11 = scalar_lea.vmem %s1374_s23, 32  ;;  %p1217_p13 = scmp.lt.s32.totalorder %s1374_s23, %s1374_s23 }
 0x1f6   :  { %p1213_p12 = scmp.ne.s32.totalorder %s1374_s23, %s1212_s11  ;;  %p1218_p0 = scmp.lt.s32.totalorder %s1212_s11, %s1212_s11 }
 0x1f8   :  { %p1219_p1 = por %p1218_p0, %p1217_p13 }
 0x1fa   :  { %p1220_p2 = pnand %p1219_p1, %p1213_p12 }
 0x1fc   :  { %1223 = shalt.err (!%p1220_p2)
}
 0x1fd   :  { %s1224_s15 = scalar_lea.hbm %s1430_s4, 32 }
 0x1fe   :  { %p1225_p3 = scmp.ne.s32.totalorder %s1430_s4, %s1224_s15  ;;  %p1228_p4 = scmp.lt.u32.totalorder %s1224_s15, %s1430_s4 }
 0x200   :  { %p1230_p5 = pnand %p1228_p4, %p1225_p3 }
 0x202   :  { %1233 = shalt.err (!%p1230_p5)
}
 0x203   :  { %836 = dma.vmem_to_hbm [thread:$0]  %s1374_s23, 32, %s1430_s4, [#allocation4]  }
 0x204   :  { %s1234_s2 = scalar_lea.vmem %s1378_s25, 32  ;;  %p1239_p7 = scmp.lt.s32.totalorder %s1378_s25, %s1378_s25 }
 0x205   :  { %p1235_p6 = scmp.ne.s32.totalorder %s1378_s25, %s1234_s2  ;;  %p1240_p8 = scmp.lt.s32.totalorder %s1234_s2, %s1234_s2 }
 0x207   :  { %p1241_p9 = por %p1240_p8, %p1239_p7 }
 0x209   :  { %p1242_p10 = pnand %p1241_p9, %p1235_p6 }
 0x20b   :  { %1245 = shalt.err (!%p1242_p10)
}
 0x20c   :  { %s1246_s21 = scalar_lea.hbm %s1432_s6, 32 }
 0x20d   :  { %p1247_p11 = scmp.ne.s32.totalorder %s1432_s6, %s1246_s21  ;;  %p1250_p12 = scmp.lt.u32.totalorder %s1246_s21, %s1432_s6 }
 0x20f   :  { %p1252_p13 = pnand %p1250_p12, %p1247_p11 }
 0x211   :  { %1255 = shalt.err (!%p1252_p13)
}
 0x212   :  { %856 = dma.vmem_to_hbm [thread:$0]  %s1378_s25, 32, %s1432_s6, [#allocation12]  }
 0x213   :  { %1262 = dma.done.wait [#allocation4], 32  }
 0x214   :  { %1263 = vsyncadd [#allocation4], 4294967264 }
 0x215   :  { %1264 = dma.done.wait [#allocation12], 64  }
 0x216   :  { %1265 = vsyncadd [#allocation12], 4294967232 }
 0x217   :  { %866 = vsyncpa [#allocation3], 1 }
 0x218   :  { %867 = vsyncpa [#allocation6], 1 }
 0x219   :  { %868 = vsyncpa [#allocation9], 1 }
 0x21a   :  { %869 = vsyncpa [#allocation4], 1 }
 0x21b   :  { %870 = vsyncpa [#allocation12], 1 }

</bundles_post_ra>
